<compile_context>
chip_gen: v7x
topology: tpu7x:2x2x1
jax: 0.10.0
libtpu: 0.0.40
codegen_flags: <defaults>
</compile_context>

<pallas_src>
import jax
import jax.numpy as jnp
from jax.experimental import pallas as pl
from jax.experimental.pallas import tpu as pltpu

IN_DIM = 64 * 9 * 12        # 6912 flattened input features
H1 = 8 * 9 * 12             # 864
H2 = 9 * 12                 # 108
NUM_CLASSES = 14
BN_EPS = 1e-5

# Lane-padded feature sizes (multiples of 128).
H1_PAD = 896                # 7 * 128
H2_PAD = 128
OUT_PAD = 128

# Layer-1 contraction tiling: 6912 = 2 * 3456 (3456 = 27 * 128).
# Fewer, larger K tiles amortize the ~0.35 us per-grid-step overhead while keeping
# the double-buffered w1 stream (~12 MiB) comfortably inside VMEM.
K_TILE = 3456
K_STEPS = IN_DIM // K_TILE


def _head_kernel(x_ref, w1_ref, s1_ref, t1_ref,
                 w2_ref, s2_ref, t2_ref,
                 w3_ref, b3_ref, o_ref, acc_ref):
    k = pl.program_id(0)

    @pl.when(k == 0)
    def _():
        acc_ref[...] = jnp.zeros_like(acc_ref)

    # Layer-1 partial matmul for this K chunk: bf16 operands, f32 accumulation (MXU).
    acc_ref[...] += jnp.dot(x_ref[...], w1_ref[...],
                            preferred_element_type=jnp.float32)

    @pl.when(k == pl.num_programs(0) - 1)
    def _():
        # Folded BN (scale/shift) + ReLU on the finished layer-1 accumulator.
        h1 = jnp.maximum(acc_ref[...] * s1_ref[...] + t1_ref[...], 0.0)
        # Layer 2: Linear + folded BN + ReLU (tiny, <0.25 MiB of weights).
        h2 = jnp.dot(h1.astype(jnp.bfloat16), w2_ref[...],
                     preferred_element_type=jnp.float32)
        h2 = jnp.maximum(h2 * s2_ref[...] + t2_ref[...], 0.0)
        # Layer 3: Linear (padded to 128 output lanes; sliced outside the kernel).
        out = jnp.dot(h2.astype(jnp.bfloat16), w3_ref[...],
                      preferred_element_type=jnp.float32) + b3_ref[...]
        o_ref[...] = out.astype(o_ref.dtype)


def linear_head_forward(x_nchw, prepared_params):
    """x_nchw: (B, 64, 9, 12) float32. Returns (B, 14) float32."""
    B = x_nchw.shape[0]
    # nn.Flatten(); cast to bf16 here so the kernel streams half the x bytes and
    # skips a per-step VPU cast.
    x = x_nchw.reshape(B, -1).astype(jnp.bfloat16)

    # Pad batch to a sublane multiple so (B, *) blocks satisfy the (8, 128) rule.
    b_pad = max(8, ((B + 7) // 8) * 8)
    if b_pad != B:
        x = jnp.pad(x, ((0, b_pad - B), (0, 0)))

    (w1, s1, t1, w2, s2, t2, w3, b3) = prepared_params

    flops = 2 * b_pad * (IN_DIM * H1_PAD + H1_PAD * H2_PAD + H2_PAD * OUT_PAD)
    bytes_accessed = (x.size * 2
                      + w1.size * 2 + w2.size * 2 + w3.size * 2
                      + (s1.size + t1.size + s2.size + t2.size + b3.size) * 4
                      + b_pad * OUT_PAD * 4)

    out_padded = pl.pallas_call(
        _head_kernel,
        out_shape=jax.ShapeDtypeStruct((b_pad, OUT_PAD), jnp.float32),
        grid_spec=pltpu.PrefetchScalarGridSpec(
            num_scalar_prefetch=0,
            grid=(K_STEPS,),
            in_specs=[
                pl.BlockSpec((b_pad, K_TILE), lambda k: (0, k)),    # x K-chunk (bf16)
                pl.BlockSpec((K_TILE, H1_PAD), lambda k: (k, 0)),   # w1 K-chunk (bf16)
                pl.BlockSpec((1, H1_PAD), lambda k: (0, 0)),        # s1
                pl.BlockSpec((1, H1_PAD), lambda k: (0, 0)),        # t1
                pl.BlockSpec((H1_PAD, H2_PAD), lambda k: (0, 0)),   # w2 (bf16)
                pl.BlockSpec((1, H2_PAD), lambda k: (0, 0)),        # s2
                pl.BlockSpec((1, H2_PAD), lambda k: (0, 0)),        # t2
                pl.BlockSpec((H2_PAD, OUT_PAD), lambda k: (0, 0)),  # w3 (bf16)
                pl.BlockSpec((1, OUT_PAD), lambda k: (0, 0)),       # b3
            ],
            out_specs=pl.BlockSpec((b_pad, OUT_PAD), lambda k: (0, 0)),
            scratch_shapes=[pltpu.VMEM((b_pad, H1_PAD), jnp.float32)],
        ),
        compiler_params=pltpu.CompilerParams(
            dimension_semantics=("arbitrary",),                 # K is a reduction axis
            vmem_limit_bytes=32 * 1024 * 1024,                  # working set ~12.5 MiB
        ),
        cost_estimate=pl.CostEstimate(flops=flops, transcendentals=0,
                                      bytes_accessed=bytes_accessed),
    )(x, w1, s1, t1, w2, s2, t2, w3, b3)

    return out_padded[:B, :NUM_CLASSES]


def init_params(key):
    """Deterministic init mirroring nn.Linear (U(-1/sqrt(fan_in), 1/sqrt(fan_in)))
    and fresh BatchNorm1d (gamma=1, beta=0, running_mean=0, running_var=1).
    Weights are stored (in_features, out_features) = transpose of PyTorch layout."""
    ks = jax.random.split(key, 6)

    def linear(kw, kb, fan_in, fan_out):
        bound = 1.0 / jnp.sqrt(jnp.float32(fan_in))
        w = jax.random.uniform(kw, (fan_in, fan_out), jnp.float32, -bound, bound)
        b = jax.random.uniform(kb, (1, fan_out), jnp.float32, -bound, bound)
        return w, b

    w1, b1 = linear(ks[0], ks[1], IN_DIM, H1)
    w2, b2 = linear(ks[2], ks[3], H1, H2)
    w3, b3 = linear(ks[4], ks[5], H2, NUM_CLASSES)

    def fold_bn(bias, n):
        gamma = jnp.ones((1, n), jnp.float32)
        beta = jnp.zeros((1, n), jnp.float32)
        running_mean = jnp.zeros((1, n), jnp.float32)
        running_var = jnp.ones((1, n), jnp.float32)
        scale = gamma / jnp.sqrt(running_var + BN_EPS)
        shift = beta + scale * (bias - running_mean)
        return scale, shift

    s1, t1 = fold_bn(b1, H1)
    s2, t2 = fold_bn(b2, H2)
    return (w1, s1, t1, w2, s2, t2, w3, b3)


def prepare_params(params):
    """Zero-pad feature dims to lane multiples and cast weights to bf16.
    Padding is exact: padded scale/shift/bias entries are 0, so padded lanes stay 0."""
    (w1, s1, t1, w2, s2, t2, w3, b3) = params

    def pad2(a, rows, cols):
        return jnp.pad(a, ((0, rows - a.shape[0]), (0, cols - a.shape[1])))

    w1p = pad2(w1, IN_DIM, H1_PAD).astype(jnp.bfloat16)
    s1p = pad2(s1, 1, H1_PAD)
    t1p = pad2(t1, 1, H1_PAD)
    w2p = pad2(w2, H1_PAD, H2_PAD).astype(jnp.bfloat16)
    s2p = pad2(s2, 1, H2_PAD)
    t2p = pad2(t2, 1, H2_PAD)
    w3p = pad2(w3, H2_PAD, OUT_PAD).astype(jnp.bfloat16)
    b3p = pad2(b3, 1, OUT_PAD)
    return (w1p, s1p, t1p, w2p, s2p, t2p, w3p, b3p)


def _reference_bf16(x_nchw, params):
    """Plain-JAX reference with matching bf16 weight/activation quantization."""
    (w1, s1, t1, w2, s2, t2, w3, b3) = params
    x = x_nchw.reshape(x_nchw.shape[0], -1)
    h1 = jnp.dot(x.astype(jnp.bfloat16), w1.astype(jnp.bfloat16),
                 preferred_element_type=jnp.float32)
    h1 = jnp.maximum(h1 * s1 + t1, 0.0)
    h2 = jnp.dot(h1.astype(jnp.bfloat16), w2.astype(jnp.bfloat16),
                 preferred_element_type=jnp.float32)
    h2 = jnp.maximum(h2 * s2 + t2, 0.0)
    return jnp.dot(h2.astype(jnp.bfloat16), w3.astype(jnp.bfloat16),
                   preferred_element_type=jnp.float32) + b3


def _reference_f32(x_nchw, params):
    """Full-precision reference (bounds the bf16 quantization error of the kernel)."""
    (w1, s1, t1, w2, s2, t2, w3, b3) = params
    x = x_nchw.reshape(x_nchw.shape[0], -1)
    h1 = jnp.maximum(jnp.dot(x, w1) * s1 + t1, 0.0)
    h2 = jnp.maximum(jnp.dot(h1, w2) * s2 + t2, 0.0)
    return jnp.dot(h2, w3) + b3


if __name__ == "__main__":
    key = jax.random.PRNGKey(0)
    k_param, k_x = jax.random.split(key)

    params = init_params(k_param)
    prepared = prepare_params(params)
    x = jax.random.normal(k_x, (8, 64, 9, 12), jnp.float32)   # NCHW input

    out = linear_head_forward(x, prepared)
    out = jax.block_until_ready(out)

    assert out.shape == (8, NUM_CLASSES), out.shape

    # Bit-level check against a reference that applies the same bf16 quantization.
    ref_bf16 = _reference_bf16(x, params)
    err_bf16 = float(jnp.max(jnp.abs(out - ref_bf16)))
    assert jnp.allclose(out, ref_bf16, atol=1e-2, rtol=1e-2), f"mismatch(bf16 ref): {err_bf16}"

    # Looser check against the true f32 model to bound bf16 quantization error.
    ref_f32 = _reference_f32(x, params)
    err_f32 = float(jnp.max(jnp.abs(out - ref_f32)))
    assert err_f32 < 5e-2, f"bf16 quantization error vs f32 too large: {err_f32}"

    print("KERNEL_OK")
</pallas_src>

<mosaic_0001>
module attributes {stable_mosaic.version = 11 : i64} {
  func.func @_head_kernel(%arg0: i32, %arg1: memref<8x3456xbf16, #tpu.memory_space<vmem>>, %arg2: memref<3456x896xbf16, #tpu.memory_space<vmem>>, %arg3: memref<1x896xf32, #tpu.memory_space<vmem>>, %arg4: memref<1x896xf32, #tpu.memory_space<vmem>>, %arg5: memref<896x128xbf16, #tpu.memory_space<vmem>>, %arg6: memref<1x128xf32, #tpu.memory_space<vmem>>, %arg7: memref<1x128xf32, #tpu.memory_space<vmem>>, %arg8: memref<128x128xbf16, #tpu.memory_space<vmem>>, %arg9: memref<1x128xf32, #tpu.memory_space<vmem>>, %arg10: memref<8x128xf32, #tpu.memory_space<vmem>>, %arg11: memref<8x896xf32, #tpu.memory_space<vmem>>) attributes {dimension_semantics = [#tpu.dimension_semantics<arbitrary>], iteration_bounds = array<i64: 2>, scalar_prefetch = 0 : i64, scratch_operands = 1 : i64, tpu.core_type = #tpu.core_type<tc>, window_params = [{transform_indices = @transform_0, window_bounds = array<i64: 8, 3456>}, {transform_indices = @transform_1, window_bounds = array<i64: 3456, 896>}, {pipeline_mode = #tpu.pipeline_mode<synchronous>, transform_indices = @transform_2, window_bounds = array<i64: 1, 896>}, {pipeline_mode = #tpu.pipeline_mode<synchronous>, transform_indices = @transform_3, window_bounds = array<i64: 1, 896>}, {pipeline_mode = #tpu.pipeline_mode<synchronous>, transform_indices = @transform_4, window_bounds = array<i64: 896, 128>}, {pipeline_mode = #tpu.pipeline_mode<synchronous>, transform_indices = @transform_5, window_bounds = array<i64: 1, 128>}, {pipeline_mode = #tpu.pipeline_mode<synchronous>, transform_indices = @transform_6, window_bounds = array<i64: 1, 128>}, {pipeline_mode = #tpu.pipeline_mode<synchronous>, transform_indices = @transform_7, window_bounds = array<i64: 128, 128>}, {pipeline_mode = #tpu.pipeline_mode<synchronous>, transform_indices = @transform_8, window_bounds = array<i64: 1, 128>}, {pipeline_mode = #tpu.pipeline_mode<synchronous>, transform_indices = @transform_9, window_bounds = array<i64: 8, 128>}]} {
    %c0_i32 = arith.constant 0 : i32
    %0 = arith.cmpi eq, %arg0, %c0_i32 : i32
    %1 = arith.extui %0 : i1 to i32
    %c0_i32_0 = arith.constant 0 : i32
    %2 = arith.cmpi ne, %1, %c0_i32_0 : i32
    scf.if %2 {
      %cst_9 = arith.constant 0.000000e+00 : f32
      %12 = vector.broadcast %cst_9 : f32 to vector<8x896xf32>
      %c0_10 = arith.constant 0 : index
      %c0_11 = arith.constant 0 : index
      %13 = vector.load %arg11[%c0_10, %c0_11] : memref<8x896xf32, #tpu.memory_space<vmem>>, vector<8x896xf32>
      tpu.vector_store %arg11[%c0_10, %c0_11], %12 {strides = array<i32>} : memref<8x896xf32, #tpu.memory_space<vmem>>, vector<8x896xf32>,
    } else {
    }
    %c0 = arith.constant 0 : index
    %c0_1 = arith.constant 0 : index
    %3 = vector.load %arg11[%c0, %c0_1] : memref<8x896xf32, #tpu.memory_space<vmem>>, vector<8x896xf32>
    %c0_2 = arith.constant 0 : index
    %c0_3 = arith.constant 0 : index
    %4 = vector.load %arg1[%c0_2, %c0_3] : memref<8x3456xbf16, #tpu.memory_space<vmem>>, vector<8x3456xbf16>
    %c0_4 = arith.constant 0 : index
    %c0_5 = arith.constant 0 : index
    %5 = vector.load %arg2[%c0_4, %c0_5] : memref<3456x896xbf16, #tpu.memory_space<vmem>>, vector<3456x896xbf16>
    %cst = arith.constant dense<0.000000e+00> : vector<8x896xf32>
    %6 = tpu.matmul %4, %5, %cst {dimension_numbers = #tpu.dot_dimension_numbers<[1], [0], [0], [1], [0, 0, 1, 1], [], []>} : vector<8x3456xbf16>, vector<3456x896xbf16>, vector<8x896xf32> -> vector<8x896xf32>
    %7 = arith.addf %3, %6 : vector<8x896xf32>
    %c0_6 = arith.constant 0 : index
    %c0_7 = arith.constant 0 : index
    %8 = vector.load %arg11[%c0_6, %c0_7] : memref<8x896xf32, #tpu.memory_space<vmem>>, vector<8x896xf32>
    tpu.vector_store %arg11[%c0_6, %c0_7], %7 {strides = array<i32>} : memref<8x896xf32, #tpu.memory_space<vmem>>, vector<8x896xf32>,
    %c1_i32 = arith.constant 1 : i32
    %9 = arith.cmpi eq, %arg0, %c1_i32 : i32
    %10 = arith.extui %9 : i1 to i32
    %c0_i32_8 = arith.constant 0 : i32
    %11 = arith.cmpi ne, %10, %c0_i32_8 : i32
    scf.if %11 {
      %c0_9 = arith.constant 0 : index
      %c0_10 = arith.constant 0 : index
      %12 = vector.load %arg11[%c0_9, %c0_10] : memref<8x896xf32, #tpu.memory_space<vmem>>, vector<8x896xf32>
      %c0_11 = arith.constant 0 : index
      %c0_12 = arith.constant 0 : index
      %13 = vector.load %arg3[%c0_11, %c0_12] : memref<1x896xf32, #tpu.memory_space<vmem>>, vector<1x896xf32>
      %14 = vector.broadcast %13 : vector<1x896xf32> to vector<8x896xf32>
      %15 = arith.mulf %12, %14 : vector<8x896xf32>
      %c0_13 = arith.constant 0 : index
      %c0_14 = arith.constant 0 : index
      %16 = vector.load %arg4[%c0_13, %c0_14] : memref<1x896xf32, #tpu.memory_space<vmem>>, vector<1x896xf32>
      %17 = vector.broadcast %16 : vector<1x896xf32> to vector<8x896xf32>
      %18 = arith.addf %15, %17 : vector<8x896xf32>
      %cst_15 = arith.constant 0.000000e+00 : f32
      %19 = vector.broadcast %cst_15 : f32 to vector<8x896xf32>
      %20 = arith.maximumf %18, %19 : vector<8x896xf32>
      %21 = arith.truncf %20 : vector<8x896xf32> to vector<8x896xbf16>
      %c0_16 = arith.constant 0 : index
      %c0_17 = arith.constant 0 : index
      %22 = vector.load %arg5[%c0_16, %c0_17] : memref<896x128xbf16, #tpu.memory_space<vmem>>, vector<896x128xbf16>
      %cst_18 = arith.constant dense<0.000000e+00> : vector<8x128xf32>
      %23 = tpu.matmul %21, %22, %cst_18 {dimension_numbers = #tpu.dot_dimension_numbers<[1], [0], [0], [1], [0, 0, 1, 1], [], []>} : vector<8x896xbf16>, vector<896x128xbf16>, vector<8x128xf32> -> vector<8x128xf32>
      %c0_19 = arith.constant 0 : index
      %c0_20 = arith.constant 0 : index
      %24 = vector.load %arg6[%c0_19, %c0_20] : memref<1x128xf32, #tpu.memory_space<vmem>>, vector<1x128xf32>
      %25 = vector.broadcast %24 : vector<1x128xf32> to vector<8x128xf32>
      %26 = arith.mulf %23, %25 : vector<8x128xf32>
      %c0_21 = arith.constant 0 : index
      %c0_22 = arith.constant 0 : index
      %27 = vector.load %arg7[%c0_21, %c0_22] : memref<1x128xf32, #tpu.memory_space<vmem>>, vector<1x128xf32>
      %28 = vector.broadcast %27 : vector<1x128xf32> to vector<8x128xf32>
      %29 = arith.addf %26, %28 : vector<8x128xf32>
      %cst_23 = arith.constant 0.000000e+00 : f32
      %30 = vector.broadcast %cst_23 : f32 to vector<8x128xf32>
      %31 = arith.maximumf %29, %30 : vector<8x128xf32>
      %32 = arith.truncf %31 : vector<8x128xf32> to vector<8x128xbf16>
      %c0_24 = arith.constant 0 : index
      %c0_25 = arith.constant 0 : index
      %33 = vector.load %arg8[%c0_24, %c0_25] : memref<128x128xbf16, #tpu.memory_space<vmem>>, vector<128x128xbf16>
      %cst_26 = arith.constant dense<0.000000e+00> : vector<8x128xf32>
      %34 = tpu.matmul %32, %33, %cst_26 {dimension_numbers = #tpu.dot_dimension_numbers<[1], [0], [0], [1], [0, 0, 1, 1], [], []>} : vector<8x128xbf16>, vector<128x128xbf16>, vector<8x128xf32> -> vector<8x128xf32>
      %c0_27 = arith.constant 0 : index
      %c0_28 = arith.constant 0 : index
      %35 = vector.load %arg9[%c0_27, %c0_28] : memref<1x128xf32, #tpu.memory_space<vmem>>, vector<1x128xf32>
      %36 = vector.broadcast %35 : vector<1x128xf32> to vector<8x128xf32>
      %37 = arith.addf %34, %36 : vector<8x128xf32>
      %c0_29 = arith.constant 0 : index
      %c0_30 = arith.constant 0 : index
      %38 = vector.load %arg10[%c0_29, %c0_30] : memref<8x128xf32, #tpu.memory_space<vmem>>, vector<8x128xf32>
      tpu.vector_store %arg10[%c0_29, %c0_30], %37 {strides = array<i32>} : memref<8x128xf32, #tpu.memory_space<vmem>>, vector<8x128xf32>,
    } else {
    }
    return
  }
  func.func @transform_0(%arg0: i32) -> (i32, i32) {
    %c0_i32 = arith.constant 0 : i32
    %c0_i32_0 = arith.constant 0 : i32
    return %c0_i32, %arg0 : i32, i32
  }
  func.func @transform_1(%arg0: i32) -> (i32, i32) {
    %c0_i32 = arith.constant 0 : i32
    %c0_i32_0 = arith.constant 0 : i32
    return %arg0, %c0_i32 : i32, i32
  }
  func.func @transform_2(%arg0: i32) -> (i32, i32) {
    %c0_i32 = arith.constant 0 : i32
    %c0_i32_0 = arith.constant 0 : i32
    %c0_i32_1 = arith.constant 0 : i32
    return %c0_i32, %c0_i32_0 : i32, i32
  }
  func.func @transform_3(%arg0: i32) -> (i32, i32) {
    %c0_i32 = arith.constant 0 : i32
    %c0_i32_0 = arith.constant 0 : i32
    %c0_i32_1 = arith.constant 0 : i32
    return %c0_i32, %c0_i32_0 : i32, i32
  }
  func.func @transform_4(%arg0: i32) -> (i32, i32) {
    %c0_i32 = arith.constant 0 : i32
    %c0_i32_0 = arith.constant 0 : i32
    %c0_i32_1 = arith.constant 0 : i32
    return %c0_i32, %c0_i32_0 : i32, i32
  }
  func.func @transform_5(%arg0: i32) -> (i32, i32) {
    %c0_i32 = arith.constant 0 : i32
    %c0_i32_0 = arith.constant 0 : i32
    %c0_i32_1 = arith.constant 0 : i32
    return %c0_i32, %c0_i32_0 : i32, i32
  }
  func.func @transform_6(%arg0: i32) -> (i32, i32) {
    %c0_i32 = arith.constant 0 : i32
    %c0_i32_0 = arith.constant 0 : i32
    %c0_i32_1 = arith.constant 0 : i32
    return %c0_i32, %c0_i32_0 : i32, i32
  }
  func.func @transform_7(%arg0: i32) -> (i32, i32) {
    %c0_i32 = arith.constant 0 : i32
    %c0_i32_0 = arith.constant 0 : i32
    %c0_i32_1 = arith.constant 0 : i32
    return %c0_i32, %c0_i32_0 : i32, i32
  }
  func.func @transform_8(%arg0: i32) -> (i32, i32) {
    %c0_i32 = arith.constant 0 : i32
    %c0_i32_0 = arith.constant 0 : i32
    %c0_i32_1 = arith.constant 0 : i32
    return %c0_i32, %c0_i32_0 : i32, i32
  }
  func.func @transform_9(%arg0: i32) -> (i32, i32) {
    %c0_i32 = arith.constant 0 : i32
    %c0_i32_0 = arith.constant 0 : i32
    %c0_i32_1 = arith.constant 0 : i32
    return %c0_i32, %c0_i32_0 : i32, i32
  }
}

</mosaic_0001>

<bundles_post_ra>
// kernel: tpu_custom_call.1
= control target key start
LH: loop header
LB: loop body
LE: loop exit
PB: predicated region body
PF: predicated region fallthrough
CT: control target
= control target key end

     0   :  { %s20597_s0 = inlined_call_operand.hbm [shape: bf16[8,6912], index: 0, kind: input, shape index: {}]   ;;  %s20598_s1 = inlined_call_operand.hbm [shape: bf16[6912,896], index: 1, kind: input, shape index: {}]   ;;  %s20599_s2 = inlined_call_operand.hbm [shape: f32[1,896], index: 2, kind: input, shape index: {}]   ;;  %s20600_s3 = inlined_call_operand.hbm [shape: f32[1,896], index: 3, kind: input, shape index: {}]   ;;  %s20601_s4 = inlined_call_operand.hbm [shape: bf16[896,128], index: 4, kind: input, shape index: {}]   ;;  %s20602_s5 = inlined_call_operand.hbm [shape: f32[1,128], index: 5, kind: input, shape index: {}]   ;;  %s20603_s6 = inlined_call_operand.hbm [shape: f32[1,128], index: 6, kind: input, shape index: {}]   ;;  %s20604_s7 = inlined_call_operand.hbm [shape: bf16[128,128], index: 7, kind: input, shape index: {}]   ;;  %s20605_s8 = inlined_call_operand.hbm [shape: f32[1,128], index: 8, kind: input, shape index: {}]   ;;  %s20606_s9 = inlined_call_operand.hbm [shape: f32[8,128], index: 9, kind: output, shape index: {}]  }
   0x1   :  { %20609 = sst [smem:[#allocation26_spill]] %s20597_s0 }
   0x2   :  { %20610 = sst [smem:[#allocation27_spill]] %s20599_s2 }
   0x3   :  { %14 = vsyncpa [#allocation4], 0 }
   0x4   :  { %16 = vsyncpa [#allocation4 + $0x1], 0 }
   0x5   :  { %17 = vsyncpa [#allocation7], 0 }
   0x6   :  { %19 = vsyncpa [#allocation7 + $0x1], 0 }
   0x7   :  { %20 = vsyncpa [#allocation10], 0 }
   0x8   :  { %21 = vsyncpa [#allocation13], 0 }
   0x9   :  { %22 = vsyncpa [#allocation16], 0 }
   0xa   :  { %23 = vsyncpa [#allocation5], 0  ;;  %s18272_s30 = smov 0   ;;  %s18274_s10 = smov 0  }
   0xb   :  { %s18276_s11 = smov 0   ;;  %s18278_s12 = smov 0  }
   0xc LB: > { %s18202_s13 = smov [#allocation8]   ;;  %s18293_s15 = sadd.s32 4294967295, %s18200_s12   ;;  %s18200_s12 = sphi %s18278_s12, %s20632_s12   ;;  %s18196_s11 = sphi %s18276_s11, %s20631_s11   ;;  %s18192_s10 = sphi %s18274_s10, %s20630_s10   ;;  %s18188_s30 = sphi %s18272_s30, %s20629_s30  }
   0xd   : > { %s267_s14 = sshll.u32 %s18202_s13, 4  ;;  %p13397_p0 = scmp.ge.s32.totalorder %s18200_s12, 1  ;;  %s268_s14 = int_to_ptr.vmem [resolvable:$true] %s267_s14 }
   0xe   : > { %p20607_p1 = scmp.eq.s32.totalorder %s18293_s15, 0  ;;  %p254_p2 = scmp.lt.s32.totalorder %s18200_s12, 3 }
   0xf   : > { %s18203_s17 = smov [#allocation9]   ;;  %s18204_s20 = smov [#allocation12]  }
  0x10   : > { %p18299_p4 = pnand %p13397_p0, %p254_p2  ;;  %s278_s18 = sshll.u32 %s18203_s17, 4  ;;  %s18305_s18 = int_to_ptr.vmem [resolvable:$true] %s278_s18 }
  0x11   : > { %s302_s21 = sshll.u32 %s18204_s20, 4  ;;  %s20613_s2 = sld [smem:[#allocation27_spill]]  ;;  %s18313_s21 = int_to_ptr.vmem [resolvable:$true] %s302_s21 }
  0x12   : > { %s20611_s16 = scalar_select %p18299_p4, 1, 0 }
  0x13   : > { %p15509_p5 = pneg %p18299_p4 }
  0x15   : > { %p18309_p6 = pnand %p15509_p5, %p20607_p1 }
  0x17   : > { %s17860_s24 = scalar_lea.hbm %s20613_s2, 112  ;;  %p18323_p8 = pneg %p18309_p6 }
  0x18   : > { %p17861_p7 = scmp.ne.s32.totalorder %s20613_s2, %s17860_s24  ;;  %p17867_p11 = scmp.lt.u32.totalorder %s17860_s24, %s20613_s2 }
  0x1a   : > { %p17863_p9 = pnand %p18323_p8, %p17861_p7 }
  0x1c   : > { %p17864_p10 = pneg %p17863_p9 }
  0x1e   : > { %p17869_p12 = pnand %p17867_p11, %p17864_p10 }
  0x20   : > { %17872 = shalt.err (!%p17869_p12)
}
  0x21   : > { %s17873_s13 = scalar_lea.vmem %s268_s14, 112  ;;  %s17880_s17 = scalar_lea.vmem %s268_s14, 128 }
  0x22   : > { %p17874_p13 = scmp.ne.s32.totalorder %s268_s14, %s17873_s13  ;;  %p17881_p5 = scmp.lt.s32.totalorder %s268_s14, %s268_s14 }
  0x23   : > { %p17882_p3 = scmp.lt.s32.totalorder %s17880_s17, %s17873_s13 }
  0x24   : > { %p17876_p0 = pnand %p17874_p13, %p18323_p8 }
  0x25   : > { %p17883_p1 = por %p17882_p3, %p17881_p5 }
  0x26   : > { %p17877_p2 = pneg %p17876_p0 }
  0x28   : > { %p17884_p4 = pnand %p17883_p1, %p17877_p2 }
  0x2a   : > { %17887 = shalt.err (!%p17884_p4)
}
  0x2b   : > { %15512 = dma.hbm_to_vmem [thread:$0]  (!%p18309_p6), %s20613_s2, 112, %s268_s14, [#allocation7]  }
  0x2c   : > { %s17888_s25 = scalar_lea.hbm %s20600_s3, 112 }
  0x2d   : > { %p17889_p7 = scmp.ne.s32.totalorder %s20600_s3, %s17888_s25  ;;  %p17895_p1 = scmp.lt.u32.totalorder %s17888_s25, %s20600_s3 }
  0x2f   : > { %p17891_p9 = pnand %p17889_p7, %p18323_p8 }
  0x31   : > { %p17892_p3 = pneg %p17891_p9 }
  0x33   : > { %p17897_p4 = pnand %p17895_p1, %p17892_p3 }
  0x35   : > { %17900 = shalt.err (!%p17897_p4)
}
  0x36   : > { %s17901_s14 = scalar_lea.vmem %s18305_s18, 112  ;;  %s17908_s17 = scalar_lea.vmem %s18305_s18, 128 }
  0x37   : > { %p17902_p10 = scmp.ne.s32.totalorder %s18305_s18, %s17901_s14  ;;  %p17909_p13 = scmp.lt.s32.totalorder %s18305_s18, %s18305_s18 }
  0x38   : > { %p17910_p0 = scmp.lt.s32.totalorder %s17908_s17, %s17901_s14 }
  0x39   : > { %p17904_p11 = pnand %p17902_p10, %p18323_p8 }
  0x3a   : > { %p17911_p2 = por %p17910_p0, %p17909_p13 }
  0x3b   : > { %p17905_p12 = pneg %p17904_p11 }
  0x3d   : > { %p17912_p5 = pnand %p17911_p2, %p17905_p12 }
  0x3f   : > { %17915 = shalt.err (!%p17912_p5)
}
  0x40   : > { %15515 = dma.hbm_to_vmem [thread:$0]  (!%p18309_p6), %s20600_s3, 112, %s18305_s18, [#allocation10]  }
  0x41   : > { %s17916_s25 = scalar_lea.hbm %s20602_s5, 16 }
  0x42   : > { %p17917_p7 = scmp.ne.s32.totalorder %s20602_s5, %s17916_s25  ;;  %p17923_p1 = scmp.lt.u32.totalorder %s17916_s25, %s20602_s5 }
  0x44   : > { %p17919_p9 = pnand %p17917_p7, %p18323_p8 }
  0x46   : > { %p17920_p3 = pneg %p17919_p9 }
  0x48   : > { %p17925_p4 = pnand %p17923_p1, %p17920_p3 }
  0x4a   : > { %17928 = shalt.err (!%p17925_p4)
}
  0x4b   : > { %s17929_s18 = scalar_lea.vmem %s18313_s21, 16  ;;  %s17936_s14 = scalar_lea.vmem %s18313_s21, 32 }
  0x4c   : > { %p17930_p10 = scmp.ne.s32.totalorder %s18313_s21, %s17929_s18  ;;  %p17937_p13 = scmp.lt.s32.totalorder %s18313_s21, %s18313_s21 }
  0x4d   : > { %p17938_p0 = scmp.lt.s32.totalorder %s17936_s14, %s17929_s18 }
  0x4e   : > { %p17932_p11 = pnand %p17930_p10, %p18323_p8 }
  0x4f   : > { %p17939_p2 = por %p17938_p0, %p17937_p13 }
  0x50   : > { %p17933_p12 = pneg %p17932_p11 }
  0x52   : > { %p17940_p5 = pnand %p17939_p2, %p17933_p12 }
  0x54   : > { %17943 = shalt.err (!%p17940_p5)
}
  0x55   : > { %15521 = dma.hbm_to_vmem [thread:$0]  (!%p18309_p6), %s20602_s5, 16, %s18313_s21, [#allocation13]  }
  0x56   : > { %s18205_s22 = smov [#allocation15]   ;;  %s18206_s24 = smov [#allocation11]  }
  0x57   : > { %s323_s23 = sshll.u32 %s18205_s22, 4  ;;  %s288_s25 = sshll.u32 %s18206_s24, 4  ;;  %s324_s23 = int_to_ptr.vmem [resolvable:$true] %s323_s23  ;;  %s18387_s25 = int_to_ptr.vmem [resolvable:$true] %s288_s25 }
  0x58   : > { %s17944_s29 = scalar_lea.hbm %s20604_s7, 1024 }
  0x59   : > { %p17945_p7 = scmp.ne.s32.totalorder %s20604_s7, %s17944_s29  ;;  %p17951_p1 = scmp.lt.u32.totalorder %s17944_s29, %s20604_s7 }
  0x5b   : > { %p17947_p9 = pnand %p17945_p7, %p18323_p8 }
  0x5d   : > { %p17948_p3 = pneg %p17947_p9 }
  0x5f   : > { %p17953_p4 = pnand %p17951_p1, %p17948_p3 }
  0x61   : > { %17956 = shalt.err (!%p17953_p4)
}
  0x62   : > { %s17957_s17 = scalar_lea.vmem %s324_s23, 1024  ;;  %p17965_p13 = scmp.lt.s32.totalorder %s324_s23, %s324_s23 }
  0x63   : > { %p17958_p10 = scmp.ne.s32.totalorder %s324_s23, %s17957_s17  ;;  %p17966_p0 = scmp.lt.s32.totalorder %s17957_s17, %s17957_s17 }
  0x65   : > { %p17960_p11 = pnand %p17958_p10, %p18323_p8  ;;  %p17967_p2 = por %p17966_p0, %p17965_p13 }
  0x67   : > { %p17961_p12 = pneg %p17960_p11 }
  0x69   : > { %p17968_p5 = pnand %p17967_p2, %p17961_p12 }
  0x6b   : > { %17971 = shalt.err (!%p17968_p5)
}
  0x6c   : > { %s18207_s20 = smov 64   ;;  %s18208_s22 = smov 4  }
  0x6d   : > { %15527 = dma.hbm_to_vmem [thread:$0]  (!%p18309_p6), %s20604_s7, 1024, %s324_s23, [#allocation16], %s18207_s20, %s18207_s20, %s18208_s22  }
  0x6e   : > { %s17972_s13 = scalar_lea.hbm %s20601_s4, 7168 }
  0x6f   : > { %p17973_p7 = scmp.ne.s32.totalorder %s20601_s4, %s17972_s13  ;;  %p17979_p1 = scmp.lt.u32.totalorder %s17972_s13, %s20601_s4 }
  0x71   : > { %p17975_p9 = pnand %p17973_p7, %p18323_p8 }
  0x73   : > { %p17976_p3 = pneg %p17975_p9 }
  0x75   : > { %p17981_p4 = pnand %p17979_p1, %p17976_p3 }
  0x77   : > { %17984 = shalt.err (!%p17981_p4)
}
  0x78   : > { %s17985_s23 = scalar_lea.vmem %s18387_s25, 7168  ;;  %p17993_p13 = scmp.lt.s32.totalorder %s18387_s25, %s18387_s25 }
  0x79   : > { %p17986_p10 = scmp.ne.s32.totalorder %s18387_s25, %s17985_s23  ;;  %p17994_p0 = scmp.lt.s32.totalorder %s17985_s23, %s17985_s23 }
  0x7b   : > { %p17988_p11 = pnand %p17986_p10, %p18323_p8  ;;  %p17995_p2 = por %p17994_p0, %p17993_p13 }
  0x7d   : > { %p17989_p12 = pneg %p17988_p11 }
  0x7f   : > { %p17996_p5 = pnand %p17995_p2, %p17989_p12 }
  0x81   : > { %17999 = shalt.err (!%p17996_p5)
}
  0x82   : > { %15518 = dma.hbm_to_vmem [thread:$0]  (!%p18309_p6), %s20601_s4, 7168, %s18387_s25, [#allocation10], %s18207_s20, %s18207_s20, %s18208_s22  }
  0x83   : > { %s18209_s28 = smov [#allocation14]   ;;  %s18210_s13 = smov [#allocation17]  }
  0x84   : > { %s313_s29 = sshll.u32 %s18209_s28, 4  ;;  %s337_s18 = sshll.u32 %s18210_s13, 4  ;;  %s314_s29 = int_to_ptr.vmem [resolvable:$true] %s313_s29  ;;  %s18430_s18 = int_to_ptr.vmem [resolvable:$true] %s337_s18 }
  0x85   : > { %s18000_s17 = scalar_lea.hbm %s20603_s6, 16 }
  0x86   : > { %p18001_p7 = scmp.ne.s32.totalorder %s20603_s6, %s18000_s17  ;;  %p18007_p1 = scmp.lt.u32.totalorder %s18000_s17, %s20603_s6 }
  0x88   : > { %p18003_p9 = pnand %p18001_p7, %p18323_p8 }
  0x8a   : > { %p18004_p3 = pneg %p18003_p9 }
  0x8c   : > { %p18009_p4 = pnand %p18007_p1, %p18004_p3 }
  0x8e   : > { %18012 = shalt.err (!%p18009_p4)
}
  0x8f   : > { %s18013_s20 = scalar_lea.vmem %s314_s29, 16  ;;  %s18020_s22 = scalar_lea.vmem %s314_s29, 32 }
  0x90   : > { %p18014_p10 = scmp.ne.s32.totalorder %s314_s29, %s18013_s20  ;;  %p18021_p13 = scmp.lt.s32.totalorder %s314_s29, %s314_s29 }
  0x91   : > { %p18022_p0 = scmp.lt.s32.totalorder %s18020_s22, %s18013_s20 }
  0x92   : > { %p18016_p11 = pnand %p18014_p10, %p18323_p8 }
  0x93   : > { %p18023_p2 = por %p18022_p0, %p18021_p13 }
  0x94   : > { %p18017_p12 = pneg %p18016_p11 }
  0x96   : > { %p18024_p5 = pnand %p18023_p2, %p18017_p12 }
  0x98   : > { %18027 = shalt.err (!%p18024_p5)
}
  0x99   : > { %15524 = dma.hbm_to_vmem [thread:$0]  (!%p18309_p6), %s20603_s6, 16, %s314_s29, [#allocation13]  }
  0x9a   : > { %s18028_s14 = scalar_lea.hbm %s20605_s8, 16 }
  0x9b   : > { %p18029_p7 = scmp.ne.s32.totalorder %s20605_s8, %s18028_s14  ;;  %p18035_p1 = scmp.lt.u32.totalorder %s18028_s14, %s20605_s8 }
  0x9d   : > { %p18031_p9 = pnand %p18029_p7, %p18323_p8 }
  0x9f   : > { %p18032_p3 = pneg %p18031_p9 }
  0xa1   : > { %p18037_p4 = pnand %p18035_p1, %p18032_p3 }
  0xa3   : > { %18040 = shalt.err (!%p18037_p4)
}
  0xa4   : > { %s18041_s29 = scalar_lea.vmem %s18430_s18, 16  ;;  %s18048_s25 = scalar_lea.vmem %s18430_s18, 32 }
  0xa5   : > { %p18042_p10 = scmp.ne.s32.totalorder %s18430_s18, %s18041_s29  ;;  %p18049_p13 = scmp.lt.s32.totalorder %s18430_s18, %s18430_s18 }
  0xa6   : > { %p18050_p0 = scmp.lt.s32.totalorder %s18048_s25, %s18041_s29 }
  0xa7   : > { %p18044_p11 = pnand %p18042_p10, %p18323_p8 }
  0xa8   : > { %p18051_p2 = por %p18050_p0, %p18049_p13 }
  0xa9   : > { %p18045_p12 = pneg %p18044_p11 }
  0xab   : > { %p18052_p5 = pnand %p18051_p2, %p18045_p12 }
  0xad   : > { %18055 = shalt.err (!%p18052_p5)
}
  0xae   : > { %15530 = dma.hbm_to_vmem [thread:$0]  (!%p18309_p6), %s20605_s8, 16, %s18430_s18, [#allocation16]  }
  0xaf   : > { %s18475_s27 = sadd.s32 1, %s18200_s12   ;;  %s36_s19 = sadd.s32 1, %s18196_s11 }
  0xb0   : > { %s33_s2 = ssub.s32 %s18200_s12, %s18475_s27  ;;  %p43_p8 = scmp.ne.s32.totalorder %s18196_s11, %s18192_s10 }
  0xb1   : > { %p34_p7 = scmp.eq.s32.totalorder %s33_s2, 0  ;;  %p44_p9 = scmp.eq.s32.totalorder %s18200_s12, 0 }
  0xb2   : > { %p49_p3 = scmp.ne.s32.totalorder %s18192_s10, %s18188_s30  ;;  %p15545_p1 = scmp.lt.s32.totalorder %s18200_s12, 2 }
  0xb3   : > { %s18487_s26 = scalar_select %p34_p7, %s18196_s11, %s36_s19  }
  0xb4   : > { %p45_p4 = por %p44_p9, %p43_p8  ;;  %p20615_p10 = scmp.eq.s32.totalorder %s18293_s15, 0 }
  0xb5   : > { %s18496_s13 = sand.u32 1, %s18196_s11   ;;  %s15028_s18 = smul.u32 1728, %s18200_s12 }
  0xb6   : > { %p18491_p11 = por %p20615_p10, %p49_p3  ;;  %s15468_s14 = smul.u32 108, %s18496_s13 }
  0xb7   : > { %s20617_s0 = sld [smem:[#allocation26_spill]]  ;;  %p18505_p6 = pnand %p15545_p1, %p45_p4 }
  0xb8   : > { %s15469_s24 = smul.u32 12096, %s18496_s13  ;;  %s352_s29 = scalar_lea.vmem [#allocation3], %s15468_s14 }
  0xb9   : > { %s360_s25 = sshll.u32 %s352_s29, 4  ;;  %s349_s20 = scalar_lea.sflag [#allocation4], %s18496_s13  ;;  %s18510_s25 = int_to_ptr.vmem [resolvable:$true] %s360_s25 }
  0xba   : > { %p18058_p13 = pneg %p18505_p6 }
  0xbd   : > { %s18503_s30 = scalar_lea.hbm %s20617_s0, %s15028_s18  ;;  %s18061_s18 = scalar_lea.hbm %s20617_s0, 3456 }
  0xbe   : > { %s18056_s22 = scalar_lea.hbm %s18503_s30, 1728  ;;  %p18062_p5 = scmp.lt.u32.totalorder %s18503_s30, %s20617_s0 }
  0xbf   : > { %p18057_p12 = scmp.ne.s32.totalorder %s18503_s30, %s18056_s22  ;;  %p18063_p8 = scmp.lt.u32.totalorder %s18061_s18, %s18056_s22 }
  0xc0   : > { %p18065_p9 = scmp.lt.u32.totalorder %s18056_s22, %s18503_s30 }
  0xc1   : > { %p18059_p0 = pnand %p18058_p13, %p18057_p12  ;;  %p18064_p7 = por %p18063_p8, %p18062_p5 }
  0xc3   : > { %p18060_p2 = pneg %p18059_p0  ;;  %p18066_p3 = por %p18065_p9, %p18064_p7 }
  0xc5   : > { %p18067_p1 = pnand %p18066_p3, %p18060_p2 }
  0xc7   : > { %18070 = shalt.err (!%p18067_p1)
}
  0xc8   : > { %s18071_s14 = scalar_lea.vmem %s18510_s25, 1728  ;;  %s18211_s29 = smov [#allocation3]  }
  0xc9   : > { %p18072_p4 = scmp.ne.s32.totalorder %s18510_s25, %s18071_s14  ;;  %s18076_s19 = sshll.u32 %s18211_s29, 4  ;;  %s18077_s19 = int_to_ptr.vmem [resolvable:$false] %s18076_s19 }
  0xca   : > { %s18078_s2 = scalar_lea.vmem %s18077_s19, 3456  ;;  %p18079_p0 = scmp.lt.s32.totalorder %s18510_s25, %s18077_s19 }
  0xcb   : > { %p18074_p10 = pnand %p18072_p4, %p18058_p13  ;;  %p18080_p5 = scmp.lt.s32.totalorder %s18078_s2, %s18071_s14 }
  0xcd   : > { %p18075_p12 = pneg %p18074_p10  ;;  %p18081_p8 = por %p18080_p5, %p18079_p0 }
  0xcf   : > { %p18082_p7 = pnand %p18081_p8, %p18075_p12 }
  0xd1   : > { %18085 = shalt.err (!%p18082_p7)
}
  0xd2   : > { %15534 = dma.hbm_to_vmem [thread:$0]  (!%p18505_p6), %s18503_s30, 1728, %s18510_s25, %s349_s20  }
  0xd3   : > { %s371_s22 = scalar_lea.vmem [#allocation6], %s15469_s24  ;;  %s367_s21 = sand.u32 1, %s18200_s12  }
  0xd4   : > { %s379_s18 = sshll.u32 %s371_s22, 4  ;;  %s15546_s17 = smul.u32 193536, %s18200_s12  ;;  %s18541_s18 = int_to_ptr.vmem [resolvable:$true] %s379_s18 }
  0xd5   : > { %s18549_s2 = scalar_lea.sflag [#allocation7], %s367_s21  ;;  %s18091_s12 = scalar_lea.hbm %s20598_s1, 387072 }
  0xd6   : > { %s18547_s19 = scalar_lea.hbm %s20598_s1, %s15546_s17 }
  0xd7   : > { %s18086_s0 = scalar_lea.hbm %s18547_s19, 193536  ;;  %p18092_p1 = scmp.lt.u32.totalorder %s18547_s19, %s20598_s1 }
  0xd8   : > { %p18087_p2 = scmp.ne.s32.totalorder %s18547_s19, %s18086_s0  ;;  %p18093_p4 = scmp.lt.u32.totalorder %s18091_s12, %s18086_s0 }
  0xd9   : > { %p18095_p12 = scmp.lt.u32.totalorder %s18086_s0, %s18547_s19 }
  0xda   : > { %p18089_p9 = pnand %p18087_p2, %p18058_p13  ;;  %p18094_p10 = por %p18093_p4, %p18092_p1 }
  0xdc   : > { %p18090_p3 = pneg %p18089_p9  ;;  %p18096_p0 = por %p18095_p12, %p18094_p10 }
  0xde   : > { %p18097_p5 = pnand %p18096_p0, %p18090_p3 }
  0xe0   : > { %18100 = shalt.err (!%p18097_p5)
}
  0xe1   : > { %s18101_s20 = scalar_lea.vmem %s18541_s18, 193536  ;;  %s18212_s22 = smov [#allocation6]  }
  0xe2   : > { %p18102_p8 = scmp.ne.s32.totalorder %s18541_s18, %s18101_s20  ;;  %s18106_s21 = sshll.u32 %s18212_s22, 4  ;;  %s18107_s21 = int_to_ptr.vmem [resolvable:$false] %s18106_s21 }
  0xe3   : > { %s18108_s17 = scalar_lea.vmem %s18107_s21, 387072  ;;  %p18109_p9 = scmp.lt.s32.totalorder %s18541_s18, %s18107_s21 }
  0xe4   : > { %p18104_p7 = pnand %p18102_p8, %p18058_p13  ;;  %p18110_p1 = scmp.lt.s32.totalorder %s18108_s17, %s18101_s20 }
  0xe6   : > { %p18105_p2 = pneg %p18104_p7  ;;  %p18111_p4 = por %p18110_p1, %p18109_p9 }
  0xe8   : > { %p18112_p10 = pnand %p18111_p4, %p18105_p2 }
  0xea   : > { %18115 = shalt.err (!%p18112_p10)
}
  0xeb   : > { %s18213_s0 = smov 448   ;;  %s18214_s14 = smov 28  }
  0xec   : > { %15537 = dma.hbm_to_vmem [thread:$0]  (!%p18505_p6), %s18547_s19, 193536, %s18541_s18, %s18549_s2, %s18213_s0, %s18213_s0, %s18214_s14  }
  0xed   : > { %p20619_p13 = scmp.ne.s32.totalorder %s20611_s16, 0 }
  0xee   : > { %s393_s29 = sand.u32 (!%p20619_p13), 1, %s18192_s10  }
  0xef   : > { %391 = sbr.rel (%p20619_p13) target bundleno = 2531 (0x9e3), region = 56  ;;  %s394_s30 = scalar_lea.sflag (!%p20619_p13), [#allocation4], %s393_s29 }
  0xf0   : > { %s15471_s13 = smul.u32 (!%p20619_p13), 108, %s393_s29 }
  0xf2   : > { %s18578_s12 = scalar_lea.vmem (!%p20619_p13), [#allocation3], %s15471_s13 }
  0xf6   : > { %18159 = dma.done.wait (%p18491_p11), %s394_s30, 1728  }
  0xf7   : > { %18161 = vsyncadd (%p18491_p11), %s394_s30, 4294965568  ;;  %s402_s24 = sand.u32 1, %s18293_s15   ;;  %s15472_s23 = smul.u32 12096, %s393_s29 }
  0xf8   : > { %s403_s18 = scalar_lea.sflag [#allocation7], %s402_s24 }
  0xf9   : > { %s18585_s19 = scalar_lea.vmem [#allocation6], %s15472_s23 }
  0xfa   : > { %18163 = dma.done.wait (%p18491_p11), %s403_s18, 193536  }
  0xfb   : > { %18165 = vsyncadd (%p18491_p11), %s403_s18, 4294773760  ;;  %p20620_p6 = scmp.eq.s32.totalorder %s18293_s15, 0 }
  0xfd   : > { %18167 = dma.done.wait (%p20620_p6), [#allocation7], 112   ;;  %p20621_p3 = pmov %p20620_p6 }
  0xff   : > { %18169 = vsyncadd (%p20621_p3), [#allocation7], 4294967184  ;;  %p20622_p12 = pmov %p20621_p3 }
 0x100   : > { %p20623_p0 = pmov %p20621_p3 }
 0x101   : > { %18171 = dma.done.wait (%p20622_p12), [#allocation10], 7280  }
 0x102   : > { %18173 = vsyncadd (%p20623_p0), [#allocation10], 4294960016  ;;  %p20624_p5 = pmov %p20623_p0 }
 0x103   : > { %p20625_p8 = pmov %p20623_p0 }
 0x104   : > { %18175 = dma.done.wait (%p20624_p5), [#allocation13], 32  }
 0x105   : > { %18177 = vsyncadd (%p20625_p8), [#allocation13], 4294967264  ;;  %p20626_p11 = pmov %p20623_p0 }
 0x106   : > { %p20627_p7 = pmov %p20623_p0 }
 0x107   : > { %18179 = dma.done.wait (%p20626_p11), [#allocation16], 1040  }
 0x108   : > { %18181 = vsyncadd (%p20627_p7), [#allocation16], 4294966256  ;;  %p20628_p2 = scmp.ne.s32.totalorder %s18293_s15, 0 }
 0x109   : > { %v18215_v0 = vmov (!%p20628_p2), 0.0  }
 0x10a   : > { %475 = sbr.rel (%p20628_p2) target bundleno = 273 (0x111), region = 96  ;;  %476 = vst [vmem:[#allocation2] sm:$0xff] (!%p20628_p2), %v18215_v0  ;;  %477 = vst [vmem:[#allocation2 + $0x8] sm:$0xff] (!%p20628_p2), %v18215_v0 }
 0x10b   : > { %478 = vst [vmem:[#allocation2 + $0x10] sm:$0xff] (!%p20628_p2), %v18215_v0  ;;  %479 = vst [vmem:[#allocation2 + $0x18] sm:$0xff] (!%p20628_p2), %v18215_v0 }
 0x10c   : > { %480 = vst [vmem:[#allocation2 + $0x20] sm:$0xff] (!%p20628_p2), %v18215_v0  ;;  %481 = vst [vmem:[#allocation2 + $0x28] sm:$0xff] (!%p20628_p2), %v18215_v0 }
 0x10d   : > { %482 = vst [vmem:[#allocation2 + $0x30] sm:$0xff] (!%p20628_p2), %v18215_v0 }
 0x111 PF: > { %v15606_v1 = vld [vmem:[%s18585_s19 + $0x4] ss:$28 sps:$4 sm:$0xff]   ;;  %v15612_v5 = vld [vmem:[%s18585_s19 + $0x3c] ss:$28 sps:$4 sm:$0xff]   ;;  %v15618_v9 = vld [vmem:[%s18585_s19 + $0x74] ss:$28 sps:$4 sm:$0xff]  }
 0x112   : > { %v15608_v2 = vld [vmem:[%s18585_s19 + $0x384] ss:$28 sps:$4 sm:$0xff]   ;;  %10103 = vmatprep.subr.bf16.mxu0 %v15606_v1  ;;  %v15614_v6 = vld [vmem:[%s18585_s19 + $0x3bc] ss:$28 sps:$4 sm:$0xff]   ;;  %v15620_v10 = vld [vmem:[%s18585_s19 + $0x3f4] ss:$28 sps:$4 sm:$0xff]  }
 0x113   : > { %v15610_v3 = vld [vmem:[%s18585_s19] ss:$28 sps:$4 sm:$0xff]   ;;  %10144 = vmatprep.subr.bf16.mxu1 %v15608_v2  ;;  %v15616_v7 = vld [vmem:[%s18585_s19 + $0x38] ss:$28 sps:$4 sm:$0xff]   ;;  %v15622_v11 = vld [vmem:[%s18585_s19 + $0x70] ss:$28 sps:$4 sm:$0xff]  }
 0x114   : > { %v15611_v4 = vld [vmem:[%s18585_s19 + $0x380] ss:$28 sps:$4 sm:$0xff]   ;;  %10104 = vmatpush1.bf16.msra.mxu0 %v15610_v3  ;;  %v15617_v8 = vld [vmem:[%s18585_s19 + $0x3b8] ss:$28 sps:$4 sm:$0xff]   ;;  %v15623_v12 = vld [vmem:[%s18585_s19 + $0x3f0] ss:$28 sps:$4 sm:$0xff]  }
 0x115   : > { %10145 = vmatpush1.bf16.msra.mxu1 %v15611_v4  ;;  %10105 = vmatprep.subr.bf16.mxu0 %v15612_v5  ;;  %v15624_v13 = vld [vmem:[%s18585_s19 + $0xac] ss:$28 sps:$4 sm:$0xff]   ;;  %v15630_v17 = vld [vmem:[%s18585_s19 + $0xe4] ss:$28 sps:$4 sm:$0xff]   ;;  %v15636_v21 = vld [vmem:[%s18585_s19 + $0x11c] ss:$28 sps:$4 sm:$0xff]  }
 0x116   : > { %10146 = vmatprep.subr.bf16.mxu1 %v15614_v6  ;;  %v15626_v14 = vld [vmem:[%s18585_s19 + $0x42c] ss:$28 sps:$4 sm:$0xff]   ;;  %v15632_v18 = vld [vmem:[%s18585_s19 + $0x464] ss:$28 sps:$4 sm:$0xff]   ;;  %v15638_v22 = vld [vmem:[%s18585_s19 + $0x49c] ss:$28 sps:$4 sm:$0xff]  }
 0x117   : > { %v15628_v15 = vld [vmem:[%s18585_s19 + $0xa8] ss:$28 sps:$4 sm:$0xff]   ;;  %v15634_v19 = vld [vmem:[%s18585_s19 + $0xe0] ss:$28 sps:$4 sm:$0xff]   ;;  %v15640_v23 = vld [vmem:[%s18585_s19 + $0x118] ss:$28 sps:$4 sm:$0xff]  }
 0x118   : > { %10106 = vmatpush1.bf16.msra.mxu0 %v15616_v7  ;;  %v15629_v16 = vld [vmem:[%s18585_s19 + $0x428] ss:$28 sps:$4 sm:$0xff]   ;;  %v15635_v20 = vld [vmem:[%s18585_s19 + $0x460] ss:$28 sps:$4 sm:$0xff]   ;;  %v15641_v24 = vld [vmem:[%s18585_s19 + $0x498] ss:$28 sps:$4 sm:$0xff]  }
 0x119   : > { %10147 = vmatpush1.bf16.msra.mxu1 %v15617_v8  ;;  %10107 = vmatprep.subr.bf16.mxu0 %v15618_v9  ;;  %v15642_v25 = vld [vmem:[%s18585_s19 + $0x154] ss:$28 sps:$4 sm:$0xff]   ;;  %v15648_v29 = vld [vmem:[%s18585_s19 + $0x18c] ss:$28 sps:$4 sm:$0xff]   ;;  %v15654_v33 = vld [vmem:[%s18585_s19 + $0x1c4] ss:$28 sps:$4 sm:$0xff]  }
 0x11a   : > { %10148 = vmatprep.subr.bf16.mxu1 %v15620_v10  ;;  %v15644_v26 = vld [vmem:[%s18585_s19 + $0x4d4] ss:$28 sps:$4 sm:$0xff]   ;;  %v15650_v30 = vld [vmem:[%s18585_s19 + $0x50c] ss:$28 sps:$4 sm:$0xff]   ;;  %v15656_v34 = vld [vmem:[%s18585_s19 + $0x544] ss:$28 sps:$4 sm:$0xff]  }
 0x11b   : > { %v15646_v27 = vld [vmem:[%s18585_s19 + $0x150] ss:$28 sps:$4 sm:$0xff]   ;;  %v15652_v31 = vld [vmem:[%s18585_s19 + $0x188] ss:$28 sps:$4 sm:$0xff]   ;;  %v15658_v35 = vld [vmem:[%s18585_s19 + $0x1c0] ss:$28 sps:$4 sm:$0xff]  }
 0x11c   : > { %10108 = vmatpush1.bf16.msra.mxu0 %v15622_v11  ;;  %v15647_v28 = vld [vmem:[%s18585_s19 + $0x4d0] ss:$28 sps:$4 sm:$0xff]   ;;  %v15653_v32 = vld [vmem:[%s18585_s19 + $0x508] ss:$28 sps:$4 sm:$0xff]   ;;  %v15659_v36 = vld [vmem:[%s18585_s19 + $0x540] ss:$28 sps:$4 sm:$0xff]  }
 0x11d   : > { %10149 = vmatpush1.bf16.msra.mxu1 %v15623_v12  ;;  %10109 = vmatprep.subr.bf16.mxu0 %v15624_v13  ;;  %v15660_v37 = vld [vmem:[%s18585_s19 + $0x1fc] ss:$28 sps:$4 sm:$0xff]   ;;  %v15666_v41 = vld [vmem:[%s18585_s19 + $0x234] ss:$28 sps:$4 sm:$0xff]   ;;  %v15672_v45 = vld [vmem:[%s18585_s19 + $0x26c] ss:$28 sps:$4 sm:$0xff]  }
 0x11e   : > { %10150 = vmatprep.subr.bf16.mxu1 %v15626_v14  ;;  %v15662_v38 = vld [vmem:[%s18585_s19 + $0x57c] ss:$28 sps:$4 sm:$0xff]   ;;  %v15668_v42 = vld [vmem:[%s18585_s19 + $0x5b4] ss:$28 sps:$4 sm:$0xff]   ;;  %v15674_v46 = vld [vmem:[%s18585_s19 + $0x5ec] ss:$28 sps:$4 sm:$0xff]  }
 0x11f   : > { %v15664_v39 = vld [vmem:[%s18585_s19 + $0x1f8] ss:$28 sps:$4 sm:$0xff]   ;;  %v15670_v43 = vld [vmem:[%s18585_s19 + $0x230] ss:$28 sps:$4 sm:$0xff]   ;;  %v15676_v50 = vld [vmem:[%s18585_s19 + $0x268] ss:$28 sps:$4 sm:$0xff]  }
 0x120   : > { %10110 = vmatpush1.bf16.msra.mxu0 %v15628_v15  ;;  %v15665_v40 = vld [vmem:[%s18585_s19 + $0x578] ss:$28 sps:$4 sm:$0xff]   ;;  %v15671_v44 = vld [vmem:[%s18585_s19 + $0x5b0] ss:$28 sps:$4 sm:$0xff]   ;;  %v15677_v51 = vld [vmem:[%s18585_s19 + $0x5e8] ss:$28 sps:$4 sm:$0xff]  }
 0x121   : > { %10151 = vmatpush1.bf16.msra.mxu1 %v15629_v16  ;;  %10111 = vmatprep.subr.bf16.mxu0 %v15630_v17  ;;  %v490_v47 = vld [vmem:[%s18578_s12] sm:$0xff]  ;;  %v491_v49 = vld [vmem:[%s18578_s12 + $0x8] sm:$0xff]  ;;  %vm18218_vm0 = vmmov 0   ;;  %p14956_p9 = scmp.ne.s32.totalorder %s18293_s15, 1 }
 0x122   : > { %10152 = vmatprep.subr.bf16.mxu1 %v15632_v18  ;;  %v18656_v48 = vcombine.high %v490_v47, %v490_v47  ;;  %v18661_v52 = vcombine.high %v491_v49, %v491_v49  ;;  %v15678_v53 = vld [vmem:[%s18585_s19 + $0x2a4] ss:$28 sps:$4 sm:$0xff]   ;;  %v15684_v57 = vld [vmem:[%s18585_s19 + $0x2dc] ss:$28 sps:$4 sm:$0xff]   ;;  %v15690_v61 = vld [vmem:[%s18585_s19 + $0x314] ss:$28 sps:$4 sm:$0xff]   ;;  %v18683_v7 = vcombine.low %v490_v47, %v490_v47  ;;  %v18685_v8 = vcombine.low %v491_v49, %v491_v49 }
 0x123   : > { %v15680_v54 = vld [vmem:[%s18585_s19 + $0x624] ss:$28 sps:$4 sm:$0xff]   ;;  %v15686_v58 = vld [vmem:[%s18585_s19 + $0x65c] ss:$28 sps:$4 sm:$0xff]   ;;  %v15692_v62 = vld [vmem:[%s18585_s19 + $0x694] ss:$28 sps:$4 sm:$0xff]  }
 0x124   : > { %10112 = vmatpush1.bf16.msra.mxu0 %v15634_v19  ;;  %10135 = vmatprep.mubr.bf16.mxu0 %v18656_v48  ;;  %v15682_v55 = vld [vmem:[%s18585_s19 + $0x2a0] ss:$28 sps:$4 sm:$0xff]   ;;  %v15688_v59 = vld [vmem:[%s18585_s19 + $0x2d8] ss:$28 sps:$4 sm:$0xff]   ;;  %v15694_v63 = vld [vmem:[%s18585_s19 + $0x310] ss:$28 sps:$4 sm:$0xff]  }
 0x125   : > { %10153 = vmatpush1.bf16.msra.mxu1 %v15635_v20  ;;  %10113 = vmatprep.subr.bf16.mxu0 %v15636_v21  ;;  %v15683_v56 = vld [vmem:[%s18585_s19 + $0x620] ss:$28 sps:$4 sm:$0xff]   ;;  %v15689_v60 = vld [vmem:[%s18585_s19 + $0x658] ss:$28 sps:$4 sm:$0xff]   ;;  %v15695_v0 = vld [vmem:[%s18585_s19 + $0x690] ss:$28 sps:$4 sm:$0xff]  }
 0x126   : > { %10154 = vmatprep.subr.bf16.mxu1 %v15638_v22  ;;  %10176 = vmatprep.mubr.bf16.mxu1 %v18661_v52  ;;  %v15696_v1 = vld [vmem:[%s18585_s19 + $0x34c] ss:$28 sps:$4 sm:$0xff]   ;;  %v15708_v5 = vld [vmem:[%s18585_s19 + $0x704] ss:$28 sps:$4 sm:$0xff]   ;;  %v15714_v11 = vld [vmem:[%s18585_s19 + $0x73c] ss:$28 sps:$4 sm:$0xff]  }
 0x127   : > { %v15698_v2 = vld [vmem:[%s18585_s19 + $0x6cc] ss:$28 sps:$4 sm:$0xff]   ;;  %v15711_v6 = vld [vmem:[%s18585_s19 + $0xa84] ss:$28 sps:$4 sm:$0xff]   ;;  %v15717_v12 = vld [vmem:[%s18585_s19 + $0xabc] ss:$28 sps:$4 sm:$0xff]  }
 0x128   : > { %10114 = vmatpush1.bf16.msra.mxu0 %v15640_v23  ;;  %v15700_v3 = vld [vmem:[%s18585_s19 + $0x348] ss:$28 sps:$4 sm:$0xff]   ;;  %v15706_v9 = vld [vmem:[%s18585_s19 + $0x700] ss:$28 sps:$4 sm:$0xff]   ;;  %v15712_v13 = vld [vmem:[%s18585_s19 + $0x738] ss:$28 sps:$4 sm:$0xff]  }
 0x129   : > { %10155 = vmatpush1.bf16.msra.mxu1 %v15641_v24  ;;  %10115 = vmatprep.subr.bf16.mxu0 %v15642_v25  ;;  %v15701_v4 = vld [vmem:[%s18585_s19 + $0x6c8] ss:$28 sps:$4 sm:$0xff]   ;;  %v15709_v10 = vld [vmem:[%s18585_s19 + $0xa80] ss:$28 sps:$4 sm:$0xff]   ;;  %v15715_v14 = vld [vmem:[%s18585_s19 + $0xab8] ss:$28 sps:$4 sm:$0xff]  }
 0x12a   : > { %10156 = vmatprep.subr.bf16.mxu1 %v15644_v26  ;;  %v15720_v15 = vld [vmem:[%s18585_s19 + $0x774] ss:$28 sps:$4 sm:$0xff]   ;;  %v15726_v19 = vld [vmem:[%s18585_s19 + $0x7ac] ss:$28 sps:$4 sm:$0xff]   ;;  %v15732_v23 = vld [vmem:[%s18585_s19 + $0x7e4] ss:$28 sps:$4 sm:$0xff]  }
 0x12b   : > { %v15723_v16 = vld [vmem:[%s18585_s19 + $0xaf4] ss:$28 sps:$4 sm:$0xff]   ;;  %v15729_v20 = vld [vmem:[%s18585_s19 + $0xb2c] ss:$28 sps:$4 sm:$0xff]   ;;  %v15735_v24 = vld [vmem:[%s18585_s19 + $0xb64] ss:$28 sps:$4 sm:$0xff]  }
 0x12c   : > { %10116 = vmatpush1.bf16.msra.mxu0 %v15646_v27  ;;  %v15718_v17 = vld [vmem:[%s18585_s19 + $0x770] ss:$28 sps:$4 sm:$0xff]   ;;  %v15724_v21 = vld [vmem:[%s18585_s19 + $0x7a8] ss:$28 sps:$4 sm:$0xff]   ;;  %v15730_v25 = vld [vmem:[%s18585_s19 + $0x7e0] ss:$28 sps:$4 sm:$0xff]  }
 0x12d   : > { %10157 = vmatpush1.bf16.msra.mxu1 %v15647_v28  ;;  %10117 = vmatprep.subr.bf16.mxu0 %v15648_v29  ;;  %v15721_v18 = vld [vmem:[%s18585_s19 + $0xaf0] ss:$28 sps:$4 sm:$0xff]   ;;  %v15727_v22 = vld [vmem:[%s18585_s19 + $0xb28] ss:$28 sps:$4 sm:$0xff]   ;;  %v15733_v26 = vld [vmem:[%s18585_s19 + $0xb60] ss:$28 sps:$4 sm:$0xff]  }
 0x12e   : > { %10158 = vmatprep.subr.bf16.mxu1 %v15650_v30  ;;  %v15738_v27 = vld [vmem:[%s18585_s19 + $0x81c] ss:$28 sps:$4 sm:$0xff]   ;;  %vm18220_vm1 = vmmov (!%p14956_p9), 0  }
 0x12f   : > { %v15741_v28 = vld [vmem:[%s18585_s19 + $0xb9c] ss:$28 sps:$4 sm:$0xff]  }
 0x130   : > { %10118 = vmatpush1.bf16.msra.mxu0 %v15652_v31  ;;  %v15736_v29 = vld [vmem:[%s18585_s19 + $0x818] ss:$28 sps:$4 sm:$0xff]  }
 0x131   : > { %10159 = vmatpush1.bf16.msra.mxu1 %v15653_v32  ;;  %10119 = vmatprep.subr.bf16.mxu0 %v15654_v33  ;;  %v15739_v30 = vld [vmem:[%s18585_s19 + $0xb98] ss:$28 sps:$4 sm:$0xff]  }
 0x132   : > { %10160 = vmatprep.subr.bf16.mxu1 %v15656_v34  ;;  %v15744_v31 = vld [vmem:[%s18585_s19 + $0x854] ss:$28 sps:$4 sm:$0xff]   ;;  %v18714_v33 = vld [vmem:[%s18578_s12 + $0x10] sm:$0xff] }
 0x133   : > { %v15747_v32 = vld [vmem:[%s18585_s19 + $0xbd4] ss:$28 sps:$4 sm:$0xff]   ;;  %v15762_v47 = vld [vmem:[%s18585_s19 + $0x8fc] ss:$28 sps:$4 sm:$0xff]  }
 0x134   : > { %10120 = vmatpush1.bf16.msra.mxu0 %v15658_v35  ;;  %v18717_v34 = vld [vmem:[%s18578_s12 + $0x18] sm:$0xff]  ;;  %v15765_v49 = vld [vmem:[%s18585_s19 + $0xc7c] ss:$28 sps:$4 sm:$0xff]  }
 0x135   : > { %10161 = vmatpush1.bf16.msra.mxu1 %v15659_v36  ;;  %10121 = vmatprep.subr.bf16.mxu0 %v15660_v37  ;;  %v15742_v35 = vld [vmem:[%s18585_s19 + $0x850] ss:$28 sps:$4 sm:$0xff]   ;;  %v18723_v37 = vcombine.high %v18714_v33, %v18714_v33 }
 0x136   : > { %10162 = vmatprep.subr.bf16.mxu1 %v15662_v38  ;;  %v15745_v36 = vld [vmem:[%s18585_s19 + $0xbd0] ss:$28 sps:$4 sm:$0xff]   ;;  %v18727_v38 = vcombine.high %v18717_v34, %v18717_v34 }
 0x138   : > { %10122 = vmatpush1.bf16.msra.mxu0 %v15664_v39  ;;  %v15750_v39 = vld [vmem:[%s18585_s19 + $0x88c] ss:$28 sps:$4 sm:$0xff]  }
 0x139   : > { %10163 = vmatpush1.bf16.msra.mxu1 %v15665_v40  ;;  %10123 = vmatprep.subr.bf16.mxu0 %v15666_v41  ;;  %v15753_v40 = vld [vmem:[%s18585_s19 + $0xc0c] ss:$28 sps:$4 sm:$0xff]  }
 0x13a   : > { %10164 = vmatprep.subr.bf16.mxu1 %v15668_v42  ;;  %v15748_v41 = vld [vmem:[%s18585_s19 + $0x888] ss:$28 sps:$4 sm:$0xff]  }
 0x13b   : > { %v15751_v42 = vld [vmem:[%s18585_s19 + $0xc08] ss:$28 sps:$4 sm:$0xff]  }
 0x13c   : > { %10124 = vmatpush1.bf16.msra.mxu0 %v15670_v43  ;;  %v15756_v43 = vld [vmem:[%s18585_s19 + $0x8c4] ss:$28 sps:$4 sm:$0xff]  }
 0x13d   : > { %10165 = vmatpush1.bf16.msra.mxu1 %v15671_v44  ;;  %10125 = vmatprep.subr.bf16.mxu0 %v15672_v45  ;;  %v15759_v44 = vld [vmem:[%s18585_s19 + $0xc44] ss:$28 sps:$4 sm:$0xff]  }
 0x13e   : > { %10166 = vmatprep.subr.bf16.mxu1 %v15674_v46  ;;  %v15754_v45 = vld [vmem:[%s18585_s19 + $0x8c0] ss:$28 sps:$4 sm:$0xff]  }
 0x13f   : > { %v15757_v46 = vld [vmem:[%s18585_s19 + $0xc40] ss:$28 sps:$4 sm:$0xff]  }
 0x140   : > { %10126 = vmatpush1.bf16.msra.mxu0 %v15676_v50  ;;  %v15760_v50 = vld [vmem:[%s18585_s19 + $0x8f8] ss:$28 sps:$4 sm:$0xff]  }
 0x141   : > { %10167 = vmatpush1.bf16.msra.mxu1 %v15677_v51  ;;  %10127 = vmatprep.subr.bf16.mxu0 %v15678_v53  ;;  %v15763_v51 = vld [vmem:[%s18585_s19 + $0xc78] ss:$28 sps:$4 sm:$0xff]  }
 0x142   : > { %10168 = vmatprep.subr.bf16.mxu1 %v15680_v54  ;;  %v15768_v53 = vld [vmem:[%s18585_s19 + $0x934] ss:$28 sps:$4 sm:$0xff]  }
 0x143   : > { %v15771_v54 = vld [vmem:[%s18585_s19 + $0xcb4] ss:$28 sps:$4 sm:$0xff]  }
 0x144   : > { %10128 = vmatpush1.bf16.msra.mxu0 %v15682_v55  ;;  %v15766_v55 = vld [vmem:[%s18585_s19 + $0x930] ss:$28 sps:$4 sm:$0xff]  }
 0x145   : > { %10169 = vmatpush1.bf16.msra.mxu1 %v15683_v56  ;;  %10129 = vmatprep.subr.bf16.mxu0 %v15684_v57  ;;  %v15769_v56 = vld [vmem:[%s18585_s19 + $0xcb0] ss:$28 sps:$4 sm:$0xff]  }
 0x146   : > { %10170 = vmatprep.subr.bf16.mxu1 %v15686_v58  ;;  %v15774_v57 = vld [vmem:[%s18585_s19 + $0x96c] ss:$28 sps:$4 sm:$0xff]  }
 0x147   : > { %v15777_v58 = vld [vmem:[%s18585_s19 + $0xcec] ss:$28 sps:$4 sm:$0xff]  }
 0x148   : > { %10130 = vmatpush1.bf16.msra.mxu0 %v15688_v59  ;;  %v15772_v59 = vld [vmem:[%s18585_s19 + $0x968] ss:$28 sps:$4 sm:$0xff]  }
 0x149   : > { %10171 = vmatpush1.bf16.msra.mxu1 %v15689_v60  ;;  %10131 = vmatprep.subr.bf16.mxu0 %v15690_v61  ;;  %v15775_v60 = vld [vmem:[%s18585_s19 + $0xce8] ss:$28 sps:$4 sm:$0xff]  }
 0x14a   : > { %10172 = vmatprep.subr.bf16.mxu1 %v15692_v62  ;;  %v15780_v61 = vld [vmem:[%s18585_s19 + $0x9a4] ss:$28 sps:$4 sm:$0xff]  }
 0x14b   : > { %v15783_v62 = vld [vmem:[%s18585_s19 + $0xd24] ss:$28 sps:$4 sm:$0xff]  }
 0x14c   : > { %10132 = vmatpush1.bf16.msra.mxu0 %v15694_v63  ;;  %v15778_v63 = vld [vmem:[%s18585_s19 + $0x9a0] ss:$28 sps:$4 sm:$0xff]  }
 0x14d   : > { %10173 = vmatpush1.bf16.msra.mxu1 %v15695_v0  ;;  %10133 = vmatprep.subr.bf16.mxu0 %v15696_v1  ;;  %v15781_v0 = vld [vmem:[%s18585_s19 + $0xd20] ss:$28 sps:$4 sm:$0xff]  }
 0x14e   : > { %10174 = vmatprep.subr.bf16.mxu1 %v15698_v2  ;;  %v15786_v1 = vld [vmem:[%s18585_s19 + $0x9dc] ss:$28 sps:$4 sm:$0xff]  }
 0x14f   : > { %v15789_v2 = vld [vmem:[%s18585_s19 + $0xd5c] ss:$28 sps:$4 sm:$0xff]  }
 0x150   : > { %10134 = vmatpush1.bf16.msra.mxu0 %v15700_v3  ;;  %v15784_v3 = vld [vmem:[%s18585_s19 + $0x9d8] ss:$28 sps:$4 sm:$0xff]  }
 0x151   : > { %10175 = vmatpush1.bf16.msra.mxu1 %v15701_v4  ;;  %10185 = vmatprep.subr.bf16.mxu0 %v15708_v5  ;;  %v15787_v4 = vld [vmem:[%s18585_s19 + $0xd58] ss:$28 sps:$4 sm:$0xff]  }
 0x152   : > { %10226 = vmatprep.subr.bf16.mxu1 %v15711_v6  ;;  %v15792_v5 = vld [vmem:[%s18585_s19 + $0xa14] ss:$28 sps:$4 sm:$0xff]  }
 0x153   : > { %10136 = vmatmul.mubr.bf16.vlgmr.msra.gmra.mrb[0].mxu0 %v18683_v7  ;;  %v15795_v6 = vld [vmem:[%s18585_s19 + $0xd94] ss:$28 sps:$4 sm:$0xff]  }
 0x154   : > { %10177 = vmatmul.mubr.bf16.vlgmr.msra.gmra.mrb[0].mxu1 %v18685_v8  ;;  %10186 = vmatpush1.bf16.msra.mxu0 %v15706_v9  ;;  %v15790_v9 = vld [vmem:[%s18585_s19 + $0xa10] ss:$28 sps:$4 sm:$0xff]  }
 0x155   : > { %10227 = vmatpush1.bf16.msra.mxu1 %v15709_v10  ;;  %10187 = vmatprep.subr.bf16.mxu0 %v15714_v11  ;;  %v15793_v10 = vld [vmem:[%s18585_s19 + $0xd90] ss:$28 sps:$4 sm:$0xff]  }
 0x156   : > { %10228 = vmatprep.subr.bf16.mxu1 %v15717_v12  ;;  %10217 = vmatprep.mubr.bf16.mxu0 %v18723_v37  ;;  %v15798_v11 = vld [vmem:[%s18585_s19 + $0xa4c] ss:$28 sps:$4 sm:$0xff]  }
 0x157   : > { %10258 = vmatprep.mubr.bf16.mxu1 %v18727_v38  ;;  %v15801_v12 = vld [vmem:[%s18585_s19 + $0xdcc] ss:$28 sps:$4 sm:$0xff]  }
 0x158   : > { %10188 = vmatpush1.bf16.msra.mxu0 %v15712_v13  ;;  %v15796_v13 = vld [vmem:[%s18585_s19 + $0xa48] ss:$28 sps:$4 sm:$0xff]  }
 0x159   : > { %10229 = vmatpush1.bf16.msra.mxu1 %v15715_v14  ;;  %10189 = vmatprep.subr.bf16.mxu0 %v15720_v15  ;;  %v15799_v14 = vld [vmem:[%s18585_s19 + $0xdc8] ss:$28 sps:$4 sm:$0xff]  }
 0x15a   : > { %10230 = vmatprep.subr.bf16.mxu1 %v15723_v16  ;;  %v15807_v15 = vld [vmem:[%s18585_s19 + $0xe04] ss:$28 sps:$4 sm:$0xff]  }
 0x15b   : > { %v15810_v16 = vld [vmem:[%s18585_s19 + $0x1184] ss:$28 sps:$4 sm:$0xff]  }
 0x15c   : > { %10190 = vmatpush1.bf16.msra.mxu0 %v15718_v17  ;;  %v18771_v17 = vcombine.low %v18714_v33, %v18714_v33  ;;  %v15826_v33 = vld [vmem:[%s18585_s19 + $0xeac] ss:$28 sps:$4 sm:$0xff]  }
 0x15d   : > { %10231 = vmatpush1.bf16.msra.mxu1 %v15721_v18  ;;  %10191 = vmatprep.subr.bf16.mxu0 %v15726_v19  ;;  %v15805_v18 = vld [vmem:[%s18585_s19 + $0xe00] ss:$28 sps:$4 sm:$0xff]  }
 0x15e   : > { %10232 = vmatprep.subr.bf16.mxu1 %v15729_v20  ;;  %v15808_v19 = vld [vmem:[%s18585_s19 + $0x1180] ss:$28 sps:$4 sm:$0xff]   ;;  %v18777_v20 = vcombine.low %v18717_v34, %v18717_v34  ;;  %v15829_v34 = vld [vmem:[%s18585_s19 + $0x122c] ss:$28 sps:$4 sm:$0xff]  }
 0x160   : > { %10192 = vmatpush1.bf16.msra.mxu0 %v15724_v21  ;;  %v15814_v21 = vld [vmem:[%s18585_s19 + $0xe3c] ss:$28 sps:$4 sm:$0xff]  }
 0x161   : > { %10233 = vmatpush1.bf16.msra.mxu1 %v15727_v22  ;;  %10193 = vmatprep.subr.bf16.mxu0 %v15732_v23  ;;  %v15817_v22 = vld [vmem:[%s18585_s19 + $0x11bc] ss:$28 sps:$4 sm:$0xff]  }
 0x162   : > { %10234 = vmatprep.subr.bf16.mxu1 %v15735_v24  ;;  %v18782_v23 = vld [vmem:[%s18578_s12 + $0x20] sm:$0xff]  ;;  %v18785_v24 = vld [vmem:[%s18578_s12 + $0x28] sm:$0xff] }
 0x164   : > { %10194 = vmatpush1.bf16.msra.mxu0 %v15730_v25  ;;  %v18789_v25 = vcombine.high %v18782_v23, %v18782_v23 }
 0x165   : > { %10235 = vmatpush1.bf16.msra.mxu1 %v15733_v26  ;;  %10195 = vmatprep.subr.bf16.mxu0 %v15738_v27  ;;  %v18793_v26 = vcombine.high %v18785_v24, %v18785_v24  ;;  %v15812_v27 = vld [vmem:[%s18585_s19 + $0xe38] ss:$28 sps:$4 sm:$0xff]  }
 0x166   : > { %10236 = vmatprep.subr.bf16.mxu1 %v15741_v28  ;;  %v15815_v28 = vld [vmem:[%s18585_s19 + $0x11b8] ss:$28 sps:$4 sm:$0xff]  }
 0x168   : > { %10196 = vmatpush1.bf16.msra.mxu0 %v15736_v29  ;;  %v15820_v29 = vld [vmem:[%s18585_s19 + $0xe74] ss:$28 sps:$4 sm:$0xff]  }
 0x169   : > { %10237 = vmatpush1.bf16.msra.mxu1 %v15739_v30  ;;  %10197 = vmatprep.subr.bf16.mxu0 %v15744_v31  ;;  %v15823_v30 = vld [vmem:[%s18585_s19 + $0x11f4] ss:$28 sps:$4 sm:$0xff]  }
 0x16a   : > { %10238 = vmatprep.subr.bf16.mxu1 %v15747_v32  ;;  %v15818_v31 = vld [vmem:[%s18585_s19 + $0xe70] ss:$28 sps:$4 sm:$0xff]  }
 0x16b   : > { %v15821_v32 = vld [vmem:[%s18585_s19 + $0x11f0] ss:$28 sps:$4 sm:$0xff]  }
 0x16c   : > { %10198 = vmatpush1.bf16.msra.mxu0 %v15742_v35  ;;  %v15824_v35 = vld [vmem:[%s18585_s19 + $0xea8] ss:$28 sps:$4 sm:$0xff]  }
 0x16d   : > { %10239 = vmatpush1.bf16.msra.mxu1 %v15745_v36  ;;  %10199 = vmatprep.subr.bf16.mxu0 %v15750_v39  ;;  %v15827_v36 = vld [vmem:[%s18585_s19 + $0x1228] ss:$28 sps:$4 sm:$0xff]  }
 0x16e   : > { %10240 = vmatprep.subr.bf16.mxu1 %v15753_v40  ;;  %v15832_v39 = vld [vmem:[%s18585_s19 + $0xee4] ss:$28 sps:$4 sm:$0xff]  }
 0x16f   : > { %v15835_v40 = vld [vmem:[%s18585_s19 + $0x1264] ss:$28 sps:$4 sm:$0xff]  }
 0x170   : > { %10200 = vmatpush1.bf16.msra.mxu0 %v15748_v41  ;;  %v15830_v41 = vld [vmem:[%s18585_s19 + $0xee0] ss:$28 sps:$4 sm:$0xff]  }
 0x171   : > { %10241 = vmatpush1.bf16.msra.mxu1 %v15751_v42  ;;  %10201 = vmatprep.subr.bf16.mxu0 %v15756_v43  ;;  %v15833_v42 = vld [vmem:[%s18585_s19 + $0x1260] ss:$28 sps:$4 sm:$0xff]  }
 0x172   : > { %10242 = vmatprep.subr.bf16.mxu1 %v15759_v44  ;;  %v15838_v43 = vld [vmem:[%s18585_s19 + $0xf1c] ss:$28 sps:$4 sm:$0xff]  }
 0x173   : > { %v15841_v44 = vld [vmem:[%s18585_s19 + $0x129c] ss:$28 sps:$4 sm:$0xff]  }
 0x174   : > { %10202 = vmatpush1.bf16.msra.mxu0 %v15754_v45  ;;  %v15836_v45 = vld [vmem:[%s18585_s19 + $0xf18] ss:$28 sps:$4 sm:$0xff]  }
 0x175   : > { %10243 = vmatpush1.bf16.msra.mxu1 %v15757_v46  ;;  %10203 = vmatprep.subr.bf16.mxu0 %v15762_v47  ;;  %v15839_v46 = vld [vmem:[%s18585_s19 + $0x1298] ss:$28 sps:$4 sm:$0xff]  }
 0x176   : > { %10244 = vmatprep.subr.bf16.mxu1 %v15765_v49  ;;  %v15844_v47 = vld [vmem:[%s18585_s19 + $0xf54] ss:$28 sps:$4 sm:$0xff]  }
 0x177   : > { %v15847_v49 = vld [vmem:[%s18585_s19 + $0x12d4] ss:$28 sps:$4 sm:$0xff]  }
 0x178   : > { %10204 = vmatpush1.bf16.msra.mxu0 %v15760_v50  ;;  %v15842_v50 = vld [vmem:[%s18585_s19 + $0xf50] ss:$28 sps:$4 sm:$0xff]  }
 0x179   : > { %10245 = vmatpush1.bf16.msra.mxu1 %v15763_v51  ;;  %10205 = vmatprep.subr.bf16.mxu0 %v15768_v53  ;;  %v15845_v51 = vld [vmem:[%s18585_s19 + $0x12d0] ss:$28 sps:$4 sm:$0xff]  }
 0x17a   : > { %10246 = vmatprep.subr.bf16.mxu1 %v15771_v54  ;;  %v15850_v53 = vld [vmem:[%s18585_s19 + $0xf8c] ss:$28 sps:$4 sm:$0xff]  }
 0x17b   : > { %v15853_v54 = vld [vmem:[%s18585_s19 + $0x130c] ss:$28 sps:$4 sm:$0xff]  }
 0x17c   : > { %10206 = vmatpush1.bf16.msra.mxu0 %v15766_v55  ;;  %v15848_v55 = vld [vmem:[%s18585_s19 + $0xf88] ss:$28 sps:$4 sm:$0xff]  }
 0x17d   : > { %10247 = vmatpush1.bf16.msra.mxu1 %v15769_v56  ;;  %10207 = vmatprep.subr.bf16.mxu0 %v15774_v57  ;;  %v15851_v56 = vld [vmem:[%s18585_s19 + $0x1308] ss:$28 sps:$4 sm:$0xff]  }
 0x17e   : > { %10248 = vmatprep.subr.bf16.mxu1 %v15777_v58  ;;  %v15856_v57 = vld [vmem:[%s18585_s19 + $0xfc4] ss:$28 sps:$4 sm:$0xff]  }
 0x17f   : > { %v15859_v58 = vld [vmem:[%s18585_s19 + $0x1344] ss:$28 sps:$4 sm:$0xff]  }
 0x180   : > { %10208 = vmatpush1.bf16.msra.mxu0 %v15772_v59  ;;  %v15854_v59 = vld [vmem:[%s18585_s19 + $0xfc0] ss:$28 sps:$4 sm:$0xff]  }
 0x181   : > { %10249 = vmatpush1.bf16.msra.mxu1 %v15775_v60  ;;  %10209 = vmatprep.subr.bf16.mxu0 %v15780_v61  ;;  %v15857_v60 = vld [vmem:[%s18585_s19 + $0x1340] ss:$28 sps:$4 sm:$0xff]  }
 0x182   : > { %10250 = vmatprep.subr.bf16.mxu1 %v15783_v62  ;;  %v15862_v61 = vld [vmem:[%s18585_s19 + $0xffc] ss:$28 sps:$4 sm:$0xff]  }
 0x183   : > { %v15865_v62 = vld [vmem:[%s18585_s19 + $0x137c] ss:$28 sps:$4 sm:$0xff]  }
 0x184   : > { %10210 = vmatpush1.bf16.msra.mxu0 %v15778_v63  ;;  %v15860_v63 = vld [vmem:[%s18585_s19 + $0xff8] ss:$28 sps:$4 sm:$0xff]  }
 0x185   : > { %10251 = vmatpush1.bf16.msra.mxu1 %v15781_v0  ;;  %10211 = vmatprep.subr.bf16.mxu0 %v15786_v1  ;;  %v15863_v0 = vld [vmem:[%s18585_s19 + $0x1378] ss:$28 sps:$4 sm:$0xff]  }
 0x186   : > { %10252 = vmatprep.subr.bf16.mxu1 %v15789_v2  ;;  %v15868_v1 = vld [vmem:[%s18585_s19 + $0x1034] ss:$28 sps:$4 sm:$0xff]  }
 0x187   : > { %v15871_v2 = vld [vmem:[%s18585_s19 + $0x13b4] ss:$28 sps:$4 sm:$0xff]  }
 0x188   : > { %10212 = vmatpush1.bf16.msra.mxu0 %v15784_v3  ;;  %v15866_v3 = vld [vmem:[%s18585_s19 + $0x1030] ss:$28 sps:$4 sm:$0xff]  }
 0x189   : > { %10253 = vmatpush1.bf16.msra.mxu1 %v15787_v4  ;;  %10213 = vmatprep.subr.bf16.mxu0 %v15792_v5  ;;  %v15869_v4 = vld [vmem:[%s18585_s19 + $0x13b0] ss:$28 sps:$4 sm:$0xff]  }
 0x18a   : > { %10254 = vmatprep.subr.bf16.mxu1 %v15795_v6  ;;  %v15874_v5 = vld [vmem:[%s18585_s19 + $0x106c] ss:$28 sps:$4 sm:$0xff]  }
 0x18b   : > { %v15877_v6 = vld [vmem:[%s18585_s19 + $0x13ec] ss:$28 sps:$4 sm:$0xff]  }
 0x18c   : > { %10214 = vmatpush1.bf16.msra.mxu0 %v15790_v9  ;;  %v15872_v9 = vld [vmem:[%s18585_s19 + $0x1068] ss:$28 sps:$4 sm:$0xff]  }
 0x18d   : > { %10255 = vmatpush1.bf16.msra.mxu1 %v15793_v10  ;;  %10215 = vmatprep.subr.bf16.mxu0 %v15798_v11  ;;  %v15875_v10 = vld [vmem:[%s18585_s19 + $0x13e8] ss:$28 sps:$4 sm:$0xff]  }
 0x18e   : > { %10256 = vmatprep.subr.bf16.mxu1 %v15801_v12  ;;  %v15880_v11 = vld [vmem:[%s18585_s19 + $0x10a4] ss:$28 sps:$4 sm:$0xff]  }
 0x18f   : > { %v15883_v12 = vld [vmem:[%s18585_s19 + $0x1424] ss:$28 sps:$4 sm:$0xff]  }
 0x190   : > { %10216 = vmatpush1.bf16.msra.mxu0 %v15796_v13  ;;  %v15878_v13 = vld [vmem:[%s18585_s19 + $0x10a0] ss:$28 sps:$4 sm:$0xff]  }
 0x191   : > { %10257 = vmatpush1.bf16.msra.mxu1 %v15799_v14  ;;  %10267 = vmatprep.subr.bf16.mxu0 %v15807_v15  ;;  %v15881_v14 = vld [vmem:[%s18585_s19 + $0x1420] ss:$28 sps:$4 sm:$0xff]  }
 0x192   : > { %10308 = vmatprep.subr.bf16.mxu1 %v15810_v16  ;;  %v15886_v15 = vld [vmem:[%s18585_s19 + $0x10dc] ss:$28 sps:$4 sm:$0xff]  }
 0x193   : > { %10218 = vmatmul.mubr.bf16.vlgmr.msra.gmra.mrb[4].mxu0 %v18771_v17  ;;  %v15889_v16 = vld [vmem:[%s18585_s19 + $0x145c] ss:$28 sps:$4 sm:$0xff]  }
 0x194   : > { %10259 = vmatmul.mubr.bf16.vlgmr.msra.gmra.mrb[4].mxu1 %v18777_v20  ;;  %10268 = vmatpush1.bf16.msra.mxu0 %v15805_v18  ;;  %v15884_v18 = vld [vmem:[%s18585_s19 + $0x10d8] ss:$28 sps:$4 sm:$0xff]  }
 0x195   : > { %10309 = vmatpush1.bf16.msra.mxu1 %v15808_v19  ;;  %10269 = vmatprep.subr.bf16.mxu0 %v15814_v21  ;;  %v15887_v19 = vld [vmem:[%s18585_s19 + $0x1458] ss:$28 sps:$4 sm:$0xff]  }
 0x196   : > { %10310 = vmatprep.subr.bf16.mxu1 %v15817_v22  ;;  %10299 = vmatprep.mubr.bf16.mxu0 %v18789_v25  ;;  %v15892_v21 = vld [vmem:[%s18585_s19 + $0x1114] ss:$28 sps:$4 sm:$0xff]  }
 0x197   : > { %10340 = vmatprep.mubr.bf16.mxu1 %v18793_v26  ;;  %v15895_v22 = vld [vmem:[%s18585_s19 + $0x1494] ss:$28 sps:$4 sm:$0xff]  }
 0x198   : > { %10270 = vmatpush1.bf16.msra.mxu0 %v15812_v27  ;;  %v15890_v27 = vld [vmem:[%s18585_s19 + $0x1110] ss:$28 sps:$4 sm:$0xff]  }
 0x199   : > { %10311 = vmatpush1.bf16.msra.mxu1 %v15815_v28  ;;  %10271 = vmatprep.subr.bf16.mxu0 %v15820_v29  ;;  %v15893_v28 = vld [vmem:[%s18585_s19 + $0x1490] ss:$28 sps:$4 sm:$0xff]  }
 0x19a   : > { %10312 = vmatprep.subr.bf16.mxu1 %v15823_v30  ;;  %v15898_v29 = vld [vmem:[%s18585_s19 + $0x114c] ss:$28 sps:$4 sm:$0xff]  }
 0x19b   : > { %v15901_v30 = vld [vmem:[%s18585_s19 + $0x14cc] ss:$28 sps:$4 sm:$0xff]  }
 0x19c   : > { %10272 = vmatpush1.bf16.msra.mxu0 %v15818_v31  ;;  %v15896_v31 = vld [vmem:[%s18585_s19 + $0x1148] ss:$28 sps:$4 sm:$0xff]  }
 0x19d   : > { %10313 = vmatpush1.bf16.msra.mxu1 %v15821_v32  ;;  %10273 = vmatprep.subr.bf16.mxu0 %v15826_v33  ;;  %v15899_v32 = vld [vmem:[%s18585_s19 + $0x14c8] ss:$28 sps:$4 sm:$0xff]  }
 0x19e   : > { %10314 = vmatprep.subr.bf16.mxu1 %v15829_v34  ;;  %v15907_v33 = vld [vmem:[%s18585_s19 + $0x1504] ss:$28 sps:$4 sm:$0xff]  }
 0x19f   : > { %v15910_v34 = vld [vmem:[%s18585_s19 + $0x1884] ss:$28 sps:$4 sm:$0xff]  }
 0x1a0   : > { %10274 = vmatpush1.bf16.msra.mxu0 %v15824_v35  ;;  %v15905_v35 = vld [vmem:[%s18585_s19 + $0x1500] ss:$28 sps:$4 sm:$0xff]  }
 0x1a1   : > { %10315 = vmatpush1.bf16.msra.mxu1 %v15827_v36  ;;  %10275 = vmatprep.subr.bf16.mxu0 %v15832_v39  ;;  %v15908_v36 = vld [vmem:[%s18585_s19 + $0x1880] ss:$28 sps:$4 sm:$0xff]   ;;  %v18863_v39 = vcombine.low %v18782_v23, %v18782_v23 }
 0x1a2   : > { %10316 = vmatprep.subr.bf16.mxu1 %v15835_v40  ;;  %v18867_v40 = vcombine.low %v18785_v24, %v18785_v24 }
 0x1a4   : > { %10276 = vmatpush1.bf16.msra.mxu0 %v15830_v41  ;;  %v18870_v41 = vld [vmem:[%s18578_s12 + $0x30] sm:$0xff] }
 0x1a5   : > { %10317 = vmatpush1.bf16.msra.mxu1 %v15833_v42  ;;  %10277 = vmatprep.subr.bf16.mxu0 %v15838_v43  ;;  %v18873_v42 = vld [vmem:[%s18578_s12 + $0x38] sm:$0xff]  ;;  %v15914_v43 = vld [vmem:[%s18585_s19 + $0x153c] ss:$28 sps:$4 sm:$0xff]   ;;  %v18879_v23 = vcombine.high %v18870_v41, %v18870_v41 }
 0x1a6   : > { %10318 = vmatprep.subr.bf16.mxu1 %v15841_v44  ;;  %v15917_v44 = vld [vmem:[%s18585_s19 + $0x18bc] ss:$28 sps:$4 sm:$0xff]   ;;  %v18883_v24 = vcombine.high %v18873_v42, %v18873_v42 }
 0x1a8   : > { %10278 = vmatpush1.bf16.msra.mxu0 %v15836_v45  ;;  %v15912_v45 = vld [vmem:[%s18585_s19 + $0x1538] ss:$28 sps:$4 sm:$0xff]  }
 0x1a9   : > { %10319 = vmatpush1.bf16.msra.mxu1 %v15839_v46  ;;  %10279 = vmatprep.subr.bf16.mxu0 %v15844_v47  ;;  %v15915_v46 = vld [vmem:[%s18585_s19 + $0x18b8] ss:$28 sps:$4 sm:$0xff]  }
 0x1aa   : > { %10320 = vmatprep.subr.bf16.mxu1 %v15847_v49  ;;  %v15920_v47 = vld [vmem:[%s18585_s19 + $0x1574] ss:$28 sps:$4 sm:$0xff]  }
 0x1ab   : > { %v15923_v49 = vld [vmem:[%s18585_s19 + $0x18f4] ss:$28 sps:$4 sm:$0xff]  }
 0x1ac   : > { %10280 = vmatpush1.bf16.msra.mxu0 %v15842_v50  ;;  %v15918_v50 = vld [vmem:[%s18585_s19 + $0x1570] ss:$28 sps:$4 sm:$0xff]  }
 0x1ad   : > { %10321 = vmatpush1.bf16.msra.mxu1 %v15845_v51  ;;  %10281 = vmatprep.subr.bf16.mxu0 %v15850_v53  ;;  %v15921_v51 = vld [vmem:[%s18585_s19 + $0x18f0] ss:$28 sps:$4 sm:$0xff]  }
 0x1ae   : > { %10322 = vmatprep.subr.bf16.mxu1 %v15853_v54  ;;  %v15926_v53 = vld [vmem:[%s18585_s19 + $0x15ac] ss:$28 sps:$4 sm:$0xff]  }
 0x1af   : > { %v15929_v54 = vld [vmem:[%s18585_s19 + $0x192c] ss:$28 sps:$4 sm:$0xff]  }
 0x1b0   : > { %10282 = vmatpush1.bf16.msra.mxu0 %v15848_v55  ;;  %v15924_v55 = vld [vmem:[%s18585_s19 + $0x15a8] ss:$28 sps:$4 sm:$0xff]  }
 0x1b1   : > { %10323 = vmatpush1.bf16.msra.mxu1 %v15851_v56  ;;  %10283 = vmatprep.subr.bf16.mxu0 %v15856_v57  ;;  %v15927_v56 = vld [vmem:[%s18585_s19 + $0x1928] ss:$28 sps:$4 sm:$0xff]  }
 0x1b2   : > { %10324 = vmatprep.subr.bf16.mxu1 %v15859_v58  ;;  %v15932_v57 = vld [vmem:[%s18585_s19 + $0x15e4] ss:$28 sps:$4 sm:$0xff]  }
 0x1b3   : > { %v15935_v58 = vld [vmem:[%s18585_s19 + $0x1964] ss:$28 sps:$4 sm:$0xff]  }
 0x1b4   : > { %10284 = vmatpush1.bf16.msra.mxu0 %v15854_v59  ;;  %v15930_v59 = vld [vmem:[%s18585_s19 + $0x15e0] ss:$28 sps:$4 sm:$0xff]  }
 0x1b5   : > { %10325 = vmatpush1.bf16.msra.mxu1 %v15857_v60  ;;  %10285 = vmatprep.subr.bf16.mxu0 %v15862_v61  ;;  %v15933_v60 = vld [vmem:[%s18585_s19 + $0x1960] ss:$28 sps:$4 sm:$0xff]  }
 0x1b6   : > { %10326 = vmatprep.subr.bf16.mxu1 %v15865_v62  ;;  %v15938_v61 = vld [vmem:[%s18585_s19 + $0x161c] ss:$28 sps:$4 sm:$0xff]  }
 0x1b7   : > { %v15941_v62 = vld [vmem:[%s18585_s19 + $0x199c] ss:$28 sps:$4 sm:$0xff]  }
 0x1b8   : > { %10286 = vmatpush1.bf16.msra.mxu0 %v15860_v63  ;;  %v15936_v63 = vld [vmem:[%s18585_s19 + $0x1618] ss:$28 sps:$4 sm:$0xff]  }
 0x1b9   : > { %10327 = vmatpush1.bf16.msra.mxu1 %v15863_v0  ;;  %10287 = vmatprep.subr.bf16.mxu0 %v15868_v1  ;;  %v15939_v0 = vld [vmem:[%s18585_s19 + $0x1998] ss:$28 sps:$4 sm:$0xff]  }
 0x1ba   : > { %10328 = vmatprep.subr.bf16.mxu1 %v15871_v2  ;;  %v15944_v1 = vld [vmem:[%s18585_s19 + $0x1654] ss:$28 sps:$4 sm:$0xff]  }
 0x1bb   : > { %v15947_v2 = vld [vmem:[%s18585_s19 + $0x19d4] ss:$28 sps:$4 sm:$0xff]  }
 0x1bc   : > { %10288 = vmatpush1.bf16.msra.mxu0 %v15866_v3  ;;  %v15942_v3 = vld [vmem:[%s18585_s19 + $0x1650] ss:$28 sps:$4 sm:$0xff]  }
 0x1bd   : > { %10329 = vmatpush1.bf16.msra.mxu1 %v15869_v4  ;;  %10289 = vmatprep.subr.bf16.mxu0 %v15874_v5  ;;  %v15945_v4 = vld [vmem:[%s18585_s19 + $0x19d0] ss:$28 sps:$4 sm:$0xff]  }
 0x1be   : > { %10330 = vmatprep.subr.bf16.mxu1 %v15877_v6  ;;  %v15950_v5 = vld [vmem:[%s18585_s19 + $0x168c] ss:$28 sps:$4 sm:$0xff]  }
 0x1bf   : > { %v15953_v6 = vld [vmem:[%s18585_s19 + $0x1a0c] ss:$28 sps:$4 sm:$0xff]  }
 0x1c0   : > { %10290 = vmatpush1.bf16.msra.mxu0 %v15872_v9  ;;  %v15948_v9 = vld [vmem:[%s18585_s19 + $0x1688] ss:$28 sps:$4 sm:$0xff]  }
 0x1c1   : > { %10331 = vmatpush1.bf16.msra.mxu1 %v15875_v10  ;;  %10291 = vmatprep.subr.bf16.mxu0 %v15880_v11  ;;  %v15951_v10 = vld [vmem:[%s18585_s19 + $0x1a08] ss:$28 sps:$4 sm:$0xff]  }
 0x1c2   : > { %10332 = vmatprep.subr.bf16.mxu1 %v15883_v12  ;;  %v15956_v11 = vld [vmem:[%s18585_s19 + $0x16c4] ss:$28 sps:$4 sm:$0xff]  }
 0x1c3   : > { %v15959_v12 = vld [vmem:[%s18585_s19 + $0x1a44] ss:$28 sps:$4 sm:$0xff]  }
 0x1c4   : > { %10292 = vmatpush1.bf16.msra.mxu0 %v15878_v13  ;;  %v15954_v13 = vld [vmem:[%s18585_s19 + $0x16c0] ss:$28 sps:$4 sm:$0xff]  }
 0x1c5   : > { %10333 = vmatpush1.bf16.msra.mxu1 %v15881_v14  ;;  %10293 = vmatprep.subr.bf16.mxu0 %v15886_v15  ;;  %v15957_v14 = vld [vmem:[%s18585_s19 + $0x1a40] ss:$28 sps:$4 sm:$0xff]  }
 0x1c6   : > { %10334 = vmatprep.subr.bf16.mxu1 %v15889_v16  ;;  %v15962_v15 = vld [vmem:[%s18585_s19 + $0x16fc] ss:$28 sps:$4 sm:$0xff]  }
 0x1c7   : > { %v15965_v16 = vld [vmem:[%s18585_s19 + $0x1a7c] ss:$28 sps:$4 sm:$0xff]  }
 0x1c8   : > { %10294 = vmatpush1.bf16.msra.mxu0 %v15884_v18  ;;  %v15960_v18 = vld [vmem:[%s18585_s19 + $0x16f8] ss:$28 sps:$4 sm:$0xff]  }
 0x1c9   : > { %10335 = vmatpush1.bf16.msra.mxu1 %v15887_v19  ;;  %10295 = vmatprep.subr.bf16.mxu0 %v15892_v21  ;;  %v15963_v19 = vld [vmem:[%s18585_s19 + $0x1a78] ss:$28 sps:$4 sm:$0xff]  }
 0x1ca   : > { %10336 = vmatprep.subr.bf16.mxu1 %v15895_v22  ;;  %v15968_v21 = vld [vmem:[%s18585_s19 + $0x1734] ss:$28 sps:$4 sm:$0xff]  }
 0x1cb   : > { %v15971_v22 = vld [vmem:[%s18585_s19 + $0x1ab4] ss:$28 sps:$4 sm:$0xff]  }
 0x1cc   : > { %10296 = vmatpush1.bf16.msra.mxu0 %v15890_v27  ;;  %v15966_v27 = vld [vmem:[%s18585_s19 + $0x1730] ss:$28 sps:$4 sm:$0xff]  }
 0x1cd   : > { %10337 = vmatpush1.bf16.msra.mxu1 %v15893_v28  ;;  %10297 = vmatprep.subr.bf16.mxu0 %v15898_v29  ;;  %v15969_v28 = vld [vmem:[%s18585_s19 + $0x1ab0] ss:$28 sps:$4 sm:$0xff]  }
 0x1ce   : > { %10338 = vmatprep.subr.bf16.mxu1 %v15901_v30  ;;  %v15974_v29 = vld [vmem:[%s18585_s19 + $0x176c] ss:$28 sps:$4 sm:$0xff]  }
 0x1cf   : > { %v15977_v30 = vld [vmem:[%s18585_s19 + $0x1aec] ss:$28 sps:$4 sm:$0xff]  }
 0x1d0   : > { %10298 = vmatpush1.bf16.msra.mxu0 %v15896_v31  ;;  %v15972_v31 = vld [vmem:[%s18585_s19 + $0x1768] ss:$28 sps:$4 sm:$0xff]  }
 0x1d1   : > { %10339 = vmatpush1.bf16.msra.mxu1 %v15899_v32  ;;  %10349 = vmatprep.subr.bf16.mxu0 %v15907_v33  ;;  %v15975_v32 = vld [vmem:[%s18585_s19 + $0x1ae8] ss:$28 sps:$4 sm:$0xff]  }
 0x1d2   : > { %10390 = vmatprep.subr.bf16.mxu1 %v15910_v34  ;;  %v15980_v33 = vld [vmem:[%s18585_s19 + $0x17a4] ss:$28 sps:$4 sm:$0xff]  }
 0x1d3   : > { %10300 = vmatmul.mubr.bf16.vlgmr.msra.gmra.mrb[8].mxu0 %v18863_v39  ;;  %v15983_v34 = vld [vmem:[%s18585_s19 + $0x1b24] ss:$28 sps:$4 sm:$0xff]  }
 0x1d4   : > { %10341 = vmatmul.mubr.bf16.vlgmr.msra.gmra.mrb[8].mxu1 %v18867_v40  ;;  %10350 = vmatpush1.bf16.msra.mxu0 %v15905_v35  ;;  %v15978_v35 = vld [vmem:[%s18585_s19 + $0x17a0] ss:$28 sps:$4 sm:$0xff]  }
 0x1d5   : > { %10391 = vmatpush1.bf16.msra.mxu1 %v15908_v36  ;;  %10351 = vmatprep.subr.bf16.mxu0 %v15914_v43  ;;  %v15981_v36 = vld [vmem:[%s18585_s19 + $0x1b20] ss:$28 sps:$4 sm:$0xff]  }
 0x1d6   : > { %10392 = vmatprep.subr.bf16.mxu1 %v15917_v44  ;;  %10381 = vmatprep.mubr.bf16.mxu0 %v18879_v23  ;;  %v15986_v43 = vld [vmem:[%s18585_s19 + $0x17dc] ss:$28 sps:$4 sm:$0xff]  }
 0x1d7   : > { %10422 = vmatprep.mubr.bf16.mxu1 %v18883_v24  ;;  %v15989_v44 = vld [vmem:[%s18585_s19 + $0x1b5c] ss:$28 sps:$4 sm:$0xff]  }
 0x1d8   : > { %10352 = vmatpush1.bf16.msra.mxu0 %v15912_v45  ;;  %v15984_v45 = vld [vmem:[%s18585_s19 + $0x17d8] ss:$28 sps:$4 sm:$0xff]  }
 0x1d9   : > { %10393 = vmatpush1.bf16.msra.mxu1 %v15915_v46  ;;  %10353 = vmatprep.subr.bf16.mxu0 %v15920_v47  ;;  %v15987_v46 = vld [vmem:[%s18585_s19 + $0x1b58] ss:$28 sps:$4 sm:$0xff]  }
 0x1da   : > { %10394 = vmatprep.subr.bf16.mxu1 %v15923_v49  ;;  %v15992_v47 = vld [vmem:[%s18585_s19 + $0x1814] ss:$28 sps:$4 sm:$0xff]  }
 0x1db   : > { %v15995_v49 = vld [vmem:[%s18585_s19 + $0x1b94] ss:$28 sps:$4 sm:$0xff]  }
 0x1dc   : > { %10354 = vmatpush1.bf16.msra.mxu0 %v15918_v50  ;;  %v15990_v50 = vld [vmem:[%s18585_s19 + $0x1810] ss:$28 sps:$4 sm:$0xff]  }
 0x1dd   : > { %10395 = vmatpush1.bf16.msra.mxu1 %v15921_v51  ;;  %10355 = vmatprep.subr.bf16.mxu0 %v15926_v53  ;;  %v15993_v51 = vld [vmem:[%s18585_s19 + $0x1b90] ss:$28 sps:$4 sm:$0xff]  }
 0x1de   : > { %10396 = vmatprep.subr.bf16.mxu1 %v15929_v54  ;;  %v15998_v53 = vld [vmem:[%s18585_s19 + $0x184c] ss:$28 sps:$4 sm:$0xff]  }
 0x1df   : > { %v16001_v54 = vld [vmem:[%s18585_s19 + $0x1bcc] ss:$28 sps:$4 sm:$0xff]  }
 0x1e0   : > { %10356 = vmatpush1.bf16.msra.mxu0 %v15924_v55  ;;  %v15996_v55 = vld [vmem:[%s18585_s19 + $0x1848] ss:$28 sps:$4 sm:$0xff]  }
 0x1e1   : > { %10397 = vmatpush1.bf16.msra.mxu1 %v15927_v56  ;;  %10357 = vmatprep.subr.bf16.mxu0 %v15932_v57  ;;  %v15999_v56 = vld [vmem:[%s18585_s19 + $0x1bc8] ss:$28 sps:$4 sm:$0xff]  }
 0x1e2   : > { %10398 = vmatprep.subr.bf16.mxu1 %v15935_v58  ;;  %v16007_v57 = vld [vmem:[%s18585_s19 + $0x1c04] ss:$28 sps:$4 sm:$0xff]  }
 0x1e3   : > { %v16010_v58 = vld [vmem:[%s18585_s19 + $0x1f84] ss:$28 sps:$4 sm:$0xff]  }
 0x1e4   : > { %10358 = vmatpush1.bf16.msra.mxu0 %v15930_v59  ;;  %v18950_v59 = vld [vmem:[%s18578_s12 + $0x40] sm:$0xff] }
 0x1e5   : > { %10399 = vmatpush1.bf16.msra.mxu1 %v15933_v60  ;;  %10359 = vmatprep.subr.bf16.mxu0 %v15938_v61  ;;  %v18954_v60 = vcombine.low %v18870_v41, %v18870_v41  ;;  %v18958_v61 = vcombine.low %v18873_v42, %v18873_v42  ;;  %v18969_v41 = vcombine.high %v18950_v59, %v18950_v59 }
 0x1e6   : > { %10400 = vmatprep.subr.bf16.mxu1 %v15941_v62  ;;  %v18961_v62 = vld [vmem:[%s18578_s12 + $0x48] sm:$0xff] }
 0x1e7   : > { %v18973_v42 = vcombine.high %v18961_v62, %v18961_v62 }
 0x1e8   : > { %10360 = vmatpush1.bf16.msra.mxu0 %v15936_v63  ;;  %v16005_v63 = vld [vmem:[%s18585_s19 + $0x1c00] ss:$28 sps:$4 sm:$0xff]  }
 0x1e9   : > { %10401 = vmatpush1.bf16.msra.mxu1 %v15939_v0  ;;  %10361 = vmatprep.subr.bf16.mxu0 %v15944_v1  ;;  %v16008_v0 = vld [vmem:[%s18585_s19 + $0x1f80] ss:$28 sps:$4 sm:$0xff]  }
 0x1ea   : > { %10402 = vmatprep.subr.bf16.mxu1 %v15947_v2  ;;  %v16014_v1 = vld [vmem:[%s18585_s19 + $0x1c3c] ss:$28 sps:$4 sm:$0xff]  }
 0x1eb   : > { %v16017_v2 = vld [vmem:[%s18585_s19 + $0x1fbc] ss:$28 sps:$4 sm:$0xff]  }
 0x1ec   : > { %10362 = vmatpush1.bf16.msra.mxu0 %v15942_v3  ;;  %v16012_v3 = vld [vmem:[%s18585_s19 + $0x1c38] ss:$28 sps:$4 sm:$0xff]  }
 0x1ed   : > { %10403 = vmatpush1.bf16.msra.mxu1 %v15945_v4  ;;  %10363 = vmatprep.subr.bf16.mxu0 %v15950_v5  ;;  %v16015_v4 = vld [vmem:[%s18585_s19 + $0x1fb8] ss:$28 sps:$4 sm:$0xff]  }
 0x1ee   : > { %10404 = vmatprep.subr.bf16.mxu1 %v15953_v6  ;;  %v16020_v5 = vld [vmem:[%s18585_s19 + $0x1c74] ss:$28 sps:$4 sm:$0xff]  }
 0x1ef   : > { %v16023_v6 = vld [vmem:[%s18585_s19 + $0x1ff4] ss:$28 sps:$4 sm:$0xff]  }
 0x1f0   : > { %10364 = vmatpush1.bf16.msra.mxu0 %v15948_v9  ;;  %v16018_v9 = vld [vmem:[%s18585_s19 + $0x1c70] ss:$28 sps:$4 sm:$0xff]  }
 0x1f1   : > { %10405 = vmatpush1.bf16.msra.mxu1 %v15951_v10  ;;  %10365 = vmatprep.subr.bf16.mxu0 %v15956_v11  ;;  %v16021_v10 = vld [vmem:[%s18585_s19 + $0x1ff0] ss:$28 sps:$4 sm:$0xff]  }
 0x1f2   : > { %10406 = vmatprep.subr.bf16.mxu1 %v15959_v12  ;;  %v16026_v11 = vld [vmem:[%s18585_s19 + $0x1cac] ss:$28 sps:$4 sm:$0xff]  }
 0x1f3   : > { %v16029_v12 = vld [vmem:[%s18585_s19 + $0x202c] ss:$28 sps:$4 sm:$0xff]  }
 0x1f4   : > { %10366 = vmatpush1.bf16.msra.mxu0 %v15954_v13  ;;  %v16024_v13 = vld [vmem:[%s18585_s19 + $0x1ca8] ss:$28 sps:$4 sm:$0xff]  }
 0x1f5   : > { %10407 = vmatpush1.bf16.msra.mxu1 %v15957_v14  ;;  %10367 = vmatprep.subr.bf16.mxu0 %v15962_v15  ;;  %v16027_v14 = vld [vmem:[%s18585_s19 + $0x2028] ss:$28 sps:$4 sm:$0xff]  }
 0x1f6   : > { %10408 = vmatprep.subr.bf16.mxu1 %v15965_v16  ;;  %v16032_v15 = vld [vmem:[%s18585_s19 + $0x1ce4] ss:$28 sps:$4 sm:$0xff]  }
 0x1f7   : > { %v16035_v16 = vld [vmem:[%s18585_s19 + $0x2064] ss:$28 sps:$4 sm:$0xff]  }
 0x1f8   : > { %10368 = vmatpush1.bf16.msra.mxu0 %v15960_v18  ;;  %v16030_v18 = vld [vmem:[%s18585_s19 + $0x1ce0] ss:$28 sps:$4 sm:$0xff]  }
 0x1f9   : > { %10409 = vmatpush1.bf16.msra.mxu1 %v15963_v19  ;;  %10369 = vmatprep.subr.bf16.mxu0 %v15968_v21  ;;  %v16033_v19 = vld [vmem:[%s18585_s19 + $0x2060] ss:$28 sps:$4 sm:$0xff]  }
 0x1fa   : > { %10410 = vmatprep.subr.bf16.mxu1 %v15971_v22  ;;  %v16038_v21 = vld [vmem:[%s18585_s19 + $0x1d1c] ss:$28 sps:$4 sm:$0xff]  }
 0x1fb   : > { %v16041_v22 = vld [vmem:[%s18585_s19 + $0x209c] ss:$28 sps:$4 sm:$0xff]  }
 0x1fc   : > { %10370 = vmatpush1.bf16.msra.mxu0 %v15966_v27  ;;  %v16036_v27 = vld [vmem:[%s18585_s19 + $0x1d18] ss:$28 sps:$4 sm:$0xff]  }
 0x1fd   : > { %10411 = vmatpush1.bf16.msra.mxu1 %v15969_v28  ;;  %10371 = vmatprep.subr.bf16.mxu0 %v15974_v29  ;;  %v16039_v28 = vld [vmem:[%s18585_s19 + $0x2098] ss:$28 sps:$4 sm:$0xff]  }
 0x1fe   : > { %10412 = vmatprep.subr.bf16.mxu1 %v15977_v30  ;;  %v16044_v29 = vld [vmem:[%s18585_s19 + $0x1d54] ss:$28 sps:$4 sm:$0xff]  }
 0x1ff   : > { %v16047_v30 = vld [vmem:[%s18585_s19 + $0x20d4] ss:$28 sps:$4 sm:$0xff]  }
 0x200   : > { %10372 = vmatpush1.bf16.msra.mxu0 %v15972_v31 }
 0x201   : > { %10413 = vmatpush1.bf16.msra.mxu1 %v15975_v32  ;;  %10373 = vmatprep.subr.bf16.mxu0 %v15980_v33  ;;  %v16042_v33 = vld [vmem:[%s18585_s19 + $0x1d50] ss:$28 sps:$4 sm:$0xff]  }
 0x202   : > { %10414 = vmatprep.subr.bf16.mxu1 %v15983_v34  ;;  %v16045_v34 = vld [vmem:[%s18585_s19 + $0x20d0] ss:$28 sps:$4 sm:$0xff]  }
 0x204   : > { %10374 = vmatpush1.bf16.msra.mxu0 %v15978_v35 }
 0x205   : > { %10415 = vmatpush1.bf16.msra.mxu1 %v15981_v36  ;;  %10375 = vmatprep.subr.bf16.mxu0 %v15986_v43 }
 0x206   : > { %10416 = vmatprep.subr.bf16.mxu1 %v15989_v44 }
 0x208   : > { %10376 = vmatpush1.bf16.msra.mxu0 %v15984_v45 }
 0x209   : > { %10417 = vmatpush1.bf16.msra.mxu1 %v15987_v46  ;;  %10377 = vmatprep.subr.bf16.mxu0 %v15992_v47 }
 0x20a   : > { %10418 = vmatprep.subr.bf16.mxu1 %v15995_v49  ;;  %v16050_v49 = vld [vmem:[%s18585_s19 + $0x1d8c] ss:$28 sps:$4 sm:$0xff]  }
 0x20c   : > { %10378 = vmatpush1.bf16.msra.mxu0 %v15990_v50  ;;  %v16053_v50 = vld [vmem:[%s18585_s19 + $0x210c] ss:$28 sps:$4 sm:$0xff]  }
 0x20d   : > { %10419 = vmatpush1.bf16.msra.mxu1 %v15993_v51  ;;  %10379 = vmatprep.subr.bf16.mxu0 %v15998_v53  ;;  %v16048_v53 = vld [vmem:[%s18585_s19 + $0x1d88] ss:$28 sps:$4 sm:$0xff]  }
 0x20e   : > { %10420 = vmatprep.subr.bf16.mxu1 %v16001_v54  ;;  %v16051_v54 = vld [vmem:[%s18585_s19 + $0x2108] ss:$28 sps:$4 sm:$0xff]  }
 0x210   : > { %10380 = vmatpush1.bf16.msra.mxu0 %v15996_v55  ;;  %v16056_v55 = vld [vmem:[%s18585_s19 + $0x1dc4] ss:$28 sps:$4 sm:$0xff]  }
 0x211   : > { %10421 = vmatpush1.bf16.msra.mxu1 %v15999_v56  ;;  %10431 = vmatprep.subr.bf16.mxu0 %v16007_v57  ;;  %v16059_v56 = vld [vmem:[%s18585_s19 + $0x2144] ss:$28 sps:$4 sm:$0xff]  }
 0x212   : > { %10472 = vmatprep.subr.bf16.mxu1 %v16010_v58  ;;  %v16054_v57 = vld [vmem:[%s18585_s19 + $0x1dc0] ss:$28 sps:$4 sm:$0xff]  }
 0x213   : > { %10382 = vmatmul.mubr.bf16.vlgmr.msra.gmra.mrb[12].mxu0 %v18954_v60  ;;  %v16057_v58 = vld [vmem:[%s18585_s19 + $0x2140] ss:$28 sps:$4 sm:$0xff]  }
 0x214   : > { %10423 = vmatmul.mubr.bf16.vlgmr.msra.gmra.mrb[12].mxu1 %v18958_v61  ;;  %10432 = vmatpush1.bf16.msra.mxu0 %v16005_v63  ;;  %v16062_v63 = vld [vmem:[%s18585_s19 + $0x1dfc] ss:$28 sps:$4 sm:$0xff]  }
 0x215   : > { %10473 = vmatpush1.bf16.msra.mxu1 %v16008_v0  ;;  %10433 = vmatprep.subr.bf16.mxu0 %v16014_v1  ;;  %v16065_v0 = vld [vmem:[%s18585_s19 + $0x217c] ss:$28 sps:$4 sm:$0xff]  }
 0x216   : > { %10474 = vmatprep.subr.bf16.mxu1 %v16017_v2  ;;  %10463 = vmatprep.mubr.bf16.mxu0 %v18969_v41  ;;  %v16060_v1 = vld [vmem:[%s18585_s19 + $0x1df8] ss:$28 sps:$4 sm:$0xff]  }
 0x217   : > { %10504 = vmatprep.mubr.bf16.mxu1 %v18973_v42  ;;  %v16063_v2 = vld [vmem:[%s18585_s19 + $0x2178] ss:$28 sps:$4 sm:$0xff]  }
 0x218   : > { %10434 = vmatpush1.bf16.msra.mxu0 %v16012_v3  ;;  %v16068_v3 = vld [vmem:[%s18585_s19 + $0x1e34] ss:$28 sps:$4 sm:$0xff]  }
 0x219   : > { %10475 = vmatpush1.bf16.msra.mxu1 %v16015_v4  ;;  %10435 = vmatprep.subr.bf16.mxu0 %v16020_v5  ;;  %v16071_v4 = vld [vmem:[%s18585_s19 + $0x21b4] ss:$28 sps:$4 sm:$0xff]  }
 0x21a   : > { %10476 = vmatprep.subr.bf16.mxu1 %v16023_v6  ;;  %v16066_v5 = vld [vmem:[%s18585_s19 + $0x1e30] ss:$28 sps:$4 sm:$0xff]  }
 0x21b   : > { %v16069_v6 = vld [vmem:[%s18585_s19 + $0x21b0] ss:$28 sps:$4 sm:$0xff]  }
 0x21c   : > { %10436 = vmatpush1.bf16.msra.mxu0 %v16018_v9  ;;  %v16074_v9 = vld [vmem:[%s18585_s19 + $0x1e6c] ss:$28 sps:$4 sm:$0xff]  }
 0x21d   : > { %10477 = vmatpush1.bf16.msra.mxu1 %v16021_v10  ;;  %10437 = vmatprep.subr.bf16.mxu0 %v16026_v11  ;;  %v16077_v10 = vld [vmem:[%s18585_s19 + $0x21ec] ss:$28 sps:$4 sm:$0xff]  }
 0x21e   : > { %10478 = vmatprep.subr.bf16.mxu1 %v16029_v12  ;;  %v16072_v11 = vld [vmem:[%s18585_s19 + $0x1e68] ss:$28 sps:$4 sm:$0xff]  }
 0x21f   : > { %v16075_v12 = vld [vmem:[%s18585_s19 + $0x21e8] ss:$28 sps:$4 sm:$0xff]  }
 0x220   : > { %10438 = vmatpush1.bf16.msra.mxu0 %v16024_v13  ;;  %v16080_v13 = vld [vmem:[%s18585_s19 + $0x1ea4] ss:$28 sps:$4 sm:$0xff]  }
 0x221   : > { %10479 = vmatpush1.bf16.msra.mxu1 %v16027_v14  ;;  %10439 = vmatprep.subr.bf16.mxu0 %v16032_v15  ;;  %v16083_v14 = vld [vmem:[%s18585_s19 + $0x2224] ss:$28 sps:$4 sm:$0xff]  }
 0x222   : > { %10480 = vmatprep.subr.bf16.mxu1 %v16035_v16  ;;  %v16078_v15 = vld [vmem:[%s18585_s19 + $0x1ea0] ss:$28 sps:$4 sm:$0xff]  }
 0x223   : > { %v16081_v16 = vld [vmem:[%s18585_s19 + $0x2220] ss:$28 sps:$4 sm:$0xff]  }
 0x224   : > { %10440 = vmatpush1.bf16.msra.mxu0 %v16030_v18  ;;  %v16086_v18 = vld [vmem:[%s18585_s19 + $0x1edc] ss:$28 sps:$4 sm:$0xff]  }
 0x225   : > { %10481 = vmatpush1.bf16.msra.mxu1 %v16033_v19  ;;  %10441 = vmatprep.subr.bf16.mxu0 %v16038_v21  ;;  %v16089_v19 = vld [vmem:[%s18585_s19 + $0x225c] ss:$28 sps:$4 sm:$0xff]  }
 0x226   : > { %10482 = vmatprep.subr.bf16.mxu1 %v16041_v22  ;;  %v10137_v31 = vpop.f32.mrb[0].mxu0  ;;  %v16084_v21 = vld [vmem:[%s18585_s19 + $0x1ed8] ss:$28 sps:$4 sm:$0xff]  }
 0x227   : > { %v10178_v32 = vpop.f32.mrb[0].mxu1  ;;  %v10139_v36 = vpop.f32.mrb[1].mxu0  ;;  %v16087_v22 = vld [vmem:[%s18585_s19 + $0x2258] ss:$28 sps:$4 sm:$0xff]  }
 0x228   : > { %v19001_v35 = vadd.f32 %v10178_v32, %v10137_v31  ;;  %v10180_v43 = vpop.f32.mrb[1].mxu1  ;;  %v10141_v45 = vpop.f32.mrb[2].mxu0  ;;  %10442 = vmatpush1.bf16.msra.mxu0 %v16036_v27  ;;  %v16092_v27 = vld [vmem:[%s18585_s19 + $0x1f14] ss:$28 sps:$4 sm:$0xff]   ;;  %v16098_v31 = vld [vmem:[%s18585_s19 + $0x1f4c] ss:$28 sps:$4 sm:$0xff]  }
 0x229   : > { %v19003_v44 = vadd.f32 %v10180_v43, %v10139_v36  ;;  %10483 = vmatpush1.bf16.msra.mxu1 %v16039_v28  ;;  %v10182_v46 = vpop.f32.mrb[2].mxu1  ;;  %v10142_v47 = vpop.f32.mrb[3].mxu0  ;;  %10443 = vmatprep.subr.bf16.mxu0 %v16044_v29  ;;  %v16095_v28 = vld [vmem:[%s18585_s19 + $0x2294] ss:$28 sps:$4 sm:$0xff]   ;;  %v16101_v32 = vld [vmem:[%s18585_s19 + $0x22cc] ss:$28 sps:$4 sm:$0xff]  }
 0x22a   : > { %10484 = vmatprep.subr.bf16.mxu1 %v16047_v30  ;;  %v10183_v51 = vpop.f32.mrb[3].mxu1  ;;  %v16090_v29 = vld [vmem:[%s18585_s19 + $0x1f10] ss:$28 sps:$4 sm:$0xff]   ;;  %v16107_v36 = vld [vmem:[%s18585_s19 + $0x2304] ss:$28 sps:$4 sm:$0xff]  }
 0x22b   : > { %v16093_v30 = vld [vmem:[%s18585_s19 + $0x2290] ss:$28 sps:$4 sm:$0xff]   ;;  %v16110_v43 = vld [vmem:[%s18585_s19 + $0x2684] ss:$28 sps:$4 sm:$0xff]  }
 0x22c   : > { %10444 = vmatpush1.bf16.msra.mxu0 %v16042_v33  ;;  %v16096_v33 = vld [vmem:[%s18585_s19 + $0x1f48] ss:$28 sps:$4 sm:$0xff]   ;;  %v16105_v46 = vld [vmem:[%s18585_s19 + $0x2300] ss:$28 sps:$4 sm:$0xff]  }
 0x22d   : > { %10485 = vmatpush1.bf16.msra.mxu1 %v16045_v34  ;;  %10445 = vmatprep.subr.bf16.mxu0 %v16050_v49  ;;  %v16099_v34 = vld [vmem:[%s18585_s19 + $0x22c8] ss:$28 sps:$4 sm:$0xff]   ;;  %v16108_v47 = vld [vmem:[%s18585_s19 + $0x2680] ss:$28 sps:$4 sm:$0xff]   ;;  %v19050_v49 = vcombine.low %v18950_v59, %v18950_v59 }
 0x22e   : > { %10486 = vmatprep.subr.bf16.mxu1 %v16053_v50  ;;  %v19044_v45 = vld [vmem:[%s18578_s12 + $0x50] sm:$0xff]  ;;  %v19054_v50 = vcombine.low %v18961_v62, %v18961_v62  ;;  %v19057_v51 = vld [vmem:[%s18578_s12 + $0x58] sm:$0xff] }
 0x22f   : > { %v19067_v59 = vcombine.high %v19057_v51, %v19057_v51  ;;  %v16112_v62 = vld [vmem:[%s18585_s19 + $0x2338] ss:$28 sps:$4 sm:$0xff]  }
 0x230   : > { %10446 = vmatpush1.bf16.msra.mxu0 %v16048_v53  ;;  %v16114_v53 = vld [vmem:[%s18585_s19 + $0x233c] ss:$28 sps:$4 sm:$0xff]  }
 0x231   : > { %10487 = vmatpush1.bf16.msra.mxu1 %v16051_v54  ;;  %10447 = vmatprep.subr.bf16.mxu0 %v16056_v55  ;;  %v16117_v54 = vld [vmem:[%s18585_s19 + $0x26bc] ss:$28 sps:$4 sm:$0xff]   ;;  %v19063_v55 = vcombine.high %v19044_v45, %v19044_v45 }
 0x232   : > { %10488 = vmatprep.subr.bf16.mxu1 %v16059_v56  ;;  %v16115_v56 = vld [vmem:[%s18585_s19 + $0x26b8] ss:$28 sps:$4 sm:$0xff]  }
 0x234   : > { %10448 = vmatpush1.bf16.msra.mxu0 %v16054_v57  ;;  %v16120_v57 = vld [vmem:[%s18585_s19 + $0x2374] ss:$28 sps:$4 sm:$0xff]  }
 0x235   : > { %10489 = vmatpush1.bf16.msra.mxu1 %v16057_v58  ;;  %10449 = vmatprep.subr.bf16.mxu0 %v16062_v63  ;;  %v16123_v58 = vld [vmem:[%s18585_s19 + $0x26f4] ss:$28 sps:$4 sm:$0xff]  }
 0x236   : > { %10490 = vmatprep.subr.bf16.mxu1 %v16065_v0  ;;  %v16118_v63 = vld [vmem:[%s18585_s19 + $0x2370] ss:$28 sps:$4 sm:$0xff]  }
 0x237   : > { %v16121_v0 = vld [vmem:[%s18585_s19 + $0x26f0] ss:$28 sps:$4 sm:$0xff]  }
 0x238   : > { %10450 = vmatpush1.bf16.msra.mxu0 %v16060_v1  ;;  %v16126_v1 = vld [vmem:[%s18585_s19 + $0x23ac] ss:$28 sps:$4 sm:$0xff]  }
 0x239   : > { %10491 = vmatpush1.bf16.msra.mxu1 %v16063_v2  ;;  %10451 = vmatprep.subr.bf16.mxu0 %v16068_v3  ;;  %v16129_v2 = vld [vmem:[%s18585_s19 + $0x272c] ss:$28 sps:$4 sm:$0xff]  }
 0x23a   : > { %10492 = vmatprep.subr.bf16.mxu1 %v16071_v4  ;;  %v16124_v3 = vld [vmem:[%s18585_s19 + $0x23a8] ss:$28 sps:$4 sm:$0xff]  }
 0x23b   : > { %v16127_v4 = vld [vmem:[%s18585_s19 + $0x2728] ss:$28 sps:$4 sm:$0xff]  }
 0x23c   : > { %10452 = vmatpush1.bf16.msra.mxu0 %v16066_v5  ;;  %v16132_v5 = vld [vmem:[%s18585_s19 + $0x23e4] ss:$28 sps:$4 sm:$0xff]  }
 0x23d   : > { %10493 = vmatpush1.bf16.msra.mxu1 %v16069_v6  ;;  %10453 = vmatprep.subr.bf16.mxu0 %v16074_v9  ;;  %v16135_v6 = vld [vmem:[%s18585_s19 + $0x2764] ss:$28 sps:$4 sm:$0xff]  }
 0x23e   : > { %10494 = vmatprep.subr.bf16.mxu1 %v16077_v10  ;;  %v16130_v9 = vld [vmem:[%s18585_s19 + $0x23e0] ss:$28 sps:$4 sm:$0xff]  }
 0x23f   : > { %v16133_v10 = vld [vmem:[%s18585_s19 + $0x2760] ss:$28 sps:$4 sm:$0xff]  }
 0x240   : > { %10454 = vmatpush1.bf16.msra.mxu0 %v16072_v11  ;;  %v16138_v11 = vld [vmem:[%s18585_s19 + $0x241c] ss:$28 sps:$4 sm:$0xff]  }
 0x241   : > { %10495 = vmatpush1.bf16.msra.mxu1 %v16075_v12  ;;  %10455 = vmatprep.subr.bf16.mxu0 %v16080_v13  ;;  %v16141_v12 = vld [vmem:[%s18585_s19 + $0x279c] ss:$28 sps:$4 sm:$0xff]  }
 0x242   : > { %10496 = vmatprep.subr.bf16.mxu1 %v16083_v14  ;;  %v16136_v13 = vld [vmem:[%s18585_s19 + $0x2418] ss:$28 sps:$4 sm:$0xff]  }
 0x243   : > { %v16139_v14 = vld [vmem:[%s18585_s19 + $0x2798] ss:$28 sps:$4 sm:$0xff]  }
 0x244   : > { %10456 = vmatpush1.bf16.msra.mxu0 %v16078_v15  ;;  %v16144_v15 = vld [vmem:[%s18585_s19 + $0x2454] ss:$28 sps:$4 sm:$0xff]  }
 0x245   : > { %10497 = vmatpush1.bf16.msra.mxu1 %v16081_v16  ;;  %10457 = vmatprep.subr.bf16.mxu0 %v16086_v18  ;;  %v16147_v16 = vld [vmem:[%s18585_s19 + $0x27d4] ss:$28 sps:$4 sm:$0xff]  }
 0x246   : > { %10498 = vmatprep.subr.bf16.mxu1 %v16089_v19 }
 0x248   : > { %10458 = vmatpush1.bf16.msra.mxu0 %v16084_v21  ;;  %v16142_v21 = vld [vmem:[%s18585_s19 + $0x2450] ss:$28 sps:$4 sm:$0xff]  }
 0x249   : > { %10499 = vmatpush1.bf16.msra.mxu1 %v16087_v22  ;;  %10459 = vmatprep.subr.bf16.mxu0 %v16092_v27  ;;  %v16145_v22 = vld [vmem:[%s18585_s19 + $0x27d0] ss:$28 sps:$4 sm:$0xff]  }
 0x24a   : > { %10500 = vmatprep.subr.bf16.mxu1 %v16095_v28 }
 0x24c   : > { %10460 = vmatpush1.bf16.msra.mxu0 %v16090_v29 }
 0x24d   : > { %10501 = vmatpush1.bf16.msra.mxu1 %v16093_v30  ;;  %10461 = vmatprep.subr.bf16.mxu0 %v16098_v31 }
 0x24e   : > { %10502 = vmatprep.subr.bf16.mxu1 %v16101_v32 }
 0x250   : > { %10462 = vmatpush1.bf16.msra.mxu0 %v16096_v33 }
 0x251   : > { %10503 = vmatpush1.bf16.msra.mxu1 %v16099_v34  ;;  %10513 = vmatprep.subr.bf16.mxu0 %v16107_v36  ;;  %v16153_v36 = vld [vmem:[%s18585_s19 + $0x280c] ss:$28 sps:$4 sm:$0xff]  }
 0x252   : > { %10554 = vmatprep.subr.bf16.mxu1 %v16110_v43 }
 0x253   : > { %10464 = vmatmul.mubr.bf16.vlgmr.msra.gmra.mrb[16].mxu0 %v19050_v49 }
 0x254   : > { %10505 = vmatmul.mubr.bf16.vlgmr.msra.gmra.mrb[16].mxu1 %v19054_v50  ;;  %10514 = vmatpush1.bf16.msra.mxu0 %v16105_v46 }
 0x255   : > { %10555 = vmatpush1.bf16.msra.mxu1 %v16108_v47  ;;  %10515 = vmatprep.subr.bf16.mxu0 %v16114_v53  ;;  %v16151_v47 = vld [vmem:[%s18585_s19 + $0x2808] ss:$28 sps:$4 sm:$0xff]  }
 0x256   : > { %10556 = vmatprep.subr.bf16.mxu1 %v16117_v54  ;;  %10545 = vmatprep.mubr.bf16.mxu0 %v19063_v55  ;;  %v16156_v53 = vld [vmem:[%s18585_s19 + $0x24c4] ss:$28 sps:$4 sm:$0xff]  }
 0x257   : > { %10586 = vmatprep.mubr.bf16.mxu1 %v19067_v59  ;;  %v16159_v54 = vld [vmem:[%s18585_s19 + $0x2844] ss:$28 sps:$4 sm:$0xff]  }
 0x258   : > { %10516 = vmatpush1.bf16.msra.mxu0 %v16112_v62  ;;  %v16154_v62 = vld [vmem:[%s18585_s19 + $0x24c0] ss:$28 sps:$4 sm:$0xff]  }
 0x259   : > { %10557 = vmatpush1.bf16.msra.mxu1 %v16115_v56  ;;  %10517 = vmatprep.subr.bf16.mxu0 %v16120_v57  ;;  %v16157_v56 = vld [vmem:[%s18585_s19 + $0x2840] ss:$28 sps:$4 sm:$0xff]  }
 0x25a   : > { %10558 = vmatprep.subr.bf16.mxu1 %v16123_v58  ;;  %v16162_v57 = vld [vmem:[%s18585_s19 + $0x24fc] ss:$28 sps:$4 sm:$0xff]  }
 0x25b   : > { %v16165_v58 = vld [vmem:[%s18585_s19 + $0x287c] ss:$28 sps:$4 sm:$0xff]  }
 0x25c   : > { %10518 = vmatpush1.bf16.msra.mxu0 %v16118_v63  ;;  %v16160_v63 = vld [vmem:[%s18585_s19 + $0x24f8] ss:$28 sps:$4 sm:$0xff]  }
 0x25d   : > { %10559 = vmatpush1.bf16.msra.mxu1 %v16121_v0  ;;  %10519 = vmatprep.subr.bf16.mxu0 %v16126_v1  ;;  %v16163_v0 = vld [vmem:[%s18585_s19 + $0x2878] ss:$28 sps:$4 sm:$0xff]  }
 0x25e   : > { %10560 = vmatprep.subr.bf16.mxu1 %v16129_v2  ;;  %v16168_v1 = vld [vmem:[%s18585_s19 + $0x2534] ss:$28 sps:$4 sm:$0xff]  }
 0x25f   : > { %v16171_v2 = vld [vmem:[%s18585_s19 + $0x28b4] ss:$28 sps:$4 sm:$0xff]  }
 0x260   : > { %10520 = vmatpush1.bf16.msra.mxu0 %v16124_v3  ;;  %v16166_v3 = vld [vmem:[%s18585_s19 + $0x2530] ss:$28 sps:$4 sm:$0xff]  }
 0x261   : > { %10561 = vmatpush1.bf16.msra.mxu1 %v16127_v4  ;;  %10521 = vmatprep.subr.bf16.mxu0 %v16132_v5  ;;  %v16169_v4 = vld [vmem:[%s18585_s19 + $0x28b0] ss:$28 sps:$4 sm:$0xff]  }
 0x262   : > { %10562 = vmatprep.subr.bf16.mxu1 %v16135_v6  ;;  %v16174_v5 = vld [vmem:[%s18585_s19 + $0x256c] ss:$28 sps:$4 sm:$0xff]  }
 0x263   : > { %v16177_v6 = vld [vmem:[%s18585_s19 + $0x28ec] ss:$28 sps:$4 sm:$0xff]  }
 0x264   : > { %10522 = vmatpush1.bf16.msra.mxu0 %v16130_v9  ;;  %v16172_v9 = vld [vmem:[%s18585_s19 + $0x2568] ss:$28 sps:$4 sm:$0xff]  }
 0x265   : > { %10563 = vmatpush1.bf16.msra.mxu1 %v16133_v10  ;;  %10523 = vmatprep.subr.bf16.mxu0 %v16138_v11  ;;  %v16175_v10 = vld [vmem:[%s18585_s19 + $0x28e8] ss:$28 sps:$4 sm:$0xff]  }
 0x266   : > { %10564 = vmatprep.subr.bf16.mxu1 %v16141_v12  ;;  %v10219_v18 = vpop.f32.mrb[4].mxu0  ;;  %v16180_v11 = vld [vmem:[%s18585_s19 + $0x25a4] ss:$28 sps:$4 sm:$0xff]  }
 0x267   : > { %v10260_v19 = vpop.f32.mrb[4].mxu1  ;;  %v10220_v27 = vadd.f32 %v10219_v18, %v19001_v35  ;;  %v10221_v28 = vpop.f32.mrb[5].mxu0  ;;  %v16150_v35 = vld [vmem:[%s18585_s19 + $0x248c] ss:$28 sps:$4 sm:$0xff]   ;;  %v16183_v12 = vld [vmem:[%s18585_s19 + $0x2924] ss:$28 sps:$4 sm:$0xff]  }
 0x268   : > { %v10262_v29 = vpop.f32.mrb[5].mxu1  ;;  %v10222_v30 = vadd.f32 %v10221_v28, %v19003_v44  ;;  %v10223_v31 = vpop.f32.mrb[6].mxu0  ;;  %10524 = vmatpush1.bf16.msra.mxu0 %v16136_v13  ;;  %v16148_v44 = vld [vmem:[%s18585_s19 + $0x2488] ss:$28 sps:$4 sm:$0xff]   ;;  %v16178_v13 = vld [vmem:[%s18585_s19 + $0x25a0] ss:$28 sps:$4 sm:$0xff]  }
 0x269   : > { %10565 = vmatpush1.bf16.msra.mxu1 %v16139_v14  ;;  %v10264_v32 = vpop.f32.mrb[6].mxu1  ;;  %v19097_v33 = vadd.f32 %v10260_v19, %v10220_v27  ;;  %v10224_v34 = vpop.f32.mrb[7].mxu0  ;;  %10525 = vmatprep.subr.bf16.mxu0 %v16144_v15  ;;  %v16181_v14 = vld [vmem:[%s18585_s19 + $0x2920] ss:$28 sps:$4 sm:$0xff]   ;;  %v16184_v18 = vld [vmem:[%s18585_s19 + $0x25d8] ss:$28 sps:$4 sm:$0xff]  }
 0x26a   : > { %10566 = vmatprep.subr.bf16.mxu1 %v16147_v16  ;;  %v10265_v43 = vpop.f32.mrb[7].mxu1  ;;  %v19101_v46 = vadd.f32 %v10262_v29, %v10222_v30  ;;  %v16186_v15 = vld [vmem:[%s18585_s19 + $0x25dc] ss:$28 sps:$4 sm:$0xff]   ;;  %v16190_v27 = vld [vmem:[%s18585_s19 + $0x2610] ss:$28 sps:$4 sm:$0xff]  }
 0x26b   : > { %v16189_v16 = vld [vmem:[%s18585_s19 + $0x295c] ss:$28 sps:$4 sm:$0xff]   ;;  %v16193_v28 = vld [vmem:[%s18585_s19 + $0x2990] ss:$28 sps:$4 sm:$0xff]   ;;  %v16196_v31 = vld [vmem:[%s18585_s19 + $0x2648] ss:$28 sps:$4 sm:$0xff]  }
 0x26c   : > { %10526 = vmatpush1.bf16.msra.mxu0 %v16142_v21  ;;  %v16187_v19 = vld [vmem:[%s18585_s19 + $0x2958] ss:$28 sps:$4 sm:$0xff]   ;;  %v16198_v29 = vld [vmem:[%s18585_s19 + $0x264c] ss:$28 sps:$4 sm:$0xff]   ;;  %v16207_v34 = vld [vmem:[%s18585_s19 + $0x2a04] ss:$28 sps:$4 sm:$0xff]  }
 0x26d   : > { %10567 = vmatpush1.bf16.msra.mxu1 %v16145_v22  ;;  %10527 = vmatprep.subr.bf16.mxu0 %v16150_v35  ;;  %v16192_v21 = vld [vmem:[%s18585_s19 + $0x2614] ss:$28 sps:$4 sm:$0xff]   ;;  %v16201_v30 = vld [vmem:[%s18585_s19 + $0x29cc] ss:$28 sps:$4 sm:$0xff]   ;;  %v16210_v35 = vld [vmem:[%s18585_s19 + $0x2d84] ss:$28 sps:$4 sm:$0xff]  }
 0x26e   : > { %10568 = vmatprep.subr.bf16.mxu1 %v16153_v36  ;;  %v16195_v22 = vld [vmem:[%s18585_s19 + $0x2994] ss:$28 sps:$4 sm:$0xff]   ;;  %v16199_v32 = vld [vmem:[%s18585_s19 + $0x29c8] ss:$28 sps:$4 sm:$0xff]   ;;  %v16205_v43 = vld [vmem:[%s18585_s19 + $0x2a00] ss:$28 sps:$4 sm:$0xff]  }
 0x26f   : > { %v19140_v36 = vld [vmem:[%s18578_s12 + $0x60] sm:$0xff] }
 0x270   : > { %10528 = vmatpush1.bf16.msra.mxu0 %v16148_v44  ;;  %v16208_v44 = vld [vmem:[%s18585_s19 + $0x2d80] ss:$28 sps:$4 sm:$0xff]  }
 0x271   : > { %10569 = vmatpush1.bf16.msra.mxu1 %v16151_v47  ;;  %10529 = vmatprep.subr.bf16.mxu0 %v16156_v53  ;;  %v19146_v47 = vcombine.low %v19044_v45, %v19044_v45  ;;  %v19150_v53 = vcombine.low %v19057_v51, %v19057_v51  ;;  %v16212_v45 = vld [vmem:[%s18585_s19 + $0x2a38] ss:$28 sps:$4 sm:$0xff]  }
 0x272   : > { %10570 = vmatprep.subr.bf16.mxu1 %v16159_v54  ;;  %v16214_v54 = vld [vmem:[%s18585_s19 + $0x2a3c] ss:$28 sps:$4 sm:$0xff]  }
 0x273   : > { %v16215_v51 = vld [vmem:[%s18585_s19 + $0x2db8] ss:$28 sps:$4 sm:$0xff]  }
 0x274   : > { %10530 = vmatpush1.bf16.msra.mxu0 %v16154_v62  ;;  %v16217_v62 = vld [vmem:[%s18585_s19 + $0x2dbc] ss:$28 sps:$4 sm:$0xff]  }
 0x275   : > { %10571 = vmatpush1.bf16.msra.mxu1 %v16157_v56  ;;  %10531 = vmatprep.subr.bf16.mxu0 %v16162_v57  ;;  %v19156_v56 = vcombine.high %v19140_v36, %v19140_v36  ;;  %v16220_v57 = vld [vmem:[%s18585_s19 + $0x2a74] ss:$28 sps:$4 sm:$0xff]  }
 0x276   : > { %10572 = vmatprep.subr.bf16.mxu1 %v16165_v58  ;;  %v16223_v58 = vld [vmem:[%s18585_s19 + $0x2df4] ss:$28 sps:$4 sm:$0xff]  }
 0x278   : > { %10532 = vmatpush1.bf16.msra.mxu0 %v16160_v63  ;;  %v18216_v63 = vmov 0  }
 0x279   : > { %10573 = vmatpush1.bf16.msra.mxu1 %v16163_v0  ;;  %10533 = vmatprep.subr.bf16.mxu0 %v16168_v1  ;;  %v16218_v0 = vld [vmem:[%s18585_s19 + $0x2a70] ss:$28 sps:$4 sm:$0xff]  }
 0x27a   : > { %10574 = vmatprep.subr.bf16.mxu1 %v16171_v2  ;;  %v16221_v1 = vld [vmem:[%s18585_s19 + $0x2df0] ss:$28 sps:$4 sm:$0xff]  }
 0x27b   : > { %v16226_v2 = vld [vmem:[%s18585_s19 + $0x2aac] ss:$28 sps:$4 sm:$0xff]  }
 0x27c   : > { %10534 = vmatpush1.bf16.msra.mxu0 %v16166_v3  ;;  %v16229_v3 = vld [vmem:[%s18585_s19 + $0x2e2c] ss:$28 sps:$4 sm:$0xff]  }
 0x27d   : > { %10575 = vmatpush1.bf16.msra.mxu1 %v16169_v4  ;;  %10535 = vmatprep.subr.bf16.mxu0 %v16174_v5  ;;  %v16224_v4 = vld [vmem:[%s18585_s19 + $0x2aa8] ss:$28 sps:$4 sm:$0xff]  }
 0x27e   : > { %10576 = vmatprep.subr.bf16.mxu1 %v16177_v6  ;;  %v16227_v5 = vld [vmem:[%s18585_s19 + $0x2e28] ss:$28 sps:$4 sm:$0xff]  }
 0x27f   : > { %v16232_v6 = vld [vmem:[%s18585_s19 + $0x2ae4] ss:$28 sps:$4 sm:$0xff]  }
 0x280   : > { %10536 = vmatpush1.bf16.msra.mxu0 %v16172_v9  ;;  %v16235_v9 = vld [vmem:[%s18585_s19 + $0x2e64] ss:$28 sps:$4 sm:$0xff]  }
 0x281   : > { %10577 = vmatpush1.bf16.msra.mxu1 %v16175_v10  ;;  %10537 = vmatprep.subr.bf16.mxu0 %v16180_v11  ;;  %v16230_v10 = vld [vmem:[%s18585_s19 + $0x2ae0] ss:$28 sps:$4 sm:$0xff]  }
 0x282   : > { %10578 = vmatprep.subr.bf16.mxu1 %v16183_v12  ;;  %v16233_v11 = vld [vmem:[%s18585_s19 + $0x2e60] ss:$28 sps:$4 sm:$0xff]  }
 0x283   : > { %v16238_v12 = vld [vmem:[%s18585_s19 + $0x2b1c] ss:$28 sps:$4 sm:$0xff]  }
 0x284   : > { %10538 = vmatpush1.bf16.msra.mxu0 %v16178_v13  ;;  %v16241_v13 = vld [vmem:[%s18585_s19 + $0x2e9c] ss:$28 sps:$4 sm:$0xff]  }
 0x285   : > { %10579 = vmatpush1.bf16.msra.mxu1 %v16181_v14  ;;  %10539 = vmatprep.subr.bf16.mxu0 %v16186_v15  ;;  %v16236_v14 = vld [vmem:[%s18585_s19 + $0x2b18] ss:$28 sps:$4 sm:$0xff]  }
 0x286   : > { %10580 = vmatprep.subr.bf16.mxu1 %v16189_v16  ;;  %v16239_v15 = vld [vmem:[%s18585_s19 + $0x2e98] ss:$28 sps:$4 sm:$0xff]  }
 0x287   : > { %v16244_v16 = vld [vmem:[%s18585_s19 + $0x2b54] ss:$28 sps:$4 sm:$0xff]  }
 0x288   : > { %10540 = vmatpush1.bf16.msra.mxu0 %v16184_v18  ;;  %v16247_v18 = vld [vmem:[%s18585_s19 + $0x2ed4] ss:$28 sps:$4 sm:$0xff]  }
 0x289   : > { %10581 = vmatpush1.bf16.msra.mxu1 %v16187_v19  ;;  %10541 = vmatprep.subr.bf16.mxu0 %v16192_v21 }
 0x28a   : > { %10582 = vmatprep.subr.bf16.mxu1 %v16195_v22  ;;  %v16242_v22 = vld [vmem:[%s18585_s19 + $0x2b50] ss:$28 sps:$4 sm:$0xff]  }
 0x28c   : > { %10542 = vmatpush1.bf16.msra.mxu0 %v16190_v27  ;;  %v16245_v27 = vld [vmem:[%s18585_s19 + $0x2ed0] ss:$28 sps:$4 sm:$0xff]  }
 0x28d   : > { %10583 = vmatpush1.bf16.msra.mxu1 %v16193_v28  ;;  %10543 = vmatprep.subr.bf16.mxu0 %v16198_v29 }
 0x28e   : > { %10584 = vmatprep.subr.bf16.mxu1 %v16201_v30 }
 0x290   : > { %10544 = vmatpush1.bf16.msra.mxu0 %v16196_v31 }
 0x291   : > { %10585 = vmatpush1.bf16.msra.mxu1 %v16199_v32  ;;  %10595 = vmatprep.subr.bf16.mxu0 %v16207_v34 }
 0x292   : > { %10636 = vmatprep.subr.bf16.mxu1 %v16210_v35 }
 0x293   : > { %10546 = vmatmul.mubr.bf16.vlgmr.msra.gmra.mrb[20].mxu0 %v19146_v47 }
 0x294   : > { %10587 = vmatmul.mubr.bf16.vlgmr.msra.gmra.mrb[20].mxu1 %v19150_v53  ;;  %10596 = vmatpush1.bf16.msra.mxu0 %v16205_v43 }
 0x295   : > { %10637 = vmatpush1.bf16.msra.mxu1 %v16208_v44  ;;  %10597 = vmatprep.subr.bf16.mxu0 %v16214_v54  ;;  %v16253_v44 = vld [vmem:[%s18585_s19 + $0x2f0c] ss:$28 sps:$4 sm:$0xff]  }
 0x296   : > { %10638 = vmatprep.subr.bf16.mxu1 %v16217_v62  ;;  %10668 = vmatprep.mubr.bf16.mxu1 %v18216_v63 }
 0x297   : > { %10627 = vmatprep.mubr.bf16.mxu0 %v19156_v56 }
 0x298   : > { %10598 = vmatpush1.bf16.msra.mxu0 %v16212_v45  ;;  %v16251_v45 = vld [vmem:[%s18585_s19 + $0x2f08] ss:$28 sps:$4 sm:$0xff]  }
 0x299   : > { %10639 = vmatpush1.bf16.msra.mxu1 %v16215_v51  ;;  %10599 = vmatprep.subr.bf16.mxu0 %v16220_v57  ;;  %v16256_v51 = vld [vmem:[%s18585_s19 + $0x2bc4] ss:$28 sps:$4 sm:$0xff]   ;;  %v16259_v57 = vld [vmem:[%s18585_s19 + $0xc] ss:$28 sps:$4 sm:$0xff]  }
 0x29a   : > { %10640 = vmatprep.subr.bf16.mxu1 %v16223_v58  ;;  %v16260_v58 = vld [vmem:[%s18578_s12 + $0x68] ss:$0 sps:$4 sm:$0xff]  }
 0x29c   : > { %10600 = vmatpush1.bf16.msra.mxu0 %v16218_v0  ;;  %v16254_v0 = vld [vmem:[%s18585_s19 + $0x2bc0] ss:$28 sps:$4 sm:$0xff]  }
 0x29d   : > { %10641 = vmatpush1.bf16.msra.mxu1 %v16221_v1  ;;  %10601 = vmatprep.subr.bf16.mxu0 %v16226_v2  ;;  %v16257_v1 = vld [vmem:[%s18585_s19 + $0x8] ss:$28 sps:$4 sm:$0xff]   ;;  %v16263_v2 = vld [vmem:[%s18585_s19 + $0x2bfc] ss:$28 sps:$4 sm:$0xff]  }
 0x29e   : > { %10642 = vmatprep.subr.bf16.mxu1 %v16229_v3  ;;  %v16266_v3 = vld [vmem:[%s18585_s19 + $0x44] ss:$28 sps:$4 sm:$0xff]  }
 0x2a0   : > { %10602 = vmatpush1.bf16.msra.mxu0 %v16224_v4  ;;  %v16261_v4 = vld [vmem:[%s18585_s19 + $0x2bf8] ss:$28 sps:$4 sm:$0xff]  }
 0x2a1   : > { %10643 = vmatpush1.bf16.msra.mxu1 %v16227_v5  ;;  %10603 = vmatprep.subr.bf16.mxu0 %v16232_v6  ;;  %v16264_v5 = vld [vmem:[%s18585_s19 + $0x40] ss:$28 sps:$4 sm:$0xff]   ;;  %v16269_v6 = vld [vmem:[%s18585_s19 + $0x2c34] ss:$28 sps:$4 sm:$0xff]  }
 0x2a2   : > { %10644 = vmatprep.subr.bf16.mxu1 %v16235_v9  ;;  %v16272_v9 = vld [vmem:[%s18585_s19 + $0x7c] ss:$28 sps:$4 sm:$0xff]  }
 0x2a4   : > { %10604 = vmatpush1.bf16.msra.mxu0 %v16230_v10  ;;  %v16267_v10 = vld [vmem:[%s18585_s19 + $0x2c30] ss:$28 sps:$4 sm:$0xff]  }
 0x2a5   : > { %10645 = vmatpush1.bf16.msra.mxu1 %v16233_v11  ;;  %10605 = vmatprep.subr.bf16.mxu0 %v16238_v12  ;;  %v16270_v11 = vld [vmem:[%s18585_s19 + $0x78] ss:$28 sps:$4 sm:$0xff]   ;;  %v16275_v12 = vld [vmem:[%s18585_s19 + $0x2c6c] ss:$28 sps:$4 sm:$0xff]  }
 0x2a6   : > { %10646 = vmatprep.subr.bf16.mxu1 %v16241_v13  ;;  %v10301_v19 = vpop.f32.mrb[8].mxu0  ;;  %v16278_v13 = vld [vmem:[%s18585_s19 + $0xb4] ss:$28 sps:$4 sm:$0xff]  }
 0x2a7   : > { %v10342_v21 = vpop.f32.mrb[8].mxu1  ;;  %v10302_v28 = vadd.f32 %v10301_v19, %v19097_v33  ;;  %v10303_v29 = vpop.f32.mrb[9].mxu0  ;;  %v16250_v33 = vld [vmem:[%s18585_s19 + $0x2b8c] ss:$28 sps:$4 sm:$0xff]   ;;  %v16279_v19 = vld [vmem:[%s18585_s19 + $0x2ca0] ss:$28 sps:$4 sm:$0xff]  }
 0x2a8   : > { %v10344_v30 = vpop.f32.mrb[9].mxu1  ;;  %v10304_v31 = vadd.f32 %v10303_v29, %v19101_v46  ;;  %v10305_v32 = vpop.f32.mrb[10].mxu0  ;;  %10606 = vmatpush1.bf16.msra.mxu0 %v16236_v14  ;;  %v16248_v46 = vld [vmem:[%s18585_s19 + $0x2b88] ss:$28 sps:$4 sm:$0xff]   ;;  %v16288_v29 = vld [vmem:[%s18585_s19 + $0x120] ss:$28 sps:$4 sm:$0xff]  }
 0x2a9   : > { %10647 = vmatpush1.bf16.msra.mxu1 %v16239_v15  ;;  %v10346_v34 = vpop.f32.mrb[10].mxu1  ;;  %v19186_v35 = vadd.f32 %v10342_v21, %v10302_v28  ;;  %v10306_v43 = vpop.f32.mrb[11].mxu0  ;;  %10607 = vmatprep.subr.bf16.mxu0 %v16244_v16  ;;  %v16273_v14 = vld [vmem:[%s18585_s19 + $0x2c68] ss:$28 sps:$4 sm:$0xff]   ;;  %v16276_v15 = vld [vmem:[%s18585_s19 + $0xb0] ss:$28 sps:$4 sm:$0xff]  }
 0x2aa   : > { %10648 = vmatprep.subr.bf16.mxu1 %v16247_v18  ;;  %v10347_v54 = vpop.f32.mrb[11].mxu1  ;;  %v19190_v62 = vadd.f32 %v10344_v30, %v10304_v31  ;;  %v16281_v16 = vld [vmem:[%s18585_s19 + $0x2ca4] ss:$28 sps:$4 sm:$0xff]   ;;  %v16284_v18 = vld [vmem:[%s18585_s19 + $0xec] ss:$28 sps:$4 sm:$0xff]  }
 0x2ab   : > { %v16282_v21 = vld [vmem:[%s18585_s19 + $0xe8] ss:$28 sps:$4 sm:$0xff]   ;;  %v16285_v28 = vld [vmem:[%s18585_s19 + $0x2cd8] ss:$28 sps:$4 sm:$0xff]   ;;  %v16291_v32 = vld [vmem:[%s18585_s19 + $0x2d10] ss:$28 sps:$4 sm:$0xff]  }
 0x2ac   : > { %10608 = vmatpush1.bf16.msra.mxu0 %v16242_v22  ;;  %v16287_v22 = vld [vmem:[%s18585_s19 + $0x2cdc] ss:$28 sps:$4 sm:$0xff]   ;;  %v16293_v30 = vld [vmem:[%s18585_s19 + $0x2d14] ss:$28 sps:$4 sm:$0xff]   ;;  %v16299_v43 = vld [vmem:[%s18585_s19 + $0x2d4c] ss:$28 sps:$4 sm:$0xff]  }
 0x2ad   : > { %10649 = vmatpush1.bf16.msra.mxu1 %v16245_v27  ;;  %10609 = vmatprep.subr.bf16.mxu0 %v16250_v33  ;;  %v16290_v27 = vld [vmem:[%s18585_s19 + $0x124] ss:$28 sps:$4 sm:$0xff]   ;;  %v16296_v31 = vld [vmem:[%s18585_s19 + $0x15c] ss:$28 sps:$4 sm:$0xff]   ;;  %v16302_v33 = vld [vmem:[%s18585_s19 + $0x194] ss:$28 sps:$4 sm:$0xff]  }
 0x2ae   : > { %10650 = vmatprep.subr.bf16.mxu1 %v16253_v44  ;;  %v16294_v34 = vld [vmem:[%s18585_s19 + $0x158] ss:$28 sps:$4 sm:$0xff]   ;;  %v16297_v44 = vld [vmem:[%s18585_s19 + $0x2d48] ss:$28 sps:$4 sm:$0xff]   ;;  %v16300_v54 = vld [vmem:[%s18585_s19 + $0x190] ss:$28 sps:$4 sm:$0xff]  }
 0x2b0   : > { %10610 = vmatpush1.bf16.msra.mxu0 %v16248_v46  ;;  %v16307_v46 = vld [vmem:[%s18585_s19 + $0x1cc] ss:$28 sps:$4 sm:$0xff]  }
 0x2b1   : > { %10651 = vmatpush1.bf16.msra.mxu1 %v16251_v45  ;;  %10611 = vmatprep.subr.bf16.mxu0 %v16256_v51  ;;  %v16310_v45 = vld [vmem:[%s18585_s19 + $0x38c] ss:$28 sps:$4 sm:$0xff]  }
 0x2b2   : > { %10677 = vmatprep.subr.bf16.mxu1 %v16259_v57  ;;  %v16305_v51 = vld [vmem:[%s18585_s19 + $0x1c8] ss:$28 sps:$4 sm:$0xff]  }
 0x2b3   : > { %v16308_v57 = vld [vmem:[%s18585_s19 + $0x388] ss:$28 sps:$4 sm:$0xff]  }
 0x2b4   : > { %10669 = vmatmul.mubr.bf16.vlgmr.msra.gmra.mrb[24].mxu1 %v16260_v58  ;;  %10612 = vmatpush1.bf16.msra.mxu0 %v16254_v0  ;;  %v19234_v58 = vcombine.low %v19140_v36, %v19140_v36  ;;  %v16313_v0 = vld [vmem:[%s18585_s19 + $0x204] ss:$28 sps:$4 sm:$0xff]   ;;  %v16319_v36 = vld [vmem:[%s18585_s19 + $0x23c] ss:$28 sps:$4 sm:$0xff]  }
 0x2b5   : > { %10678 = vmatpush1.bf16.msra.mxu1 %v16257_v1  ;;  %10613 = vmatprep.subr.bf16.mxu0 %v16263_v2  ;;  %v16316_v1 = vld [vmem:[%s18585_s19 + $0x3c4] ss:$28 sps:$4 sm:$0xff]  }
 0x2b6   : > { %10679 = vmatprep.subr.bf16.mxu1 %v16266_v3  ;;  %10709 = vmatprep.mubr.bf16.mxu1 %v18656_v48  ;;  %v16311_v2 = vld [vmem:[%s18585_s19 + $0x200] ss:$28 sps:$4 sm:$0xff]  }
 0x2b7   : > { %v16314_v3 = vld [vmem:[%s18585_s19 + $0x3c0] ss:$28 sps:$4 sm:$0xff]  }
 0x2b8   : > { %10614 = vmatpush1.bf16.msra.mxu0 %v16261_v4  ;;  %v16322_v4 = vld [vmem:[%s18585_s19 + $0x3fc] ss:$28 sps:$4 sm:$0xff]  }
 0x2b9   : > { %10680 = vmatpush1.bf16.msra.mxu1 %v16264_v5  ;;  %10615 = vmatprep.subr.bf16.mxu0 %v16269_v6  ;;  %v16317_v5 = vld [vmem:[%s18585_s19 + $0x238] ss:$28 sps:$4 sm:$0xff]  }
 0x2ba   : > { %10681 = vmatprep.subr.bf16.mxu1 %v16272_v9  ;;  %v16320_v6 = vld [vmem:[%s18585_s19 + $0x3f8] ss:$28 sps:$4 sm:$0xff]  }
 0x2bb   : > { %v16325_v9 = vld [vmem:[%s18585_s19 + $0x274] ss:$28 sps:$4 sm:$0xff]  }
 0x2bc   : > { %10616 = vmatpush1.bf16.msra.mxu0 %v16267_v10  ;;  %v16328_v10 = vld [vmem:[%s18585_s19 + $0x434] ss:$28 sps:$4 sm:$0xff]  }
 0x2bd   : > { %10682 = vmatpush1.bf16.msra.mxu1 %v16270_v11  ;;  %10617 = vmatprep.subr.bf16.mxu0 %v16275_v12  ;;  %v16323_v11 = vld [vmem:[%s18585_s19 + $0x270] ss:$28 sps:$4 sm:$0xff]  }
 0x2be   : > { %10683 = vmatprep.subr.bf16.mxu1 %v16278_v13  ;;  %v16326_v12 = vld [vmem:[%s18585_s19 + $0x430] ss:$28 sps:$4 sm:$0xff]  }
 0x2bf   : > { %v16331_v13 = vld [vmem:[%s18585_s19 + $0x2ac] ss:$28 sps:$4 sm:$0xff]  }
 0x2c0   : > { %10618 = vmatpush1.bf16.msra.mxu0 %v16273_v14  ;;  %v16334_v14 = vld [vmem:[%s18585_s19 + $0x46c] ss:$28 sps:$4 sm:$0xff]  }
 0x2c1   : > { %10684 = vmatpush1.bf16.msra.mxu1 %v16276_v15  ;;  %10619 = vmatprep.subr.bf16.mxu0 %v16281_v16  ;;  %v16329_v15 = vld [vmem:[%s18585_s19 + $0x2a8] ss:$28 sps:$4 sm:$0xff]  }
 0x2c2   : > { %10685 = vmatprep.subr.bf16.mxu1 %v16284_v18  ;;  %v16332_v16 = vld [vmem:[%s18585_s19 + $0x468] ss:$28 sps:$4 sm:$0xff]  }
 0x2c3   : > { %v16337_v18 = vld [vmem:[%s18585_s19 + $0x2e4] ss:$28 sps:$4 sm:$0xff]  }
 0x2c4   : > { %10620 = vmatpush1.bf16.msra.mxu0 %v16279_v19  ;;  %v16340_v19 = vld [vmem:[%s18585_s19 + $0x4a4] ss:$28 sps:$4 sm:$0xff]  }
 0x2c5   : > { %10686 = vmatpush1.bf16.msra.mxu1 %v16282_v21  ;;  %10621 = vmatprep.subr.bf16.mxu0 %v16287_v22  ;;  %v16335_v21 = vld [vmem:[%s18585_s19 + $0x2e0] ss:$28 sps:$4 sm:$0xff]  }
 0x2c6   : > { %10687 = vmatprep.subr.bf16.mxu1 %v16290_v27  ;;  %v16338_v22 = vld [vmem:[%s18585_s19 + $0x4a0] ss:$28 sps:$4 sm:$0xff]  }
 0x2c7   : > { %v16343_v27 = vld [vmem:[%s18585_s19 + $0x31c] ss:$28 sps:$4 sm:$0xff]  }
 0x2c8   : > { %10622 = vmatpush1.bf16.msra.mxu0 %v16285_v28  ;;  %v16346_v28 = vld [vmem:[%s18585_s19 + $0x4dc] ss:$28 sps:$4 sm:$0xff]  }
 0x2c9   : > { %10688 = vmatpush1.bf16.msra.mxu1 %v16288_v29  ;;  %10623 = vmatprep.subr.bf16.mxu0 %v16293_v30 }
 0x2ca   : > { %10689 = vmatprep.subr.bf16.mxu1 %v16296_v31  ;;  %v16341_v31 = vld [vmem:[%s18585_s19 + $0x318] ss:$28 sps:$4 sm:$0xff]  }
 0x2cc   : > { %10624 = vmatpush1.bf16.msra.mxu0 %v16291_v32  ;;  %v16344_v32 = vld [vmem:[%s18585_s19 + $0x4d8] ss:$28 sps:$4 sm:$0xff]  }
 0x2cd   : > { %10690 = vmatpush1.bf16.msra.mxu1 %v16294_v34  ;;  %10625 = vmatprep.subr.bf16.mxu0 %v16299_v43 }
 0x2ce   : > { %10691 = vmatprep.subr.bf16.mxu1 %v16302_v33 }
 0x2d0   : > { %10626 = vmatpush1.bf16.msra.mxu0 %v16297_v44 }
 0x2d1   : > { %10692 = vmatpush1.bf16.msra.mxu1 %v16300_v54  ;;  %10718 = vmatprep.subr.bf16.mxu0 %v16310_v45 }
 0x2d2   : > { %10693 = vmatprep.subr.bf16.mxu1 %v16307_v46 }
 0x2d3   : > { %10628 = vmatmul.mubr.bf16.vlgmr.msra.gmra.mrb[24].mxu0 %v19234_v58 }
 0x2d4   : > { %10719 = vmatpush1.bf16.msra.mxu0 %v16308_v57  ;;  %10750 = vmatprep.mubr.bf16.mxu0 %v18661_v52  ;;  %v16352_v57 = vld [vmem:[%s18585_s19 + $0x514] ss:$28 sps:$4 sm:$0xff]  }
 0x2d5   : > { %10694 = vmatpush1.bf16.msra.mxu1 %v16305_v51  ;;  %10720 = vmatprep.subr.bf16.mxu0 %v16316_v1 }
 0x2d6   : > { %10695 = vmatprep.subr.bf16.mxu1 %v16313_v0 }
 0x2d8   : > { %10721 = vmatpush1.bf16.msra.mxu0 %v16314_v3  ;;  %v16355_v3 = vld [vmem:[%s18585_s19 + $0x54c] ss:$28 sps:$4 sm:$0xff]  }
 0x2d9   : > { %10696 = vmatpush1.bf16.msra.mxu1 %v16311_v2  ;;  %10722 = vmatprep.subr.bf16.mxu0 %v16322_v4  ;;  %v16350_v2 = vld [vmem:[%s18585_s19 + $0x510] ss:$28 sps:$4 sm:$0xff]   ;;  %v16353_v4 = vld [vmem:[%s18585_s19 + $0x548] ss:$28 sps:$4 sm:$0xff]  }
 0x2da   : > { %10697 = vmatprep.subr.bf16.mxu1 %v16319_v36  ;;  %v16358_v36 = vld [vmem:[%s18585_s19 + $0x70c] ss:$28 sps:$4 sm:$0xff]  }
 0x2dc   : > { %10723 = vmatpush1.bf16.msra.mxu0 %v16320_v6  ;;  %v16361_v6 = vld [vmem:[%s18585_s19 + $0x584] ss:$28 sps:$4 sm:$0xff]  }
 0x2dd   : > { %10698 = vmatpush1.bf16.msra.mxu1 %v16317_v5  ;;  %10724 = vmatprep.subr.bf16.mxu0 %v16328_v10  ;;  %v16356_v5 = vld [vmem:[%s18585_s19 + $0x708] ss:$28 sps:$4 sm:$0xff]   ;;  %v16359_v10 = vld [vmem:[%s18585_s19 + $0x580] ss:$28 sps:$4 sm:$0xff]  }
 0x2de   : > { %10699 = vmatprep.subr.bf16.mxu1 %v16325_v9  ;;  %v16364_v9 = vld [vmem:[%s18585_s19 + $0x744] ss:$28 sps:$4 sm:$0xff]  }
 0x2e0   : > { %10725 = vmatpush1.bf16.msra.mxu0 %v16326_v12  ;;  %v16367_v12 = vld [vmem:[%s18585_s19 + $0x5bc] ss:$28 sps:$4 sm:$0xff]  }
 0x2e1   : > { %10700 = vmatpush1.bf16.msra.mxu1 %v16323_v11  ;;  %10726 = vmatprep.subr.bf16.mxu0 %v16334_v14  ;;  %v16362_v11 = vld [vmem:[%s18585_s19 + $0x740] ss:$28 sps:$4 sm:$0xff]   ;;  %v16365_v14 = vld [vmem:[%s18585_s19 + $0x5b8] ss:$28 sps:$4 sm:$0xff]  }
 0x2e2   : > { %10701 = vmatprep.subr.bf16.mxu1 %v16331_v13  ;;  %v16370_v13 = vld [vmem:[%s18585_s19 + $0x77c] ss:$28 sps:$4 sm:$0xff]  }
 0x2e4   : > { %10727 = vmatpush1.bf16.msra.mxu0 %v16332_v16  ;;  %v16373_v16 = vld [vmem:[%s18585_s19 + $0x5f4] ss:$28 sps:$4 sm:$0xff]  }
 0x2e5   : > { %10702 = vmatpush1.bf16.msra.mxu1 %v16329_v15  ;;  %10728 = vmatprep.subr.bf16.mxu0 %v16340_v19  ;;  %v16368_v15 = vld [vmem:[%s18585_s19 + $0x778] ss:$28 sps:$4 sm:$0xff]   ;;  %v16371_v19 = vld [vmem:[%s18585_s19 + $0x5f0] ss:$28 sps:$4 sm:$0xff]  }
 0x2e6   : > { %10703 = vmatprep.subr.bf16.mxu1 %v16337_v18  ;;  %v10383_v29 = vpop.f32.mrb[12].mxu0  ;;  %v16376_v18 = vld [vmem:[%s18585_s19 + $0x7b4] ss:$28 sps:$4 sm:$0xff]  }
 0x2e7   : > { %v10424_v30 = vpop.f32.mrb[12].mxu1  ;;  %v10384_v34 = vadd.f32 %v10383_v29, %v19186_v35  ;;  %v10385_v43 = vpop.f32.mrb[13].mxu0  ;;  %v16349_v35 = vld [vmem:[%s18585_s19 + $0x354] ss:$28 sps:$4 sm:$0xff]   ;;  %v16380_v29 = vld [vmem:[%s18585_s19 + $0x7e8] ss:$28 sps:$4 sm:$0xff]  }
 0x2e8   : > { %v10426_v33 = vpop.f32.mrb[13].mxu1  ;;  %v10386_v44 = vadd.f32 %v10385_v43, %v19190_v62  ;;  %v10387_v54 = vpop.f32.mrb[14].mxu0  ;;  %10729 = vmatpush1.bf16.msra.mxu0 %v16338_v22  ;;  %v16347_v62 = vld [vmem:[%s18585_s19 + $0x350] ss:$28 sps:$4 sm:$0xff]   ;;  %v16391_v43 = vld [vmem:[%s18585_s19 + $0x69c] ss:$28 sps:$4 sm:$0xff]  }
 0x2e9   : > { %10704 = vmatpush1.bf16.msra.mxu1 %v16335_v21  ;;  %v10428_v46 = vpop.f32.mrb[14].mxu1  ;;  %v19264_v45 = vadd.f32 %v10424_v30, %v10384_v34  ;;  %v10388_v51 = vpop.f32.mrb[15].mxu0  ;;  %10730 = vmatprep.subr.bf16.mxu0 %v16346_v28  ;;  %v16374_v21 = vld [vmem:[%s18585_s19 + $0x7b0] ss:$28 sps:$4 sm:$0xff]   ;;  %v16377_v28 = vld [vmem:[%s18585_s19 + $0x628] ss:$28 sps:$4 sm:$0xff]  }
 0x2ea   : > { %10705 = vmatprep.subr.bf16.mxu1 %v16343_v27  ;;  %v10429_v0 = vpop.f32.mrb[15].mxu1  ;;  %v19268_v1 = vadd.f32 %v10426_v33, %v10386_v44  ;;  %v16379_v22 = vld [vmem:[%s18585_s19 + $0x62c] ss:$28 sps:$4 sm:$0xff]   ;;  %v16385_v30 = vld [vmem:[%s18585_s19 + $0x664] ss:$28 sps:$4 sm:$0xff]  }
 0x2eb   : > { %v16382_v27 = vld [vmem:[%s18585_s19 + $0x7ec] ss:$28 sps:$4 sm:$0xff]   ;;  %v16386_v34 = vld [vmem:[%s18585_s19 + $0x820] ss:$28 sps:$4 sm:$0xff]   ;;  %v16389_v44 = vld [vmem:[%s18585_s19 + $0x698] ss:$28 sps:$4 sm:$0xff]  }
 0x2ec   : > { %10731 = vmatpush1.bf16.msra.mxu0 %v16344_v32  ;;  %v16383_v32 = vld [vmem:[%s18585_s19 + $0x660] ss:$28 sps:$4 sm:$0xff]   ;;  %v16392_v54 = vld [vmem:[%s18585_s19 + $0x858] ss:$28 sps:$4 sm:$0xff]   ;;  %v16403_v0 = vld [vmem:[%s18585_s19 + $0x8cc] ss:$28 sps:$4 sm:$0xff]  }
 0x2ed   : > { %10706 = vmatpush1.bf16.msra.mxu1 %v16341_v31  ;;  %10732 = vmatprep.subr.bf16.mxu0 %v16352_v57  ;;  %v16388_v31 = vld [vmem:[%s18585_s19 + $0x824] ss:$28 sps:$4 sm:$0xff]   ;;  %v16394_v33 = vld [vmem:[%s18585_s19 + $0x85c] ss:$28 sps:$4 sm:$0xff]   ;;  %v16397_v46 = vld [vmem:[%s18585_s19 + $0x6d4] ss:$28 sps:$4 sm:$0xff]  }
 0x2ee   : > { %10707 = vmatprep.subr.bf16.mxu1 %v16349_v35  ;;  %v16400_v51 = vld [vmem:[%s18585_s19 + $0x894] ss:$28 sps:$4 sm:$0xff]  }
 0x2ef   : > { %v16395_v35 = vld [vmem:[%s18585_s19 + $0x6d0] ss:$28 sps:$4 sm:$0xff]  }
 0x2f0   : > { %10733 = vmatpush1.bf16.msra.mxu0 %v16350_v2  ;;  %v16398_v57 = vld [vmem:[%s18585_s19 + $0x890] ss:$28 sps:$4 sm:$0xff]   ;;  %v16401_v2 = vld [vmem:[%s18585_s19 + $0x8c8] ss:$28 sps:$4 sm:$0xff]  }
 0x2f1   : > { %10708 = vmatpush1.bf16.msra.mxu1 %v16347_v62  ;;  %10734 = vmatprep.subr.bf16.mxu0 %v16355_v3  ;;  %v16406_v62 = vld [vmem:[%s18585_s19 + $0xa8c] ss:$28 sps:$4 sm:$0xff]  }
 0x2f2   : > { %10759 = vmatprep.subr.bf16.mxu1 %v16358_v36  ;;  %v16404_v3 = vld [vmem:[%s18585_s19 + $0xa88] ss:$28 sps:$4 sm:$0xff]  }
 0x2f3   : > { %v16409_v36 = vld [vmem:[%s18585_s19 + $0x904] ss:$28 sps:$4 sm:$0xff]  }
 0x2f4   : > { %10710 = vmatmul.mubr.bf16.vlgmr.msra.gmra.mrb[28].mxu1 %v18683_v7  ;;  %10735 = vmatpush1.bf16.msra.mxu0 %v16353_v4  ;;  %v16412_v4 = vld [vmem:[%s18585_s19 + $0xac4] ss:$28 sps:$4 sm:$0xff]  }
 0x2f5   : > { %10760 = vmatpush1.bf16.msra.mxu1 %v16356_v5  ;;  %10736 = vmatprep.subr.bf16.mxu0 %v16361_v6  ;;  %v16407_v5 = vld [vmem:[%s18585_s19 + $0x900] ss:$28 sps:$4 sm:$0xff]  }
 0x2f6   : > { %10761 = vmatprep.subr.bf16.mxu1 %v16364_v9  ;;  %10791 = vmatprep.mubr.bf16.mxu1 %v18723_v37  ;;  %v16410_v6 = vld [vmem:[%s18585_s19 + $0xac0] ss:$28 sps:$4 sm:$0xff]  }
 0x2f7   : > { %v16415_v9 = vld [vmem:[%s18585_s19 + $0x93c] ss:$28 sps:$4 sm:$0xff]  }
 0x2f8   : > { %10737 = vmatpush1.bf16.msra.mxu0 %v16359_v10  ;;  %v16418_v10 = vld [vmem:[%s18585_s19 + $0xafc] ss:$28 sps:$4 sm:$0xff]  }
 0x2f9   : > { %10762 = vmatpush1.bf16.msra.mxu1 %v16362_v11  ;;  %10738 = vmatprep.subr.bf16.mxu0 %v16367_v12  ;;  %v16413_v11 = vld [vmem:[%s18585_s19 + $0x938] ss:$28 sps:$4 sm:$0xff]  }
 0x2fa   : > { %10763 = vmatprep.subr.bf16.mxu1 %v16370_v13  ;;  %v16416_v12 = vld [vmem:[%s18585_s19 + $0xaf8] ss:$28 sps:$4 sm:$0xff]  }
 0x2fb   : > { %v16421_v13 = vld [vmem:[%s18585_s19 + $0x974] ss:$28 sps:$4 sm:$0xff]  }
 0x2fc   : > { %10739 = vmatpush1.bf16.msra.mxu0 %v16365_v14  ;;  %v16424_v14 = vld [vmem:[%s18585_s19 + $0xb34] ss:$28 sps:$4 sm:$0xff]  }
 0x2fd   : > { %10764 = vmatpush1.bf16.msra.mxu1 %v16368_v15  ;;  %10740 = vmatprep.subr.bf16.mxu0 %v16373_v16  ;;  %v16419_v15 = vld [vmem:[%s18585_s19 + $0x970] ss:$28 sps:$4 sm:$0xff]  }
 0x2fe   : > { %10765 = vmatprep.subr.bf16.mxu1 %v16376_v18  ;;  %v16422_v16 = vld [vmem:[%s18585_s19 + $0xb30] ss:$28 sps:$4 sm:$0xff]  }
 0x2ff   : > { %v16427_v18 = vld [vmem:[%s18585_s19 + $0x9ac] ss:$28 sps:$4 sm:$0xff]  }
 0x300   : > { %10741 = vmatpush1.bf16.msra.mxu0 %v16371_v19  ;;  %v16430_v19 = vld [vmem:[%s18585_s19 + $0xb6c] ss:$28 sps:$4 sm:$0xff]  }
 0x301   : > { %10766 = vmatpush1.bf16.msra.mxu1 %v16374_v21  ;;  %10742 = vmatprep.subr.bf16.mxu0 %v16379_v22  ;;  %v16425_v21 = vld [vmem:[%s18585_s19 + $0x9a8] ss:$28 sps:$4 sm:$0xff]  }
 0x302   : > { %10767 = vmatprep.subr.bf16.mxu1 %v16382_v27  ;;  %v16428_v22 = vld [vmem:[%s18585_s19 + $0xb68] ss:$28 sps:$4 sm:$0xff]  }
 0x303   : > { %v16433_v27 = vld [vmem:[%s18585_s19 + $0x9e4] ss:$28 sps:$4 sm:$0xff]  }
 0x304   : > { %10743 = vmatpush1.bf16.msra.mxu0 %v16377_v28  ;;  %v16436_v28 = vld [vmem:[%s18585_s19 + $0xba4] ss:$28 sps:$4 sm:$0xff]  }
 0x305   : > { %10768 = vmatpush1.bf16.msra.mxu1 %v16380_v29  ;;  %10744 = vmatprep.subr.bf16.mxu0 %v16385_v30  ;;  %v16431_v29 = vld [vmem:[%s18585_s19 + $0x9e0] ss:$28 sps:$4 sm:$0xff]  }
 0x306   : > { %10769 = vmatprep.subr.bf16.mxu1 %v16388_v31  ;;  %v16434_v30 = vld [vmem:[%s18585_s19 + $0xba0] ss:$28 sps:$4 sm:$0xff]  }
 0x307   : > { %v16439_v31 = vld [vmem:[%s18585_s19 + $0xa1c] ss:$28 sps:$4 sm:$0xff]  }
 0x308   : > { %10745 = vmatpush1.bf16.msra.mxu0 %v16383_v32  ;;  %v16442_v32 = vld [vmem:[%s18585_s19 + $0xbdc] ss:$28 sps:$4 sm:$0xff]  }
 0x309   : > { %10770 = vmatpush1.bf16.msra.mxu1 %v16386_v34  ;;  %10746 = vmatprep.subr.bf16.mxu0 %v16391_v43 }
 0x30a   : > { %10771 = vmatprep.subr.bf16.mxu1 %v16394_v33  ;;  %v16437_v33 = vld [vmem:[%s18585_s19 + $0xa18] ss:$28 sps:$4 sm:$0xff]  }
 0x30c   : > { %10747 = vmatpush1.bf16.msra.mxu0 %v16389_v44  ;;  %v16440_v44 = vld [vmem:[%s18585_s19 + $0xbd8] ss:$28 sps:$4 sm:$0xff]  }
 0x30d   : > { %10772 = vmatpush1.bf16.msra.mxu1 %v16392_v54  ;;  %10748 = vmatprep.subr.bf16.mxu0 %v16397_v46 }
 0x30e   : > { %10773 = vmatprep.subr.bf16.mxu1 %v16400_v51 }
 0x310   : > { %10749 = vmatpush1.bf16.msra.mxu0 %v16395_v35 }
 0x311   : > { %10774 = vmatpush1.bf16.msra.mxu1 %v16398_v57  ;;  %10800 = vmatprep.subr.bf16.mxu0 %v16406_v62 }
 0x312   : > { %10775 = vmatprep.subr.bf16.mxu1 %v16403_v0 }
 0x313   : > { %10751 = vmatmul.mubr.bf16.vlgmr.msra.gmra.mrb[28].mxu0 %v18685_v8 }
 0x314   : > { %10801 = vmatpush1.bf16.msra.mxu0 %v16404_v3  ;;  %10832 = vmatprep.mubr.bf16.mxu0 %v18727_v38  ;;  %v16448_v3 = vld [vmem:[%s18585_s19 + $0xc14] ss:$28 sps:$4 sm:$0xff]  }
 0x315   : > { %10776 = vmatpush1.bf16.msra.mxu1 %v16401_v2  ;;  %10802 = vmatprep.subr.bf16.mxu0 %v16412_v4 }
 0x316   : > { %10777 = vmatprep.subr.bf16.mxu1 %v16409_v36 }
 0x318   : > { %10803 = vmatpush1.bf16.msra.mxu0 %v16410_v6  ;;  %v16451_v6 = vld [vmem:[%s18585_s19 + $0xc4c] ss:$28 sps:$4 sm:$0xff]  }
 0x319   : > { %10778 = vmatpush1.bf16.msra.mxu1 %v16407_v5  ;;  %10804 = vmatprep.subr.bf16.mxu0 %v16418_v10  ;;  %v16446_v5 = vld [vmem:[%s18585_s19 + $0xc10] ss:$28 sps:$4 sm:$0xff]   ;;  %v16449_v10 = vld [vmem:[%s18585_s19 + $0xc48] ss:$28 sps:$4 sm:$0xff]  }
 0x31a   : > { %10779 = vmatprep.subr.bf16.mxu1 %v16415_v9  ;;  %v16454_v9 = vld [vmem:[%s18585_s19 + $0xe0c] ss:$28 sps:$4 sm:$0xff]  }
 0x31c   : > { %10805 = vmatpush1.bf16.msra.mxu0 %v16416_v12  ;;  %v16457_v12 = vld [vmem:[%s18585_s19 + $0xc84] ss:$28 sps:$4 sm:$0xff]  }
 0x31d   : > { %10780 = vmatpush1.bf16.msra.mxu1 %v16413_v11  ;;  %10806 = vmatprep.subr.bf16.mxu0 %v16424_v14  ;;  %v16452_v11 = vld [vmem:[%s18585_s19 + $0xe08] ss:$28 sps:$4 sm:$0xff]   ;;  %v16455_v14 = vld [vmem:[%s18585_s19 + $0xc80] ss:$28 sps:$4 sm:$0xff]  }
 0x31e   : > { %10781 = vmatprep.subr.bf16.mxu1 %v16421_v13  ;;  %v16460_v13 = vld [vmem:[%s18585_s19 + $0xe44] ss:$28 sps:$4 sm:$0xff]  }
 0x320   : > { %10807 = vmatpush1.bf16.msra.mxu0 %v16422_v16  ;;  %v16463_v16 = vld [vmem:[%s18585_s19 + $0xcbc] ss:$28 sps:$4 sm:$0xff]  }
 0x321   : > { %10782 = vmatpush1.bf16.msra.mxu1 %v16419_v15  ;;  %10808 = vmatprep.subr.bf16.mxu0 %v16430_v19  ;;  %v16458_v15 = vld [vmem:[%s18585_s19 + $0xe40] ss:$28 sps:$4 sm:$0xff]   ;;  %v16461_v19 = vld [vmem:[%s18585_s19 + $0xcb8] ss:$28 sps:$4 sm:$0xff]  }
 0x322   : > { %10783 = vmatprep.subr.bf16.mxu1 %v16427_v18  ;;  %v16466_v18 = vld [vmem:[%s18585_s19 + $0xe7c] ss:$28 sps:$4 sm:$0xff]  }
 0x324   : > { %10809 = vmatpush1.bf16.msra.mxu0 %v16428_v22  ;;  %v16469_v22 = vld [vmem:[%s18585_s19 + $0xcf4] ss:$28 sps:$4 sm:$0xff]  }
 0x325   : > { %10784 = vmatpush1.bf16.msra.mxu1 %v16425_v21  ;;  %10810 = vmatprep.subr.bf16.mxu0 %v16436_v28  ;;  %v16464_v21 = vld [vmem:[%s18585_s19 + $0xe78] ss:$28 sps:$4 sm:$0xff]   ;;  %v16467_v28 = vld [vmem:[%s18585_s19 + $0xcf0] ss:$28 sps:$4 sm:$0xff]  }
 0x326   : > { %10785 = vmatprep.subr.bf16.mxu1 %v16433_v27  ;;  %v10465_v34 = vpop.f32.mrb[16].mxu0  ;;  %v16472_v27 = vld [vmem:[%s18585_s19 + $0xeb4] ss:$28 sps:$4 sm:$0xff]  }
 0x327   : > { %v10506_v43 = vpop.f32.mrb[16].mxu1  ;;  %v10466_v54 = vadd.f32 %v10465_v34, %v19264_v45  ;;  %v10467_v46 = vpop.f32.mrb[17].mxu0  ;;  %v16445_v45 = vld [vmem:[%s18585_s19 + $0xa54] ss:$28 sps:$4 sm:$0xff]   ;;  %v16476_v34 = vld [vmem:[%s18585_s19 + $0xee8] ss:$28 sps:$4 sm:$0xff]  }
 0x328   : > { %v10508_v51 = vpop.f32.mrb[17].mxu1  ;;  %v10468_v35 = vadd.f32 %v10467_v46, %v19268_v1  ;;  %v10469_v57 = vpop.f32.mrb[18].mxu0  ;;  %10811 = vmatpush1.bf16.msra.mxu0 %v16434_v30  ;;  %v16443_v1 = vld [vmem:[%s18585_s19 + $0xa50] ss:$28 sps:$4 sm:$0xff]   ;;  %v16487_v46 = vld [vmem:[%s18585_s19 + $0xd9c] ss:$28 sps:$4 sm:$0xff]  }
 0x329   : > { %10786 = vmatpush1.bf16.msra.mxu1 %v16431_v29  ;;  %v10510_v0 = vpop.f32.mrb[18].mxu1  ;;  %v19338_v62 = vadd.f32 %v10506_v43, %v10466_v54  ;;  %v10470_v2 = vpop.f32.mrb[19].mxu0  ;;  %10812 = vmatprep.subr.bf16.mxu0 %v16442_v32  ;;  %v16470_v29 = vld [vmem:[%s18585_s19 + $0xeb0] ss:$28 sps:$4 sm:$0xff]   ;;  %v16473_v32 = vld [vmem:[%s18585_s19 + $0xd28] ss:$28 sps:$4 sm:$0xff]  }
 0x32a   : > { %10787 = vmatprep.subr.bf16.mxu1 %v16439_v31  ;;  %v10511_v36 = vpop.f32.mrb[19].mxu1  ;;  %v19342_v4 = vadd.f32 %v10508_v51, %v10468_v35  ;;  %v16475_v30 = vld [vmem:[%s18585_s19 + $0xd2c] ss:$28 sps:$4 sm:$0xff]   ;;  %v16481_v43 = vld [vmem:[%s18585_s19 + $0xd64] ss:$28 sps:$4 sm:$0xff]  }
 0x32b   : > { %v16478_v31 = vld [vmem:[%s18585_s19 + $0xeec] ss:$28 sps:$4 sm:$0xff]   ;;  %v16482_v54 = vld [vmem:[%s18585_s19 + $0xf20] ss:$28 sps:$4 sm:$0xff]   ;;  %v16485_v35 = vld [vmem:[%s18585_s19 + $0xd98] ss:$28 sps:$4 sm:$0xff]  }
 0x32c   : > { %10813 = vmatpush1.bf16.msra.mxu0 %v16440_v44  ;;  %v16479_v44 = vld [vmem:[%s18585_s19 + $0xd60] ss:$28 sps:$4 sm:$0xff]   ;;  %v16488_v57 = vld [vmem:[%s18585_s19 + $0xf58] ss:$28 sps:$4 sm:$0xff]   ;;  %v16499_v36 = vld [vmem:[%s18585_s19 + $0xfcc] ss:$28 sps:$4 sm:$0xff]  }
 0x32d   : > { %10788 = vmatpush1.bf16.msra.mxu1 %v16437_v33  ;;  %10814 = vmatprep.subr.bf16.mxu0 %v16448_v3  ;;  %v16484_v33 = vld [vmem:[%s18585_s19 + $0xf24] ss:$28 sps:$4 sm:$0xff]   ;;  %v16490_v51 = vld [vmem:[%s18585_s19 + $0xf5c] ss:$28 sps:$4 sm:$0xff]   ;;  %v16493_v0 = vld [vmem:[%s18585_s19 + $0xdd4] ss:$28 sps:$4 sm:$0xff]  }
 0x32e   : > { %10789 = vmatprep.subr.bf16.mxu1 %v16445_v45  ;;  %v16496_v2 = vld [vmem:[%s18585_s19 + $0xf94] ss:$28 sps:$4 sm:$0xff]  }
 0x32f   : > { %v16491_v45 = vld [vmem:[%s18585_s19 + $0xdd0] ss:$28 sps:$4 sm:$0xff]  }
 0x330   : > { %10815 = vmatpush1.bf16.msra.mxu0 %v16446_v5  ;;  %v16494_v3 = vld [vmem:[%s18585_s19 + $0xf90] ss:$28 sps:$4 sm:$0xff]   ;;  %v16497_v5 = vld [vmem:[%s18585_s19 + $0xfc8] ss:$28 sps:$4 sm:$0xff]  }
 0x331   : > { %10790 = vmatpush1.bf16.msra.mxu1 %v16443_v1  ;;  %10816 = vmatprep.subr.bf16.mxu0 %v16451_v6  ;;  %v16502_v1 = vld [vmem:[%s18585_s19 + $0x118c] ss:$28 sps:$4 sm:$0xff]  }
 0x332   : > { %10841 = vmatprep.subr.bf16.mxu1 %v16454_v9  ;;  %v16500_v6 = vld [vmem:[%s18585_s19 + $0x1188] ss:$28 sps:$4 sm:$0xff]  }
 0x333   : > { %v16505_v9 = vld [vmem:[%s18585_s19 + $0x1004] ss:$28 sps:$4 sm:$0xff]  }
 0x334   : > { %10792 = vmatmul.mubr.bf16.vlgmr.msra.gmra.mrb[32].mxu1 %v18771_v17  ;;  %10817 = vmatpush1.bf16.msra.mxu0 %v16449_v10  ;;  %v16508_v10 = vld [vmem:[%s18585_s19 + $0x11c4] ss:$28 sps:$4 sm:$0xff]  }
 0x335   : > { %10842 = vmatpush1.bf16.msra.mxu1 %v16452_v11  ;;  %10818 = vmatprep.subr.bf16.mxu0 %v16457_v12  ;;  %v16503_v11 = vld [vmem:[%s18585_s19 + $0x1000] ss:$28 sps:$4 sm:$0xff]  }
 0x336   : > { %10843 = vmatprep.subr.bf16.mxu1 %v16460_v13  ;;  %10873 = vmatprep.mubr.bf16.mxu1 %v18789_v25  ;;  %v16506_v12 = vld [vmem:[%s18585_s19 + $0x11c0] ss:$28 sps:$4 sm:$0xff]  }
 0x337   : > { %v16511_v13 = vld [vmem:[%s18585_s19 + $0x103c] ss:$28 sps:$4 sm:$0xff]  }
 0x338   : > { %10819 = vmatpush1.bf16.msra.mxu0 %v16455_v14  ;;  %v16514_v14 = vld [vmem:[%s18585_s19 + $0x11fc] ss:$28 sps:$4 sm:$0xff]  }
 0x339   : > { %10844 = vmatpush1.bf16.msra.mxu1 %v16458_v15  ;;  %10820 = vmatprep.subr.bf16.mxu0 %v16463_v16  ;;  %v16509_v15 = vld [vmem:[%s18585_s19 + $0x1038] ss:$28 sps:$4 sm:$0xff]  }
 0x33a   : > { %10845 = vmatprep.subr.bf16.mxu1 %v16466_v18  ;;  %v16512_v16 = vld [vmem:[%s18585_s19 + $0x11f8] ss:$28 sps:$4 sm:$0xff]  }
 0x33b   : > { %v16517_v18 = vld [vmem:[%s18585_s19 + $0x1074] ss:$28 sps:$4 sm:$0xff]  }
 0x33c   : > { %10821 = vmatpush1.bf16.msra.mxu0 %v16461_v19  ;;  %v16520_v19 = vld [vmem:[%s18585_s19 + $0x1234] ss:$28 sps:$4 sm:$0xff]  }
 0x33d   : > { %10846 = vmatpush1.bf16.msra.mxu1 %v16464_v21  ;;  %10822 = vmatprep.subr.bf16.mxu0 %v16469_v22  ;;  %v16515_v21 = vld [vmem:[%s18585_s19 + $0x1070] ss:$28 sps:$4 sm:$0xff]  }
 0x33e   : > { %10847 = vmatprep.subr.bf16.mxu1 %v16472_v27  ;;  %v16518_v22 = vld [vmem:[%s18585_s19 + $0x1230] ss:$28 sps:$4 sm:$0xff]  }
 0x33f   : > { %v16523_v27 = vld [vmem:[%s18585_s19 + $0x10ac] ss:$28 sps:$4 sm:$0xff]  }
 0x340   : > { %10823 = vmatpush1.bf16.msra.mxu0 %v16467_v28  ;;  %v16526_v28 = vld [vmem:[%s18585_s19 + $0x126c] ss:$28 sps:$4 sm:$0xff]  }
 0x341   : > { %10848 = vmatpush1.bf16.msra.mxu1 %v16470_v29  ;;  %10824 = vmatprep.subr.bf16.mxu0 %v16475_v30  ;;  %v16521_v29 = vld [vmem:[%s18585_s19 + $0x10a8] ss:$28 sps:$4 sm:$0xff]  }
 0x342   : > { %10849 = vmatprep.subr.bf16.mxu1 %v16478_v31  ;;  %v16524_v30 = vld [vmem:[%s18585_s19 + $0x1268] ss:$28 sps:$4 sm:$0xff]  }
 0x343   : > { %v16529_v31 = vld [vmem:[%s18585_s19 + $0x10e4] ss:$28 sps:$4 sm:$0xff]  }
 0x344   : > { %10825 = vmatpush1.bf16.msra.mxu0 %v16473_v32  ;;  %v16532_v32 = vld [vmem:[%s18585_s19 + $0x12a4] ss:$28 sps:$4 sm:$0xff]  }
 0x345   : > { %10850 = vmatpush1.bf16.msra.mxu1 %v16476_v34  ;;  %10826 = vmatprep.subr.bf16.mxu0 %v16481_v43  ;;  %v16527_v34 = vld [vmem:[%s18585_s19 + $0x10e0] ss:$28 sps:$4 sm:$0xff]  }
 0x346   : > { %10851 = vmatprep.subr.bf16.mxu1 %v16484_v33  ;;  %v16530_v43 = vld [vmem:[%s18585_s19 + $0x12a0] ss:$28 sps:$4 sm:$0xff]  }
 0x347   : > { %v16535_v33 = vld [vmem:[%s18585_s19 + $0x111c] ss:$28 sps:$4 sm:$0xff]  }
 0x348   : > { %10827 = vmatpush1.bf16.msra.mxu0 %v16479_v44  ;;  %v16538_v44 = vld [vmem:[%s18585_s19 + $0x12dc] ss:$28 sps:$4 sm:$0xff]  }
 0x349   : > { %10852 = vmatpush1.bf16.msra.mxu1 %v16482_v54  ;;  %10828 = vmatprep.subr.bf16.mxu0 %v16487_v46 }
 0x34a   : > { %10853 = vmatprep.subr.bf16.mxu1 %v16490_v51  ;;  %v16533_v51 = vld [vmem:[%s18585_s19 + $0x1118] ss:$28 sps:$4 sm:$0xff]  }
 0x34c   : > { %10829 = vmatpush1.bf16.msra.mxu0 %v16485_v35  ;;  %v16536_v35 = vld [vmem:[%s18585_s19 + $0x12d8] ss:$28 sps:$4 sm:$0xff]  }
 0x34d   : > { %10854 = vmatpush1.bf16.msra.mxu1 %v16488_v57  ;;  %10830 = vmatprep.subr.bf16.mxu0 %v16493_v0 }
 0x34e   : > { %10855 = vmatprep.subr.bf16.mxu1 %v16496_v2 }
 0x350   : > { %10831 = vmatpush1.bf16.msra.mxu0 %v16491_v45 }
 0x351   : > { %10856 = vmatpush1.bf16.msra.mxu1 %v16494_v3  ;;  %10882 = vmatprep.subr.bf16.mxu0 %v16502_v1 }
 0x352   : > { %10857 = vmatprep.subr.bf16.mxu1 %v16499_v36 }
 0x353   : > { %10833 = vmatmul.mubr.bf16.vlgmr.msra.gmra.mrb[32].mxu0 %v18777_v20 }
 0x354   : > { %10883 = vmatpush1.bf16.msra.mxu0 %v16500_v6  ;;  %10914 = vmatprep.mubr.bf16.mxu0 %v18793_v26  ;;  %v16544_v6 = vld [vmem:[%s18585_s19 + $0x1314] ss:$28 sps:$4 sm:$0xff]  }
 0x355   : > { %10858 = vmatpush1.bf16.msra.mxu1 %v16497_v5  ;;  %10884 = vmatprep.subr.bf16.mxu0 %v16508_v10 }
 0x356   : > { %10859 = vmatprep.subr.bf16.mxu1 %v16505_v9 }
 0x358   : > { %10885 = vmatpush1.bf16.msra.mxu0 %v16506_v12  ;;  %v16547_v12 = vld [vmem:[%s18585_s19 + $0x134c] ss:$28 sps:$4 sm:$0xff]  }
 0x359   : > { %10860 = vmatpush1.bf16.msra.mxu1 %v16503_v11  ;;  %10886 = vmatprep.subr.bf16.mxu0 %v16514_v14  ;;  %v16542_v11 = vld [vmem:[%s18585_s19 + $0x1310] ss:$28 sps:$4 sm:$0xff]   ;;  %v16545_v14 = vld [vmem:[%s18585_s19 + $0x1348] ss:$28 sps:$4 sm:$0xff]  }
 0x35a   : > { %10861 = vmatprep.subr.bf16.mxu1 %v16511_v13  ;;  %v16550_v13 = vld [vmem:[%s18585_s19 + $0x150c] ss:$28 sps:$4 sm:$0xff]  }
 0x35c   : > { %10887 = vmatpush1.bf16.msra.mxu0 %v16512_v16  ;;  %v16553_v16 = vld [vmem:[%s18585_s19 + $0x1384] ss:$28 sps:$4 sm:$0xff]  }
 0x35d   : > { %10862 = vmatpush1.bf16.msra.mxu1 %v16509_v15  ;;  %10888 = vmatprep.subr.bf16.mxu0 %v16520_v19  ;;  %v16548_v15 = vld [vmem:[%s18585_s19 + $0x1508] ss:$28 sps:$4 sm:$0xff]   ;;  %v16551_v19 = vld [vmem:[%s18585_s19 + $0x1380] ss:$28 sps:$4 sm:$0xff]  }
 0x35e   : > { %10863 = vmatprep.subr.bf16.mxu1 %v16517_v18  ;;  %v16556_v18 = vld [vmem:[%s18585_s19 + $0x1544] ss:$28 sps:$4 sm:$0xff]  }
 0x360   : > { %10889 = vmatpush1.bf16.msra.mxu0 %v16518_v22  ;;  %v16559_v22 = vld [vmem:[%s18585_s19 + $0x13bc] ss:$28 sps:$4 sm:$0xff]  }
 0x361   : > { %10864 = vmatpush1.bf16.msra.mxu1 %v16515_v21  ;;  %10890 = vmatprep.subr.bf16.mxu0 %v16526_v28  ;;  %v16554_v21 = vld [vmem:[%s18585_s19 + $0x1540] ss:$28 sps:$4 sm:$0xff]   ;;  %v16557_v28 = vld [vmem:[%s18585_s19 + $0x13b8] ss:$28 sps:$4 sm:$0xff]  }
 0x362   : > { %10865 = vmatprep.subr.bf16.mxu1 %v16523_v27  ;;  %v16562_v27 = vld [vmem:[%s18585_s19 + $0x157c] ss:$28 sps:$4 sm:$0xff]  }
 0x364   : > { %10891 = vmatpush1.bf16.msra.mxu0 %v16524_v30  ;;  %v16565_v30 = vld [vmem:[%s18585_s19 + $0x13f4] ss:$28 sps:$4 sm:$0xff]  }
 0x365   : > { %10866 = vmatpush1.bf16.msra.mxu1 %v16521_v29  ;;  %10892 = vmatprep.subr.bf16.mxu0 %v16532_v32  ;;  %v16560_v29 = vld [vmem:[%s18585_s19 + $0x1578] ss:$28 sps:$4 sm:$0xff]   ;;  %v16563_v32 = vld [vmem:[%s18585_s19 + $0x13f0] ss:$28 sps:$4 sm:$0xff]  }
 0x366   : > { %10867 = vmatprep.subr.bf16.mxu1 %v16529_v31  ;;  %v10547_v54 = vpop.f32.mrb[20].mxu0  ;;  %v16568_v31 = vld [vmem:[%s18585_s19 + $0x15b4] ss:$28 sps:$4 sm:$0xff]  }
 0x367   : > { %v10588_v46 = vpop.f32.mrb[20].mxu1  ;;  %v10548_v57 = vadd.f32 %v10547_v54, %v19338_v62  ;;  %v10549_v0 = vpop.f32.mrb[21].mxu0  ;;  %v16541_v62 = vld [vmem:[%s18585_s19 + $0x1154] ss:$28 sps:$4 sm:$0xff]   ;;  %v16572_v54 = vld [vmem:[%s18585_s19 + $0x15e8] ss:$28 sps:$4 sm:$0xff]  }
 0x368   : > { %v10590_v2 = vpop.f32.mrb[21].mxu1  ;;  %v10550_v45 = vadd.f32 %v10549_v0, %v19342_v4  ;;  %v10551_v3 = vpop.f32.mrb[22].mxu0  ;;  %10893 = vmatpush1.bf16.msra.mxu0 %v16530_v43  ;;  %v16539_v4 = vld [vmem:[%s18585_s19 + $0x1150] ss:$28 sps:$4 sm:$0xff]   ;;  %v16583_v0 = vld [vmem:[%s18585_s19 + $0x149c] ss:$28 sps:$4 sm:$0xff]  }
 0x369   : > { %10868 = vmatpush1.bf16.msra.mxu1 %v16527_v34  ;;  %v10592_v36 = vpop.f32.mrb[22].mxu1  ;;  %v19412_v1 = vadd.f32 %v10588_v46, %v10548_v57  ;;  %v10552_v5 = vpop.f32.mrb[23].mxu0  ;;  %10894 = vmatprep.subr.bf16.mxu0 %v16538_v44  ;;  %v16566_v34 = vld [vmem:[%s18585_s19 + $0x15b0] ss:$28 sps:$4 sm:$0xff]   ;;  %v16569_v44 = vld [vmem:[%s18585_s19 + $0x1428] ss:$28 sps:$4 sm:$0xff]  }
 0x36a   : > { %10869 = vmatprep.subr.bf16.mxu1 %v16535_v33  ;;  %v10593_v9 = vpop.f32.mrb[23].mxu1  ;;  %v19416_v10 = vadd.f32 %v10590_v2, %v10550_v45  ;;  %v16571_v43 = vld [vmem:[%s18585_s19 + $0x142c] ss:$28 sps:$4 sm:$0xff]   ;;  %v16577_v46 = vld [vmem:[%s18585_s19 + $0x1464] ss:$28 sps:$4 sm:$0xff]  }
 0x36b   : > { %v16574_v33 = vld [vmem:[%s18585_s19 + $0x15ec] ss:$28 sps:$4 sm:$0xff]   ;;  %v16578_v57 = vld [vmem:[%s18585_s19 + $0x1620] ss:$28 sps:$4 sm:$0xff]   ;;  %v16581_v36 = vld [vmem:[%s18585_s19 + $0x1498] ss:$28 sps:$4 sm:$0xff]  }
 0x36c   : > { %10895 = vmatpush1.bf16.msra.mxu0 %v16536_v35  ;;  %v16575_v35 = vld [vmem:[%s18585_s19 + $0x1460] ss:$28 sps:$4 sm:$0xff]   ;;  %v16584_v5 = vld [vmem:[%s18585_s19 + $0x1658] ss:$28 sps:$4 sm:$0xff]  }
 0x36d   : > { %10870 = vmatpush1.bf16.msra.mxu1 %v16533_v51  ;;  %10896 = vmatprep.subr.bf16.mxu0 %v16544_v6  ;;  %v16580_v51 = vld [vmem:[%s18585_s19 + $0x1624] ss:$28 sps:$4 sm:$0xff]   ;;  %v16586_v2 = vld [vmem:[%s18585_s19 + $0x165c] ss:$28 sps:$4 sm:$0xff]   ;;  %v16589_v6 = vld [vmem:[%s18585_s19 + $0x14d4] ss:$28 sps:$4 sm:$0xff]  }
 0x36e   : > { %10871 = vmatprep.subr.bf16.mxu1 %v16541_v62  ;;  %v16592_v9 = vld [vmem:[%s18585_s19 + $0x1694] ss:$28 sps:$4 sm:$0xff]  }
 0x370   : > { %10897 = vmatpush1.bf16.msra.mxu0 %v16542_v11  ;;  %v16587_v11 = vld [vmem:[%s18585_s19 + $0x14d0] ss:$28 sps:$4 sm:$0xff]  }
 0x371   : > { %10872 = vmatpush1.bf16.msra.mxu1 %v16539_v4  ;;  %10898 = vmatprep.subr.bf16.mxu0 %v16547_v12  ;;  %v16590_v12 = vld [vmem:[%s18585_s19 + $0x1690] ss:$28 sps:$4 sm:$0xff]  }
 0x372   : > { %10923 = vmatprep.subr.bf16.mxu1 %v16550_v13  ;;  %v16595_v13 = vld [vmem:[%s18585_s19 + $0x16cc] ss:$28 sps:$4 sm:$0xff]  }
 0x374   : > { %10874 = vmatmul.mubr.bf16.vlgmr.msra.gmra.mrb[36].mxu1 %v18863_v39  ;;  %10899 = vmatpush1.bf16.msra.mxu0 %v16545_v14  ;;  %v16598_v14 = vld [vmem:[%s18585_s19 + $0x188c] ss:$28 sps:$4 sm:$0xff]  }
 0x375   : > { %10924 = vmatpush1.bf16.msra.mxu1 %v16548_v15  ;;  %10900 = vmatprep.subr.bf16.mxu0 %v16553_v16  ;;  %v16593_v15 = vld [vmem:[%s18585_s19 + $0x16c8] ss:$28 sps:$4 sm:$0xff]  }
 0x376   : > { %10925 = vmatprep.subr.bf16.mxu1 %v16556_v18  ;;  %10955 = vmatprep.mubr.bf16.mxu1 %v18879_v23  ;;  %v16596_v16 = vld [vmem:[%s18585_s19 + $0x1888] ss:$28 sps:$4 sm:$0xff]  }
 0x377   : > { %v16601_v18 = vld [vmem:[%s18585_s19 + $0x1704] ss:$28 sps:$4 sm:$0xff]  }
 0x378   : > { %10901 = vmatpush1.bf16.msra.mxu0 %v16551_v19  ;;  %v16604_v19 = vld [vmem:[%s18585_s19 + $0x18c4] ss:$28 sps:$4 sm:$0xff]  }
 0x379   : > { %10926 = vmatpush1.bf16.msra.mxu1 %v16554_v21  ;;  %10902 = vmatprep.subr.bf16.mxu0 %v16559_v22  ;;  %v16599_v21 = vld [vmem:[%s18585_s19 + $0x1700] ss:$28 sps:$4 sm:$0xff]  }
 0x37a   : > { %10927 = vmatprep.subr.bf16.mxu1 %v16562_v27  ;;  %v16602_v22 = vld [vmem:[%s18585_s19 + $0x18c0] ss:$28 sps:$4 sm:$0xff]  }
 0x37b   : > { %v16607_v27 = vld [vmem:[%s18585_s19 + $0x173c] ss:$28 sps:$4 sm:$0xff]  }
 0x37c   : > { %10903 = vmatpush1.bf16.msra.mxu0 %v16557_v28  ;;  %v16610_v28 = vld [vmem:[%s18585_s19 + $0x18fc] ss:$28 sps:$4 sm:$0xff]  }
 0x37d   : > { %10928 = vmatpush1.bf16.msra.mxu1 %v16560_v29  ;;  %10904 = vmatprep.subr.bf16.mxu0 %v16565_v30  ;;  %v16605_v29 = vld [vmem:[%s18585_s19 + $0x1738] ss:$28 sps:$4 sm:$0xff]  }
 0x37e   : > { %10929 = vmatprep.subr.bf16.mxu1 %v16568_v31  ;;  %v16608_v30 = vld [vmem:[%s18585_s19 + $0x18f8] ss:$28 sps:$4 sm:$0xff]  }
 0x37f   : > { %v16613_v31 = vld [vmem:[%s18585_s19 + $0x1774] ss:$28 sps:$4 sm:$0xff]  }
 0x380   : > { %10905 = vmatpush1.bf16.msra.mxu0 %v16563_v32  ;;  %v16616_v32 = vld [vmem:[%s18585_s19 + $0x1934] ss:$28 sps:$4 sm:$0xff]  }
 0x381   : > { %10930 = vmatpush1.bf16.msra.mxu1 %v16566_v34  ;;  %10906 = vmatprep.subr.bf16.mxu0 %v16571_v43  ;;  %v16611_v34 = vld [vmem:[%s18585_s19 + $0x1770] ss:$28 sps:$4 sm:$0xff]  }
 0x382   : > { %10931 = vmatprep.subr.bf16.mxu1 %v16574_v33  ;;  %v16614_v43 = vld [vmem:[%s18585_s19 + $0x1930] ss:$28 sps:$4 sm:$0xff]  }
 0x383   : > { %v16619_v33 = vld [vmem:[%s18585_s19 + $0x17ac] ss:$28 sps:$4 sm:$0xff]  }
 0x384   : > { %10907 = vmatpush1.bf16.msra.mxu0 %v16569_v44  ;;  %v16622_v44 = vld [vmem:[%s18585_s19 + $0x196c] ss:$28 sps:$4 sm:$0xff]  }
 0x385   : > { %10932 = vmatpush1.bf16.msra.mxu1 %v16572_v54  ;;  %10908 = vmatprep.subr.bf16.mxu0 %v16577_v46  ;;  %v16617_v54 = vld [vmem:[%s18585_s19 + $0x17a8] ss:$28 sps:$4 sm:$0xff]  }
 0x386   : > { %10933 = vmatprep.subr.bf16.mxu1 %v16580_v51  ;;  %v16620_v46 = vld [vmem:[%s18585_s19 + $0x1968] ss:$28 sps:$4 sm:$0xff]  }
 0x387   : > { %v19448_v45 = vpop.f32.mrb[24].mxu1  ;;  %v16625_v51 = vld [vmem:[%s18585_s19 + $0x17e4] ss:$28 sps:$4 sm:$0xff]  }
 0x388   : > { %v19450_v3 = vpop.f32.mrb[25].mxu1  ;;  %10909 = vmatpush1.bf16.msra.mxu0 %v16575_v35  ;;  %v16628_v35 = vld [vmem:[%s18585_s19 + $0x19a4] ss:$28 sps:$4 sm:$0xff]  }
 0x389   : > { %10934 = vmatpush1.bf16.msra.mxu1 %v16578_v57  ;;  %v10674_v62 = vpop.f32.mrb[26].mxu1  ;;  %10910 = vmatprep.subr.bf16.mxu0 %v16583_v0  ;;  %v16623_v57 = vld [vmem:[%s18585_s19 + $0x17e0] ss:$28 sps:$4 sm:$0xff]  }
 0x38a   : > { %10935 = vmatprep.subr.bf16.mxu1 %v16586_v2  ;;  %v10675_v4 = vpop.f32.mrb[27].mxu1  ;;  %v16626_v0 = vld [vmem:[%s18585_s19 + $0x19a0] ss:$28 sps:$4 sm:$0xff]  }
 0x38b   : > { %v16631_v2 = vld [vmem:[%s18585_s19 + $0x181c] ss:$28 sps:$4 sm:$0xff]  }
 0x38c   : > { %10911 = vmatpush1.bf16.msra.mxu0 %v16581_v36  ;;  %v16634_v36 = vld [vmem:[%s18585_s19 + $0x19dc] ss:$28 sps:$4 sm:$0xff]  }
 0x38d   : > { %10936 = vmatpush1.bf16.msra.mxu1 %v16584_v5  ;;  %10912 = vmatprep.subr.bf16.mxu0 %v16589_v6  ;;  %v483_v5 = vld [vmem:[#allocation2] sm:$0xff] }
 0x38e   : > { %10937 = vmatprep.subr.bf16.mxu1 %v16592_v9  ;;  %v16629_v6 = vld [vmem:[%s18585_s19 + $0x1818] ss:$28 sps:$4 sm:$0xff]  }
 0x38f   : > { %v16632_v9 = vld [vmem:[%s18585_s19 + $0x19d8] ss:$28 sps:$4 sm:$0xff]  }
 0x390   : > { %10913 = vmatpush1.bf16.msra.mxu0 %v16587_v11  ;;  %v484_v11 = vld [vmem:[#allocation2 + $0x8] sm:$0xff] }
 0x391   : > { %10938 = vmatpush1.bf16.msra.mxu1 %v16590_v12  ;;  %10964 = vmatprep.subr.bf16.mxu0 %v16598_v14 }
 0x392   : > { %10939 = vmatprep.subr.bf16.mxu1 %v16595_v13 }
 0x393   : > { %10915 = vmatmul.mubr.bf16.vlgmr.msra.gmra.mrb[36].mxu0 %v18867_v40 }
 0x394   : > { %10965 = vmatpush1.bf16.msra.mxu0 %v16596_v16  ;;  %10996 = vmatprep.mubr.bf16.mxu0 %v18883_v24 }
 0x395   : > { %10940 = vmatpush1.bf16.msra.mxu1 %v16593_v15  ;;  %10966 = vmatprep.subr.bf16.mxu0 %v16604_v19 }
 0x396   : > { %10941 = vmatprep.subr.bf16.mxu1 %v16601_v18  ;;  %v16637_v18 = vld [vmem:[%s18585_s19 + $0x1854] ss:$28 sps:$4 sm:$0xff]  }
 0x398   : > { %10967 = vmatpush1.bf16.msra.mxu0 %v16602_v22 }
 0x399   : > { %10942 = vmatpush1.bf16.msra.mxu1 %v16599_v21  ;;  %10968 = vmatprep.subr.bf16.mxu0 %v16610_v28  ;;  %v16646_v28 = vld [vmem:[%s18585_s19 + $0x1c0c] ss:$28 sps:$4 sm:$0xff]  }
 0x39a   : > { %10943 = vmatprep.subr.bf16.mxu1 %v16607_v27  ;;  %v16638_v27 = vld [vmem:[%s18585_s19 + $0x1a10] ss:$28 sps:$4 sm:$0xff]  }
 0x39c   : > { %10969 = vmatpush1.bf16.msra.mxu0 %v16608_v30  ;;  %v16649_v30 = vld [vmem:[%s18585_s19 + $0x1a84] ss:$28 sps:$4 sm:$0xff]  }
 0x39d   : > { %10944 = vmatpush1.bf16.msra.mxu1 %v16605_v29  ;;  %10970 = vmatprep.subr.bf16.mxu0 %v16616_v32  ;;  %v16641_v29 = vld [vmem:[%s18585_s19 + $0x1a48] ss:$28 sps:$4 sm:$0xff]   ;;  %v16647_v32 = vld [vmem:[%s18585_s19 + $0x1a80] ss:$28 sps:$4 sm:$0xff]  }
 0x39e   : > { %10945 = vmatprep.subr.bf16.mxu1 %v16613_v31  ;;  %v16652_v31 = vld [vmem:[%s18585_s19 + $0x1c44] ss:$28 sps:$4 sm:$0xff]  }
 0x3a0   : > { %10971 = vmatpush1.bf16.msra.mxu0 %v16614_v43  ;;  %v16655_v43 = vld [vmem:[%s18585_s19 + $0x1abc] ss:$28 sps:$4 sm:$0xff]  }
 0x3a1   : > { %10946 = vmatpush1.bf16.msra.mxu1 %v16611_v34  ;;  %10972 = vmatprep.subr.bf16.mxu0 %v16622_v44  ;;  %v16650_v34 = vld [vmem:[%s18585_s19 + $0x1c40] ss:$28 sps:$4 sm:$0xff]   ;;  %v16653_v44 = vld [vmem:[%s18585_s19 + $0x1ab8] ss:$28 sps:$4 sm:$0xff]  }
 0x3a2   : > { %10947 = vmatprep.subr.bf16.mxu1 %v16619_v33  ;;  %v16658_v33 = vld [vmem:[%s18585_s19 + $0x1c7c] ss:$28 sps:$4 sm:$0xff]  }
 0x3a4   : > { %10973 = vmatpush1.bf16.msra.mxu0 %v16620_v46  ;;  %v16661_v46 = vld [vmem:[%s18585_s19 + $0x1af4] ss:$28 sps:$4 sm:$0xff]  }
 0x3a5   : > { %10948 = vmatpush1.bf16.msra.mxu1 %v16617_v54  ;;  %10974 = vmatprep.subr.bf16.mxu0 %v16628_v35  ;;  %v16656_v54 = vld [vmem:[%s18585_s19 + $0x1c78] ss:$28 sps:$4 sm:$0xff]   ;;  %v16659_v35 = vld [vmem:[%s18585_s19 + $0x1af0] ss:$28 sps:$4 sm:$0xff]  }
 0x3a6   : > { %10949 = vmatprep.subr.bf16.mxu1 %v16625_v51  ;;  %v10629_v62 = vpop.f32.mrb[24].mxu0  ;;  %v16664_v51 = vld [vmem:[%s18585_s19 + $0x1cb4] ss:$28 sps:$4 sm:$0xff]  }
 0x3a7   : > { %v10630_v4 = vadd.f32 %v10629_v62, %v19412_v1  ;;  %v10631_v12 = vpop.f32.mrb[25].mxu0  ;;  %v16640_v1 = vld [vmem:[%s18585_s19 + $0x1a14] ss:$28 sps:$4 sm:$0xff]   ;;  %v16673_v62 = vld [vmem:[%s18585_s19 + $0x1b64] ss:$28 sps:$4 sm:$0xff]  }
 0x3a8   : > { %v10632_v13 = vadd.f32 %v10631_v12, %v19416_v10  ;;  %v10633_v14 = vpop.f32.mrb[26].mxu0  ;;  %10975 = vmatpush1.bf16.msra.mxu0 %v16626_v0  ;;  %v16635_v10 = vld [vmem:[%s18585_s19 + $0x1850] ss:$28 sps:$4 sm:$0xff]   ;;  %v16682_v12 = vld [vmem:[%s18585_s19 + $0x1d5c] ss:$28 sps:$4 sm:$0xff]  }
 0x3a9   : > { %10950 = vmatpush1.bf16.msra.mxu1 %v16623_v57  ;;  %v10671_v15 = vadd.f32 %v19448_v45, %v10630_v4  ;;  %v10634_v16 = vpop.f32.mrb[27].mxu0  ;;  %10976 = vmatprep.subr.bf16.mxu0 %v16634_v36  ;;  %v16643_v45 = vld [vmem:[%s18585_s19 + $0x1a4c] ss:$28 sps:$4 sm:$0xff]   ;;  %v16674_v4 = vld [vmem:[%s18585_s19 + $0x1d20] ss:$28 sps:$4 sm:$0xff]  }
 0x3aa   : > { %10951 = vmatprep.subr.bf16.mxu1 %v16631_v2  ;;  %v10673_v19 = vadd.f32 %v19450_v3, %v10632_v13  ;;  %v16644_v3 = vld [vmem:[%s18585_s19 + $0x1c08] ss:$28 sps:$4 sm:$0xff]   ;;  %v16662_v57 = vld [vmem:[%s18585_s19 + $0x1cb0] ss:$28 sps:$4 sm:$0xff]   ;;  %v16680_v16 = vld [vmem:[%s18585_s19 + $0x1d58] ss:$28 sps:$4 sm:$0xff]  }
 0x3ab   : > { %v12385_v21 = vadd.f32 %v10671_v15, %v483_v5  ;;  %v16667_v0 = vld [vmem:[%s18585_s19 + $0x1b2c] ss:$28 sps:$4 sm:$0xff]   ;;  %v16677_v15 = vld [vmem:[%s18585_s19 + $0x1b98] ss:$28 sps:$4 sm:$0xff]  }
 0x3ac   : > { %v12386_v22 = vadd.f32 %v10673_v19, %v484_v11  ;;  %10977 = vmatpush1.bf16.msra.mxu0 %v16632_v9  ;;  %v16670_v2 = vld [vmem:[%s18585_s19 + $0x1cec] ss:$28 sps:$4 sm:$0xff]   ;;  %v16671_v9 = vld [vmem:[%s18585_s19 + $0x1b60] ss:$28 sps:$4 sm:$0xff]   ;;  %v16688_v19 = vld [vmem:[%s18585_s19 + $0x1d94] ss:$28 sps:$4 sm:$0xff]  }
 0x3ad   : > { %10952 = vmatpush1.bf16.msra.mxu1 %v16629_v6  ;;  %12392 = vst [vmem:[#allocation2] sm:$0xff] %v12385_v21  ;;  %10978 = vmatprep.subr.bf16.mxu0 %v16640_v1  ;;  %v16665_v36 = vld [vmem:[%s18585_s19 + $0x1b28] ss:$28 sps:$4 sm:$0xff]   ;;  %v16679_v11 = vld [vmem:[%s18585_s19 + $0x1b9c] ss:$28 sps:$4 sm:$0xff]  }
 0x3ae   : > { %10953 = vmatprep.subr.bf16.mxu1 %v16637_v18  ;;  %12393 = vst [vmem:[#allocation2 + $0x8] sm:$0xff] %v12386_v22  ;;  %v16668_v5 = vld [vmem:[%s18585_s19 + $0x1ce8] ss:$28 sps:$4 sm:$0xff]   ;;  %v16685_v1 = vld [vmem:[%s18585_s19 + $0x1bd4] ss:$28 sps:$4 sm:$0xff]  }
 0x3af   : > { %v16676_v6 = vld [vmem:[%s18585_s19 + $0x1d24] ss:$28 sps:$4 sm:$0xff]   ;;  %v16683_v22 = vld [vmem:[%s18585_s19 + $0x1bd0] ss:$28 sps:$4 sm:$0xff]  }
 0x3b0   : > { %10979 = vmatpush1.bf16.msra.mxu0 %v16638_v27  ;;  %v16691_v27 = vld [vmem:[%s18585_s19 + $0x1dcc] ss:$28 sps:$4 sm:$0xff]  }
 0x3b1   : > { %10954 = vmatpush1.bf16.msra.mxu1 %v16635_v10  ;;  %10980 = vmatprep.subr.bf16.mxu0 %v16643_v45  ;;  %v16686_v10 = vld [vmem:[%s18585_s19 + $0x1d90] ss:$28 sps:$4 sm:$0xff]  }
 0x3b2   : > { %11005 = vmatprep.subr.bf16.mxu1 %v16646_v28  ;;  %v16694_v45 = vld [vmem:[%s18585_s19 + $0x1f8c] ss:$28 sps:$4 sm:$0xff]  }
 0x3b3   : > { %v16689_v28 = vld [vmem:[%s18585_s19 + $0x1dc8] ss:$28 sps:$4 sm:$0xff]  }
 0x3b4   : > { %10956 = vmatmul.mubr.bf16.vlgmr.msra.gmra.mrb[40].mxu1 %v18954_v60  ;;  %10981 = vmatpush1.bf16.msra.mxu0 %v16641_v29  ;;  %v16692_v29 = vld [vmem:[%s18585_s19 + $0x1f88] ss:$28 sps:$4 sm:$0xff]  }
 0x3b5   : > { %11006 = vmatpush1.bf16.msra.mxu1 %v16644_v3  ;;  %10982 = vmatprep.subr.bf16.mxu0 %v16649_v30  ;;  %v16697_v3 = vld [vmem:[%s18585_s19 + $0x1e04] ss:$28 sps:$4 sm:$0xff]  }
 0x3b6   : > { %11007 = vmatprep.subr.bf16.mxu1 %v16652_v31  ;;  %11037 = vmatprep.mubr.bf16.mxu1 %v18969_v41  ;;  %v16700_v30 = vld [vmem:[%s18585_s19 + $0x1fc4] ss:$28 sps:$4 sm:$0xff]  }
 0x3b7   : > { %v16695_v31 = vld [vmem:[%s18585_s19 + $0x1e00] ss:$28 sps:$4 sm:$0xff]  }
 0x3b8   : > { %10983 = vmatpush1.bf16.msra.mxu0 %v16647_v32  ;;  %v16698_v32 = vld [vmem:[%s18585_s19 + $0x1fc0] ss:$28 sps:$4 sm:$0xff]  }
 0x3b9   : > { %11008 = vmatpush1.bf16.msra.mxu1 %v16650_v34  ;;  %10984 = vmatprep.subr.bf16.mxu0 %v16655_v43  ;;  %v16703_v34 = vld [vmem:[%s18585_s19 + $0x1e3c] ss:$28 sps:$4 sm:$0xff]  }
 0x3ba   : > { %11009 = vmatprep.subr.bf16.mxu1 %v16658_v33  ;;  %v16706_v43 = vld [vmem:[%s18585_s19 + $0x1ffc] ss:$28 sps:$4 sm:$0xff]  }
 0x3bb   : > { %v16701_v33 = vld [vmem:[%s18585_s19 + $0x1e38] ss:$28 sps:$4 sm:$0xff]  }
 0x3bc   : > { %10985 = vmatpush1.bf16.msra.mxu0 %v16653_v44  ;;  %v16704_v44 = vld [vmem:[%s18585_s19 + $0x1ff8] ss:$28 sps:$4 sm:$0xff]  }
 0x3bd   : > { %11010 = vmatpush1.bf16.msra.mxu1 %v16656_v54  ;;  %10986 = vmatprep.subr.bf16.mxu0 %v16661_v46  ;;  %v16709_v54 = vld [vmem:[%s18585_s19 + $0x1e74] ss:$28 sps:$4 sm:$0xff]  }
 0x3be   : > { %11011 = vmatprep.subr.bf16.mxu1 %v16664_v51  ;;  %v16712_v46 = vld [vmem:[%s18585_s19 + $0x2034] ss:$28 sps:$4 sm:$0xff]  }
 0x3bf   : > { %v16707_v51 = vld [vmem:[%s18585_s19 + $0x1e70] ss:$28 sps:$4 sm:$0xff]  }
 0x3c0   : > { %10987 = vmatpush1.bf16.msra.mxu0 %v16659_v35  ;;  %v16710_v35 = vld [vmem:[%s18585_s19 + $0x2030] ss:$28 sps:$4 sm:$0xff]  }
 0x3c1   : > { %11012 = vmatpush1.bf16.msra.mxu1 %v16662_v57  ;;  %10988 = vmatprep.subr.bf16.mxu0 %v16667_v0  ;;  %v16715_v57 = vld [vmem:[%s18585_s19 + $0x1eac] ss:$28 sps:$4 sm:$0xff]  }
 0x3c2   : > { %11013 = vmatprep.subr.bf16.mxu1 %v16670_v2  ;;  %v16718_v0 = vld [vmem:[%s18585_s19 + $0x206c] ss:$28 sps:$4 sm:$0xff]  }
 0x3c3   : > { %v16713_v2 = vld [vmem:[%s18585_s19 + $0x1ea8] ss:$28 sps:$4 sm:$0xff]  }
 0x3c4   : > { %10989 = vmatpush1.bf16.msra.mxu0 %v16665_v36  ;;  %v16716_v36 = vld [vmem:[%s18585_s19 + $0x2068] ss:$28 sps:$4 sm:$0xff]  }
 0x3c5   : > { %11014 = vmatpush1.bf16.msra.mxu1 %v16668_v5  ;;  %10990 = vmatprep.subr.bf16.mxu0 %v16673_v62  ;;  %v16721_v5 = vld [vmem:[%s18585_s19 + $0x1ee4] ss:$28 sps:$4 sm:$0xff]  }
 0x3c6   : > { %11015 = vmatprep.subr.bf16.mxu1 %v16676_v6  ;;  %v16724_v62 = vld [vmem:[%s18585_s19 + $0x20a4] ss:$28 sps:$4 sm:$0xff]  }
 0x3c7   : > { %v19524_v13 = vpop.f32.mrb[28].mxu1  ;;  %v16719_v6 = vld [vmem:[%s18585_s19 + $0x1ee0] ss:$28 sps:$4 sm:$0xff]  }
 0x3c8   : > { %v19526_v14 = vpop.f32.mrb[29].mxu1  ;;  %10991 = vmatpush1.bf16.msra.mxu0 %v16671_v9  ;;  %v16722_v9 = vld [vmem:[%s18585_s19 + $0x20a0] ss:$28 sps:$4 sm:$0xff]  }
 0x3c9   : > { %11016 = vmatpush1.bf16.msra.mxu1 %v16674_v4  ;;  %v10715_v18 = vpop.f32.mrb[30].mxu1  ;;  %10992 = vmatprep.subr.bf16.mxu0 %v16679_v11  ;;  %v16727_v4 = vld [vmem:[%s18585_s19 + $0x1f1c] ss:$28 sps:$4 sm:$0xff]  }
 0x3ca   : > { %11017 = vmatprep.subr.bf16.mxu1 %v16682_v12  ;;  %v10716_v21 = vpop.f32.mrb[31].mxu1  ;;  %v16730_v11 = vld [vmem:[%s18585_s19 + $0x20dc] ss:$28 sps:$4 sm:$0xff]  }
 0x3cc   : > { %10993 = vmatpush1.bf16.msra.mxu0 %v16677_v15  ;;  %v16725_v15 = vld [vmem:[%s18585_s19 + $0x1f18] ss:$28 sps:$4 sm:$0xff]  }
 0x3cd   : > { %11018 = vmatpush1.bf16.msra.mxu1 %v16680_v16  ;;  %10994 = vmatprep.subr.bf16.mxu0 %v16685_v1  ;;  %v16728_v16 = vld [vmem:[%s18585_s19 + $0x20d8] ss:$28 sps:$4 sm:$0xff]  }
 0x3ce   : > { %11019 = vmatprep.subr.bf16.mxu1 %v16688_v19 }
 0x3d0   : > { %10995 = vmatpush1.bf16.msra.mxu0 %v16683_v22 }
 0x3d1   : > { %11020 = vmatpush1.bf16.msra.mxu1 %v16686_v10  ;;  %11046 = vmatprep.subr.bf16.mxu0 %v16694_v45  ;;  %v16733_v10 = vld [vmem:[%s18585_s19 + $0x1f54] ss:$28 sps:$4 sm:$0xff]  }
 0x3d2   : > { %11021 = vmatprep.subr.bf16.mxu1 %v16691_v27  ;;  %v16736_v27 = vld [vmem:[%s18585_s19 + $0x2114] ss:$28 sps:$4 sm:$0xff]  }
 0x3d3   : > { %10997 = vmatmul.mubr.bf16.vlgmr.msra.gmra.mrb[40].mxu0 %v18958_v61  ;;  %v16734_v45 = vld [vmem:[%s18585_s19 + $0x2110] ss:$28 sps:$4 sm:$0xff]  }
 0x3d4   : > { %11047 = vmatpush1.bf16.msra.mxu0 %v16692_v29  ;;  %11078 = vmatprep.mubr.bf16.mxu0 %v18973_v42  ;;  %v16737_v29 = vld [vmem:[%s18585_s19 + $0x2148] ss:$28 sps:$4 sm:$0xff]  }
 0x3d5   : > { %11022 = vmatpush1.bf16.msra.mxu1 %v16689_v28  ;;  %11048 = vmatprep.subr.bf16.mxu0 %v16700_v30  ;;  %v16742_v28 = vld [vmem:[%s18585_s19 + $0x230c] ss:$28 sps:$4 sm:$0xff]   ;;  %v16745_v30 = vld [vmem:[%s18585_s19 + $0x2184] ss:$28 sps:$4 sm:$0xff]  }
 0x3d6   : > { %11023 = vmatprep.subr.bf16.mxu1 %v16697_v3  ;;  %v16740_v3 = vld [vmem:[%s18585_s19 + $0x2308] ss:$28 sps:$4 sm:$0xff]  }
 0x3d8   : > { %11049 = vmatpush1.bf16.msra.mxu0 %v16698_v32  ;;  %v16743_v32 = vld [vmem:[%s18585_s19 + $0x2180] ss:$28 sps:$4 sm:$0xff]  }
 0x3d9   : > { %11024 = vmatpush1.bf16.msra.mxu1 %v16695_v31  ;;  %11050 = vmatprep.subr.bf16.mxu0 %v16706_v43  ;;  %v16748_v31 = vld [vmem:[%s18585_s19 + $0x2344] ss:$28 sps:$4 sm:$0xff]   ;;  %v16751_v43 = vld [vmem:[%s18585_s19 + $0x21bc] ss:$28 sps:$4 sm:$0xff]  }
 0x3da   : > { %11025 = vmatprep.subr.bf16.mxu1 %v16703_v34  ;;  %v16746_v34 = vld [vmem:[%s18585_s19 + $0x2340] ss:$28 sps:$4 sm:$0xff]  }
 0x3dc   : > { %11051 = vmatpush1.bf16.msra.mxu0 %v16704_v44  ;;  %v16749_v44 = vld [vmem:[%s18585_s19 + $0x21b8] ss:$28 sps:$4 sm:$0xff]  }
 0x3dd   : > { %11026 = vmatpush1.bf16.msra.mxu1 %v16701_v33  ;;  %11052 = vmatprep.subr.bf16.mxu0 %v16712_v46  ;;  %v16754_v33 = vld [vmem:[%s18585_s19 + $0x237c] ss:$28 sps:$4 sm:$0xff]   ;;  %v16757_v46 = vld [vmem:[%s18585_s19 + $0x21f4] ss:$28 sps:$4 sm:$0xff]  }
 0x3de   : > { %11027 = vmatprep.subr.bf16.mxu1 %v16709_v54  ;;  %v16752_v54 = vld [vmem:[%s18585_s19 + $0x2378] ss:$28 sps:$4 sm:$0xff]  }
 0x3e0   : > { %11053 = vmatpush1.bf16.msra.mxu0 %v16710_v35  ;;  %v16755_v35 = vld [vmem:[%s18585_s19 + $0x21f0] ss:$28 sps:$4 sm:$0xff]  }
 0x3e1   : > { %11028 = vmatpush1.bf16.msra.mxu1 %v16707_v51  ;;  %11054 = vmatprep.subr.bf16.mxu0 %v16718_v0  ;;  %v16760_v51 = vld [vmem:[%s18585_s19 + $0x23b4] ss:$28 sps:$4 sm:$0xff]   ;;  %v16763_v0 = vld [vmem:[%s18585_s19 + $0x222c] ss:$28 sps:$4 sm:$0xff]  }
 0x3e2   : > { %11029 = vmatprep.subr.bf16.mxu1 %v16715_v57  ;;  %v16758_v57 = vld [vmem:[%s18585_s19 + $0x23b0] ss:$28 sps:$4 sm:$0xff]  }
 0x3e4   : > { %11055 = vmatpush1.bf16.msra.mxu0 %v16716_v36  ;;  %v16761_v36 = vld [vmem:[%s18585_s19 + $0x2228] ss:$28 sps:$4 sm:$0xff]  }
 0x3e5   : > { %11030 = vmatpush1.bf16.msra.mxu1 %v16713_v2  ;;  %11056 = vmatprep.subr.bf16.mxu0 %v16724_v62  ;;  %v16766_v2 = vld [vmem:[%s18585_s19 + $0x23ec] ss:$28 sps:$4 sm:$0xff]   ;;  %v16769_v62 = vld [vmem:[%s18585_s19 + $0x2264] ss:$28 sps:$4 sm:$0xff]  }
 0x3e6   : > { %11031 = vmatprep.subr.bf16.mxu1 %v16721_v5  ;;  %v10752_v12 = vpop.f32.mrb[28].mxu0  ;;  %v16764_v5 = vld [vmem:[%s18585_s19 + $0x23e8] ss:$28 sps:$4 sm:$0xff]  }
 0x3e7   : > { %v19565_v18 = vadd.f32 %v10752_v12, %v19524_v13  ;;  %v10754_v1 = vpop.f32.mrb[29].mxu0  ;;  %v16731_v13 = vld [vmem:[%s18585_s19 + $0x1f50] ss:$28 sps:$4 sm:$0xff]   ;;  %v16778_v12 = vld [vmem:[%s18585_s19 + $0x245c] ss:$28 sps:$4 sm:$0xff]  }
 0x3e8   : > { %v19568_v19 = vadd.f32 %v10754_v1, %v19526_v14  ;;  %v10756_v21 = vpop.f32.mrb[30].mxu0  ;;  %11057 = vmatpush1.bf16.msra.mxu0 %v16722_v9  ;;  %v16739_v14 = vld [vmem:[%s18585_s19 + $0x214c] ss:$28 sps:$4 sm:$0xff]   ;;  %v16767_v9 = vld [vmem:[%s18585_s19 + $0x2260] ss:$28 sps:$4 sm:$0xff]  }
 0x3e9   : > { %11032 = vmatpush1.bf16.msra.mxu1 %v16719_v6  ;;  %v10757_v22 = vpop.f32.mrb[31].mxu0  ;;  %11058 = vmatprep.subr.bf16.mxu0 %v16730_v11  ;;  %v16772_v6 = vld [vmem:[%s18585_s19 + $0x2424] ss:$28 sps:$4 sm:$0xff]   ;;  %v16775_v11 = vld [vmem:[%s18585_s19 + $0x229c] ss:$28 sps:$4 sm:$0xff]  }
 0x3ea   : > { %11033 = vmatprep.subr.bf16.mxu1 %v16727_v4  ;;  %v16770_v4 = vld [vmem:[%s18585_s19 + $0x2420] ss:$28 sps:$4 sm:$0xff]   ;;  %v16773_v22 = vld [vmem:[%s18585_s19 + $0x2298] ss:$28 sps:$4 sm:$0xff]  }
 0x3ec   : > { %11059 = vmatpush1.bf16.msra.mxu0 %v16728_v16 }
 0x3ed   : > { %11034 = vmatpush1.bf16.msra.mxu1 %v16725_v15  ;;  %11060 = vmatprep.subr.bf16.mxu0 %v16736_v27 }
 0x3ee   : > { %11035 = vmatprep.subr.bf16.mxu1 %v16733_v10  ;;  %v16776_v10 = vld [vmem:[%s18585_s19 + $0x2458] ss:$28 sps:$4 sm:$0xff]  }
 0x3f0   : > { %11061 = vmatpush1.bf16.msra.mxu0 %v16734_v45  ;;  %v16784_v45 = vld [vmem:[%s18585_s19 + $0x2494] ss:$28 sps:$4 sm:$0xff]  }
 0x3f1   : > { %11036 = vmatpush1.bf16.msra.mxu1 %v16731_v13  ;;  %11062 = vmatprep.subr.bf16.mxu0 %v16739_v14  ;;  %v16781_v13 = vld [vmem:[%s18585_s19 + $0x22d4] ss:$28 sps:$4 sm:$0xff]  }
 0x3f2   : > { %11087 = vmatprep.subr.bf16.mxu1 %v16742_v28  ;;  %v16782_v14 = vld [vmem:[%s18585_s19 + $0x2490] ss:$28 sps:$4 sm:$0xff]  }
 0x3f3   : > { %v16787_v28 = vld [vmem:[%s18585_s19 + $0x24cc] ss:$28 sps:$4 sm:$0xff]  }
 0x3f4   : > { %11038 = vmatmul.mubr.bf16.vlgmr.msra.gmra.mrb[44].mxu1 %v19050_v49  ;;  %11063 = vmatpush1.bf16.msra.mxu0 %v16737_v29  ;;  %v16790_v29 = vld [vmem:[%s18585_s19 + $0x268c] ss:$28 sps:$4 sm:$0xff]  }
 0x3f5   : > { %11088 = vmatpush1.bf16.msra.mxu1 %v16740_v3  ;;  %11064 = vmatprep.subr.bf16.mxu0 %v16745_v30  ;;  %v16785_v3 = vld [vmem:[%s18585_s19 + $0x24c8] ss:$28 sps:$4 sm:$0xff]  }
 0x3f6   : > { %11089 = vmatprep.subr.bf16.mxu1 %v16748_v31  ;;  %11119 = vmatprep.mubr.bf16.mxu1 %v19063_v55  ;;  %v16788_v30 = vld [vmem:[%s18585_s19 + $0x2688] ss:$28 sps:$4 sm:$0xff]  }
 0x3f7   : > { %v16793_v31 = vld [vmem:[%s18585_s19 + $0x2504] ss:$28 sps:$4 sm:$0xff]  }
 0x3f8   : > { %11065 = vmatpush1.bf16.msra.mxu0 %v16743_v32  ;;  %v16796_v32 = vld [vmem:[%s18585_s19 + $0x26c4] ss:$28 sps:$4 sm:$0xff]  }
 0x3f9   : > { %11090 = vmatpush1.bf16.msra.mxu1 %v16746_v34  ;;  %11066 = vmatprep.subr.bf16.mxu0 %v16751_v43  ;;  %v16791_v34 = vld [vmem:[%s18585_s19 + $0x2500] ss:$28 sps:$4 sm:$0xff]  }
 0x3fa   : > { %11091 = vmatprep.subr.bf16.mxu1 %v16754_v33  ;;  %v16794_v43 = vld [vmem:[%s18585_s19 + $0x26c0] ss:$28 sps:$4 sm:$0xff]  }
 0x3fb   : > { %v16799_v33 = vld [vmem:[%s18585_s19 + $0x253c] ss:$28 sps:$4 sm:$0xff]  }
 0x3fc   : > { %11067 = vmatpush1.bf16.msra.mxu0 %v16749_v44  ;;  %v16802_v44 = vld [vmem:[%s18585_s19 + $0x26fc] ss:$28 sps:$4 sm:$0xff]  }
 0x3fd   : > { %11092 = vmatpush1.bf16.msra.mxu1 %v16752_v54  ;;  %11068 = vmatprep.subr.bf16.mxu0 %v16757_v46  ;;  %v16797_v54 = vld [vmem:[%s18585_s19 + $0x2538] ss:$28 sps:$4 sm:$0xff]  }
 0x3fe   : > { %11093 = vmatprep.subr.bf16.mxu1 %v16760_v51  ;;  %v16800_v46 = vld [vmem:[%s18585_s19 + $0x26f8] ss:$28 sps:$4 sm:$0xff]  }
 0x3ff   : > { %v16805_v51 = vld [vmem:[%s18585_s19 + $0x2574] ss:$28 sps:$4 sm:$0xff]  }
 0x400   : > { %11069 = vmatpush1.bf16.msra.mxu0 %v16755_v35  ;;  %v16808_v35 = vld [vmem:[%s18585_s19 + $0x2734] ss:$28 sps:$4 sm:$0xff]  }
 0x401   : > { %11094 = vmatpush1.bf16.msra.mxu1 %v16758_v57  ;;  %11070 = vmatprep.subr.bf16.mxu0 %v16763_v0  ;;  %v16803_v57 = vld [vmem:[%s18585_s19 + $0x2570] ss:$28 sps:$4 sm:$0xff]  }
 0x402   : > { %11095 = vmatprep.subr.bf16.mxu1 %v16766_v2  ;;  %v16806_v0 = vld [vmem:[%s18585_s19 + $0x2730] ss:$28 sps:$4 sm:$0xff]  }
 0x403   : > { %v16811_v2 = vld [vmem:[%s18585_s19 + $0x25ac] ss:$28 sps:$4 sm:$0xff]  }
 0x404   : > { %11071 = vmatpush1.bf16.msra.mxu0 %v16761_v36  ;;  %v16814_v36 = vld [vmem:[%s18585_s19 + $0x276c] ss:$28 sps:$4 sm:$0xff]  }
 0x405   : > { %11096 = vmatpush1.bf16.msra.mxu1 %v16764_v5  ;;  %11072 = vmatprep.subr.bf16.mxu0 %v16769_v62  ;;  %v16809_v5 = vld [vmem:[%s18585_s19 + $0x25a8] ss:$28 sps:$4 sm:$0xff]  }
 0x406   : > { %11097 = vmatprep.subr.bf16.mxu1 %v16772_v6  ;;  %v16812_v62 = vld [vmem:[%s18585_s19 + $0x2768] ss:$28 sps:$4 sm:$0xff]  }
 0x407   : > { %v10793_v15 = vpop.f32.mrb[32].mxu1  ;;  %v16817_v6 = vld [vmem:[%s18585_s19 + $0x25e4] ss:$28 sps:$4 sm:$0xff]  }
 0x408   : > { %v19603_v16 = vadd.f32 %v10793_v15, %v19565_v18  ;;  %v10795_v1 = vpop.f32.mrb[33].mxu1  ;;  %11073 = vmatpush1.bf16.msra.mxu0 %v16767_v9  ;;  %v16820_v9 = vld [vmem:[%s18585_s19 + $0x27a4] ss:$28 sps:$4 sm:$0xff]   ;;  %v16826_v15 = vld [vmem:[%s18585_s19 + $0x27dc] ss:$28 sps:$4 sm:$0xff]  }
 0x409   : > { %v19606_v21 = vadd.f32 %v10795_v1, %v19568_v19  ;;  %11098 = vmatpush1.bf16.msra.mxu1 %v16770_v4  ;;  %v10797_v27 = vpop.f32.mrb[34].mxu1  ;;  %11074 = vmatprep.subr.bf16.mxu0 %v16775_v11  ;;  %v16779_v19 = vld [vmem:[%s18585_s19 + $0x22d0] ss:$28 sps:$4 sm:$0xff]   ;;  %v16815_v4 = vld [vmem:[%s18585_s19 + $0x25e0] ss:$28 sps:$4 sm:$0xff]  }
 0x40a   : > { %11099 = vmatprep.subr.bf16.mxu1 %v16778_v12  ;;  %v10798_v18 = vpop.f32.mrb[35].mxu1  ;;  %v16818_v11 = vld [vmem:[%s18585_s19 + $0x27a0] ss:$28 sps:$4 sm:$0xff]  }
 0x40b   : > { %v16823_v12 = vld [vmem:[%s18585_s19 + $0x261c] ss:$28 sps:$4 sm:$0xff]  }
 0x40c   : > { %11075 = vmatpush1.bf16.msra.mxu0 %v16773_v22  ;;  %v16821_v22 = vld [vmem:[%s18585_s19 + $0x2618] ss:$28 sps:$4 sm:$0xff]  }
 0x40d   : > { %11100 = vmatpush1.bf16.msra.mxu1 %v16776_v10  ;;  %11076 = vmatprep.subr.bf16.mxu0 %v16781_v13  ;;  %v16824_v10 = vld [vmem:[%s18585_s19 + $0x27d8] ss:$28 sps:$4 sm:$0xff]  }
 0x40e   : > { %11101 = vmatprep.subr.bf16.mxu1 %v16784_v45 }
 0x410   : > { %11077 = vmatpush1.bf16.msra.mxu0 %v16779_v19 }
 0x411   : > { %11102 = vmatpush1.bf16.msra.mxu1 %v16782_v14  ;;  %11128 = vmatprep.subr.bf16.mxu0 %v16790_v29  ;;  %v16829_v14 = vld [vmem:[%s18585_s19 + $0x2654] ss:$28 sps:$4 sm:$0xff]  }
 0x412   : > { %11103 = vmatprep.subr.bf16.mxu1 %v16787_v28  ;;  %v16832_v28 = vld [vmem:[%s18585_s19 + $0x2814] ss:$28 sps:$4 sm:$0xff]  }
 0x413   : > { %11079 = vmatmul.mubr.bf16.vlgmr.msra.gmra.mrb[44].mxu0 %v19054_v50  ;;  %v16830_v29 = vld [vmem:[%s18585_s19 + $0x2810] ss:$28 sps:$4 sm:$0xff]  }
 0x414   : > { %11129 = vmatpush1.bf16.msra.mxu0 %v16788_v30  ;;  %11160 = vmatprep.mubr.bf16.mxu0 %v19067_v59  ;;  %v16833_v30 = vld [vmem:[%s18585_s19 + $0x2848] ss:$28 sps:$4 sm:$0xff]  }
 0x415   : > { %11104 = vmatpush1.bf16.msra.mxu1 %v16785_v3  ;;  %11130 = vmatprep.subr.bf16.mxu0 %v16796_v32  ;;  %v16838_v3 = vld [vmem:[%s18585_s19 + $0x2a0c] ss:$28 sps:$4 sm:$0xff]   ;;  %v16841_v32 = vld [vmem:[%s18585_s19 + $0x2884] ss:$28 sps:$4 sm:$0xff]  }
 0x416   : > { %11105 = vmatprep.subr.bf16.mxu1 %v16793_v31  ;;  %v16836_v31 = vld [vmem:[%s18585_s19 + $0x2a08] ss:$28 sps:$4 sm:$0xff]  }
 0x418   : > { %11131 = vmatpush1.bf16.msra.mxu0 %v16794_v43  ;;  %v16839_v43 = vld [vmem:[%s18585_s19 + $0x2880] ss:$28 sps:$4 sm:$0xff]  }
 0x419   : > { %11106 = vmatpush1.bf16.msra.mxu1 %v16791_v34  ;;  %11132 = vmatprep.subr.bf16.mxu0 %v16802_v44  ;;  %v16844_v34 = vld [vmem:[%s18585_s19 + $0x2a44] ss:$28 sps:$4 sm:$0xff]   ;;  %v16847_v44 = vld [vmem:[%s18585_s19 + $0x28bc] ss:$28 sps:$4 sm:$0xff]  }
 0x41a   : > { %11107 = vmatprep.subr.bf16.mxu1 %v16799_v33  ;;  %v16842_v33 = vld [vmem:[%s18585_s19 + $0x2a40] ss:$28 sps:$4 sm:$0xff]  }
 0x41c   : > { %11133 = vmatpush1.bf16.msra.mxu0 %v16800_v46  ;;  %v16845_v46 = vld [vmem:[%s18585_s19 + $0x28b8] ss:$28 sps:$4 sm:$0xff]  }
 0x41d   : > { %11108 = vmatpush1.bf16.msra.mxu1 %v16797_v54  ;;  %11134 = vmatprep.subr.bf16.mxu0 %v16808_v35  ;;  %v16850_v54 = vld [vmem:[%s18585_s19 + $0x2a7c] ss:$28 sps:$4 sm:$0xff]   ;;  %v16853_v35 = vld [vmem:[%s18585_s19 + $0x28f4] ss:$28 sps:$4 sm:$0xff]  }
 0x41e   : > { %11109 = vmatprep.subr.bf16.mxu1 %v16805_v51  ;;  %v16848_v51 = vld [vmem:[%s18585_s19 + $0x2a78] ss:$28 sps:$4 sm:$0xff]  }
 0x420   : > { %11135 = vmatpush1.bf16.msra.mxu0 %v16806_v0  ;;  %v16851_v0 = vld [vmem:[%s18585_s19 + $0x28f0] ss:$28 sps:$4 sm:$0xff]  }
 0x421   : > { %11110 = vmatpush1.bf16.msra.mxu1 %v16803_v57  ;;  %11136 = vmatprep.subr.bf16.mxu0 %v16814_v36  ;;  %v16856_v57 = vld [vmem:[%s18585_s19 + $0x2ab4] ss:$28 sps:$4 sm:$0xff]   ;;  %v16859_v36 = vld [vmem:[%s18585_s19 + $0x292c] ss:$28 sps:$4 sm:$0xff]  }
 0x422   : > { %11111 = vmatprep.subr.bf16.mxu1 %v16811_v2  ;;  %v16854_v2 = vld [vmem:[%s18585_s19 + $0x2ab0] ss:$28 sps:$4 sm:$0xff]  }
 0x424   : > { %11137 = vmatpush1.bf16.msra.mxu0 %v16812_v62  ;;  %v16857_v62 = vld [vmem:[%s18585_s19 + $0x2928] ss:$28 sps:$4 sm:$0xff]  }
 0x425   : > { %11112 = vmatpush1.bf16.msra.mxu1 %v16809_v5  ;;  %11138 = vmatprep.subr.bf16.mxu0 %v16820_v9  ;;  %v16862_v5 = vld [vmem:[%s18585_s19 + $0x2aec] ss:$28 sps:$4 sm:$0xff]   ;;  %v16865_v9 = vld [vmem:[%s18585_s19 + $0x2964] ss:$28 sps:$4 sm:$0xff]  }
 0x426   : > { %11113 = vmatprep.subr.bf16.mxu1 %v16817_v6  ;;  %v10834_v1 = vpop.f32.mrb[32].mxu0  ;;  %v16860_v6 = vld [vmem:[%s18585_s19 + $0x2ae8] ss:$28 sps:$4 sm:$0xff]  }
 0x427   : > { %v19645_v27 = vadd.f32 %v10834_v1, %v19603_v16  ;;  %v10836_v13 = vpop.f32.mrb[33].mxu0  ;;  %v16827_v16 = vld [vmem:[%s18585_s19 + $0x2650] ss:$28 sps:$4 sm:$0xff]   ;;  %v16874_v1 = vld [vmem:[%s18585_s19 + $0x2b5c] ss:$28 sps:$4 sm:$0xff]  }
 0x428   : > { %v19648_v45 = vadd.f32 %v10836_v13, %v19606_v21  ;;  %v10838_v18 = vpop.f32.mrb[34].mxu0  ;;  %11139 = vmatpush1.bf16.msra.mxu0 %v16818_v11  ;;  %v16835_v21 = vld [vmem:[%s18585_s19 + $0x284c] ss:$28 sps:$4 sm:$0xff]   ;;  %v16863_v11 = vld [vmem:[%s18585_s19 + $0x2960] ss:$28 sps:$4 sm:$0xff]  }
 0x429   : > { %11114 = vmatpush1.bf16.msra.mxu1 %v16815_v4  ;;  %v10839_v19 = vpop.f32.mrb[35].mxu0  ;;  %11140 = vmatprep.subr.bf16.mxu0 %v16826_v15  ;;  %v16868_v4 = vld [vmem:[%s18585_s19 + $0x2b24] ss:$28 sps:$4 sm:$0xff]   ;;  %v16871_v15 = vld [vmem:[%s18585_s19 + $0x299c] ss:$28 sps:$4 sm:$0xff]  }
 0x42a   : > { %11115 = vmatprep.subr.bf16.mxu1 %v16823_v12  ;;  %v16866_v12 = vld [vmem:[%s18585_s19 + $0x2b20] ss:$28 sps:$4 sm:$0xff]   ;;  %v16869_v18 = vld [vmem:[%s18585_s19 + $0x2998] ss:$28 sps:$4 sm:$0xff]  }
 0x42c   : > { %11141 = vmatpush1.bf16.msra.mxu0 %v16824_v10 }
 0x42d   : > { %11116 = vmatpush1.bf16.msra.mxu1 %v16821_v22  ;;  %11142 = vmatprep.subr.bf16.mxu0 %v16832_v28  ;;  %v16877_v28 = vld [vmem:[%s18585_s19 + $0x29d4] ss:$28 sps:$4 sm:$0xff]  }
 0x42e   : > { %11117 = vmatprep.subr.bf16.mxu1 %v16829_v14  ;;  %v16872_v14 = vld [vmem:[%s18585_s19 + $0x2b58] ss:$28 sps:$4 sm:$0xff]  }
 0x430   : > { %11143 = vmatpush1.bf16.msra.mxu0 %v16830_v29 }
 0x431   : > { %11118 = vmatpush1.bf16.msra.mxu1 %v16827_v16  ;;  %11144 = vmatprep.subr.bf16.mxu0 %v16835_v21  ;;  %v16875_v21 = vld [vmem:[%s18585_s19 + $0x29d0] ss:$28 sps:$4 sm:$0xff]  }
 0x432   : > { %11169 = vmatprep.subr.bf16.mxu1 %v16838_v3  ;;  %v16878_v3 = vld [vmem:[%s18585_s19 + $0x2b90] ss:$28 sps:$4 sm:$0xff]  }
 0x434   : > { %11120 = vmatmul.mubr.bf16.vlgmr.msra.gmra.mrb[48].mxu1 %v19146_v47  ;;  %11145 = vmatpush1.bf16.msra.mxu0 %v16833_v30  ;;  %v16886_v30 = vld [vmem:[%s18585_s19 + $0x2d8c] ss:$28 sps:$4 sm:$0xff]  }
 0x435   : > { %11170 = vmatpush1.bf16.msra.mxu1 %v16836_v31  ;;  %11146 = vmatprep.subr.bf16.mxu0 %v16841_v32  ;;  %v16881_v31 = vld [vmem:[%s18585_s19 + $0x2bc8] ss:$28 sps:$4 sm:$0xff]  }
 0x436   : > { %11171 = vmatprep.subr.bf16.mxu1 %v16844_v34  ;;  %11201 = vmatprep.mubr.bf16.mxu1 %v19156_v56  ;;  %v16884_v32 = vld [vmem:[%s18585_s19 + $0x2d88] ss:$28 sps:$4 sm:$0xff]  }
 0x437   : > { %v16889_v34 = vld [vmem:[%s18585_s19 + $0x2c04] ss:$28 sps:$4 sm:$0xff]  }
 0x438   : > { %11147 = vmatpush1.bf16.msra.mxu0 %v16839_v43  ;;  %v16892_v43 = vld [vmem:[%s18585_s19 + $0x2dc4] ss:$28 sps:$4 sm:$0xff]  }
 0x439   : > { %11172 = vmatpush1.bf16.msra.mxu1 %v16842_v33  ;;  %11148 = vmatprep.subr.bf16.mxu0 %v16847_v44  ;;  %v16887_v33 = vld [vmem:[%s18585_s19 + $0x2c00] ss:$28 sps:$4 sm:$0xff]  }
 0x43a   : > { %11173 = vmatprep.subr.bf16.mxu1 %v16850_v54  ;;  %v16890_v44 = vld [vmem:[%s18585_s19 + $0x2dc0] ss:$28 sps:$4 sm:$0xff]  }
 0x43b   : > { %v16895_v54 = vld [vmem:[%s18585_s19 + $0x2c3c] ss:$28 sps:$4 sm:$0xff]  }
 0x43c   : > { %11149 = vmatpush1.bf16.msra.mxu0 %v16845_v46  ;;  %v16898_v46 = vld [vmem:[%s18585_s19 + $0x2dfc] ss:$28 sps:$4 sm:$0xff]  }
 0x43d   : > { %11174 = vmatpush1.bf16.msra.mxu1 %v16848_v51  ;;  %11150 = vmatprep.subr.bf16.mxu0 %v16853_v35  ;;  %v16893_v51 = vld [vmem:[%s18585_s19 + $0x2c38] ss:$28 sps:$4 sm:$0xff]  }
 0x43e   : > { %11175 = vmatprep.subr.bf16.mxu1 %v16856_v57  ;;  %v16896_v35 = vld [vmem:[%s18585_s19 + $0x2df8] ss:$28 sps:$4 sm:$0xff]  }
 0x43f   : > { %v16901_v57 = vld [vmem:[%s18585_s19 + $0x2c74] ss:$28 sps:$4 sm:$0xff]  }
 0x440   : > { %11151 = vmatpush1.bf16.msra.mxu0 %v16851_v0  ;;  %v16904_v0 = vld [vmem:[%s18585_s19 + $0x2e34] ss:$28 sps:$4 sm:$0xff]  }
 0x441   : > { %11176 = vmatpush1.bf16.msra.mxu1 %v16854_v2  ;;  %11152 = vmatprep.subr.bf16.mxu0 %v16859_v36  ;;  %v16899_v2 = vld [vmem:[%s18585_s19 + $0x2c70] ss:$28 sps:$4 sm:$0xff]  }
 0x442   : > { %11177 = vmatprep.subr.bf16.mxu1 %v16862_v5  ;;  %v16902_v36 = vld [vmem:[%s18585_s19 + $0x2e30] ss:$28 sps:$4 sm:$0xff]  }
 0x443   : > { %v16907_v5 = vld [vmem:[%s18585_s19 + $0x2cac] ss:$28 sps:$4 sm:$0xff]  }
 0x444   : > { %11153 = vmatpush1.bf16.msra.mxu0 %v16857_v62  ;;  %v16910_v62 = vld [vmem:[%s18585_s19 + $0x2e6c] ss:$28 sps:$4 sm:$0xff]  }
 0x445   : > { %11178 = vmatpush1.bf16.msra.mxu1 %v16860_v6  ;;  %11154 = vmatprep.subr.bf16.mxu0 %v16865_v9  ;;  %v16905_v6 = vld [vmem:[%s18585_s19 + $0x2ca8] ss:$28 sps:$4 sm:$0xff]  }
 0x446   : > { %11179 = vmatprep.subr.bf16.mxu1 %v16868_v4  ;;  %v16908_v9 = vld [vmem:[%s18585_s19 + $0x2e68] ss:$28 sps:$4 sm:$0xff]  }
 0x447   : > { %v10875_v22 = vpop.f32.mrb[36].mxu1  ;;  %v16913_v4 = vld [vmem:[%s18585_s19 + $0x2ce4] ss:$28 sps:$4 sm:$0xff]  }
 0x448   : > { %v19683_v10 = vadd.f32 %v10875_v22, %v19645_v27  ;;  %v10877_v13 = vpop.f32.mrb[37].mxu1  ;;  %11155 = vmatpush1.bf16.msra.mxu0 %v16863_v11  ;;  %v16880_v27 = vld [vmem:[%s18585_s19 + $0x2b94] ss:$28 sps:$4 sm:$0xff]   ;;  %v16916_v11 = vld [vmem:[%s18585_s19 + $0x2ea4] ss:$28 sps:$4 sm:$0xff]  }
 0x449   : > { %v19687_v19 = vadd.f32 %v10877_v13, %v19648_v45  ;;  %11180 = vmatpush1.bf16.msra.mxu1 %v16866_v12  ;;  %v10879_v16 = vpop.f32.mrb[38].mxu1  ;;  %11156 = vmatprep.subr.bf16.mxu0 %v16871_v15  ;;  %v16883_v45 = vld [vmem:[%s18585_s19 + $0x2bcc] ss:$28 sps:$4 sm:$0xff]   ;;  %v16911_v12 = vld [vmem:[%s18585_s19 + $0x2ce0] ss:$28 sps:$4 sm:$0xff]  }
 0x44a   : > { %11181 = vmatprep.subr.bf16.mxu1 %v16874_v1  ;;  %v10880_v29 = vpop.f32.mrb[39].mxu1  ;;  %v16914_v15 = vld [vmem:[%s18585_s19 + $0x2ea0] ss:$28 sps:$4 sm:$0xff]  }
 0x44b   : > { %v16919_v1 = vld [vmem:[%s18585_s19 + $0x2d1c] ss:$28 sps:$4 sm:$0xff]  }
 0x44c   : > { %11157 = vmatpush1.bf16.msra.mxu0 %v16869_v18  ;;  %v16922_v22 = vld [vmem:[%s18585_s19 + $0x2edc] ss:$28 sps:$4 sm:$0xff]  }
 0x44d   : > { %11182 = vmatpush1.bf16.msra.mxu1 %v16872_v14  ;;  %11158 = vmatprep.subr.bf16.mxu0 %v16877_v28  ;;  %v16917_v28 = vld [vmem:[%s18585_s19 + $0x2d18] ss:$28 sps:$4 sm:$0xff]  }
 0x44e   : > { %11183 = vmatprep.subr.bf16.mxu1 %v16880_v27  ;;  %v16920_v29 = vld [vmem:[%s18585_s19 + $0x2ed8] ss:$28 sps:$4 sm:$0xff]  }
 0x450   : > { %11159 = vmatpush1.bf16.msra.mxu0 %v16875_v21 }
 0x451   : > { %11184 = vmatpush1.bf16.msra.mxu1 %v16878_v3  ;;  %11210 = vmatprep.subr.bf16.mxu0 %v16886_v30  ;;  %v16928_v3 = vld [vmem:[%s18585_s19 + $0x2f14] ss:$28 sps:$4 sm:$0xff]  }
 0x452   : > { %11185 = vmatprep.subr.bf16.mxu1 %v16883_v45  ;;  %v16923_v45 = vld [vmem:[%s18585_s19 + $0x2d50] ss:$28 sps:$4 sm:$0xff]  }
 0x453   : > { %11161 = vmatmul.mubr.bf16.vlgmr.msra.gmra.mrb[48].mxu0 %v19150_v53  ;;  %v16926_v30 = vld [vmem:[%s18585_s19 + $0x2f10] ss:$28 sps:$4 sm:$0xff]  }
 0x454   : > { %11211 = vmatpush1.bf16.msra.mxu0 %v16884_v32  ;;  %11242 = vmatprep.mubr.bf16.mxu0 %v18216_v63  ;;  %v16929_v32 = vld [vmem:[%s18585_s19 + $0x10] ss:$28 sps:$4 sm:$0xff]  }
 0x455   : > { %11186 = vmatpush1.bf16.msra.mxu1 %v16881_v31  ;;  %11212 = vmatprep.subr.bf16.mxu0 %v16892_v43  ;;  %v16934_v31 = vld [vmem:[%s18585_s19 + $0x394] ss:$28 sps:$4 sm:$0xff]   ;;  %v16937_v43 = vld [vmem:[%s18585_s19 + $0x4c] ss:$28 sps:$4 sm:$0xff]  }
 0x456   : > { %11187 = vmatprep.subr.bf16.mxu1 %v16889_v34  ;;  %v16932_v34 = vld [vmem:[%s18585_s19 + $0x390] ss:$28 sps:$4 sm:$0xff]  }
 0x458   : > { %11213 = vmatpush1.bf16.msra.mxu0 %v16890_v44  ;;  %v17793_v44 = vld [vmem:[%s18578_s12 + $0x68] ss:$0 sps:$4 sm:$0xff]  }
 0x459   : > { %11188 = vmatpush1.bf16.msra.mxu1 %v16887_v33  ;;  %11214 = vmatprep.subr.bf16.mxu0 %v16898_v46  ;;  %v16940_v33 = vld [vmem:[%s18585_s19 + $0x3cc] ss:$28 sps:$4 sm:$0xff]  }
 0x45a   : > { %11189 = vmatprep.subr.bf16.mxu1 %v16895_v54  ;;  %v16935_v54 = vld [vmem:[%s18585_s19 + $0x48] ss:$28 sps:$4 sm:$0xff]  }
 0x45b   : > { %v16938_v46 = vld [vmem:[%s18585_s19 + $0x3c8] ss:$28 sps:$4 sm:$0xff]  }
 0x45c   : > { %11215 = vmatpush1.bf16.msra.mxu0 %v16896_v35  ;;  %v16946_v35 = vld [vmem:[%s18585_s19 + $0x404] ss:$28 sps:$4 sm:$0xff]  }
 0x45d   : > { %11190 = vmatpush1.bf16.msra.mxu1 %v16893_v51  ;;  %11216 = vmatprep.subr.bf16.mxu0 %v16904_v0  ;;  %v16943_v51 = vld [vmem:[%s18585_s19 + $0x84] ss:$28 sps:$4 sm:$0xff]  }
 0x45e   : > { %11191 = vmatprep.subr.bf16.mxu1 %v16901_v57  ;;  %v16941_v57 = vld [vmem:[%s18585_s19 + $0x80] ss:$28 sps:$4 sm:$0xff]  }
 0x45f   : > { %v16944_v0 = vld [vmem:[%s18585_s19 + $0x400] ss:$28 sps:$4 sm:$0xff]  }
 0x460   : > { %11217 = vmatpush1.bf16.msra.mxu0 %v16902_v36  ;;  %v16952_v36 = vld [vmem:[%s18585_s19 + $0x43c] ss:$28 sps:$4 sm:$0xff]  }
 0x461   : > { %11192 = vmatpush1.bf16.msra.mxu1 %v16899_v2  ;;  %11218 = vmatprep.subr.bf16.mxu0 %v16910_v62  ;;  %v16949_v2 = vld [vmem:[%s18585_s19 + $0xbc] ss:$28 sps:$4 sm:$0xff]  }
 0x462   : > { %11193 = vmatprep.subr.bf16.mxu1 %v16907_v5  ;;  %v16947_v5 = vld [vmem:[%s18585_s19 + $0xb8] ss:$28 sps:$4 sm:$0xff]  }
 0x463   : > { %v16950_v62 = vld [vmem:[%s18585_s19 + $0x438] ss:$28 sps:$4 sm:$0xff]  }
 0x464   : > { %11219 = vmatpush1.bf16.msra.mxu0 %v16908_v9  ;;  %v16958_v9 = vld [vmem:[%s18585_s19 + $0x474] ss:$28 sps:$4 sm:$0xff]  }
 0x465   : > { %11194 = vmatpush1.bf16.msra.mxu1 %v16905_v6  ;;  %11220 = vmatprep.subr.bf16.mxu0 %v16916_v11  ;;  %v16955_v6 = vld [vmem:[%s18585_s19 + $0xf4] ss:$28 sps:$4 sm:$0xff]  }
 0x466   : > { %11195 = vmatprep.subr.bf16.mxu1 %v16913_v4  ;;  %v10916_v13 = vpop.f32.mrb[36].mxu0  ;;  %v16953_v4 = vld [vmem:[%s18585_s19 + $0xf0] ss:$28 sps:$4 sm:$0xff]  }
 0x467   : > { %v19723_v18 = vadd.f32 %v10916_v13, %v19683_v10  ;;  %v10918_v14 = vpop.f32.mrb[37].mxu0  ;;  %v16925_v10 = vld [vmem:[%s18585_s19 + $0x2d54] ss:$28 sps:$4 sm:$0xff]   ;;  %v16967_v13 = vld [vmem:[%s18585_s19 + $0x164] ss:$28 sps:$4 sm:$0xff]  }
 0x468   : > { %v19727_v16 = vadd.f32 %v10918_v14, %v19687_v19  ;;  %v10920_v27 = vpop.f32.mrb[38].mxu0  ;;  %11221 = vmatpush1.bf16.msra.mxu0 %v16914_v15  ;;  %v16931_v19 = vld [vmem:[%s18585_s19 + $0x14] ss:$28 sps:$4 sm:$0xff]   ;;  %v16964_v15 = vld [vmem:[%s18585_s19 + $0x4ac] ss:$28 sps:$4 sm:$0xff]  }
 0x469   : > { %11196 = vmatpush1.bf16.msra.mxu1 %v16911_v12  ;;  %v10921_v21 = vpop.f32.mrb[39].mxu0  ;;  %11222 = vmatprep.subr.bf16.mxu0 %v16922_v22  ;;  %v16956_v11 = vld [vmem:[%s18585_s19 + $0x470] ss:$28 sps:$4 sm:$0xff]   ;;  %v16962_v22 = vld [vmem:[%s18585_s19 + $0x4a8] ss:$28 sps:$4 sm:$0xff]  }
 0x46a   : > { %11197 = vmatprep.subr.bf16.mxu1 %v16919_v1  ;;  %v16961_v12 = vld [vmem:[%s18585_s19 + $0x12c] ss:$28 sps:$4 sm:$0xff]   ;;  %v16970_v14 = vld [vmem:[%s18585_s19 + $0x4e4] ss:$28 sps:$4 sm:$0xff]  }
 0x46b   : > { %v16959_v1 = vld [vmem:[%s18585_s19 + $0x128] ss:$28 sps:$4 sm:$0xff]   ;;  %v16965_v21 = vld [vmem:[%s18585_s19 + $0x160] ss:$28 sps:$4 sm:$0xff]  }
 0x46c   : > { %11223 = vmatpush1.bf16.msra.mxu0 %v16920_v29 }
 0x46d   : > { %11198 = vmatpush1.bf16.msra.mxu1 %v16917_v28  ;;  %11224 = vmatprep.subr.bf16.mxu0 %v16928_v3  ;;  %v16968_v3 = vld [vmem:[%s18585_s19 + $0x4e0] ss:$28 sps:$4 sm:$0xff]  }
 0x46e   : > { %11199 = vmatprep.subr.bf16.mxu1 %v16925_v10 }
 0x470   : > { %11225 = vmatpush1.bf16.msra.mxu0 %v16926_v30 }
 0x471   : > { %11200 = vmatpush1.bf16.msra.mxu1 %v16923_v45  ;;  %11251 = vmatprep.subr.bf16.mxu0 %v16931_v19  ;;  %v16973_v45 = vld [vmem:[%s18585_s19 + $0x19c] ss:$28 sps:$4 sm:$0xff]  }
 0x472   : > { %11292 = vmatprep.subr.bf16.mxu1 %v16934_v31  ;;  %v16971_v31 = vld [vmem:[%s18585_s19 + $0x198] ss:$28 sps:$4 sm:$0xff]  }
 0x473   : > { %11243 = vmatmul.mubr.bf16.vlgmr.msra.gmra.mrb[52].mxu0 %v17793_v44  ;;  %v16985_v44 = vld [vmem:[%s18585_s19 + $0x20c] ss:$28 sps:$4 sm:$0xff]  }
 0x474   : > { %11202 = vmatmul.mubr.bf16.vlgmr.msra.gmra.mrb[52].mxu1 %v19234_v58  ;;  %11252 = vmatpush1.bf16.msra.mxu0 %v16929_v32  ;;  %v16974_v32 = vld [vmem:[%s18585_s19 + $0x518] ss:$28 sps:$4 sm:$0xff]  }
 0x475   : > { %11293 = vmatpush1.bf16.msra.mxu1 %v16932_v34  ;;  %11253 = vmatprep.subr.bf16.mxu0 %v16937_v43  ;;  %v16982_v34 = vld [vmem:[%s18585_s19 + $0x554] ss:$28 sps:$4 sm:$0xff]  }
 0x476   : > { %11294 = vmatprep.subr.bf16.mxu1 %v16940_v33  ;;  %11283 = vmatprep.mubr.bf16.mxu0 %v18656_v48  ;;  %v16977_v43 = vld [vmem:[%s18585_s19 + $0x1d0] ss:$28 sps:$4 sm:$0xff]  }
 0x477   : > { %11324 = vmatprep.mubr.bf16.mxu1 %v18661_v52  ;;  %v16980_v33 = vld [vmem:[%s18585_s19 + $0x550] ss:$28 sps:$4 sm:$0xff]  }
 0x478   : > { %11254 = vmatpush1.bf16.msra.mxu0 %v16935_v54  ;;  %v16988_v54 = vld [vmem:[%s18585_s19 + $0x58c] ss:$28 sps:$4 sm:$0xff]  }
 0x479   : > { %11295 = vmatpush1.bf16.msra.mxu1 %v16938_v46  ;;  %11255 = vmatprep.subr.bf16.mxu0 %v16943_v51  ;;  %v16983_v46 = vld [vmem:[%s18585_s19 + $0x208] ss:$28 sps:$4 sm:$0xff]  }
 0x47a   : > { %11296 = vmatprep.subr.bf16.mxu1 %v16946_v35  ;;  %v16986_v51 = vld [vmem:[%s18585_s19 + $0x588] ss:$28 sps:$4 sm:$0xff]  }
 0x47b   : > { %v16991_v35 = vld [vmem:[%s18585_s19 + $0x244] ss:$28 sps:$4 sm:$0xff]  }
 0x47c   : > { %11256 = vmatpush1.bf16.msra.mxu0 %v16941_v57  ;;  %v16994_v57 = vld [vmem:[%s18585_s19 + $0x5c4] ss:$28 sps:$4 sm:$0xff]  }
 0x47d   : > { %11297 = vmatpush1.bf16.msra.mxu1 %v16944_v0  ;;  %11257 = vmatprep.subr.bf16.mxu0 %v16949_v2  ;;  %v16989_v0 = vld [vmem:[%s18585_s19 + $0x240] ss:$28 sps:$4 sm:$0xff]  }
 0x47e   : > { %11298 = vmatprep.subr.bf16.mxu1 %v16952_v36  ;;  %v16992_v2 = vld [vmem:[%s18585_s19 + $0x5c0] ss:$28 sps:$4 sm:$0xff]  }
 0x47f   : > { %v16997_v36 = vld [vmem:[%s18585_s19 + $0x27c] ss:$28 sps:$4 sm:$0xff]  }
 0x480   : > { %11258 = vmatpush1.bf16.msra.mxu0 %v16947_v5  ;;  %v17000_v5 = vld [vmem:[%s18585_s19 + $0x5fc] ss:$28 sps:$4 sm:$0xff]  }
 0x481   : > { %11299 = vmatpush1.bf16.msra.mxu1 %v16950_v62  ;;  %11259 = vmatprep.subr.bf16.mxu0 %v16955_v6  ;;  %v16995_v62 = vld [vmem:[%s18585_s19 + $0x278] ss:$28 sps:$4 sm:$0xff]  }
 0x482   : > { %11300 = vmatprep.subr.bf16.mxu1 %v16958_v9  ;;  %v16998_v6 = vld [vmem:[%s18585_s19 + $0x5f8] ss:$28 sps:$4 sm:$0xff]  }
 0x483   : > { %v17003_v9 = vld [vmem:[%s18585_s19 + $0x2b4] ss:$28 sps:$4 sm:$0xff]  }
 0x484   : > { %11260 = vmatpush1.bf16.msra.mxu0 %v16953_v4  ;;  %v17006_v4 = vld [vmem:[%s18585_s19 + $0x634] ss:$28 sps:$4 sm:$0xff]  }
 0x485   : > { %11301 = vmatpush1.bf16.msra.mxu1 %v16956_v11  ;;  %11261 = vmatprep.subr.bf16.mxu0 %v16961_v12  ;;  %v17001_v11 = vld [vmem:[%s18585_s19 + $0x2b0] ss:$28 sps:$4 sm:$0xff]  }
 0x486   : > { %11302 = vmatprep.subr.bf16.mxu1 %v16964_v15  ;;  %v17004_v12 = vld [vmem:[%s18585_s19 + $0x630] ss:$28 sps:$4 sm:$0xff]  }
 0x487   : > { %v10957_v28 = vpop.f32.mrb[40].mxu1  ;;  %v17009_v15 = vld [vmem:[%s18585_s19 + $0x2ec] ss:$28 sps:$4 sm:$0xff]  }
 0x488   : > { %v19765_v27 = vadd.f32 %v10957_v28, %v19723_v18  ;;  %v10959_v29 = vpop.f32.mrb[41].mxu1  ;;  %11262 = vmatpush1.bf16.msra.mxu0 %v16959_v1  ;;  %v16976_v18 = vld [vmem:[%s18585_s19 + $0x51c] ss:$28 sps:$4 sm:$0xff]   ;;  %v17012_v1 = vld [vmem:[%s18585_s19 + $0x66c] ss:$28 sps:$4 sm:$0xff]  }
 0x489   : > { %v19769_v10 = vadd.f32 %v10959_v29, %v19727_v16  ;;  %11303 = vmatpush1.bf16.msra.mxu1 %v16962_v22  ;;  %v10961_v30 = vpop.f32.mrb[42].mxu1  ;;  %11263 = vmatprep.subr.bf16.mxu0 %v16967_v13  ;;  %v16979_v16 = vld [vmem:[%s18585_s19 + $0x1d4] ss:$28 sps:$4 sm:$0xff]   ;;  %v17007_v22 = vld [vmem:[%s18585_s19 + $0x2e8] ss:$28 sps:$4 sm:$0xff]  }
 0x48a   : > { %11304 = vmatprep.subr.bf16.mxu1 %v16970_v14  ;;  %v10962_v19 = vpop.f32.mrb[43].mxu1  ;;  %v17010_v13 = vld [vmem:[%s18585_s19 + $0x668] ss:$28 sps:$4 sm:$0xff]  }
 0x48b   : > { %v17015_v14 = vld [vmem:[%s18585_s19 + $0x324] ss:$28 sps:$4 sm:$0xff]  }
 0x48c   : > { %11264 = vmatpush1.bf16.msra.mxu0 %v16965_v21  ;;  %v17018_v28 = vld [vmem:[%s18585_s19 + $0x6a4] ss:$28 sps:$4 sm:$0xff]  }
 0x48d   : > { %11305 = vmatpush1.bf16.msra.mxu1 %v16968_v3  ;;  %11265 = vmatprep.subr.bf16.mxu0 %v16973_v45  ;;  %v17013_v45 = vld [vmem:[%s18585_s19 + $0x320] ss:$28 sps:$4 sm:$0xff]  }
 0x48e   : > { %11306 = vmatprep.subr.bf16.mxu1 %v16976_v18  ;;  %v17016_v19 = vld [vmem:[%s18585_s19 + $0x6a0] ss:$28 sps:$4 sm:$0xff]  }
 0x490   : > { %11266 = vmatpush1.bf16.msra.mxu0 %v16971_v31 }
 0x491   : > { %11307 = vmatpush1.bf16.msra.mxu1 %v16974_v32  ;;  %11267 = vmatprep.subr.bf16.mxu0 %v16979_v16  ;;  %v17024_v32 = vld [vmem:[%s18585_s19 + $0x6dc] ss:$28 sps:$4 sm:$0xff]  }
 0x492   : > { %11308 = vmatprep.subr.bf16.mxu1 %v16982_v34  ;;  %v17019_v16 = vld [vmem:[%s18585_s19 + $0x358] ss:$28 sps:$4 sm:$0xff]  }
 0x493   : > { %v17022_v34 = vld [vmem:[%s18585_s19 + $0x6d8] ss:$28 sps:$4 sm:$0xff]  }
 0x494   : > { %11268 = vmatpush1.bf16.msra.mxu0 %v16977_v43  ;;  %v17030_v43 = vld [vmem:[%s18585_s19 + $0xa94] ss:$28 sps:$4 sm:$0xff]  }
 0x495   : > { %11309 = vmatpush1.bf16.msra.mxu1 %v16980_v33  ;;  %11269 = vmatprep.subr.bf16.mxu0 %v16985_v44  ;;  %v17025_v33 = vld [vmem:[%s18585_s19 + $0x710] ss:$28 sps:$4 sm:$0xff]  }
 0x496   : > { %11310 = vmatprep.subr.bf16.mxu1 %v16988_v54  ;;  %v17028_v44 = vld [vmem:[%s18585_s19 + $0xa90] ss:$28 sps:$4 sm:$0xff]  }
 0x497   : > { %v17033_v54 = vld [vmem:[%s18585_s19 + $0x74c] ss:$28 sps:$4 sm:$0xff]  }
 0x498   : > { %11270 = vmatpush1.bf16.msra.mxu0 %v16983_v46  ;;  %v17036_v46 = vld [vmem:[%s18585_s19 + $0xacc] ss:$28 sps:$4 sm:$0xff]  }
 0x499   : > { %11311 = vmatpush1.bf16.msra.mxu1 %v16986_v51  ;;  %11271 = vmatprep.subr.bf16.mxu0 %v16991_v35  ;;  %v17031_v51 = vld [vmem:[%s18585_s19 + $0x748] ss:$28 sps:$4 sm:$0xff]  }
 0x49a   : > { %11312 = vmatprep.subr.bf16.mxu1 %v16994_v57  ;;  %v17034_v35 = vld [vmem:[%s18585_s19 + $0xac8] ss:$28 sps:$4 sm:$0xff]  }
 0x49b   : > { %v17039_v57 = vld [vmem:[%s18585_s19 + $0x784] ss:$28 sps:$4 sm:$0xff]  }
 0x49c   : > { %11272 = vmatpush1.bf16.msra.mxu0 %v16989_v0  ;;  %v17042_v0 = vld [vmem:[%s18585_s19 + $0xb04] ss:$28 sps:$4 sm:$0xff]  }
 0x49d   : > { %11313 = vmatpush1.bf16.msra.mxu1 %v16992_v2  ;;  %11273 = vmatprep.subr.bf16.mxu0 %v16997_v36  ;;  %v17037_v2 = vld [vmem:[%s18585_s19 + $0x780] ss:$28 sps:$4 sm:$0xff]  }
 0x49e   : > { %11314 = vmatprep.subr.bf16.mxu1 %v17000_v5  ;;  %v17040_v36 = vld [vmem:[%s18585_s19 + $0xb00] ss:$28 sps:$4 sm:$0xff]  }
 0x49f   : > { %v17045_v5 = vld [vmem:[%s18585_s19 + $0x7bc] ss:$28 sps:$4 sm:$0xff]  }
 0x4a0   : > { %11274 = vmatpush1.bf16.msra.mxu0 %v16995_v62  ;;  %v17048_v62 = vld [vmem:[%s18585_s19 + $0xb3c] ss:$28 sps:$4 sm:$0xff]  }
 0x4a1   : > { %11315 = vmatpush1.bf16.msra.mxu1 %v16998_v6  ;;  %11275 = vmatprep.subr.bf16.mxu0 %v17003_v9  ;;  %v17043_v6 = vld [vmem:[%s18585_s19 + $0x7b8] ss:$28 sps:$4 sm:$0xff]  }
 0x4a2   : > { %11316 = vmatprep.subr.bf16.mxu1 %v17006_v4  ;;  %v17046_v9 = vld [vmem:[%s18585_s19 + $0xb38] ss:$28 sps:$4 sm:$0xff]  }
 0x4a3   : > { %v17051_v4 = vld [vmem:[%s18585_s19 + $0x7f4] ss:$28 sps:$4 sm:$0xff]  }
 0x4a4   : > { %11276 = vmatpush1.bf16.msra.mxu0 %v17001_v11  ;;  %v17054_v11 = vld [vmem:[%s18585_s19 + $0xb74] ss:$28 sps:$4 sm:$0xff]  }
 0x4a5   : > { %11317 = vmatpush1.bf16.msra.mxu1 %v17004_v12  ;;  %11277 = vmatprep.subr.bf16.mxu0 %v17009_v15  ;;  %v17049_v12 = vld [vmem:[%s18585_s19 + $0x7f0] ss:$28 sps:$4 sm:$0xff]  }
 0x4a6   : > { %11318 = vmatprep.subr.bf16.mxu1 %v17012_v1  ;;  %v10998_v29 = vpop.f32.mrb[40].mxu0  ;;  %v17052_v15 = vld [vmem:[%s18585_s19 + $0xb70] ss:$28 sps:$4 sm:$0xff]  }
 0x4a7   : > { %v19803_v21 = vadd.f32 %v10998_v29, %v19765_v27  ;;  %v11000_v3 = vpop.f32.mrb[41].mxu0  ;;  %v17021_v27 = vld [vmem:[%s18585_s19 + $0x35c] ss:$28 sps:$4 sm:$0xff]   ;;  %v17057_v1 = vld [vmem:[%s18585_s19 + $0x82c] ss:$28 sps:$4 sm:$0xff]  }
 0x4a8   : > { %v19807_v30 = vadd.f32 %v11000_v3, %v19769_v10  ;;  %v11002_v18 = vpop.f32.mrb[42].mxu0  ;;  %11278 = vmatpush1.bf16.msra.mxu0 %v17007_v22  ;;  %v17027_v10 = vld [vmem:[%s18585_s19 + $0x714] ss:$28 sps:$4 sm:$0xff]   ;;  %v17060_v22 = vld [vmem:[%s18585_s19 + $0xbac] ss:$28 sps:$4 sm:$0xff]  }
 0x4a9   : > { %11319 = vmatpush1.bf16.msra.mxu1 %v17010_v13  ;;  %v11003_v31 = vpop.f32.mrb[43].mxu0  ;;  %11279 = vmatprep.subr.bf16.mxu0 %v17015_v14  ;;  %v17055_v13 = vld [vmem:[%s18585_s19 + $0x828] ss:$28 sps:$4 sm:$0xff]  }
 0x4aa   : > { %11320 = vmatprep.subr.bf16.mxu1 %v17018_v28  ;;  %v17058_v14 = vld [vmem:[%s18585_s19 + $0xba8] ss:$28 sps:$4 sm:$0xff]   ;;  %v17064_v31 = vld [vmem:[%s18585_s19 + $0xbe0] ss:$28 sps:$4 sm:$0xff]  }
 0x4ab   : > { %v17063_v28 = vld [vmem:[%s18585_s19 + $0x864] ss:$28 sps:$4 sm:$0xff]  }
 0x4ac   : > { %11280 = vmatpush1.bf16.msra.mxu0 %v17013_v45  ;;  %v17066_v29 = vld [vmem:[%s18585_s19 + $0xbe4] ss:$28 sps:$4 sm:$0xff]  }
 0x4ad   : > { %11321 = vmatpush1.bf16.msra.mxu1 %v17016_v19  ;;  %11281 = vmatprep.subr.bf16.mxu0 %v17021_v27  ;;  %v17061_v45 = vld [vmem:[%s18585_s19 + $0x860] ss:$28 sps:$4 sm:$0xff]  }
 0x4ae   : > { %11322 = vmatprep.subr.bf16.mxu1 %v17024_v32  ;;  %v17069_v32 = vld [vmem:[%s18585_s19 + $0x89c] ss:$28 sps:$4 sm:$0xff]  }
 0x4b0   : > { %11282 = vmatpush1.bf16.msra.mxu0 %v17019_v16 }
 0x4b1   : > { %11323 = vmatpush1.bf16.msra.mxu1 %v17022_v34  ;;  %11333 = vmatprep.subr.bf16.mxu0 %v17027_v10  ;;  %v17072_v34 = vld [vmem:[%s18585_s19 + $0xc1c] ss:$28 sps:$4 sm:$0xff]  }
 0x4b2   : > { %11374 = vmatprep.subr.bf16.mxu1 %v17030_v43  ;;  %v17070_v43 = vld [vmem:[%s18585_s19 + $0xc18] ss:$28 sps:$4 sm:$0xff]  }
 0x4b3   : > { %11284 = vmatmul.mubr.bf16.vlgmr.msra.gmra.mrb[56].mxu0 %v18683_v7 }
 0x4b4   : > { %11325 = vmatmul.mubr.bf16.vlgmr.msra.gmra.mrb[56].mxu1 %v18685_v8  ;;  %11334 = vmatpush1.bf16.msra.mxu0 %v17025_v33  ;;  %v17078_v33 = vld [vmem:[%s18585_s19 + $0xc54] ss:$28 sps:$4 sm:$0xff]  }
 0x4b5   : > { %11375 = vmatpush1.bf16.msra.mxu1 %v17028_v44  ;;  %11335 = vmatprep.subr.bf16.mxu0 %v17033_v54  ;;  %v17073_v44 = vld [vmem:[%s18585_s19 + $0x8d0] ss:$28 sps:$4 sm:$0xff]  }
 0x4b6   : > { %11376 = vmatprep.subr.bf16.mxu1 %v17036_v46  ;;  %11365 = vmatprep.mubr.bf16.mxu0 %v18723_v37  ;;  %v17076_v54 = vld [vmem:[%s18585_s19 + $0xc50] ss:$28 sps:$4 sm:$0xff]  }
 0x4b7   : > { %11406 = vmatprep.mubr.bf16.mxu1 %v18727_v38  ;;  %v17081_v46 = vld [vmem:[%s18585_s19 + $0x90c] ss:$28 sps:$4 sm:$0xff]  }
 0x4b8   : > { %11336 = vmatpush1.bf16.msra.mxu0 %v17031_v51  ;;  %v17084_v51 = vld [vmem:[%s18585_s19 + $0xc8c] ss:$28 sps:$4 sm:$0xff]  }
 0x4b9   : > { %11377 = vmatpush1.bf16.msra.mxu1 %v17034_v35  ;;  %11337 = vmatprep.subr.bf16.mxu0 %v17039_v57  ;;  %v17079_v35 = vld [vmem:[%s18585_s19 + $0x908] ss:$28 sps:$4 sm:$0xff]  }
 0x4ba   : > { %11378 = vmatprep.subr.bf16.mxu1 %v17042_v0  ;;  %v17082_v57 = vld [vmem:[%s18585_s19 + $0xc88] ss:$28 sps:$4 sm:$0xff]  }
 0x4bb   : > { %v17087_v0 = vld [vmem:[%s18585_s19 + $0x944] ss:$28 sps:$4 sm:$0xff]  }
 0x4bc   : > { %11338 = vmatpush1.bf16.msra.mxu0 %v17037_v2  ;;  %v17090_v2 = vld [vmem:[%s18585_s19 + $0xcc4] ss:$28 sps:$4 sm:$0xff]  }
 0x4bd   : > { %11379 = vmatpush1.bf16.msra.mxu1 %v17040_v36  ;;  %11339 = vmatprep.subr.bf16.mxu0 %v17045_v5  ;;  %v17085_v36 = vld [vmem:[%s18585_s19 + $0x940] ss:$28 sps:$4 sm:$0xff]  }
 0x4be   : > { %11380 = vmatprep.subr.bf16.mxu1 %v17048_v62  ;;  %v17088_v5 = vld [vmem:[%s18585_s19 + $0xcc0] ss:$28 sps:$4 sm:$0xff]  }
 0x4bf   : > { %v17093_v62 = vld [vmem:[%s18585_s19 + $0x97c] ss:$28 sps:$4 sm:$0xff]  }
 0x4c0   : > { %11340 = vmatpush1.bf16.msra.mxu0 %v17043_v6  ;;  %v17096_v6 = vld [vmem:[%s18585_s19 + $0xcfc] ss:$28 sps:$4 sm:$0xff]  }
 0x4c1   : > { %11381 = vmatpush1.bf16.msra.mxu1 %v17046_v9  ;;  %11341 = vmatprep.subr.bf16.mxu0 %v17051_v4  ;;  %v17091_v9 = vld [vmem:[%s18585_s19 + $0x978] ss:$28 sps:$4 sm:$0xff]  }
 0x4c2   : > { %11382 = vmatprep.subr.bf16.mxu1 %v17054_v11  ;;  %v17094_v4 = vld [vmem:[%s18585_s19 + $0xcf8] ss:$28 sps:$4 sm:$0xff]  }
 0x4c3   : > { %v17099_v11 = vld [vmem:[%s18585_s19 + $0x9b4] ss:$28 sps:$4 sm:$0xff]  }
 0x4c4   : > { %11342 = vmatpush1.bf16.msra.mxu0 %v17049_v12  ;;  %v17102_v12 = vld [vmem:[%s18585_s19 + $0xd34] ss:$28 sps:$4 sm:$0xff]  }
 0x4c5   : > { %11383 = vmatpush1.bf16.msra.mxu1 %v17052_v15  ;;  %11343 = vmatprep.subr.bf16.mxu0 %v17057_v1  ;;  %v17097_v15 = vld [vmem:[%s18585_s19 + $0x9b0] ss:$28 sps:$4 sm:$0xff]  }
 0x4c6   : > { %11384 = vmatprep.subr.bf16.mxu1 %v17060_v22  ;;  %v17100_v1 = vld [vmem:[%s18585_s19 + $0xd30] ss:$28 sps:$4 sm:$0xff]  }
 0x4c7   : > { %v11039_v3 = vpop.f32.mrb[44].mxu1  ;;  %v17105_v22 = vld [vmem:[%s18585_s19 + $0x9ec] ss:$28 sps:$4 sm:$0xff]  }
 0x4c8   : > { %v19846_v18 = vadd.f32 %v11039_v3, %v19803_v21  ;;  %v11041_v19 = vpop.f32.mrb[45].mxu1  ;;  %11344 = vmatpush1.bf16.msra.mxu0 %v17055_v13  ;;  %v17067_v21 = vld [vmem:[%s18585_s19 + $0x898] ss:$28 sps:$4 sm:$0xff]   ;;  %v17108_v13 = vld [vmem:[%s18585_s19 + $0xd6c] ss:$28 sps:$4 sm:$0xff]  }
 0x4c9   : > { %v19850_v27 = vadd.f32 %v11041_v19, %v19807_v30  ;;  %11385 = vmatpush1.bf16.msra.mxu1 %v17058_v14  ;;  %v11043_v16 = vpop.f32.mrb[46].mxu1  ;;  %11345 = vmatprep.subr.bf16.mxu0 %v17063_v28  ;;  %v17075_v30 = vld [vmem:[%s18585_s19 + $0x8d4] ss:$28 sps:$4 sm:$0xff]   ;;  %v17103_v14 = vld [vmem:[%s18585_s19 + $0x9e8] ss:$28 sps:$4 sm:$0xff]  }
 0x4ca   : > { %11386 = vmatprep.subr.bf16.mxu1 %v17066_v29  ;;  %v11044_v10 = vpop.f32.mrb[47].mxu1  ;;  %v17106_v28 = vld [vmem:[%s18585_s19 + $0xd68] ss:$28 sps:$4 sm:$0xff]  }
 0x4cb   : > { %v17111_v29 = vld [vmem:[%s18585_s19 + $0xa24] ss:$28 sps:$4 sm:$0xff]  }
 0x4cc   : > { %11346 = vmatpush1.bf16.msra.mxu0 %v17061_v45  ;;  %v17114_v3 = vld [vmem:[%s18585_s19 + $0xda4] ss:$28 sps:$4 sm:$0xff]  }
 0x4cd   : > { %11387 = vmatpush1.bf16.msra.mxu1 %v17064_v31  ;;  %11347 = vmatprep.subr.bf16.mxu0 %v17069_v32  ;;  %v17112_v10 = vld [vmem:[%s18585_s19 + $0xda0] ss:$28 sps:$4 sm:$0xff]  }
 0x4ce   : > { %11388 = vmatprep.subr.bf16.mxu1 %v17072_v34  ;;  %v17109_v34 = vld [vmem:[%s18585_s19 + $0xa20] ss:$28 sps:$4 sm:$0xff]  }
 0x4d0   : > { %11348 = vmatpush1.bf16.msra.mxu0 %v17067_v21 }
 0x4d1   : > { %11389 = vmatpush1.bf16.msra.mxu1 %v17070_v43  ;;  %11349 = vmatprep.subr.bf16.mxu0 %v17075_v30  ;;  %v17117_v43 = vld [vmem:[%s18585_s19 + $0xa5c] ss:$28 sps:$4 sm:$0xff]  }
 0x4d2   : > { %11390 = vmatprep.subr.bf16.mxu1 %v17078_v33  ;;  %v17118_v30 = vld [vmem:[%s18585_s19 + $0xdd8] ss:$28 sps:$4 sm:$0xff]  }
 0x4d3   : > { %v17123_v33 = vld [vmem:[%s18585_s19 + $0xe14] ss:$28 sps:$4 sm:$0xff]  }
 0x4d4   : > { %11350 = vmatpush1.bf16.msra.mxu0 %v17073_v44  ;;  %v17126_v44 = vld [vmem:[%s18585_s19 + $0x1194] ss:$28 sps:$4 sm:$0xff]  }
 0x4d5   : > { %11391 = vmatpush1.bf16.msra.mxu1 %v17076_v54  ;;  %11351 = vmatprep.subr.bf16.mxu0 %v17081_v46  ;;  %v17121_v54 = vld [vmem:[%s18585_s19 + $0xe10] ss:$28 sps:$4 sm:$0xff]  }
 0x4d6   : > { %11392 = vmatprep.subr.bf16.mxu1 %v17084_v51  ;;  %v17124_v46 = vld [vmem:[%s18585_s19 + $0x1190] ss:$28 sps:$4 sm:$0xff]  }
 0x4d7   : > { %v17129_v51 = vld [vmem:[%s18585_s19 + $0xe4c] ss:$28 sps:$4 sm:$0xff]  }
 0x4d8   : > { %11352 = vmatpush1.bf16.msra.mxu0 %v17079_v35  ;;  %v17132_v35 = vld [vmem:[%s18585_s19 + $0x11cc] ss:$28 sps:$4 sm:$0xff]  }
 0x4d9   : > { %11393 = vmatpush1.bf16.msra.mxu1 %v17082_v57  ;;  %11353 = vmatprep.subr.bf16.mxu0 %v17087_v0  ;;  %v17127_v57 = vld [vmem:[%s18585_s19 + $0xe48] ss:$28 sps:$4 sm:$0xff]  }
 0x4da   : > { %11394 = vmatprep.subr.bf16.mxu1 %v17090_v2  ;;  %v17130_v0 = vld [vmem:[%s18585_s19 + $0x11c8] ss:$28 sps:$4 sm:$0xff]  }
 0x4db   : > { %v17135_v2 = vld [vmem:[%s18585_s19 + $0xe84] ss:$28 sps:$4 sm:$0xff]  }
 0x4dc   : > { %11354 = vmatpush1.bf16.msra.mxu0 %v17085_v36  ;;  %v17138_v36 = vld [vmem:[%s18585_s19 + $0x1204] ss:$28 sps:$4 sm:$0xff]  }
 0x4dd   : > { %11395 = vmatpush1.bf16.msra.mxu1 %v17088_v5  ;;  %11355 = vmatprep.subr.bf16.mxu0 %v17093_v62  ;;  %v17133_v5 = vld [vmem:[%s18585_s19 + $0xe80] ss:$28 sps:$4 sm:$0xff]  }
 0x4de   : > { %11396 = vmatprep.subr.bf16.mxu1 %v17096_v6  ;;  %v17136_v62 = vld [vmem:[%s18585_s19 + $0x1200] ss:$28 sps:$4 sm:$0xff]  }
 0x4df   : > { %v17141_v6 = vld [vmem:[%s18585_s19 + $0xebc] ss:$28 sps:$4 sm:$0xff]  }
 0x4e0   : > { %11356 = vmatpush1.bf16.msra.mxu0 %v17091_v9  ;;  %v17144_v9 = vld [vmem:[%s18585_s19 + $0x123c] ss:$28 sps:$4 sm:$0xff]  }
 0x4e1   : > { %11397 = vmatpush1.bf16.msra.mxu1 %v17094_v4  ;;  %11357 = vmatprep.subr.bf16.mxu0 %v17099_v11  ;;  %v17139_v4 = vld [vmem:[%s18585_s19 + $0xeb8] ss:$28 sps:$4 sm:$0xff]  }
 0x4e2   : > { %11398 = vmatprep.subr.bf16.mxu1 %v17102_v12  ;;  %v17142_v11 = vld [vmem:[%s18585_s19 + $0x1238] ss:$28 sps:$4 sm:$0xff]  }
 0x4e3   : > { %v17147_v12 = vld [vmem:[%s18585_s19 + $0xef4] ss:$28 sps:$4 sm:$0xff]  }
 0x4e4   : > { %11358 = vmatpush1.bf16.msra.mxu0 %v17097_v15  ;;  %v17150_v15 = vld [vmem:[%s18585_s19 + $0x1274] ss:$28 sps:$4 sm:$0xff]  }
 0x4e5   : > { %11399 = vmatpush1.bf16.msra.mxu1 %v17100_v1  ;;  %11359 = vmatprep.subr.bf16.mxu0 %v17105_v22  ;;  %v17145_v1 = vld [vmem:[%s18585_s19 + $0xef0] ss:$28 sps:$4 sm:$0xff]  }
 0x4e6   : > { %11400 = vmatprep.subr.bf16.mxu1 %v17108_v13  ;;  %v11080_v45 = vpop.f32.mrb[44].mxu0  ;;  %v17148_v22 = vld [vmem:[%s18585_s19 + $0x1270] ss:$28 sps:$4 sm:$0xff]  }
 0x4e7   : > { %v19883_v19 = vadd.f32 %v11080_v45, %v19846_v18  ;;  %v11082_v31 = vpop.f32.mrb[45].mxu0  ;;  %v17120_v18 = vld [vmem:[%s18585_s19 + $0xddc] ss:$28 sps:$4 sm:$0xff]   ;;  %v17153_v13 = vld [vmem:[%s18585_s19 + $0xf2c] ss:$28 sps:$4 sm:$0xff]  }
 0x4e8   : > { %v19886_v32 = vadd.f32 %v11082_v31, %v19850_v27  ;;  %v11084_v16 = vpop.f32.mrb[46].mxu0  ;;  %11360 = vmatpush1.bf16.msra.mxu0 %v17103_v14  ;;  %v17115_v27 = vld [vmem:[%s18585_s19 + $0xa58] ss:$28 sps:$4 sm:$0xff]   ;;  %v17156_v14 = vld [vmem:[%s18585_s19 + $0x12ac] ss:$28 sps:$4 sm:$0xff]  }
 0x4e9   : > { %11401 = vmatpush1.bf16.msra.mxu1 %v17106_v28  ;;  %v11085_v21 = vpop.f32.mrb[47].mxu0  ;;  %11361 = vmatprep.subr.bf16.mxu0 %v17111_v29  ;;  %v17151_v28 = vld [vmem:[%s18585_s19 + $0xf28] ss:$28 sps:$4 sm:$0xff]  }
 0x4ea   : > { %11402 = vmatprep.subr.bf16.mxu1 %v17114_v3  ;;  %v17154_v29 = vld [vmem:[%s18585_s19 + $0x12a8] ss:$28 sps:$4 sm:$0xff]   ;;  %v17157_v21 = vld [vmem:[%s18585_s19 + $0xf60] ss:$28 sps:$4 sm:$0xff]  }
 0x4eb   : > { %v17159_v3 = vld [vmem:[%s18585_s19 + $0xf64] ss:$28 sps:$4 sm:$0xff]  }
 0x4ec   : > { %11362 = vmatpush1.bf16.msra.mxu0 %v17109_v34  ;;  %v17162_v45 = vld [vmem:[%s18585_s19 + $0x12e4] ss:$28 sps:$4 sm:$0xff]  }
 0x4ed   : > { %11403 = vmatpush1.bf16.msra.mxu1 %v17112_v10  ;;  %11363 = vmatprep.subr.bf16.mxu0 %v17117_v43  ;;  %v17160_v43 = vld [vmem:[%s18585_s19 + $0x12e0] ss:$28 sps:$4 sm:$0xff]  }
 0x4ee   : > { %11404 = vmatprep.subr.bf16.mxu1 %v17120_v18 }
 0x4f0   : > { %11364 = vmatpush1.bf16.msra.mxu0 %v17115_v27  ;;  %v17165_v27 = vld [vmem:[%s18585_s19 + $0xf9c] ss:$28 sps:$4 sm:$0xff]  }
 0x4f1   : > { %11405 = vmatpush1.bf16.msra.mxu1 %v17118_v30  ;;  %11415 = vmatprep.subr.bf16.mxu0 %v17123_v33  ;;  %v17168_v30 = vld [vmem:[%s18585_s19 + $0x131c] ss:$28 sps:$4 sm:$0xff]  }
 0x4f2   : > { %11456 = vmatprep.subr.bf16.mxu1 %v17126_v44  ;;  %v17166_v33 = vld [vmem:[%s18585_s19 + $0x1318] ss:$28 sps:$4 sm:$0xff]  }
 0x4f3   : > { %11366 = vmatmul.mubr.bf16.vlgmr.msra.gmra.mrb[60].mxu0 %v18771_v17  ;;  %v17171_v44 = vld [vmem:[%s18585_s19 + $0xfd4] ss:$28 sps:$4 sm:$0xff]  }
 0x4f4   : > { %11407 = vmatmul.mubr.bf16.vlgmr.msra.gmra.mrb[60].mxu1 %v18777_v20  ;;  %11416 = vmatpush1.bf16.msra.mxu0 %v17121_v54  ;;  %v17174_v54 = vld [vmem:[%s18585_s19 + $0x1354] ss:$28 sps:$4 sm:$0xff]  }
 0x4f5   : > { %11457 = vmatpush1.bf16.msra.mxu1 %v17124_v46  ;;  %11417 = vmatprep.subr.bf16.mxu0 %v17129_v51  ;;  %v17169_v46 = vld [vmem:[%s18585_s19 + $0xfd0] ss:$28 sps:$4 sm:$0xff]  }
 0x4f6   : > { %11458 = vmatprep.subr.bf16.mxu1 %v17132_v35  ;;  %11447 = vmatprep.mubr.bf16.mxu0 %v18789_v25  ;;  %v17172_v51 = vld [vmem:[%s18585_s19 + $0x1350] ss:$28 sps:$4 sm:$0xff]  }
 0x4f7   : > { %11488 = vmatprep.mubr.bf16.mxu1 %v18793_v26  ;;  %v17177_v35 = vld [vmem:[%s18585_s19 + $0x100c] ss:$28 sps:$4 sm:$0xff]  }
 0x4f8   : > { %11418 = vmatpush1.bf16.msra.mxu0 %v17127_v57  ;;  %v17180_v57 = vld [vmem:[%s18585_s19 + $0x138c] ss:$28 sps:$4 sm:$0xff]  }
 0x4f9   : > { %11459 = vmatpush1.bf16.msra.mxu1 %v17130_v0  ;;  %11419 = vmatprep.subr.bf16.mxu0 %v17135_v2  ;;  %v17175_v0 = vld [vmem:[%s18585_s19 + $0x1008] ss:$28 sps:$4 sm:$0xff]  }
 0x4fa   : > { %11460 = vmatprep.subr.bf16.mxu1 %v17138_v36  ;;  %v17178_v2 = vld [vmem:[%s18585_s19 + $0x1388] ss:$28 sps:$4 sm:$0xff]  }
 0x4fb   : > { %v17183_v36 = vld [vmem:[%s18585_s19 + $0x1044] ss:$28 sps:$4 sm:$0xff]  }
 0x4fc   : > { %11420 = vmatpush1.bf16.msra.mxu0 %v17133_v5  ;;  %v17186_v5 = vld [vmem:[%s18585_s19 + $0x13c4] ss:$28 sps:$4 sm:$0xff]  }
 0x4fd   : > { %11461 = vmatpush1.bf16.msra.mxu1 %v17136_v62  ;;  %11421 = vmatprep.subr.bf16.mxu0 %v17141_v6  ;;  %v17181_v62 = vld [vmem:[%s18585_s19 + $0x1040] ss:$28 sps:$4 sm:$0xff]  }
 0x4fe   : > { %11462 = vmatprep.subr.bf16.mxu1 %v17144_v9  ;;  %v17184_v6 = vld [vmem:[%s18585_s19 + $0x13c0] ss:$28 sps:$4 sm:$0xff]  }
 0x4ff   : > { %v17189_v9 = vld [vmem:[%s18585_s19 + $0x107c] ss:$28 sps:$4 sm:$0xff]  }
 0x500   : > { %11422 = vmatpush1.bf16.msra.mxu0 %v17139_v4  ;;  %v17192_v4 = vld [vmem:[%s18585_s19 + $0x13fc] ss:$28 sps:$4 sm:$0xff]  }
 0x501   : > { %11463 = vmatpush1.bf16.msra.mxu1 %v17142_v11  ;;  %11423 = vmatprep.subr.bf16.mxu0 %v17147_v12  ;;  %v17187_v11 = vld [vmem:[%s18585_s19 + $0x1078] ss:$28 sps:$4 sm:$0xff]  }
 0x502   : > { %11464 = vmatprep.subr.bf16.mxu1 %v17150_v15  ;;  %v17190_v12 = vld [vmem:[%s18585_s19 + $0x13f8] ss:$28 sps:$4 sm:$0xff]  }
 0x503   : > { %v17195_v15 = vld [vmem:[%s18585_s19 + $0x10b4] ss:$28 sps:$4 sm:$0xff]  }
 0x504   : > { %11424 = vmatpush1.bf16.msra.mxu0 %v17145_v1  ;;  %v17198_v1 = vld [vmem:[%s18585_s19 + $0x1434] ss:$28 sps:$4 sm:$0xff]  }
 0x505   : > { %11465 = vmatpush1.bf16.msra.mxu1 %v17148_v22  ;;  %11425 = vmatprep.subr.bf16.mxu0 %v17153_v13  ;;  %v17193_v22 = vld [vmem:[%s18585_s19 + $0x10b0] ss:$28 sps:$4 sm:$0xff]  }
 0x506   : > { %11466 = vmatprep.subr.bf16.mxu1 %v17156_v14  ;;  %v17196_v13 = vld [vmem:[%s18585_s19 + $0x1430] ss:$28 sps:$4 sm:$0xff]  }
 0x507   : > { %v11121_v31 = vpop.f32.mrb[48].mxu1  ;;  %v17201_v14 = vld [vmem:[%s18585_s19 + $0x10ec] ss:$28 sps:$4 sm:$0xff]  }
 0x508   : > { %v19925_v16 = vadd.f32 %v11121_v31, %v19883_v19  ;;  %v11123_v34 = vpop.f32.mrb[49].mxu1  ;;  %11426 = vmatpush1.bf16.msra.mxu0 %v17151_v28  ;;  %v17204_v28 = vld [vmem:[%s18585_s19 + $0x146c] ss:$28 sps:$4 sm:$0xff]   ;;  %v17210_v31 = vld [vmem:[%s18585_s19 + $0x14a4] ss:$28 sps:$4 sm:$0xff]  }
 0x509   : > { %v19928_v10 = vadd.f32 %v11123_v34, %v19886_v32  ;;  %11467 = vmatpush1.bf16.msra.mxu1 %v17154_v29  ;;  %v11125_v18 = vpop.f32.mrb[50].mxu1  ;;  %11427 = vmatprep.subr.bf16.mxu0 %v17159_v3  ;;  %v17163_v32 = vld [vmem:[%s18585_s19 + $0xf98] ss:$28 sps:$4 sm:$0xff]   ;;  %v17199_v29 = vld [vmem:[%s18585_s19 + $0x10e8] ss:$28 sps:$4 sm:$0xff]  }
 0x50a   : > { %11468 = vmatprep.subr.bf16.mxu1 %v17162_v45  ;;  %v11126_v19 = vpop.f32.mrb[51].mxu1  ;;  %v17202_v3 = vld [vmem:[%s18585_s19 + $0x1468] ss:$28 sps:$4 sm:$0xff]  }
 0x50b   : > { %v17207_v45 = vld [vmem:[%s18585_s19 + $0x1124] ss:$28 sps:$4 sm:$0xff]  }
 0x50c   : > { %11428 = vmatpush1.bf16.msra.mxu0 %v17157_v21  ;;  %v17208_v19 = vld [vmem:[%s18585_s19 + $0x14a0] ss:$28 sps:$4 sm:$0xff]  }
 0x50d   : > { %11469 = vmatpush1.bf16.msra.mxu1 %v17160_v43  ;;  %11429 = vmatprep.subr.bf16.mxu0 %v17165_v27 }
 0x50e   : > { %11470 = vmatprep.subr.bf16.mxu1 %v17168_v30  ;;  %v17205_v30 = vld [vmem:[%s18585_s19 + $0x1120] ss:$28 sps:$4 sm:$0xff]  }
 0x510   : > { %11430 = vmatpush1.bf16.msra.mxu0 %v17163_v32 }
 0x511   : > { %11471 = vmatpush1.bf16.msra.mxu1 %v17166_v33  ;;  %11431 = vmatprep.subr.bf16.mxu0 %v17171_v44  ;;  %v17213_v33 = vld [vmem:[%s18585_s19 + $0x115c] ss:$28 sps:$4 sm:$0xff]  }
 0x512   : > { %11472 = vmatprep.subr.bf16.mxu1 %v17174_v54  ;;  %v17214_v44 = vld [vmem:[%s18585_s19 + $0x14d8] ss:$28 sps:$4 sm:$0xff]  }
 0x513   : > { %v17219_v54 = vld [vmem:[%s18585_s19 + $0x1514] ss:$28 sps:$4 sm:$0xff]  }
 0x514   : > { %11432 = vmatpush1.bf16.msra.mxu0 %v17169_v46  ;;  %v17222_v46 = vld [vmem:[%s18585_s19 + $0x1894] ss:$28 sps:$4 sm:$0xff]  }
 0x515   : > { %11473 = vmatpush1.bf16.msra.mxu1 %v17172_v51  ;;  %11433 = vmatprep.subr.bf16.mxu0 %v17177_v35  ;;  %v17217_v51 = vld [vmem:[%s18585_s19 + $0x1510] ss:$28 sps:$4 sm:$0xff]  }
 0x516   : > { %11474 = vmatprep.subr.bf16.mxu1 %v17180_v57  ;;  %v17220_v35 = vld [vmem:[%s18585_s19 + $0x1890] ss:$28 sps:$4 sm:$0xff]  }
 0x517   : > { %v17225_v57 = vld [vmem:[%s18585_s19 + $0x154c] ss:$28 sps:$4 sm:$0xff]  }
 0x518   : > { %11434 = vmatpush1.bf16.msra.mxu0 %v17175_v0  ;;  %v17228_v0 = vld [vmem:[%s18585_s19 + $0x18cc] ss:$28 sps:$4 sm:$0xff]  }
 0x519   : > { %11475 = vmatpush1.bf16.msra.mxu1 %v17178_v2  ;;  %11435 = vmatprep.subr.bf16.mxu0 %v17183_v36  ;;  %v17223_v2 = vld [vmem:[%s18585_s19 + $0x1548] ss:$28 sps:$4 sm:$0xff]  }
 0x51a   : > { %11476 = vmatprep.subr.bf16.mxu1 %v17186_v5  ;;  %v17226_v36 = vld [vmem:[%s18585_s19 + $0x18c8] ss:$28 sps:$4 sm:$0xff]  }
 0x51b   : > { %v17231_v5 = vld [vmem:[%s18585_s19 + $0x1584] ss:$28 sps:$4 sm:$0xff]  }
 0x51c   : > { %11436 = vmatpush1.bf16.msra.mxu0 %v17181_v62  ;;  %v17234_v62 = vld [vmem:[%s18585_s19 + $0x1904] ss:$28 sps:$4 sm:$0xff]  }
 0x51d   : > { %11477 = vmatpush1.bf16.msra.mxu1 %v17184_v6  ;;  %11437 = vmatprep.subr.bf16.mxu0 %v17189_v9  ;;  %v17229_v6 = vld [vmem:[%s18585_s19 + $0x1580] ss:$28 sps:$4 sm:$0xff]  }
 0x51e   : > { %11478 = vmatprep.subr.bf16.mxu1 %v17192_v4  ;;  %v17232_v9 = vld [vmem:[%s18585_s19 + $0x1900] ss:$28 sps:$4 sm:$0xff]  }
 0x51f   : > { %v17237_v4 = vld [vmem:[%s18585_s19 + $0x15bc] ss:$28 sps:$4 sm:$0xff]  }
 0x520   : > { %11438 = vmatpush1.bf16.msra.mxu0 %v17187_v11  ;;  %v17240_v11 = vld [vmem:[%s18585_s19 + $0x193c] ss:$28 sps:$4 sm:$0xff]  }
 0x521   : > { %11479 = vmatpush1.bf16.msra.mxu1 %v17190_v12  ;;  %11439 = vmatprep.subr.bf16.mxu0 %v17195_v15  ;;  %v17235_v12 = vld [vmem:[%s18585_s19 + $0x15b8] ss:$28 sps:$4 sm:$0xff]  }
 0x522   : > { %11480 = vmatprep.subr.bf16.mxu1 %v17198_v1  ;;  %v17238_v15 = vld [vmem:[%s18585_s19 + $0x1938] ss:$28 sps:$4 sm:$0xff]  }
 0x523   : > { %v17243_v1 = vld [vmem:[%s18585_s19 + $0x15f4] ss:$28 sps:$4 sm:$0xff]  }
 0x524   : > { %11440 = vmatpush1.bf16.msra.mxu0 %v17193_v22  ;;  %v17246_v22 = vld [vmem:[%s18585_s19 + $0x1974] ss:$28 sps:$4 sm:$0xff]  }
 0x525   : > { %11481 = vmatpush1.bf16.msra.mxu1 %v17196_v13  ;;  %11441 = vmatprep.subr.bf16.mxu0 %v17201_v14  ;;  %v17241_v13 = vld [vmem:[%s18585_s19 + $0x15f0] ss:$28 sps:$4 sm:$0xff]  }
 0x526   : > { %11482 = vmatprep.subr.bf16.mxu1 %v17204_v28  ;;  %v11162_v34 = vpop.f32.mrb[48].mxu0  ;;  %v17244_v14 = vld [vmem:[%s18585_s19 + $0x1970] ss:$28 sps:$4 sm:$0xff]  }
 0x527   : > { %v19963_v21 = vadd.f32 %v11162_v34, %v19925_v16  ;;  %v11164_v43 = vpop.f32.mrb[49].mxu0  ;;  %v17216_v16 = vld [vmem:[%s18585_s19 + $0x14dc] ss:$28 sps:$4 sm:$0xff]   ;;  %v17249_v28 = vld [vmem:[%s18585_s19 + $0x162c] ss:$28 sps:$4 sm:$0xff]  }
 0x528   : > { %v19966_v18 = vadd.f32 %v11164_v43, %v19928_v10  ;;  %v11166_v27 = vpop.f32.mrb[50].mxu0  ;;  %11442 = vmatpush1.bf16.msra.mxu0 %v17199_v29  ;;  %v17211_v10 = vld [vmem:[%s18585_s19 + $0x1158] ss:$28 sps:$4 sm:$0xff]   ;;  %v17252_v29 = vld [vmem:[%s18585_s19 + $0x19ac] ss:$28 sps:$4 sm:$0xff]  }
 0x529   : > { %11483 = vmatpush1.bf16.msra.mxu1 %v17202_v3  ;;  %v11167_v32 = vpop.f32.mrb[51].mxu0  ;;  %11443 = vmatprep.subr.bf16.mxu0 %v17207_v45  ;;  %v17247_v3 = vld [vmem:[%s18585_s19 + $0x1628] ss:$28 sps:$4 sm:$0xff]  }
 0x52a   : > { %11484 = vmatprep.subr.bf16.mxu1 %v17210_v31  ;;  %v17250_v45 = vld [vmem:[%s18585_s19 + $0x19a8] ss:$28 sps:$4 sm:$0xff]  }
 0x52b   : > { %v17255_v31 = vld [vmem:[%s18585_s19 + $0x1664] ss:$28 sps:$4 sm:$0xff]  }
 0x52c   : > { %11444 = vmatpush1.bf16.msra.mxu0 %v17205_v30  ;;  %v17258_v34 = vld [vmem:[%s18585_s19 + $0x19e4] ss:$28 sps:$4 sm:$0xff]  }
 0x52d   : > { %11485 = vmatpush1.bf16.msra.mxu1 %v17208_v19  ;;  %11445 = vmatprep.subr.bf16.mxu0 %v17213_v33  ;;  %v17253_v33 = vld [vmem:[%s18585_s19 + $0x1660] ss:$28 sps:$4 sm:$0xff]  }
 0x52e   : > { %11486 = vmatprep.subr.bf16.mxu1 %v17216_v16  ;;  %v485_v16 = vld [vmem:[#allocation2 + $0x10] sm:$0xff] }
 0x530   : > { %11446 = vmatpush1.bf16.msra.mxu0 %v17211_v10 }
 0x531   : > { %11487 = vmatpush1.bf16.msra.mxu1 %v17214_v44  ;;  %11497 = vmatprep.subr.bf16.mxu0 %v17219_v54  ;;  %v486_v44 = vld [vmem:[#allocation2 + $0x18] sm:$0xff] }
 0x532   : > { %11538 = vmatprep.subr.bf16.mxu1 %v17222_v46  ;;  %v17256_v46 = vld [vmem:[%s18585_s19 + $0x19e0] ss:$28 sps:$4 sm:$0xff]  }
 0x533   : > { %11448 = vmatmul.mubr.bf16.vlgmr.msra.gmra.mrb[64].mxu0 %v18863_v39 }
 0x534   : > { %11489 = vmatmul.mubr.bf16.vlgmr.msra.gmra.mrb[64].mxu1 %v18867_v40  ;;  %11498 = vmatpush1.bf16.msra.mxu0 %v17217_v51 }
 0x535   : > { %11539 = vmatpush1.bf16.msra.mxu1 %v17220_v35  ;;  %11499 = vmatprep.subr.bf16.mxu0 %v17225_v57 }
 0x536   : > { %11540 = vmatprep.subr.bf16.mxu1 %v17228_v0  ;;  %11529 = vmatprep.mubr.bf16.mxu0 %v18879_v23  ;;  %v17264_v0 = vld [vmem:[%s18585_s19 + $0x1a1c] ss:$28 sps:$4 sm:$0xff]  }
 0x537   : > { %11570 = vmatprep.mubr.bf16.mxu1 %v18883_v24 }
 0x538   : > { %11500 = vmatpush1.bf16.msra.mxu0 %v17223_v2 }
 0x539   : > { %11541 = vmatpush1.bf16.msra.mxu1 %v17226_v36  ;;  %11501 = vmatprep.subr.bf16.mxu0 %v17231_v5 }
 0x53a   : > { %11542 = vmatprep.subr.bf16.mxu1 %v17234_v62  ;;  %v17259_v62 = vld [vmem:[%s18585_s19 + $0x1698] ss:$28 sps:$4 sm:$0xff]  }
 0x53c   : > { %11502 = vmatpush1.bf16.msra.mxu0 %v17229_v6  ;;  %v17262_v6 = vld [vmem:[%s18585_s19 + $0x1a18] ss:$28 sps:$4 sm:$0xff]  }
 0x53d   : > { %11543 = vmatpush1.bf16.msra.mxu1 %v17232_v9  ;;  %11503 = vmatprep.subr.bf16.mxu0 %v17237_v4  ;;  %v17267_v9 = vld [vmem:[%s18585_s19 + $0x16d4] ss:$28 sps:$4 sm:$0xff]  }
 0x53e   : > { %11544 = vmatprep.subr.bf16.mxu1 %v17240_v11  ;;  %v17270_v4 = vld [vmem:[%s18585_s19 + $0x1a54] ss:$28 sps:$4 sm:$0xff]  }
 0x53f   : > { %v17265_v11 = vld [vmem:[%s18585_s19 + $0x16d0] ss:$28 sps:$4 sm:$0xff]  }
 0x540   : > { %11504 = vmatpush1.bf16.msra.mxu0 %v17235_v12  ;;  %v17268_v12 = vld [vmem:[%s18585_s19 + $0x1a50] ss:$28 sps:$4 sm:$0xff]  }
 0x541   : > { %11545 = vmatpush1.bf16.msra.mxu1 %v17238_v15  ;;  %11505 = vmatprep.subr.bf16.mxu0 %v17243_v1  ;;  %v17273_v15 = vld [vmem:[%s18585_s19 + $0x170c] ss:$28 sps:$4 sm:$0xff]  }
 0x542   : > { %11546 = vmatprep.subr.bf16.mxu1 %v17246_v22  ;;  %v17276_v1 = vld [vmem:[%s18585_s19 + $0x1a8c] ss:$28 sps:$4 sm:$0xff]  }
 0x543   : > { %v17271_v22 = vld [vmem:[%s18585_s19 + $0x1708] ss:$28 sps:$4 sm:$0xff]  }
 0x544   : > { %11506 = vmatpush1.bf16.msra.mxu0 %v17241_v13  ;;  %v17274_v13 = vld [vmem:[%s18585_s19 + $0x1a88] ss:$28 sps:$4 sm:$0xff]  }
 0x545   : > { %11547 = vmatpush1.bf16.msra.mxu1 %v17244_v14  ;;  %11507 = vmatprep.subr.bf16.mxu0 %v17249_v28  ;;  %v17279_v14 = vld [vmem:[%s18585_s19 + $0x1744] ss:$28 sps:$4 sm:$0xff]  }
 0x546   : > { %11548 = vmatprep.subr.bf16.mxu1 %v17252_v29  ;;  %v11244_v27 = vpop.f32.mrb[52].mxu0  ;;  %v17282_v28 = vld [vmem:[%s18585_s19 + $0x1ac4] ss:$28 sps:$4 sm:$0xff]  }
 0x547   : > { %v11203_v43 = vpop.f32.mrb[52].mxu1  ;;  %v11246_v32 = vpop.f32.mrb[53].mxu0  ;;  %v17277_v29 = vld [vmem:[%s18585_s19 + $0x1740] ss:$28 sps:$4 sm:$0xff]  }
 0x548   : > { %v11204_v30 = vadd.f32 %v11203_v43, %v19963_v21  ;;  %v11205_v19 = vpop.f32.mrb[53].mxu1  ;;  %v11248_v54 = vpop.f32.mrb[54].mxu0  ;;  %11508 = vmatpush1.bf16.msra.mxu0 %v17247_v3  ;;  %v17261_v21 = vld [vmem:[%s18585_s19 + $0x169c] ss:$28 sps:$4 sm:$0xff]  }
 0x549   : > { %v11206_v10 = vadd.f32 %v11205_v19, %v19966_v18  ;;  %11549 = vmatpush1.bf16.msra.mxu1 %v17250_v45  ;;  %v11207_v51 = vpop.f32.mrb[54].mxu1  ;;  %v11249_v57 = vpop.f32.mrb[55].mxu0  ;;  %11509 = vmatprep.subr.bf16.mxu0 %v17255_v31  ;;  %v17280_v3 = vld [vmem:[%s18585_s19 + $0x1ac0] ss:$28 sps:$4 sm:$0xff]   ;;  %v17286_v43 = vld [vmem:[%s18585_s19 + $0x1af8] ss:$28 sps:$4 sm:$0xff]  }
 0x54a   : > { %v11245_v35 = vadd.f32 %v11244_v27, %v11204_v30  ;;  %11550 = vmatprep.subr.bf16.mxu1 %v17258_v34  ;;  %v11208_v2 = vpop.f32.mrb[55].mxu1  ;;  %v17285_v45 = vld [vmem:[%s18585_s19 + $0x177c] ss:$28 sps:$4 sm:$0xff]   ;;  %v17291_v27 = vld [vmem:[%s18585_s19 + $0x17b4] ss:$28 sps:$4 sm:$0xff]  }
 0x54b   : > { %v11247_v36 = vadd.f32 %v11246_v32, %v11206_v10  ;;  %v17288_v31 = vld [vmem:[%s18585_s19 + $0x1afc] ss:$28 sps:$4 sm:$0xff]   ;;  %v17294_v30 = vld [vmem:[%s18585_s19 + $0x1b34] ss:$28 sps:$4 sm:$0xff]   ;;  %v17295_v10 = vld [vmem:[%s18585_s19 + $0x17e8] ss:$28 sps:$4 sm:$0xff]  }
 0x54c   : > { %v12387_v18 = vadd.f32 %v11245_v35, %v485_v16  ;;  %11510 = vmatpush1.bf16.msra.mxu0 %v17253_v33  ;;  %v17283_v34 = vld [vmem:[%s18585_s19 + $0x1778] ss:$28 sps:$4 sm:$0xff]   ;;  %v17289_v19 = vld [vmem:[%s18585_s19 + $0x17b0] ss:$28 sps:$4 sm:$0xff]   ;;  %v17303_v54 = vld [vmem:[%s18585_s19 + $0x1824] ss:$28 sps:$4 sm:$0xff]  }
 0x54d   : > { %v12388_v5 = vadd.f32 %v11247_v36, %v486_v44  ;;  %11551 = vmatpush1.bf16.msra.mxu1 %v17256_v46  ;;  %11511 = vmatprep.subr.bf16.mxu0 %v17261_v21  ;;  %v17292_v32 = vld [vmem:[%s18585_s19 + $0x1b30] ss:$28 sps:$4 sm:$0xff]   ;;  %v17298_v44 = vld [vmem:[%s18585_s19 + $0x1b68] ss:$28 sps:$4 sm:$0xff]   ;;  %v17301_v51 = vld [vmem:[%s18585_s19 + $0x1820] ss:$28 sps:$4 sm:$0xff]  }
 0x54e   : > { %12394 = vst [vmem:[#allocation2 + $0x10] sm:$0xff] %v12387_v18  ;;  %11552 = vmatprep.subr.bf16.mxu1 %v17264_v0  ;;  %v17297_v33 = vld [vmem:[%s18585_s19 + $0x17ec] ss:$28 sps:$4 sm:$0xff]   ;;  %v17306_v46 = vld [vmem:[%s18585_s19 + $0x1ba4] ss:$28 sps:$4 sm:$0xff]  }
 0x54f   : > { %12395 = vst [vmem:[#allocation2 + $0x18] sm:$0xff] %v12388_v5  ;;  %v17300_v16 = vld [vmem:[%s18585_s19 + $0x1b6c] ss:$28 sps:$4 sm:$0xff]   ;;  %v17304_v35 = vld [vmem:[%s18585_s19 + $0x1ba0] ss:$28 sps:$4 sm:$0xff]  }
 0x550   : > { %11512 = vmatpush1.bf16.msra.mxu0 %v17259_v62  ;;  %v17309_v57 = vld [vmem:[%s18585_s19 + $0x185c] ss:$28 sps:$4 sm:$0xff]   ;;  %v17315_v36 = vld [vmem:[%s18585_s19 + $0x1c14] ss:$28 sps:$4 sm:$0xff]  }
 0x551   : > { %11553 = vmatpush1.bf16.msra.mxu1 %v17262_v6  ;;  %11513 = vmatprep.subr.bf16.mxu0 %v17267_v9  ;;  %v17312_v21 = vld [vmem:[%s18585_s19 + $0x1bdc] ss:$28 sps:$4 sm:$0xff]   ;;  %v17318_v18 = vld [vmem:[%s18585_s19 + $0x1f94] ss:$28 sps:$4 sm:$0xff]   ;;  %v17321_v6 = vld [vmem:[%s18585_s19 + $0x1c4c] ss:$28 sps:$4 sm:$0xff]  }
 0x552   : > { %11554 = vmatprep.subr.bf16.mxu1 %v17270_v4  ;;  %v17307_v0 = vld [vmem:[%s18585_s19 + $0x1858] ss:$28 sps:$4 sm:$0xff]   ;;  %v17313_v5 = vld [vmem:[%s18585_s19 + $0x1c10] ss:$28 sps:$4 sm:$0xff]   ;;  %v17319_v4 = vld [vmem:[%s18585_s19 + $0x1c48] ss:$28 sps:$4 sm:$0xff]  }
 0x553   : > { %v17310_v2 = vld [vmem:[%s18585_s19 + $0x1bd8] ss:$28 sps:$4 sm:$0xff]   ;;  %v17316_v62 = vld [vmem:[%s18585_s19 + $0x1f90] ss:$28 sps:$4 sm:$0xff]  }
 0x554   : > { %11514 = vmatpush1.bf16.msra.mxu0 %v17265_v11  ;;  %v17324_v9 = vld [vmem:[%s18585_s19 + $0x1fcc] ss:$28 sps:$4 sm:$0xff]  }
 0x555   : > { %11555 = vmatpush1.bf16.msra.mxu1 %v17268_v12  ;;  %11515 = vmatprep.subr.bf16.mxu0 %v17273_v15  ;;  %v17322_v11 = vld [vmem:[%s18585_s19 + $0x1fc8] ss:$28 sps:$4 sm:$0xff]  }
 0x556   : > { %11556 = vmatprep.subr.bf16.mxu1 %v17276_v1  ;;  %v17327_v12 = vld [vmem:[%s18585_s19 + $0x1c84] ss:$28 sps:$4 sm:$0xff]  }
 0x557   : > { %v17330_v15 = vld [vmem:[%s18585_s19 + $0x2004] ss:$28 sps:$4 sm:$0xff]  }
 0x558   : > { %11516 = vmatpush1.bf16.msra.mxu0 %v17271_v22  ;;  %v17325_v1 = vld [vmem:[%s18585_s19 + $0x1c80] ss:$28 sps:$4 sm:$0xff]  }
 0x559   : > { %11557 = vmatpush1.bf16.msra.mxu1 %v17274_v13  ;;  %11517 = vmatprep.subr.bf16.mxu0 %v17279_v14  ;;  %v17328_v22 = vld [vmem:[%s18585_s19 + $0x2000] ss:$28 sps:$4 sm:$0xff]  }
 0x55a   : > { %11558 = vmatprep.subr.bf16.mxu1 %v17282_v28  ;;  %v17333_v13 = vld [vmem:[%s18585_s19 + $0x1cbc] ss:$28 sps:$4 sm:$0xff]  }
 0x55b   : > { %v17336_v14 = vld [vmem:[%s18585_s19 + $0x203c] ss:$28 sps:$4 sm:$0xff]  }
 0x55c   : > { %11518 = vmatpush1.bf16.msra.mxu0 %v17277_v29  ;;  %v17331_v28 = vld [vmem:[%s18585_s19 + $0x1cb8] ss:$28 sps:$4 sm:$0xff]  }
 0x55d   : > { %11559 = vmatpush1.bf16.msra.mxu1 %v17280_v3  ;;  %11519 = vmatprep.subr.bf16.mxu0 %v17285_v45  ;;  %v17334_v29 = vld [vmem:[%s18585_s19 + $0x2038] ss:$28 sps:$4 sm:$0xff]  }
 0x55e   : > { %11560 = vmatprep.subr.bf16.mxu1 %v17288_v31  ;;  %v17339_v3 = vld [vmem:[%s18585_s19 + $0x1cf4] ss:$28 sps:$4 sm:$0xff]  }
 0x55f   : > { %v17342_v45 = vld [vmem:[%s18585_s19 + $0x2074] ss:$28 sps:$4 sm:$0xff]  }
 0x560   : > { %11520 = vmatpush1.bf16.msra.mxu0 %v17283_v34  ;;  %v17337_v31 = vld [vmem:[%s18585_s19 + $0x1cf0] ss:$28 sps:$4 sm:$0xff]  }
 0x561   : > { %11561 = vmatpush1.bf16.msra.mxu1 %v17286_v43  ;;  %11521 = vmatprep.subr.bf16.mxu0 %v17291_v27  ;;  %v17340_v34 = vld [vmem:[%s18585_s19 + $0x2070] ss:$28 sps:$4 sm:$0xff]  }
 0x562   : > { %11562 = vmatprep.subr.bf16.mxu1 %v17294_v30  ;;  %v17345_v43 = vld [vmem:[%s18585_s19 + $0x1d2c] ss:$28 sps:$4 sm:$0xff]  }
 0x563   : > { %v17348_v27 = vld [vmem:[%s18585_s19 + $0x20ac] ss:$28 sps:$4 sm:$0xff]  }
 0x564   : > { %11522 = vmatpush1.bf16.msra.mxu0 %v17289_v19  ;;  %v17343_v30 = vld [vmem:[%s18585_s19 + $0x1d28] ss:$28 sps:$4 sm:$0xff]  }
 0x565   : > { %11563 = vmatpush1.bf16.msra.mxu1 %v17292_v32  ;;  %11523 = vmatprep.subr.bf16.mxu0 %v17297_v33  ;;  %v17346_v19 = vld [vmem:[%s18585_s19 + $0x20a8] ss:$28 sps:$4 sm:$0xff]  }
 0x566   : > { %11564 = vmatprep.subr.bf16.mxu1 %v17300_v16  ;;  %v17351_v32 = vld [vmem:[%s18585_s19 + $0x1d64] ss:$28 sps:$4 sm:$0xff]  }
 0x567   : > { %v17354_v33 = vld [vmem:[%s18585_s19 + $0x20e4] ss:$28 sps:$4 sm:$0xff]  }
 0x568   : > { %11524 = vmatpush1.bf16.msra.mxu0 %v17295_v10 }
 0x569   : > { %11565 = vmatpush1.bf16.msra.mxu1 %v17298_v44  ;;  %11525 = vmatprep.subr.bf16.mxu0 %v17303_v54 }
 0x56a   : > { %11566 = vmatprep.subr.bf16.mxu1 %v17306_v46 }
 0x56c   : > { %11526 = vmatpush1.bf16.msra.mxu0 %v17301_v51 }
 0x56d   : > { %11567 = vmatpush1.bf16.msra.mxu1 %v17304_v35  ;;  %11527 = vmatprep.subr.bf16.mxu0 %v17309_v57  ;;  %v17349_v57 = vld [vmem:[%s18585_s19 + $0x1d60] ss:$28 sps:$4 sm:$0xff]  }
 0x56e   : > { %11568 = vmatprep.subr.bf16.mxu1 %v17312_v21  ;;  %v17352_v21 = vld [vmem:[%s18585_s19 + $0x20e0] ss:$28 sps:$4 sm:$0xff]  }
 0x570   : > { %11528 = vmatpush1.bf16.msra.mxu0 %v17307_v0 }
 0x571   : > { %11569 = vmatpush1.bf16.msra.mxu1 %v17310_v2  ;;  %11579 = vmatprep.subr.bf16.mxu0 %v17315_v36  ;;  %v17357_v36 = vld [vmem:[%s18585_s19 + $0x1d9c] ss:$28 sps:$4 sm:$0xff]  }
 0x572   : > { %11620 = vmatprep.subr.bf16.mxu1 %v17318_v18  ;;  %v17360_v18 = vld [vmem:[%s18585_s19 + $0x211c] ss:$28 sps:$4 sm:$0xff]  }
 0x573   : > { %11530 = vmatmul.mubr.bf16.vlgmr.msra.gmra.mrb[68].mxu0 %v18954_v60 }
 0x574   : > { %11571 = vmatmul.mubr.bf16.vlgmr.msra.gmra.mrb[68].mxu1 %v18958_v61  ;;  %11580 = vmatpush1.bf16.msra.mxu0 %v17313_v5 }
 0x575   : > { %11621 = vmatpush1.bf16.msra.mxu1 %v17316_v62  ;;  %11581 = vmatprep.subr.bf16.mxu0 %v17321_v6  ;;  %v17355_v62 = vld [vmem:[%s18585_s19 + $0x1d98] ss:$28 sps:$4 sm:$0xff]  }
 0x576   : > { %11622 = vmatprep.subr.bf16.mxu1 %v17324_v9  ;;  %11611 = vmatprep.mubr.bf16.mxu0 %v18969_v41  ;;  %v17358_v6 = vld [vmem:[%s18585_s19 + $0x2118] ss:$28 sps:$4 sm:$0xff]  }
 0x577   : > { %11652 = vmatprep.mubr.bf16.mxu1 %v18973_v42  ;;  %v17363_v9 = vld [vmem:[%s18585_s19 + $0x1dd4] ss:$28 sps:$4 sm:$0xff]  }
 0x578   : > { %11582 = vmatpush1.bf16.msra.mxu0 %v17319_v4  ;;  %v17366_v4 = vld [vmem:[%s18585_s19 + $0x2154] ss:$28 sps:$4 sm:$0xff]  }
 0x579   : > { %11623 = vmatpush1.bf16.msra.mxu1 %v17322_v11  ;;  %11583 = vmatprep.subr.bf16.mxu0 %v17327_v12  ;;  %v17361_v11 = vld [vmem:[%s18585_s19 + $0x1dd0] ss:$28 sps:$4 sm:$0xff]  }
 0x57a   : > { %11624 = vmatprep.subr.bf16.mxu1 %v17330_v15  ;;  %v17364_v12 = vld [vmem:[%s18585_s19 + $0x2150] ss:$28 sps:$4 sm:$0xff]  }
 0x57b   : > { %v17369_v15 = vld [vmem:[%s18585_s19 + $0x1e0c] ss:$28 sps:$4 sm:$0xff]  }
 0x57c   : > { %11584 = vmatpush1.bf16.msra.mxu0 %v17325_v1  ;;  %v17372_v1 = vld [vmem:[%s18585_s19 + $0x218c] ss:$28 sps:$4 sm:$0xff]  }
 0x57d   : > { %11625 = vmatpush1.bf16.msra.mxu1 %v17328_v22  ;;  %11585 = vmatprep.subr.bf16.mxu0 %v17333_v13  ;;  %v17367_v22 = vld [vmem:[%s18585_s19 + $0x1e08] ss:$28 sps:$4 sm:$0xff]  }
 0x57e   : > { %11626 = vmatprep.subr.bf16.mxu1 %v17336_v14  ;;  %v17370_v13 = vld [vmem:[%s18585_s19 + $0x2188] ss:$28 sps:$4 sm:$0xff]  }
 0x57f   : > { %v17375_v14 = vld [vmem:[%s18585_s19 + $0x1e44] ss:$28 sps:$4 sm:$0xff]  }
 0x580   : > { %11586 = vmatpush1.bf16.msra.mxu0 %v17331_v28  ;;  %v17378_v28 = vld [vmem:[%s18585_s19 + $0x21c4] ss:$28 sps:$4 sm:$0xff]  }
 0x581   : > { %11627 = vmatpush1.bf16.msra.mxu1 %v17334_v29  ;;  %11587 = vmatprep.subr.bf16.mxu0 %v17339_v3  ;;  %v17373_v29 = vld [vmem:[%s18585_s19 + $0x1e40] ss:$28 sps:$4 sm:$0xff]  }
 0x582   : > { %11628 = vmatprep.subr.bf16.mxu1 %v17342_v45  ;;  %v17376_v3 = vld [vmem:[%s18585_s19 + $0x21c0] ss:$28 sps:$4 sm:$0xff]  }
 0x583   : > { %v17381_v45 = vld [vmem:[%s18585_s19 + $0x1e7c] ss:$28 sps:$4 sm:$0xff]  }
 0x584   : > { %11588 = vmatpush1.bf16.msra.mxu0 %v17337_v31  ;;  %v17384_v31 = vld [vmem:[%s18585_s19 + $0x21fc] ss:$28 sps:$4 sm:$0xff]  }
 0x585   : > { %11629 = vmatpush1.bf16.msra.mxu1 %v17340_v34  ;;  %11589 = vmatprep.subr.bf16.mxu0 %v17345_v43  ;;  %v17379_v34 = vld [vmem:[%s18585_s19 + $0x1e78] ss:$28 sps:$4 sm:$0xff]  }
 0x586   : > { %11630 = vmatprep.subr.bf16.mxu1 %v17348_v27  ;;  %v11285_v16 = vpop.f32.mrb[56].mxu0  ;;  %v17382_v43 = vld [vmem:[%s18585_s19 + $0x21f8] ss:$28 sps:$4 sm:$0xff]  }
 0x587   : > { %v11326_v10 = vpop.f32.mrb[56].mxu1  ;;  %v11287_v54 = vpop.f32.mrb[57].mxu0  ;;  %v17387_v27 = vld [vmem:[%s18585_s19 + $0x1eb4] ss:$28 sps:$4 sm:$0xff]  }
 0x588   : > { %v20074_v44 = vadd.f32 %v11326_v10, %v11285_v16  ;;  %v11328_v46 = vpop.f32.mrb[57].mxu1  ;;  %v11289_v35 = vpop.f32.mrb[58].mxu0  ;;  %11590 = vmatpush1.bf16.msra.mxu0 %v17343_v30  ;;  %v17390_v30 = vld [vmem:[%s18585_s19 + $0x2234] ss:$28 sps:$4 sm:$0xff]   ;;  %v17396_v16 = vld [vmem:[%s18585_s19 + $0x226c] ss:$28 sps:$4 sm:$0xff]  }
 0x589   : > { %v20076_v51 = vadd.f32 %v11328_v46, %v11287_v54  ;;  %11631 = vmatpush1.bf16.msra.mxu1 %v17346_v19  ;;  %v11330_v0 = vpop.f32.mrb[58].mxu1  ;;  %v11290_v2 = vpop.f32.mrb[59].mxu0  ;;  %11591 = vmatprep.subr.bf16.mxu0 %v17351_v32  ;;  %v17385_v19 = vld [vmem:[%s18585_s19 + $0x1eb0] ss:$28 sps:$4 sm:$0xff]   ;;  %v17391_v10 = vld [vmem:[%s18585_s19 + $0x1ee8] ss:$28 sps:$4 sm:$0xff]  }
 0x58a   : > { %11632 = vmatprep.subr.bf16.mxu1 %v17354_v33  ;;  %v11331_v5 = vpop.f32.mrb[59].mxu1  ;;  %v17388_v32 = vld [vmem:[%s18585_s19 + $0x2230] ss:$28 sps:$4 sm:$0xff]   ;;  %v17394_v54 = vld [vmem:[%s18585_s19 + $0x2268] ss:$28 sps:$4 sm:$0xff]  }
 0x58b   : > { %v17393_v33 = vld [vmem:[%s18585_s19 + $0x1eec] ss:$28 sps:$4 sm:$0xff]   ;;  %v17399_v46 = vld [vmem:[%s18585_s19 + $0x1f24] ss:$28 sps:$4 sm:$0xff]   ;;  %v17405_v0 = vld [vmem:[%s18585_s19 + $0x1f5c] ss:$28 sps:$4 sm:$0xff]  }
 0x58c   : > { %11592 = vmatpush1.bf16.msra.mxu0 %v17349_v57  ;;  %v17402_v35 = vld [vmem:[%s18585_s19 + $0x22a4] ss:$28 sps:$4 sm:$0xff]   ;;  %v17408_v2 = vld [vmem:[%s18585_s19 + $0x22dc] ss:$28 sps:$4 sm:$0xff]   ;;  %v17411_v5 = vld [vmem:[%s18585_s19 + $0x2314] ss:$28 sps:$4 sm:$0xff]  }
 0x58d   : > { %11633 = vmatpush1.bf16.msra.mxu1 %v17352_v21  ;;  %11593 = vmatprep.subr.bf16.mxu0 %v17357_v36  ;;  %v17397_v57 = vld [vmem:[%s18585_s19 + $0x1f20] ss:$28 sps:$4 sm:$0xff]   ;;  %v17403_v36 = vld [vmem:[%s18585_s19 + $0x1f58] ss:$28 sps:$4 sm:$0xff]  }
 0x58e   : > { %11634 = vmatprep.subr.bf16.mxu1 %v17360_v18  ;;  %v17400_v21 = vld [vmem:[%s18585_s19 + $0x22a0] ss:$28 sps:$4 sm:$0xff]   ;;  %v17406_v18 = vld [vmem:[%s18585_s19 + $0x22d8] ss:$28 sps:$4 sm:$0xff]  }
 0x590   : > { %11594 = vmatpush1.bf16.msra.mxu0 %v17355_v62  ;;  %v17414_v62 = vld [vmem:[%s18585_s19 + $0x2694] ss:$28 sps:$4 sm:$0xff]  }
 0x591   : > { %11635 = vmatpush1.bf16.msra.mxu1 %v17358_v6  ;;  %11595 = vmatprep.subr.bf16.mxu0 %v17363_v9  ;;  %v17409_v6 = vld [vmem:[%s18585_s19 + $0x2310] ss:$28 sps:$4 sm:$0xff]  }
 0x592   : > { %11636 = vmatprep.subr.bf16.mxu1 %v17366_v4  ;;  %v17412_v9 = vld [vmem:[%s18585_s19 + $0x2690] ss:$28 sps:$4 sm:$0xff]  }
 0x593   : > { %v17417_v4 = vld [vmem:[%s18585_s19 + $0x234c] ss:$28 sps:$4 sm:$0xff]  }
 0x594   : > { %11596 = vmatpush1.bf16.msra.mxu0 %v17361_v11  ;;  %v17420_v11 = vld [vmem:[%s18585_s19 + $0x26cc] ss:$28 sps:$4 sm:$0xff]  }
 0x595   : > { %11637 = vmatpush1.bf16.msra.mxu1 %v17364_v12  ;;  %11597 = vmatprep.subr.bf16.mxu0 %v17369_v15  ;;  %v17415_v12 = vld [vmem:[%s18585_s19 + $0x2348] ss:$28 sps:$4 sm:$0xff]  }
 0x596   : > { %11638 = vmatprep.subr.bf16.mxu1 %v17372_v1  ;;  %v17418_v15 = vld [vmem:[%s18585_s19 + $0x26c8] ss:$28 sps:$4 sm:$0xff]  }
 0x597   : > { %v17423_v1 = vld [vmem:[%s18585_s19 + $0x2384] ss:$28 sps:$4 sm:$0xff]  }
 0x598   : > { %11598 = vmatpush1.bf16.msra.mxu0 %v17367_v22  ;;  %v17426_v22 = vld [vmem:[%s18585_s19 + $0x2704] ss:$28 sps:$4 sm:$0xff]  }
 0x599   : > { %11639 = vmatpush1.bf16.msra.mxu1 %v17370_v13  ;;  %11599 = vmatprep.subr.bf16.mxu0 %v17375_v14  ;;  %v17421_v13 = vld [vmem:[%s18585_s19 + $0x2380] ss:$28 sps:$4 sm:$0xff]  }
 0x59a   : > { %11640 = vmatprep.subr.bf16.mxu1 %v17378_v28  ;;  %v17424_v14 = vld [vmem:[%s18585_s19 + $0x2700] ss:$28 sps:$4 sm:$0xff]  }
 0x59b   : > { %v17429_v28 = vld [vmem:[%s18585_s19 + $0x23bc] ss:$28 sps:$4 sm:$0xff]  }
 0x59c   : > { %11600 = vmatpush1.bf16.msra.mxu0 %v17373_v29  ;;  %v17432_v29 = vld [vmem:[%s18585_s19 + $0x273c] ss:$28 sps:$4 sm:$0xff]  }
 0x59d   : > { %11641 = vmatpush1.bf16.msra.mxu1 %v17376_v3  ;;  %11601 = vmatprep.subr.bf16.mxu0 %v17381_v45  ;;  %v17427_v3 = vld [vmem:[%s18585_s19 + $0x23b8] ss:$28 sps:$4 sm:$0xff]  }
 0x59e   : > { %11642 = vmatprep.subr.bf16.mxu1 %v17384_v31  ;;  %v17430_v45 = vld [vmem:[%s18585_s19 + $0x2738] ss:$28 sps:$4 sm:$0xff]  }
 0x59f   : > { %v17435_v31 = vld [vmem:[%s18585_s19 + $0x23f4] ss:$28 sps:$4 sm:$0xff]  }
 0x5a0   : > { %11602 = vmatpush1.bf16.msra.mxu0 %v17379_v34  ;;  %v17438_v34 = vld [vmem:[%s18585_s19 + $0x2774] ss:$28 sps:$4 sm:$0xff]  }
 0x5a1   : > { %11643 = vmatpush1.bf16.msra.mxu1 %v17382_v43  ;;  %11603 = vmatprep.subr.bf16.mxu0 %v17387_v27  ;;  %v17433_v43 = vld [vmem:[%s18585_s19 + $0x23f0] ss:$28 sps:$4 sm:$0xff]  }
 0x5a2   : > { %11644 = vmatprep.subr.bf16.mxu1 %v17390_v30  ;;  %v17436_v27 = vld [vmem:[%s18585_s19 + $0x2770] ss:$28 sps:$4 sm:$0xff]  }
 0x5a3   : > { %v17441_v30 = vld [vmem:[%s18585_s19 + $0x242c] ss:$28 sps:$4 sm:$0xff]  }
 0x5a4   : > { %11604 = vmatpush1.bf16.msra.mxu0 %v17385_v19  ;;  %v17444_v19 = vld [vmem:[%s18585_s19 + $0x27ac] ss:$28 sps:$4 sm:$0xff]  }
 0x5a5   : > { %11645 = vmatpush1.bf16.msra.mxu1 %v17388_v32  ;;  %11605 = vmatprep.subr.bf16.mxu0 %v17393_v33  ;;  %v17439_v32 = vld [vmem:[%s18585_s19 + $0x2428] ss:$28 sps:$4 sm:$0xff]  }
 0x5a6   : > { %11646 = vmatprep.subr.bf16.mxu1 %v17396_v16  ;;  %v17442_v33 = vld [vmem:[%s18585_s19 + $0x27a8] ss:$28 sps:$4 sm:$0xff]  }
 0x5a7   : > { %v17447_v16 = vld [vmem:[%s18585_s19 + $0x2464] ss:$28 sps:$4 sm:$0xff]  }
 0x5a8   : > { %11606 = vmatpush1.bf16.msra.mxu0 %v17391_v10  ;;  %v17450_v10 = vld [vmem:[%s18585_s19 + $0x27e4] ss:$28 sps:$4 sm:$0xff]  }
 0x5a9   : > { %11647 = vmatpush1.bf16.msra.mxu1 %v17394_v54  ;;  %11607 = vmatprep.subr.bf16.mxu0 %v17399_v46 }
 0x5aa   : > { %11648 = vmatprep.subr.bf16.mxu1 %v17402_v35 }
 0x5ac   : > { %11608 = vmatpush1.bf16.msra.mxu0 %v17397_v57 }
 0x5ad   : > { %11649 = vmatpush1.bf16.msra.mxu1 %v17400_v21  ;;  %11609 = vmatprep.subr.bf16.mxu0 %v17405_v0 }
 0x5ae   : > { %11650 = vmatprep.subr.bf16.mxu1 %v17408_v2 }
 0x5b0   : > { %11610 = vmatpush1.bf16.msra.mxu0 %v17403_v36  ;;  %v17445_v36 = vld [vmem:[%s18585_s19 + $0x2460] ss:$28 sps:$4 sm:$0xff]  }
 0x5b1   : > { %11651 = vmatpush1.bf16.msra.mxu1 %v17406_v18  ;;  %11661 = vmatprep.subr.bf16.mxu0 %v17411_v5  ;;  %v17448_v18 = vld [vmem:[%s18585_s19 + $0x27e0] ss:$28 sps:$4 sm:$0xff]  }
 0x5b2   : > { %11702 = vmatprep.subr.bf16.mxu1 %v17414_v62 }
 0x5b3   : > { %11612 = vmatmul.mubr.bf16.vlgmr.msra.gmra.mrb[72].mxu0 %v19050_v49 }
 0x5b4   : > { %11653 = vmatmul.mubr.bf16.vlgmr.msra.gmra.mrb[72].mxu1 %v19054_v50  ;;  %11662 = vmatpush1.bf16.msra.mxu0 %v17409_v6 }
 0x5b5   : > { %11703 = vmatpush1.bf16.msra.mxu1 %v17412_v9  ;;  %11663 = vmatprep.subr.bf16.mxu0 %v17417_v4  ;;  %v17456_v9 = vld [vmem:[%s18585_s19 + $0x281c] ss:$28 sps:$4 sm:$0xff]  }
 0x5b6   : > { %11704 = vmatprep.subr.bf16.mxu1 %v17420_v11  ;;  %11693 = vmatprep.mubr.bf16.mxu0 %v19063_v55  ;;  %v17451_v11 = vld [vmem:[%s18585_s19 + $0x2498] ss:$28 sps:$4 sm:$0xff]  }
 0x5b7   : > { %11734 = vmatprep.mubr.bf16.mxu1 %v19067_v59 }
 0x5b8   : > { %11664 = vmatpush1.bf16.msra.mxu0 %v17415_v12  ;;  %v17454_v12 = vld [vmem:[%s18585_s19 + $0x2818] ss:$28 sps:$4 sm:$0xff]  }
 0x5b9   : > { %11705 = vmatpush1.bf16.msra.mxu1 %v17418_v15  ;;  %11665 = vmatprep.subr.bf16.mxu0 %v17423_v1  ;;  %v17459_v15 = vld [vmem:[%s18585_s19 + $0x24d4] ss:$28 sps:$4 sm:$0xff]  }
 0x5ba   : > { %11706 = vmatprep.subr.bf16.mxu1 %v17426_v22  ;;  %v17462_v1 = vld [vmem:[%s18585_s19 + $0x2854] ss:$28 sps:$4 sm:$0xff]  }
 0x5bb   : > { %v17457_v22 = vld [vmem:[%s18585_s19 + $0x24d0] ss:$28 sps:$4 sm:$0xff]  }
 0x5bc   : > { %11666 = vmatpush1.bf16.msra.mxu0 %v17421_v13  ;;  %v17460_v13 = vld [vmem:[%s18585_s19 + $0x2850] ss:$28 sps:$4 sm:$0xff]  }
 0x5bd   : > { %11707 = vmatpush1.bf16.msra.mxu1 %v17424_v14  ;;  %11667 = vmatprep.subr.bf16.mxu0 %v17429_v28  ;;  %v17465_v14 = vld [vmem:[%s18585_s19 + $0x250c] ss:$28 sps:$4 sm:$0xff]  }
 0x5be   : > { %11708 = vmatprep.subr.bf16.mxu1 %v17432_v29  ;;  %v17468_v28 = vld [vmem:[%s18585_s19 + $0x288c] ss:$28 sps:$4 sm:$0xff]  }
 0x5bf   : > { %v17463_v29 = vld [vmem:[%s18585_s19 + $0x2508] ss:$28 sps:$4 sm:$0xff]  }
 0x5c0   : > { %11668 = vmatpush1.bf16.msra.mxu0 %v17427_v3  ;;  %v17466_v3 = vld [vmem:[%s18585_s19 + $0x2888] ss:$28 sps:$4 sm:$0xff]  }
 0x5c1   : > { %11709 = vmatpush1.bf16.msra.mxu1 %v17430_v45  ;;  %11669 = vmatprep.subr.bf16.mxu0 %v17435_v31  ;;  %v17471_v45 = vld [vmem:[%s18585_s19 + $0x2544] ss:$28 sps:$4 sm:$0xff]  }
 0x5c2   : > { %11710 = vmatprep.subr.bf16.mxu1 %v17438_v34  ;;  %v17474_v31 = vld [vmem:[%s18585_s19 + $0x28c4] ss:$28 sps:$4 sm:$0xff]  }
 0x5c3   : > { %v17469_v34 = vld [vmem:[%s18585_s19 + $0x2540] ss:$28 sps:$4 sm:$0xff]  }
 0x5c4   : > { %11670 = vmatpush1.bf16.msra.mxu0 %v17433_v43  ;;  %v17472_v43 = vld [vmem:[%s18585_s19 + $0x28c0] ss:$28 sps:$4 sm:$0xff]  }
 0x5c5   : > { %11711 = vmatpush1.bf16.msra.mxu1 %v17436_v27  ;;  %11671 = vmatprep.subr.bf16.mxu0 %v17441_v30  ;;  %v17477_v27 = vld [vmem:[%s18585_s19 + $0x257c] ss:$28 sps:$4 sm:$0xff]  }
 0x5c6   : > { %11712 = vmatprep.subr.bf16.mxu1 %v17444_v19  ;;  %v11367_v54 = vpop.f32.mrb[60].mxu0  ;;  %v17480_v30 = vld [vmem:[%s18585_s19 + $0x28fc] ss:$28 sps:$4 sm:$0xff]  }
 0x5c7   : > { %v11408_v46 = vpop.f32.mrb[60].mxu1  ;;  %v11368_v35 = vadd.f32 %v11367_v54, %v20074_v44  ;;  %v11369_v57 = vpop.f32.mrb[61].mxu0  ;;  %v17453_v44 = vld [vmem:[%s18585_s19 + $0x249c] ss:$28 sps:$4 sm:$0xff]   ;;  %v17484_v54 = vld [vmem:[%s18585_s19 + $0x2930] ss:$28 sps:$4 sm:$0xff]  }
 0x5c8   : > { %v11410_v21 = vpop.f32.mrb[61].mxu1  ;;  %v11370_v0 = vadd.f32 %v11369_v57, %v20076_v51  ;;  %v11371_v2 = vpop.f32.mrb[62].mxu0  ;;  %11672 = vmatpush1.bf16.msra.mxu0 %v17439_v32  ;;  %v17475_v19 = vld [vmem:[%s18585_s19 + $0x2578] ss:$28 sps:$4 sm:$0xff]   ;;  %v17487_v57 = vld [vmem:[%s18585_s19 + $0x25e8] ss:$28 sps:$4 sm:$0xff]  }
 0x5c9   : > { %11713 = vmatpush1.bf16.msra.mxu1 %v17442_v33  ;;  %v11412_v5 = vpop.f32.mrb[62].mxu1  ;;  %v20150_v62 = vadd.f32 %v11408_v46, %v11368_v35  ;;  %v11372_v6 = vpop.f32.mrb[63].mxu0  ;;  %11673 = vmatprep.subr.bf16.mxu0 %v17447_v16  ;;  %v17478_v32 = vld [vmem:[%s18585_s19 + $0x28f8] ss:$28 sps:$4 sm:$0xff]   ;;  %v17489_v46 = vld [vmem:[%s18585_s19 + $0x25ec] ss:$28 sps:$4 sm:$0xff]  }
 0x5ca   : > { %11714 = vmatprep.subr.bf16.mxu1 %v17450_v10  ;;  %v11413_v51 = vpop.f32.mrb[63].mxu1  ;;  %v20154_v4 = vadd.f32 %v11410_v21, %v11370_v0  ;;  %v17483_v33 = vld [vmem:[%s18585_s19 + $0x25b4] ss:$28 sps:$4 sm:$0xff]   ;;  %v17492_v35 = vld [vmem:[%s18585_s19 + $0x296c] ss:$28 sps:$4 sm:$0xff]  }
 0x5cb   : > { %v17486_v16 = vld [vmem:[%s18585_s19 + $0x2934] ss:$28 sps:$4 sm:$0xff]   ;;  %v17490_v21 = vld [vmem:[%s18585_s19 + $0x2968] ss:$28 sps:$4 sm:$0xff]   ;;  %v17501_v5 = vld [vmem:[%s18585_s19 + $0x265c] ss:$28 sps:$4 sm:$0xff]  }
 0x5cc   : > { %11674 = vmatpush1.bf16.msra.mxu0 %v17445_v36  ;;  %v17481_v10 = vld [vmem:[%s18585_s19 + $0x25b0] ss:$28 sps:$4 sm:$0xff]   ;;  %v17495_v0 = vld [vmem:[%s18585_s19 + $0x2624] ss:$28 sps:$4 sm:$0xff]   ;;  %v17504_v6 = vld [vmem:[%s18585_s19 + $0x29dc] ss:$28 sps:$4 sm:$0xff]  }
 0x5cd   : > { %11715 = vmatpush1.bf16.msra.mxu1 %v17448_v18  ;;  %11675 = vmatprep.subr.bf16.mxu0 %v17453_v44  ;;  %v17498_v2 = vld [vmem:[%s18585_s19 + $0x29a4] ss:$28 sps:$4 sm:$0xff]   ;;  %v17499_v44 = vld [vmem:[%s18585_s19 + $0x2658] ss:$28 sps:$4 sm:$0xff]  }
 0x5ce   : > { %11716 = vmatprep.subr.bf16.mxu1 %v17456_v9  ;;  %v17493_v36 = vld [vmem:[%s18585_s19 + $0x2620] ss:$28 sps:$4 sm:$0xff]   ;;  %v17502_v9 = vld [vmem:[%s18585_s19 + $0x29d8] ss:$28 sps:$4 sm:$0xff]  }
 0x5cf   : > { %v17496_v18 = vld [vmem:[%s18585_s19 + $0x29a0] ss:$28 sps:$4 sm:$0xff]   ;;  %v17507_v51 = vld [vmem:[%s18585_s19 + $0x2a14] ss:$28 sps:$4 sm:$0xff]  }
 0x5d0   : > { %11676 = vmatpush1.bf16.msra.mxu0 %v17451_v11  ;;  %v17510_v11 = vld [vmem:[%s18585_s19 + $0x2d94] ss:$28 sps:$4 sm:$0xff]  }
 0x5d1   : > { %11717 = vmatpush1.bf16.msra.mxu1 %v17454_v12  ;;  %11677 = vmatprep.subr.bf16.mxu0 %v17459_v15  ;;  %v17505_v12 = vld [vmem:[%s18585_s19 + $0x2a10] ss:$28 sps:$4 sm:$0xff]  }
 0x5d2   : > { %11718 = vmatprep.subr.bf16.mxu1 %v17462_v1  ;;  %v17508_v15 = vld [vmem:[%s18585_s19 + $0x2d90] ss:$28 sps:$4 sm:$0xff]  }
 0x5d3   : > { %v17513_v1 = vld [vmem:[%s18585_s19 + $0x2a4c] ss:$28 sps:$4 sm:$0xff]  }
 0x5d4   : > { %11678 = vmatpush1.bf16.msra.mxu0 %v17457_v22  ;;  %v17516_v22 = vld [vmem:[%s18585_s19 + $0x2dcc] ss:$28 sps:$4 sm:$0xff]  }
 0x5d5   : > { %11719 = vmatpush1.bf16.msra.mxu1 %v17460_v13  ;;  %11679 = vmatprep.subr.bf16.mxu0 %v17465_v14  ;;  %v17511_v13 = vld [vmem:[%s18585_s19 + $0x2a48] ss:$28 sps:$4 sm:$0xff]  }
 0x5d6   : > { %11720 = vmatprep.subr.bf16.mxu1 %v17468_v28  ;;  %v17514_v14 = vld [vmem:[%s18585_s19 + $0x2dc8] ss:$28 sps:$4 sm:$0xff]  }
 0x5d7   : > { %v17519_v28 = vld [vmem:[%s18585_s19 + $0x2a84] ss:$28 sps:$4 sm:$0xff]  }
 0x5d8   : > { %11680 = vmatpush1.bf16.msra.mxu0 %v17463_v29  ;;  %v17522_v29 = vld [vmem:[%s18585_s19 + $0x2e04] ss:$28 sps:$4 sm:$0xff]  }
 0x5d9   : > { %11721 = vmatpush1.bf16.msra.mxu1 %v17466_v3  ;;  %11681 = vmatprep.subr.bf16.mxu0 %v17471_v45  ;;  %v17517_v3 = vld [vmem:[%s18585_s19 + $0x2a80] ss:$28 sps:$4 sm:$0xff]  }
 0x5da   : > { %11722 = vmatprep.subr.bf16.mxu1 %v17474_v31  ;;  %v17520_v45 = vld [vmem:[%s18585_s19 + $0x2e00] ss:$28 sps:$4 sm:$0xff]  }
 0x5db   : > { %v17525_v31 = vld [vmem:[%s18585_s19 + $0x2abc] ss:$28 sps:$4 sm:$0xff]  }
 0x5dc   : > { %11682 = vmatpush1.bf16.msra.mxu0 %v17469_v34  ;;  %v17528_v34 = vld [vmem:[%s18585_s19 + $0x2e3c] ss:$28 sps:$4 sm:$0xff]  }
 0x5dd   : > { %11723 = vmatpush1.bf16.msra.mxu1 %v17472_v43  ;;  %11683 = vmatprep.subr.bf16.mxu0 %v17477_v27  ;;  %v17523_v43 = vld [vmem:[%s18585_s19 + $0x2ab8] ss:$28 sps:$4 sm:$0xff]  }
 0x5de   : > { %11724 = vmatprep.subr.bf16.mxu1 %v17480_v30  ;;  %v17531_v27 = vld [vmem:[%s18585_s19 + $0x2af4] ss:$28 sps:$4 sm:$0xff]  }
 0x5df   : > { %v17534_v30 = vld [vmem:[%s18585_s19 + $0x2e74] ss:$28 sps:$4 sm:$0xff]  }
 0x5e0   : > { %11684 = vmatpush1.bf16.msra.mxu0 %v17475_v19  ;;  %v17529_v19 = vld [vmem:[%s18585_s19 + $0x2af0] ss:$28 sps:$4 sm:$0xff]  }
 0x5e1   : > { %11725 = vmatpush1.bf16.msra.mxu1 %v17478_v32  ;;  %11685 = vmatprep.subr.bf16.mxu0 %v17483_v33  ;;  %v17532_v32 = vld [vmem:[%s18585_s19 + $0x2e70] ss:$28 sps:$4 sm:$0xff]  }
 0x5e2   : > { %11726 = vmatprep.subr.bf16.mxu1 %v17486_v16  ;;  %v17537_v33 = vld [vmem:[%s18585_s19 + $0x2b2c] ss:$28 sps:$4 sm:$0xff]  }
 0x5e3   : > { %v17540_v16 = vld [vmem:[%s18585_s19 + $0x2eac] ss:$28 sps:$4 sm:$0xff]  }
 0x5e4   : > { %11686 = vmatpush1.bf16.msra.mxu0 %v17481_v10  ;;  %v17535_v10 = vld [vmem:[%s18585_s19 + $0x2b28] ss:$28 sps:$4 sm:$0xff]  }
 0x5e5   : > { %11727 = vmatpush1.bf16.msra.mxu1 %v17484_v54  ;;  %11687 = vmatprep.subr.bf16.mxu0 %v17489_v46  ;;  %v17538_v54 = vld [vmem:[%s18585_s19 + $0x2ea8] ss:$28 sps:$4 sm:$0xff]  }
 0x5e6   : > { %11728 = vmatprep.subr.bf16.mxu1 %v17492_v35  ;;  %v17543_v46 = vld [vmem:[%s18585_s19 + $0x2b64] ss:$28 sps:$4 sm:$0xff]  }
 0x5e7   : > { %v17546_v35 = vld [vmem:[%s18585_s19 + $0x2ee4] ss:$28 sps:$4 sm:$0xff]  }
 0x5e8   : > { %11688 = vmatpush1.bf16.msra.mxu0 %v17487_v57 }
 0x5e9   : > { %11729 = vmatpush1.bf16.msra.mxu1 %v17490_v21  ;;  %11689 = vmatprep.subr.bf16.mxu0 %v17495_v0 }
 0x5ea   : > { %11730 = vmatprep.subr.bf16.mxu1 %v17498_v2 }
 0x5ec   : > { %11690 = vmatpush1.bf16.msra.mxu0 %v17493_v36 }
 0x5ed   : > { %11731 = vmatpush1.bf16.msra.mxu1 %v17496_v18  ;;  %11691 = vmatprep.subr.bf16.mxu0 %v17501_v5 }
 0x5ee   : > { %11732 = vmatprep.subr.bf16.mxu1 %v17504_v6  ;;  %v17541_v6 = vld [vmem:[%s18585_s19 + $0x2b60] ss:$28 sps:$4 sm:$0xff]  }
 0x5f0   : > { %11692 = vmatpush1.bf16.msra.mxu0 %v17499_v44  ;;  %v17544_v44 = vld [vmem:[%s18585_s19 + $0x2ee0] ss:$28 sps:$4 sm:$0xff]  }
 0x5f1   : > { %11733 = vmatpush1.bf16.msra.mxu1 %v17502_v9  ;;  %11743 = vmatprep.subr.bf16.mxu0 %v17507_v51 }
 0x5f2   : > { %11784 = vmatprep.subr.bf16.mxu1 %v17510_v11 }
 0x5f3   : > { %11694 = vmatmul.mubr.bf16.vlgmr.msra.gmra.mrb[76].mxu0 %v19146_v47 }
 0x5f4   : > { %11735 = vmatmul.mubr.bf16.vlgmr.msra.gmra.mrb[76].mxu1 %v19150_v53  ;;  %11744 = vmatpush1.bf16.msra.mxu0 %v17505_v12  ;;  %v17552_v12 = vld [vmem:[%s18585_s19 + $0x2f1c] ss:$28 sps:$4 sm:$0xff]  }
 0x5f5   : > { %11785 = vmatpush1.bf16.msra.mxu1 %v17508_v15  ;;  %11745 = vmatprep.subr.bf16.mxu0 %v17513_v1  ;;  %v17547_v1 = vld [vmem:[%s18585_s19 + $0x2b98] ss:$28 sps:$4 sm:$0xff]  }
 0x5f6   : > { %11786 = vmatprep.subr.bf16.mxu1 %v17516_v22  ;;  %11816 = vmatprep.mubr.bf16.mxu1 %v18216_v63  ;;  %v17526_v63 = vld [vmem:[%s18585_s19 + $0x2e38] ss:$28 sps:$4 sm:$0xff]  }
 0x5f7   : > { %11775 = vmatprep.mubr.bf16.mxu0 %v19156_v56  ;;  %v17550_v22 = vld [vmem:[%s18585_s19 + $0x2f18] ss:$28 sps:$4 sm:$0xff]  }
 0x5f8   : > { %11746 = vmatpush1.bf16.msra.mxu0 %v17511_v13  ;;  %v17555_v13 = vld [vmem:[%s18585_s19 + $0x2bd4] ss:$28 sps:$4 sm:$0xff]  }
 0x5f9   : > { %11787 = vmatpush1.bf16.msra.mxu1 %v17514_v14  ;;  %11747 = vmatprep.subr.bf16.mxu0 %v17519_v28  ;;  %v17556_v14 = vld [vmem:[%s18585_s19 + $0x1d8] ss:$28 sps:$4 sm:$0xff]   ;;  %v17553_v28 = vld [vmem:[%s18585_s19 + $0x2bd0] ss:$28 sps:$4 sm:$0xff]  }
 0x5fa   : > { %11788 = vmatprep.subr.bf16.mxu1 %v17522_v29  ;;  %v17557_v29 = vld [vmem:[%s18585_s19 + $0x18] ss:$28 sps:$4 sm:$0xff]  }
 0x5fc   : > { %11748 = vmatpush1.bf16.msra.mxu0 %v17517_v3  ;;  %v17560_v3 = vld [vmem:[%s18585_s19 + $0x2c0c] ss:$28 sps:$4 sm:$0xff]  }
 0x5fd   : > { %11789 = vmatpush1.bf16.msra.mxu1 %v17520_v45  ;;  %11749 = vmatprep.subr.bf16.mxu0 %v17525_v31  ;;  %v17561_v45 = vld [vmem:[%s18585_s19 + $0x210] ss:$28 sps:$4 sm:$0xff]  }
 0x5fe   : > { %11790 = vmatprep.subr.bf16.mxu1 %v17528_v34  ;;  %v17794_v31 = vld [vmem:[%s18578_s12 + $0x68] ss:$0 sps:$4 sm:$0xff]   ;;  %v17558_v34 = vld [vmem:[%s18585_s19 + $0x2c08] ss:$28 sps:$4 sm:$0xff]  }
 0x600   : > { %11750 = vmatpush1.bf16.msra.mxu0 %v17523_v43  ;;  %v17562_v43 = vld [vmem:[%s18585_s19 + $0x50] ss:$28 sps:$4 sm:$0xff]  }
 0x601   : > { %11791 = vmatpush1.bf16.msra.mxu1 %v17526_v63  ;;  %11751 = vmatprep.subr.bf16.mxu0 %v17531_v27  ;;  %v17565_v63 = vld [vmem:[%s18585_s19 + $0x2c44] ss:$28 sps:$4 sm:$0xff]  }
 0x602   : > { %11792 = vmatprep.subr.bf16.mxu1 %v17534_v30  ;;  %v17566_v27 = vld [vmem:[%s18585_s19 + $0x248] ss:$28 sps:$4 sm:$0xff]   ;;  %v17563_v30 = vld [vmem:[%s18585_s19 + $0x2c40] ss:$28 sps:$4 sm:$0xff]  }
 0x604   : > { %11752 = vmatpush1.bf16.msra.mxu0 %v17529_v19  ;;  %v17567_v19 = vld [vmem:[%s18585_s19 + $0x88] ss:$28 sps:$4 sm:$0xff]  }
 0x605   : > { %11793 = vmatpush1.bf16.msra.mxu1 %v17532_v32  ;;  %11753 = vmatprep.subr.bf16.mxu0 %v17537_v33  ;;  %v17570_v32 = vld [vmem:[%s18585_s19 + $0x2c7c] ss:$28 sps:$4 sm:$0xff]  }
 0x606   : > { %11794 = vmatprep.subr.bf16.mxu1 %v17540_v16  ;;  %v11449_v57 = vpop.f32.mrb[64].mxu0  ;;  %v17571_v33 = vld [vmem:[%s18585_s19 + $0x280] ss:$28 sps:$4 sm:$0xff]   ;;  %v17568_v16 = vld [vmem:[%s18585_s19 + $0x2c78] ss:$28 sps:$4 sm:$0xff]  }
 0x607   : > { %v11490_v21 = vpop.f32.mrb[64].mxu1  ;;  %v11450_v0 = vadd.f32 %v11449_v57, %v20150_v62  ;;  %v11451_v2 = vpop.f32.mrb[65].mxu0  ;;  %v17549_v62 = vld [vmem:[%s18585_s19 + $0x2b9c] ss:$28 sps:$4 sm:$0xff]   ;;  %v17580_v57 = vld [vmem:[%s18585_s19 + $0x2cec] ss:$28 sps:$4 sm:$0xff]  }
 0x608   : > { %v11492_v36 = vpop.f32.mrb[65].mxu1  ;;  %v11452_v18 = vadd.f32 %v11451_v2, %v20154_v4  ;;  %v11453_v5 = vpop.f32.mrb[66].mxu0  ;;  %11754 = vmatpush1.bf16.msra.mxu0 %v17535_v10  ;;  %v17572_v10 = vld [vmem:[%s18585_s19 + $0xc0] ss:$28 sps:$4 sm:$0xff]   ;;  %v17582_v2 = vld [vmem:[%s18585_s19 + $0x130] ss:$28 sps:$4 sm:$0xff]  }
 0x609   : > { %11795 = vmatpush1.bf16.msra.mxu1 %v17538_v54  ;;  %v11494_v9 = vpop.f32.mrb[66].mxu1  ;;  %v20224_v51 = vadd.f32 %v11490_v21, %v11450_v0  ;;  %v11454_v11 = vpop.f32.mrb[67].mxu0  ;;  %11755 = vmatprep.subr.bf16.mxu0 %v17543_v46  ;;  %v17576_v54 = vld [vmem:[%s18585_s19 + $0x2b8] ss:$28 sps:$4 sm:$0xff]   ;;  %v17573_v46 = vld [vmem:[%s18585_s19 + $0x2cb0] ss:$28 sps:$4 sm:$0xff]  }
 0x60a   : > { %11796 = vmatprep.subr.bf16.mxu1 %v17546_v35  ;;  %v11495_v4 = vpop.f32.mrb[67].mxu1  ;;  %v20228_v15 = vadd.f32 %v11492_v36, %v11452_v18  ;;  %v17577_v35 = vld [vmem:[%s18585_s19 + $0xf8] ss:$28 sps:$4 sm:$0xff]   ;;  %v17581_v21 = vld [vmem:[%s18585_s19 + $0x2f0] ss:$28 sps:$4 sm:$0xff]  }
 0x60b   : > { %v17578_v0 = vld [vmem:[%s18585_s19 + $0x2ce8] ss:$28 sps:$4 sm:$0xff]   ;;  %v17583_v5 = vld [vmem:[%s18585_s19 + $0x2d20] ss:$28 sps:$4 sm:$0xff]   ;;  %v17588_v11 = vld [vmem:[%s18585_s19 + $0x2d58] ss:$28 sps:$4 sm:$0xff]  }
 0x60c   : > { %11756 = vmatpush1.bf16.msra.mxu0 %v17541_v6  ;;  %v17585_v36 = vld [vmem:[%s18585_s19 + $0x2d24] ss:$28 sps:$4 sm:$0xff]   ;;  %v17595_v4 = vld [vmem:[%s18585_s19 + $0x8d8] ss:$28 sps:$4 sm:$0xff]  }
 0x60d   : > { %11797 = vmatpush1.bf16.msra.mxu1 %v17544_v44  ;;  %11757 = vmatprep.subr.bf16.mxu0 %v17549_v62  ;;  %v17586_v18 = vld [vmem:[%s18585_s19 + $0x328] ss:$28 sps:$4 sm:$0xff]   ;;  %v17590_v44 = vld [vmem:[%s18585_s19 + $0x2d5c] ss:$28 sps:$4 sm:$0xff]  }
 0x60e   : > { %11798 = vmatprep.subr.bf16.mxu1 %v17552_v12  ;;  %v17587_v6 = vld [vmem:[%s18585_s19 + $0x168] ss:$28 sps:$4 sm:$0xff]   ;;  %v17591_v9 = vld [vmem:[%s18585_s19 + $0x360] ss:$28 sps:$4 sm:$0xff]   ;;  %v17593_v12 = vld [vmem:[%s18585_s19 + $0x558] ss:$28 sps:$4 sm:$0xff]  }
 0x60f   : > { %v17592_v62 = vld [vmem:[%s18585_s19 + $0x1a0] ss:$28 sps:$4 sm:$0xff]  }
 0x610   : > { %11758 = vmatpush1.bf16.msra.mxu0 %v17547_v1  ;;  %v17594_v1 = vld [vmem:[%s18585_s19 + $0x398] ss:$28 sps:$4 sm:$0xff]  }
 0x611   : > { %11799 = vmatpush1.bf16.msra.mxu1 %v17550_v22  ;;  %11759 = vmatprep.subr.bf16.mxu0 %v17555_v13  ;;  %v17596_v22 = vld [vmem:[%s18585_s19 + $0x718] ss:$28 sps:$4 sm:$0xff]   ;;  %v17597_v13 = vld [vmem:[%s18585_s19 + $0x590] ss:$28 sps:$4 sm:$0xff]  }
 0x612   : > { %15029 = vmatprep.subr.bf16.mxu1 %v17556_v14  ;;  %v17599_v14 = vld [vmem:[%s18585_s19 + $0x910] ss:$28 sps:$4 sm:$0xff]  }
 0x614   : > { %11817 = vmatmul.mubr.bf16.vlgmr.msra.gmra.mrb[80].mxu1 %v17794_v31  ;;  %11760 = vmatpush1.bf16.msra.mxu0 %v17553_v28  ;;  %v17598_v28 = vld [vmem:[%s18585_s19 + $0x3d0] ss:$28 sps:$4 sm:$0xff]   ;;  %v17604_v31 = vld [vmem:[%s18585_s19 + $0x788] ss:$28 sps:$4 sm:$0xff]  }
 0x615   : > { %15030 = vmatpush3.bf16.msra.mxu1 %v17557_v29  ;;  %11761 = vmatprep.subr.bf16.mxu0 %v17560_v3  ;;  %v17600_v29 = vld [vmem:[%s18585_s19 + $0x750] ss:$28 sps:$4 sm:$0xff]   ;;  %v17601_v3 = vld [vmem:[%s18585_s19 + $0x5c8] ss:$28 sps:$4 sm:$0xff]  }
 0x616   : > { %15031 = vmatprep.subr.bf16.mxu1 %v17561_v45  ;;  %11857 = vmatprep.mubr.bf16.mxu1 %v18656_v48  ;;  %v17575_v48 = vld [vmem:[%s18585_s19 + $0x2cb4] ss:$28 sps:$4 sm:$0xff]   ;;  %v17603_v45 = vld [vmem:[%s18585_s19 + $0x948] ss:$28 sps:$4 sm:$0xff]  }
 0x618   : > { %11762 = vmatpush1.bf16.msra.mxu0 %v17558_v34  ;;  %v17605_v34 = vld [vmem:[%s18585_s19 + $0x600] ss:$28 sps:$4 sm:$0xff]  }
 0x619   : > { %15032 = vmatpush3.bf16.msra.mxu1 %v17562_v43  ;;  %11763 = vmatprep.subr.bf16.mxu0 %v17565_v63  ;;  %v17607_v43 = vld [vmem:[%s18585_s19 + $0x980] ss:$28 sps:$4 sm:$0xff]  }
 0x61a   : > { %15033 = vmatprep.subr.bf16.mxu1 %v17566_v27  ;;  %v17606_v63 = vld [vmem:[%s18585_s19 + $0x440] ss:$28 sps:$4 sm:$0xff]   ;;  %v17611_v27 = vld [vmem:[%s18585_s19 + $0x9b8] ss:$28 sps:$4 sm:$0xff]  }
 0x61c   : > { %11764 = vmatpush1.bf16.msra.mxu0 %v17563_v30  ;;  %v17610_v30 = vld [vmem:[%s18585_s19 + $0x478] ss:$28 sps:$4 sm:$0xff]  }
 0x61d   : > { %15034 = vmatpush3.bf16.msra.mxu1 %v17567_v19  ;;  %11765 = vmatprep.subr.bf16.mxu0 %v17570_v32  ;;  %v17612_v19 = vld [vmem:[%s18585_s19 + $0x7f8] ss:$28 sps:$4 sm:$0xff]   ;;  %v17613_v32 = vld [vmem:[%s18585_s19 + $0x670] ss:$28 sps:$4 sm:$0xff]  }
 0x61e   : > { %15035 = vmatprep.subr.bf16.mxu1 %v17571_v33  ;;  %v17615_v33 = vld [vmem:[%s18585_s19 + $0x9f0] ss:$28 sps:$4 sm:$0xff]  }
 0x620   : > { %11766 = vmatpush1.bf16.msra.mxu0 %v17568_v16  ;;  %v17614_v16 = vld [vmem:[%s18585_s19 + $0x4b0] ss:$28 sps:$4 sm:$0xff]  }
 0x621   : > { %15036 = vmatpush3.bf16.msra.mxu1 %v17572_v10  ;;  %11767 = vmatprep.subr.bf16.mxu0 %v17575_v48  ;;  %v17616_v10 = vld [vmem:[%s18585_s19 + $0x830] ss:$28 sps:$4 sm:$0xff]   ;;  %v17617_v48 = vld [vmem:[%s18585_s19 + $0x6a8] ss:$28 sps:$4 sm:$0xff]  }
 0x622   : > { %15037 = vmatprep.subr.bf16.mxu1 %v17576_v54  ;;  %v17619_v54 = vld [vmem:[%s18585_s19 + $0xa28] ss:$28 sps:$4 sm:$0xff]  }
 0x624   : > { %11768 = vmatpush1.bf16.msra.mxu0 %v17573_v46 }
 0x625   : > { %15038 = vmatpush3.bf16.msra.mxu1 %v17577_v35  ;;  %11769 = vmatprep.subr.bf16.mxu0 %v17580_v57 }
 0x626   : > { %15039 = vmatprep.subr.bf16.mxu1 %v17581_v21 }
 0x628   : > { %11770 = vmatpush1.bf16.msra.mxu0 %v17578_v0 }
 0x629   : > { %15040 = vmatpush3.bf16.msra.mxu1 %v17582_v2  ;;  %11771 = vmatprep.subr.bf16.mxu0 %v17585_v36 }
 0x62a   : > { %15041 = vmatprep.subr.bf16.mxu1 %v17586_v18  ;;  %v17618_v18 = vld [vmem:[%s18585_s19 + $0x4e8] ss:$28 sps:$4 sm:$0xff]  }
 0x62c   : > { %11772 = vmatpush1.bf16.msra.mxu0 %v17583_v5  ;;  %v17620_v5 = vld [vmem:[%s18585_s19 + $0x868] ss:$28 sps:$4 sm:$0xff]  }
 0x62d   : > { %15042 = vmatpush3.bf16.msra.mxu1 %v17587_v6  ;;  %11773 = vmatprep.subr.bf16.mxu0 %v17590_v44 }
 0x62e   : > { %15043 = vmatprep.subr.bf16.mxu1 %v17591_v9 }
 0x630   : > { %11774 = vmatpush1.bf16.msra.mxu0 %v17588_v11  ;;  %v17623_v11 = vld [vmem:[%s18585_s19 + $0xa60] ss:$28 sps:$4 sm:$0xff]  }
 0x631   : > { %15044 = vmatpush3.bf16.msra.mxu1 %v17592_v62  ;;  %15051 = vmatprep.subr.bf16.mxu0 %v17593_v12  ;;  %v17622_v12 = vld [vmem:[%s18585_s19 + $0x520] ss:$28 sps:$4 sm:$0xff]  }
 0x632   : > { %15073 = vmatprep.subr.bf16.mxu1 %v17595_v4  ;;  %v17624_v4 = vld [vmem:[%s18585_s19 + $0x8a0] ss:$28 sps:$4 sm:$0xff]  }
 0x633   : > { %11776 = vmatmul.mubr.bf16.vlgmr.msra.gmra.mrb[80].mxu0 %v19234_v58 }
 0x634   : > { %11858 = vmatmul.mubr.bf16.vlgmr.msra.gmra.mrb[84].mxu1 %v18683_v7  ;;  %15052 = vmatpush3.bf16.msra.mxu0 %v17594_v1  ;;  %v17602_v7 = vld [vmem:[%s18585_s19 + $0x408] ss:$28 sps:$4 sm:$0xff]   ;;  %v17625_v1 = vld [vmem:[%s18585_s19 + $0xc58] ss:$28 sps:$4 sm:$0xff]  }
 0x635   : > { %15074 = vmatpush3.bf16.msra.mxu1 %v17596_v22  ;;  %15053 = vmatprep.subr.bf16.mxu0 %v17597_v13  ;;  %v17627_v22 = vld [vmem:[%s18585_s19 + $0xfd8] ss:$28 sps:$4 sm:$0xff]  }
 0x636   : > { %15075 = vmatprep.subr.bf16.mxu1 %v17599_v14  ;;  %11897 = vmatprep.mubr.bf16.mxu0 %v18661_v52  ;;  %v17608_v52 = vld [vmem:[%s18585_s19 + $0x7c0] ss:$28 sps:$4 sm:$0xff]   ;;  %v17626_v13 = vld [vmem:[%s18585_s19 + $0xa98] ss:$28 sps:$4 sm:$0xff]  }
 0x637   : > { %11937 = vmatprep.mubr.bf16.mxu1 %v18723_v37  ;;  %v17609_v37 = vld [vmem:[%s18585_s19 + $0x638] ss:$28 sps:$4 sm:$0xff]  }
 0x638   : > { %15054 = vmatpush3.bf16.msra.mxu0 %v17598_v28  ;;  %v17628_v14 = vld [vmem:[%s18585_s19 + $0xe18] ss:$28 sps:$4 sm:$0xff]   ;;  %v17629_v28 = vld [vmem:[%s18585_s19 + $0xc90] ss:$28 sps:$4 sm:$0xff]  }
 0x639   : > { %15076 = vmatpush3.bf16.msra.mxu1 %v17600_v29  ;;  %15055 = vmatprep.subr.bf16.mxu0 %v17601_v3  ;;  %v17631_v29 = vld [vmem:[%s18585_s19 + $0x1010] ss:$28 sps:$4 sm:$0xff]  }
 0x63a   : > { %15077 = vmatprep.subr.bf16.mxu1 %v17603_v45  ;;  %v17630_v3 = vld [vmem:[%s18585_s19 + $0xad0] ss:$28 sps:$4 sm:$0xff]  }
 0x63b   : > { %v17632_v45 = vld [vmem:[%s18585_s19 + $0xe50] ss:$28 sps:$4 sm:$0xff]  }
 0x63c   : > { %15056 = vmatpush3.bf16.msra.mxu0 %v17602_v7  ;;  %v17633_v7 = vld [vmem:[%s18585_s19 + $0xcc8] ss:$28 sps:$4 sm:$0xff]  }
 0x63d   : > { %15078 = vmatpush3.bf16.msra.mxu1 %v17604_v31  ;;  %15057 = vmatprep.subr.bf16.mxu0 %v17605_v34  ;;  %v17635_v31 = vld [vmem:[%s18585_s19 + $0x1048] ss:$28 sps:$4 sm:$0xff]   ;;  %v17637_v34 = vld [vmem:[%s18585_s19 + $0xd00] ss:$28 sps:$4 sm:$0xff]  }
 0x63e   : > { %15079 = vmatprep.subr.bf16.mxu1 %v17607_v43  ;;  %v17639_v43 = vld [vmem:[%s18585_s19 + $0x1080] ss:$28 sps:$4 sm:$0xff]  }
 0x640   : > { %15058 = vmatpush3.bf16.msra.mxu0 %v17606_v63  ;;  %v17638_v63 = vld [vmem:[%s18585_s19 + $0xb40] ss:$28 sps:$4 sm:$0xff]  }
 0x641   : > { %15080 = vmatpush3.bf16.msra.mxu1 %v17608_v52  ;;  %15059 = vmatprep.subr.bf16.mxu0 %v17609_v37  ;;  %v17643_v52 = vld [vmem:[%s18585_s19 + $0x10b8] ss:$28 sps:$4 sm:$0xff]  }
 0x642   : > { %15081 = vmatprep.subr.bf16.mxu1 %v17611_v27  ;;  %v17642_v37 = vld [vmem:[%s18585_s19 + $0xb78] ss:$28 sps:$4 sm:$0xff]  }
 0x643   : > { %v17644_v27 = vld [vmem:[%s18585_s19 + $0xef8] ss:$28 sps:$4 sm:$0xff]  }
 0x644   : > { %15060 = vmatpush3.bf16.msra.mxu0 %v17610_v30  ;;  %v17645_v30 = vld [vmem:[%s18585_s19 + $0xd70] ss:$28 sps:$4 sm:$0xff]  }
 0x645   : > { %15082 = vmatpush3.bf16.msra.mxu1 %v17612_v19  ;;  %15061 = vmatprep.subr.bf16.mxu0 %v17613_v32  ;;  %v17647_v19 = vld [vmem:[%s18585_s19 + $0x10f0] ss:$28 sps:$4 sm:$0xff]  }
 0x646   : > { %15083 = vmatprep.subr.bf16.mxu1 %v17615_v33  ;;  %v11531_v46 = vpop.f32.mrb[68].mxu0  ;;  %v17646_v32 = vld [vmem:[%s18585_s19 + $0xbb0] ss:$28 sps:$4 sm:$0xff]  }
 0x647   : > { %v11572_v35 = vpop.f32.mrb[68].mxu1  ;;  %v11532_v57 = vadd.f32 %v11531_v46, %v20224_v51  ;;  %v11533_v21 = vpop.f32.mrb[69].mxu0  ;;  %v17621_v51 = vld [vmem:[%s18585_s19 + $0x6e0] ss:$28 sps:$4 sm:$0xff]   ;;  %v17648_v33 = vld [vmem:[%s18585_s19 + $0xf30] ss:$28 sps:$4 sm:$0xff]  }
 0x648   : > { %v11574_v0 = vpop.f32.mrb[69].mxu1  ;;  %v11534_v2 = vadd.f32 %v11533_v21, %v20228_v15  ;;  %v11535_v36 = vpop.f32.mrb[70].mxu0  ;;  %15062 = vmatpush3.bf16.msra.mxu0 %v17614_v16  ;;  %v17649_v16 = vld [vmem:[%s18585_s19 + $0xda8] ss:$28 sps:$4 sm:$0xff]   ;;  %v17653_v46 = vld [vmem:[%s18585_s19 + $0xde0] ss:$28 sps:$4 sm:$0xff]  }
 0x649   : > { %15084 = vmatpush3.bf16.msra.mxu1 %v17616_v10  ;;  %v11576_v6 = vpop.f32.mrb[70].mxu1  ;;  %v20300_v44 = vadd.f32 %v11572_v35, %v11532_v57  ;;  %v11536_v9 = vpop.f32.mrb[71].mxu0  ;;  %15063 = vmatprep.subr.bf16.mxu0 %v17617_v48  ;;  %v17651_v10 = vld [vmem:[%s18585_s19 + $0x1128] ss:$28 sps:$4 sm:$0xff]   ;;  %v17655_v35 = vld [vmem:[%s18585_s19 + $0x1160] ss:$28 sps:$4 sm:$0xff]  }
 0x64a   : > { %15085 = vmatprep.subr.bf16.mxu1 %v17619_v54  ;;  %v11577_v15 = vpop.f32.mrb[71].mxu1  ;;  %v20304_v62 = vadd.f32 %v11574_v0, %v11534_v2  ;;  %v17650_v48 = vld [vmem:[%s18585_s19 + $0xbe8] ss:$28 sps:$4 sm:$0xff]   ;;  %v17654_v57 = vld [vmem:[%s18585_s19 + $0xc20] ss:$28 sps:$4 sm:$0xff]  }
 0x64b   : > { %v17652_v54 = vld [vmem:[%s18585_s19 + $0xf68] ss:$28 sps:$4 sm:$0xff]   ;;  %v17656_v21 = vld [vmem:[%s18585_s19 + $0xfa0] ss:$28 sps:$4 sm:$0xff]   ;;  %v17657_v0 = vld [vmem:[%s18585_s19 + $0x1358] ss:$28 sps:$4 sm:$0xff]  }
 0x64c   : > { %15064 = vmatpush3.bf16.msra.mxu0 %v17618_v18  ;;  %v17659_v2 = vld [vmem:[%s18585_s19 + $0x16d8] ss:$28 sps:$4 sm:$0xff]   ;;  %v17663_v6 = vld [vmem:[%s18585_s19 + $0x1710] ss:$28 sps:$4 sm:$0xff]   ;;  %v17667_v15 = vld [vmem:[%s18585_s19 + $0x1748] ss:$28 sps:$4 sm:$0xff]  }
 0x64d   : > { %15086 = vmatpush3.bf16.msra.mxu1 %v17620_v5  ;;  %15065 = vmatprep.subr.bf16.mxu0 %v17621_v51  ;;  %v17658_v36 = vld [vmem:[%s18585_s19 + $0x1198] ss:$28 sps:$4 sm:$0xff]   ;;  %v17661_v5 = vld [vmem:[%s18585_s19 + $0x1390] ss:$28 sps:$4 sm:$0xff]  }
 0x64e   : > { %15087 = vmatprep.subr.bf16.mxu1 %v17623_v11  ;;  %v17660_v18 = vld [vmem:[%s18585_s19 + $0x1518] ss:$28 sps:$4 sm:$0xff]   ;;  %v17662_v9 = vld [vmem:[%s18585_s19 + $0x11d0] ss:$28 sps:$4 sm:$0xff]   ;;  %v17665_v11 = vld [vmem:[%s18585_s19 + $0x13c8] ss:$28 sps:$4 sm:$0xff]  }
 0x64f   : > { %v17664_v51 = vld [vmem:[%s18585_s19 + $0x1550] ss:$28 sps:$4 sm:$0xff]  }
 0x650   : > { %15066 = vmatpush3.bf16.msra.mxu0 %v17622_v12  ;;  %v17669_v12 = vld [vmem:[%s18585_s19 + $0x1400] ss:$28 sps:$4 sm:$0xff]  }
 0x651   : > { %15088 = vmatpush3.bf16.msra.mxu1 %v17624_v4  ;;  %15095 = vmatprep.subr.bf16.mxu0 %v17625_v1  ;;  %v17671_v4 = vld [vmem:[%s18585_s19 + $0x1780] ss:$28 sps:$4 sm:$0xff]  }
 0x652   : > { %15117 = vmatprep.subr.bf16.mxu1 %v17627_v22  ;;  %v17670_v1 = vld [vmem:[%s18585_s19 + $0x1240] ss:$28 sps:$4 sm:$0xff]   ;;  %v17675_v22 = vld [vmem:[%s18585_s19 + $0x17b8] ss:$28 sps:$4 sm:$0xff]  }
 0x653   : > { %11898 = vmatmul.mubr.bf16.vlgmr.msra.gmra.mrb[84].mxu0 %v18685_v8  ;;  %v17634_v8 = vld [vmem:[%s18585_s19 + $0xb08] ss:$28 sps:$4 sm:$0xff]  }
 0x654   : > { %11938 = vmatmul.mubr.bf16.vlgmr.msra.gmra.mrb[88].mxu1 %v18771_v17  ;;  %15096 = vmatpush3.bf16.msra.mxu0 %v17626_v13  ;;  %v17636_v17 = vld [vmem:[%s18585_s19 + $0xe88] ss:$28 sps:$4 sm:$0xff]   ;;  %v17674_v13 = vld [vmem:[%s18585_s19 + $0x1278] ss:$28 sps:$4 sm:$0xff]  }
 0x655   : > { %15118 = vmatpush3.bf16.msra.mxu1 %v17628_v14  ;;  %15097 = vmatprep.subr.bf16.mxu0 %v17629_v28  ;;  %v17676_v14 = vld [vmem:[%s18585_s19 + $0x15f8] ss:$28 sps:$4 sm:$0xff]   ;;  %v17677_v28 = vld [vmem:[%s18585_s19 + $0x1470] ss:$28 sps:$4 sm:$0xff]  }
 0x656   : > { %15119 = vmatprep.subr.bf16.mxu1 %v17631_v29  ;;  %11977 = vmatprep.mubr.bf16.mxu0 %v18727_v38  ;;  %v17640_v38 = vld [vmem:[%s18585_s19 + $0xec0] ss:$28 sps:$4 sm:$0xff]   ;;  %v17679_v29 = vld [vmem:[%s18585_s19 + $0x17f0] ss:$28 sps:$4 sm:$0xff]  }
 0x657   : > { %12017 = vmatprep.mubr.bf16.mxu1 %v18789_v25  ;;  %v17641_v25 = vld [vmem:[%s18585_s19 + $0xd38] ss:$28 sps:$4 sm:$0xff]  }
 0x658   : > { %15098 = vmatpush3.bf16.msra.mxu0 %v17630_v3  ;;  %v17678_v3 = vld [vmem:[%s18585_s19 + $0x12b0] ss:$28 sps:$4 sm:$0xff]  }
 0x659   : > { %15120 = vmatpush3.bf16.msra.mxu1 %v17632_v45  ;;  %15099 = vmatprep.subr.bf16.mxu0 %v17633_v7  ;;  %v17680_v45 = vld [vmem:[%s18585_s19 + $0x1630] ss:$28 sps:$4 sm:$0xff]   ;;  %v17681_v7 = vld [vmem:[%s18585_s19 + $0x14a8] ss:$28 sps:$4 sm:$0xff]  }
 0x65a   : > { %15121 = vmatprep.subr.bf16.mxu1 %v17635_v31  ;;  %v17683_v31 = vld [vmem:[%s18585_s19 + $0x1828] ss:$28 sps:$4 sm:$0xff]  }
 0x65c   : > { %15100 = vmatpush3.bf16.msra.mxu0 %v17634_v8 }
 0x65d   : > { %15122 = vmatpush3.bf16.msra.mxu1 %v17636_v17  ;;  %15101 = vmatprep.subr.bf16.mxu0 %v17637_v34 }
 0x65e   : > { %15123 = vmatprep.subr.bf16.mxu1 %v17639_v43 }
 0x660   : > { %15102 = vmatpush3.bf16.msra.mxu0 %v17638_v63 }
 0x661   : > { %15124 = vmatpush3.bf16.msra.mxu1 %v17640_v38  ;;  %15103 = vmatprep.subr.bf16.mxu0 %v17641_v25 }
 0x662   : > { %15125 = vmatprep.subr.bf16.mxu1 %v17643_v52  ;;  %v17682_v52 = vld [vmem:[%s18585_s19 + $0x12e8] ss:$28 sps:$4 sm:$0xff]  }
 0x664   : > { %15104 = vmatpush3.bf16.msra.mxu0 %v17642_v37  ;;  %v17684_v37 = vld [vmem:[%s18585_s19 + $0x1668] ss:$28 sps:$4 sm:$0xff]  }
 0x665   : > { %15126 = vmatpush3.bf16.msra.mxu1 %v17644_v27  ;;  %15105 = vmatprep.subr.bf16.mxu0 %v17645_v30 }
 0x666   : > { %15127 = vmatprep.subr.bf16.mxu1 %v17647_v19 }
 0x668   : > { %15106 = vmatpush3.bf16.msra.mxu0 %v17646_v32  ;;  %v17687_v32 = vld [vmem:[%s18585_s19 + $0x1860] ss:$28 sps:$4 sm:$0xff]  }
 0x669   : > { %15128 = vmatpush3.bf16.msra.mxu1 %v17648_v33  ;;  %15107 = vmatprep.subr.bf16.mxu0 %v17649_v16  ;;  %v17686_v16 = vld [vmem:[%s18585_s19 + $0x1320] ss:$28 sps:$4 sm:$0xff]  }
 0x66a   : > { %15129 = vmatprep.subr.bf16.mxu1 %v17651_v10  ;;  %v17688_v10 = vld [vmem:[%s18585_s19 + $0x16a0] ss:$28 sps:$4 sm:$0xff]  }
 0x66c   : > { %15108 = vmatpush3.bf16.msra.mxu0 %v17650_v48  ;;  %v17689_v48 = vld [vmem:[%s18585_s19 + $0x1a58] ss:$28 sps:$4 sm:$0xff]  }
 0x66d   : > { %15130 = vmatpush3.bf16.msra.mxu1 %v17652_v54  ;;  %15109 = vmatprep.subr.bf16.mxu0 %v17653_v46  ;;  %v17691_v54 = vld [vmem:[%s18585_s19 + $0x1dd8] ss:$28 sps:$4 sm:$0xff]  }
 0x66e   : > { %15131 = vmatprep.subr.bf16.mxu1 %v17655_v35  ;;  %v17690_v46 = vld [vmem:[%s18585_s19 + $0x1898] ss:$28 sps:$4 sm:$0xff]  }
 0x66f   : > { %v17692_v35 = vld [vmem:[%s18585_s19 + $0x1c18] ss:$28 sps:$4 sm:$0xff]  }
 0x670   : > { %15110 = vmatpush3.bf16.msra.mxu0 %v17654_v57  ;;  %v17693_v57 = vld [vmem:[%s18585_s19 + $0x1a90] ss:$28 sps:$4 sm:$0xff]  }
 0x671   : > { %15132 = vmatpush3.bf16.msra.mxu1 %v17656_v21  ;;  %15139 = vmatprep.subr.bf16.mxu0 %v17657_v0  ;;  %v17695_v21 = vld [vmem:[%s18585_s19 + $0x1e10] ss:$28 sps:$4 sm:$0xff]  }
 0x672   : > { %15161 = vmatprep.subr.bf16.mxu1 %v17659_v2  ;;  %v17694_v0 = vld [vmem:[%s18585_s19 + $0x18d0] ss:$28 sps:$4 sm:$0xff]  }
 0x673   : > { %11978 = vmatmul.mubr.bf16.vlgmr.msra.gmra.mrb[88].mxu0 %v18777_v20  ;;  %v17666_v20 = vld [vmem:[%s18585_s19 + $0x1208] ss:$28 sps:$4 sm:$0xff]   ;;  %v17696_v2 = vld [vmem:[%s18585_s19 + $0x1c50] ss:$28 sps:$4 sm:$0xff]  }
 0x674   : > { %12018 = vmatmul.mubr.bf16.vlgmr.msra.gmra.mrb[92].mxu1 %v18863_v39  ;;  %15140 = vmatpush3.bf16.msra.mxu0 %v17658_v36  ;;  %v17668_v39 = vld [vmem:[%s18585_s19 + $0x1588] ss:$28 sps:$4 sm:$0xff]  }
 0x675   : > { %15162 = vmatpush3.bf16.msra.mxu1 %v17660_v18  ;;  %15141 = vmatprep.subr.bf16.mxu0 %v17661_v5  ;;  %v17697_v36 = vld [vmem:[%s18585_s19 + $0x1ac8] ss:$28 sps:$4 sm:$0xff]   ;;  %v17701_v5 = vld [vmem:[%s18585_s19 + $0x1b00] ss:$28 sps:$4 sm:$0xff]  }
 0x676   : > { %15163 = vmatprep.subr.bf16.mxu1 %v17663_v6  ;;  %12057 = vmatprep.mubr.bf16.mxu0 %v18793_v26  ;;  %v17672_v26 = vld [vmem:[%s18585_s19 + $0x15c0] ss:$28 sps:$4 sm:$0xff]   ;;  %v17699_v18 = vld [vmem:[%s18585_s19 + $0x1e48] ss:$28 sps:$4 sm:$0xff]  }
 0x677   : > { %12097 = vmatprep.mubr.bf16.mxu1 %v18879_v23  ;;  %v17673_v23 = vld [vmem:[%s18585_s19 + $0x1438] ss:$28 sps:$4 sm:$0xff]   ;;  %v17703_v6 = vld [vmem:[%s18585_s19 + $0x1e80] ss:$28 sps:$4 sm:$0xff]  }
 0x678   : > { %15142 = vmatpush3.bf16.msra.mxu0 %v17662_v9  ;;  %v17702_v9 = vld [vmem:[%s18585_s19 + $0x1940] ss:$28 sps:$4 sm:$0xff]  }
 0x679   : > { %15164 = vmatpush3.bf16.msra.mxu1 %v17664_v51  ;;  %15143 = vmatprep.subr.bf16.mxu0 %v17665_v11  ;;  %v17707_v51 = vld [vmem:[%s18585_s19 + $0x1eb8] ss:$28 sps:$4 sm:$0xff]  }
 0x67a   : > { %15165 = vmatprep.subr.bf16.mxu1 %v17667_v15  ;;  %v17706_v11 = vld [vmem:[%s18585_s19 + $0x1978] ss:$28 sps:$4 sm:$0xff]  }
 0x67b   : > { %v17708_v15 = vld [vmem:[%s18585_s19 + $0x1cf8] ss:$28 sps:$4 sm:$0xff]  }
 0x67c   : > { %15144 = vmatpush3.bf16.msra.mxu0 %v17666_v20  ;;  %v17709_v20 = vld [vmem:[%s18585_s19 + $0x1b70] ss:$28 sps:$4 sm:$0xff]  }
 0x67d   : > { %15166 = vmatpush3.bf16.msra.mxu1 %v17668_v39  ;;  %15145 = vmatprep.subr.bf16.mxu0 %v17669_v12  ;;  %v17711_v39 = vld [vmem:[%s18585_s19 + $0x1ef0] ss:$28 sps:$4 sm:$0xff]  }
 0x67e   : > { %15167 = vmatprep.subr.bf16.mxu1 %v17671_v4  ;;  %v17710_v12 = vld [vmem:[%s18585_s19 + $0x19b0] ss:$28 sps:$4 sm:$0xff]  }
 0x67f   : > { %v17712_v4 = vld [vmem:[%s18585_s19 + $0x1d30] ss:$28 sps:$4 sm:$0xff]  }
 0x680   : > { %15146 = vmatpush3.bf16.msra.mxu0 %v17670_v1  ;;  %v17713_v1 = vld [vmem:[%s18585_s19 + $0x1ba8] ss:$28 sps:$4 sm:$0xff]  }
 0x681   : > { %15168 = vmatpush3.bf16.msra.mxu1 %v17672_v26  ;;  %15147 = vmatprep.subr.bf16.mxu0 %v17673_v23  ;;  %v17715_v26 = vld [vmem:[%s18585_s19 + $0x1f28] ss:$28 sps:$4 sm:$0xff]  }
 0x682   : > { %15169 = vmatprep.subr.bf16.mxu1 %v17675_v22  ;;  %v17714_v23 = vld [vmem:[%s18585_s19 + $0x19e8] ss:$28 sps:$4 sm:$0xff]  }
 0x683   : > { %v17716_v22 = vld [vmem:[%s18585_s19 + $0x1d68] ss:$28 sps:$4 sm:$0xff]  }
 0x684   : > { %15148 = vmatpush3.bf16.msra.mxu0 %v17674_v13  ;;  %v17717_v13 = vld [vmem:[%s18585_s19 + $0x1be0] ss:$28 sps:$4 sm:$0xff]  }
 0x685   : > { %15170 = vmatpush3.bf16.msra.mxu1 %v17676_v14  ;;  %15149 = vmatprep.subr.bf16.mxu0 %v17677_v28  ;;  %v17719_v14 = vld [vmem:[%s18585_s19 + $0x1f60] ss:$28 sps:$4 sm:$0xff]  }
 0x686   : > { %15171 = vmatprep.subr.bf16.mxu1 %v17679_v29  ;;  %v11613_v8 = vpop.f32.mrb[72].mxu0  ;;  %v17718_v28 = vld [vmem:[%s18585_s19 + $0x1a20] ss:$28 sps:$4 sm:$0xff]  }
 0x687   : > { %v11654_v17 = vpop.f32.mrb[72].mxu1  ;;  %v11614_v34 = vadd.f32 %v11613_v8, %v20300_v44  ;;  %v11615_v43 = vpop.f32.mrb[73].mxu0  ;;  %v17685_v44 = vld [vmem:[%s18585_s19 + $0x14e0] ss:$28 sps:$4 sm:$0xff]   ;;  %v17725_v8 = vld [vmem:[%s18585_s19 + $0x2190] ss:$28 sps:$4 sm:$0xff]  }
 0x688   : > { %v11656_v63 = vpop.f32.mrb[73].mxu1  ;;  %v11616_v38 = vadd.f32 %v11615_v43, %v20304_v62  ;;  %v11617_v25 = vpop.f32.mrb[74].mxu0  ;;  %15150 = vmatpush3.bf16.msra.mxu0 %v17678_v3  ;;  %v17720_v29 = vld [vmem:[%s18585_s19 + $0x1da0] ss:$28 sps:$4 sm:$0xff]   ;;  %v17721_v3 = vld [vmem:[%s18585_s19 + $0x2158] ss:$28 sps:$4 sm:$0xff]  }
 0x689   : > { %15172 = vmatpush3.bf16.msra.mxu1 %v17680_v45  ;;  %v11658_v27 = vpop.f32.mrb[74].mxu1  ;;  %v20378_v30 = vadd.f32 %v11654_v17, %v11614_v34  ;;  %v11618_v19 = vpop.f32.mrb[75].mxu0  ;;  %15151 = vmatprep.subr.bf16.mxu0 %v17681_v7  ;;  %v17723_v45 = vld [vmem:[%s18585_s19 + $0x24d8] ss:$28 sps:$4 sm:$0xff]   ;;  %v17727_v17 = vld [vmem:[%s18585_s19 + $0x2510] ss:$28 sps:$4 sm:$0xff]  }
 0x68a   : > { %15173 = vmatprep.subr.bf16.mxu1 %v17683_v31  ;;  %v11659_v62 = vpop.f32.mrb[75].mxu1  ;;  %v20382_v33 = vadd.f32 %v11656_v63, %v11616_v38  ;;  %v17722_v7 = vld [vmem:[%s18585_s19 + $0x1f98] ss:$28 sps:$4 sm:$0xff]   ;;  %v17726_v34 = vld [vmem:[%s18585_s19 + $0x1fd0] ss:$28 sps:$4 sm:$0xff]  }
 0x68b   : > { %v17724_v31 = vld [vmem:[%s18585_s19 + $0x2318] ss:$28 sps:$4 sm:$0xff]   ;;  %v17728_v43 = vld [vmem:[%s18585_s19 + $0x2350] ss:$28 sps:$4 sm:$0xff]   ;;  %v17729_v63 = vld [vmem:[%s18585_s19 + $0x21c8] ss:$28 sps:$4 sm:$0xff]  }
 0x68c   : > { %15152 = vmatpush3.bf16.msra.mxu0 %v17682_v52  ;;  %v17731_v38 = vld [vmem:[%s18585_s19 + $0x2548] ss:$28 sps:$4 sm:$0xff]   ;;  %v17733_v25 = vld [vmem:[%s18585_s19 + $0x2200] ss:$28 sps:$4 sm:$0xff]   ;;  %v17739_v27 = vld [vmem:[%s18585_s19 + $0x25b8] ss:$28 sps:$4 sm:$0xff]  }
 0x68d   : > { %15174 = vmatpush3.bf16.msra.mxu1 %v17684_v37  ;;  %15153 = vmatprep.subr.bf16.mxu0 %v17685_v44  ;;  %v17735_v52 = vld [vmem:[%s18585_s19 + $0x2580] ss:$28 sps:$4 sm:$0xff]   ;;  %v17738_v19 = vld [vmem:[%s18585_s19 + $0x2078] ss:$28 sps:$4 sm:$0xff]   ;;  %v17743_v62 = vld [vmem:[%s18585_s19 + $0x25f0] ss:$28 sps:$4 sm:$0xff]  }
 0x68e   : > { %15175 = vmatprep.subr.bf16.mxu1 %v17687_v32  ;;  %v17734_v37 = vld [vmem:[%s18585_s19 + $0x2040] ss:$28 sps:$4 sm:$0xff]   ;;  %v17740_v44 = vld [vmem:[%s18585_s19 + $0x23f8] ss:$28 sps:$4 sm:$0xff]   ;;  %v17741_v32 = vld [vmem:[%s18585_s19 + $0x2270] ss:$28 sps:$4 sm:$0xff]  }
 0x690   : > { %15154 = vmatpush3.bf16.msra.mxu0 %v17686_v16  ;;  %v17742_v16 = vld [vmem:[%s18585_s19 + $0x20b0] ss:$28 sps:$4 sm:$0xff]  }
 0x691   : > { %15176 = vmatpush3.bf16.msra.mxu1 %v17688_v10  ;;  %15183 = vmatprep.subr.bf16.mxu0 %v17689_v48  ;;  %v17744_v10 = vld [vmem:[%s18585_s19 + $0x2430] ss:$28 sps:$4 sm:$0xff]   ;;  %v17745_v48 = vld [vmem:[%s18585_s19 + $0x22a8] ss:$28 sps:$4 sm:$0xff]  }
 0x692   : > { %15205 = vmatprep.subr.bf16.mxu1 %v17691_v54  ;;  %v17747_v54 = vld [vmem:[%s18585_s19 + $0x2628] ss:$28 sps:$4 sm:$0xff]  }
 0x693   : > { %12058 = vmatmul.mubr.bf16.vlgmr.msra.gmra.mrb[92].mxu0 %v18867_v40  ;;  %v17698_v40 = vld [vmem:[%s18585_s19 + $0x1908] ss:$28 sps:$4 sm:$0xff]  }
 0x694   : > { %12098 = vmatmul.mubr.bf16.vlgmr.msra.gmra.mrb[96].mxu1 %v18954_v60  ;;  %15184 = vmatpush3.bf16.msra.mxu0 %v17690_v46  ;;  %v17700_v60 = vld [vmem:[%s18585_s19 + $0x1c88] ss:$28 sps:$4 sm:$0xff]  }
 0x695   : > { %15206 = vmatpush3.bf16.msra.mxu1 %v17692_v35  ;;  %15185 = vmatprep.subr.bf16.mxu0 %v17693_v57 }
 0x696   : > { %15207 = vmatprep.subr.bf16.mxu1 %v17695_v21  ;;  %12137 = vmatprep.mubr.bf16.mxu0 %v18883_v24  ;;  %v17704_v24 = vld [vmem:[%s18585_s19 + $0x1cc0] ss:$28 sps:$4 sm:$0xff]  }
 0x697   : > { %12177 = vmatprep.mubr.bf16.mxu1 %v18969_v41  ;;  %v17705_v41 = vld [vmem:[%s18585_s19 + $0x1b38] ss:$28 sps:$4 sm:$0xff]  }
 0x698   : > { %15186 = vmatpush3.bf16.msra.mxu0 %v17694_v0 }
 0x699   : > { %15208 = vmatpush3.bf16.msra.mxu1 %v17696_v2  ;;  %15187 = vmatprep.subr.bf16.mxu0 %v17697_v36 }
 0x69a   : > { %15209 = vmatprep.subr.bf16.mxu1 %v17699_v18  ;;  %v17746_v18 = vld [vmem:[%s18585_s19 + $0x20e8] ss:$28 sps:$4 sm:$0xff]  }
 0x69c   : > { %15188 = vmatpush3.bf16.msra.mxu0 %v17698_v40  ;;  %v17748_v40 = vld [vmem:[%s18585_s19 + $0x2468] ss:$28 sps:$4 sm:$0xff]  }
 0x69d   : > { %15210 = vmatpush3.bf16.msra.mxu1 %v17700_v60  ;;  %15189 = vmatprep.subr.bf16.mxu0 %v17701_v5 }
 0x69e   : > { %15211 = vmatprep.subr.bf16.mxu1 %v17703_v6 }
 0x6a0   : > { %15190 = vmatpush3.bf16.msra.mxu0 %v17702_v9  ;;  %v17751_v9 = vld [vmem:[%s18585_s19 + $0x2660] ss:$28 sps:$4 sm:$0xff]  }
 0x6a1   : > { %15212 = vmatpush3.bf16.msra.mxu1 %v17704_v24  ;;  %15191 = vmatprep.subr.bf16.mxu0 %v17705_v41  ;;  %v17750_v41 = vld [vmem:[%s18585_s19 + $0x2120] ss:$28 sps:$4 sm:$0xff]  }
 0x6a2   : > { %15213 = vmatprep.subr.bf16.mxu1 %v17707_v51  ;;  %v17752_v51 = vld [vmem:[%s18585_s19 + $0x24a0] ss:$28 sps:$4 sm:$0xff]  }
 0x6a4   : > { %15192 = vmatpush3.bf16.msra.mxu0 %v17706_v11  ;;  %v17753_v11 = vld [vmem:[%s18585_s19 + $0x2858] ss:$28 sps:$4 sm:$0xff]  }
 0x6a5   : > { %15214 = vmatpush3.bf16.msra.mxu1 %v17708_v15  ;;  %15193 = vmatprep.subr.bf16.mxu0 %v17709_v20  ;;  %v17755_v15 = vld [vmem:[%s18585_s19 + $0x2bd8] ss:$28 sps:$4 sm:$0xff]  }
 0x6a6   : > { %15215 = vmatprep.subr.bf16.mxu1 %v17711_v39  ;;  %v17754_v20 = vld [vmem:[%s18585_s19 + $0x2698] ss:$28 sps:$4 sm:$0xff]  }
 0x6a7   : > { %v17756_v39 = vld [vmem:[%s18585_s19 + $0x2a18] ss:$28 sps:$4 sm:$0xff]  }
 0x6a8   : > { %15194 = vmatpush3.bf16.msra.mxu0 %v17710_v12  ;;  %v17757_v12 = vld [vmem:[%s18585_s19 + $0x2890] ss:$28 sps:$4 sm:$0xff]  }
 0x6a9   : > { %15216 = vmatpush3.bf16.msra.mxu1 %v17712_v4  ;;  %15195 = vmatprep.subr.bf16.mxu0 %v17713_v1  ;;  %v17759_v4 = vld [vmem:[%s18585_s19 + $0x2c10] ss:$28 sps:$4 sm:$0xff]  }
 0x6aa   : > { %15217 = vmatprep.subr.bf16.mxu1 %v17715_v26  ;;  %v17758_v1 = vld [vmem:[%s18585_s19 + $0x26d0] ss:$28 sps:$4 sm:$0xff]  }
 0x6ab   : > { %v17760_v26 = vld [vmem:[%s18585_s19 + $0x2a50] ss:$28 sps:$4 sm:$0xff]  }
 0x6ac   : > { %15196 = vmatpush3.bf16.msra.mxu0 %v17714_v23  ;;  %v17761_v23 = vld [vmem:[%s18585_s19 + $0x28c8] ss:$28 sps:$4 sm:$0xff]  }
 0x6ad   : > { %15218 = vmatpush3.bf16.msra.mxu1 %v17716_v22  ;;  %15197 = vmatprep.subr.bf16.mxu0 %v17717_v13  ;;  %v17763_v22 = vld [vmem:[%s18585_s19 + $0x2c48] ss:$28 sps:$4 sm:$0xff]   ;;  %v17765_v13 = vld [vmem:[%s18585_s19 + $0x2900] ss:$28 sps:$4 sm:$0xff]  }
 0x6ae   : > { %15219 = vmatprep.subr.bf16.mxu1 %v17719_v14  ;;  %v17767_v14 = vld [vmem:[%s18585_s19 + $0x2c80] ss:$28 sps:$4 sm:$0xff]  }
 0x6b0   : > { %15198 = vmatpush3.bf16.msra.mxu0 %v17718_v28  ;;  %v17766_v28 = vld [vmem:[%s18585_s19 + $0x2740] ss:$28 sps:$4 sm:$0xff]  }
 0x6b1   : > { %15220 = vmatpush3.bf16.msra.mxu1 %v17720_v29  ;;  %15227 = vmatprep.subr.bf16.mxu0 %v17721_v3  ;;  %v17771_v29 = vld [vmem:[%s18585_s19 + $0x2cb8] ss:$28 sps:$4 sm:$0xff]  }
 0x6b2   : > { %15249 = vmatprep.subr.bf16.mxu1 %v17723_v45  ;;  %v17770_v3 = vld [vmem:[%s18585_s19 + $0x2778] ss:$28 sps:$4 sm:$0xff]  }
 0x6b3   : > { %12138 = vmatmul.mubr.bf16.vlgmr.msra.gmra.mrb[96].mxu0 %v18958_v61  ;;  %v17730_v61 = vld [vmem:[%s18585_s19 + $0x2008] ss:$28 sps:$4 sm:$0xff]   ;;  %v17772_v45 = vld [vmem:[%s18585_s19 + $0x2af8] ss:$28 sps:$4 sm:$0xff]  }
 0x6b4   : > { %12178 = vmatmul.mubr.bf16.vlgmr.msra.gmra.mrb[100].mxu1 %v19050_v49  ;;  %15228 = vmatpush3.bf16.msra.mxu0 %v17722_v7  ;;  %v17732_v49 = vld [vmem:[%s18585_s19 + $0x2388] ss:$28 sps:$4 sm:$0xff]   ;;  %v17773_v7 = vld [vmem:[%s18585_s19 + $0x2970] ss:$28 sps:$4 sm:$0xff]  }
 0x6b5   : > { %15250 = vmatpush3.bf16.msra.mxu1 %v17724_v31  ;;  %15229 = vmatprep.subr.bf16.mxu0 %v17725_v8  ;;  %v17775_v31 = vld [vmem:[%s18585_s19 + $0x2cf0] ss:$28 sps:$4 sm:$0xff]  }
 0x6b6   : > { %15251 = vmatprep.subr.bf16.mxu1 %v17727_v17  ;;  %12217 = vmatprep.mubr.bf16.mxu0 %v18973_v42  ;;  %v17736_v42 = vld [vmem:[%s18585_s19 + $0x23c0] ss:$28 sps:$4 sm:$0xff]   ;;  %v17774_v8 = vld [vmem:[%s18585_s19 + $0x27b0] ss:$28 sps:$4 sm:$0xff]  }
 0x6b7   : > { %12257 = vmatprep.mubr.bf16.mxu1 %v19063_v55  ;;  %v17737_v55 = vld [vmem:[%s18585_s19 + $0x2238] ss:$28 sps:$4 sm:$0xff]   ;;  %v17776_v17 = vld [vmem:[%s18585_s19 + $0x2b30] ss:$28 sps:$4 sm:$0xff]  }
 0x6b8   : > { %15230 = vmatpush3.bf16.msra.mxu0 %v17726_v34  ;;  %v17777_v34 = vld [vmem:[%s18585_s19 + $0x29a8] ss:$28 sps:$4 sm:$0xff]  }
 0x6b9   : > { %15252 = vmatpush3.bf16.msra.mxu1 %v17728_v43  ;;  %15231 = vmatprep.subr.bf16.mxu0 %v17729_v63  ;;  %v17779_v43 = vld [vmem:[%s18585_s19 + $0x2d28] ss:$28 sps:$4 sm:$0xff]  }
 0x6ba   : > { %15253 = vmatprep.subr.bf16.mxu1 %v17731_v38 }
 0x6bc   : > { %15232 = vmatpush3.bf16.msra.mxu0 %v17730_v61  ;;  %v17778_v61 = vld [vmem:[%s18585_s19 + $0x27e8] ss:$28 sps:$4 sm:$0xff]  }
 0x6bd   : > { %15254 = vmatpush3.bf16.msra.mxu1 %v17732_v49  ;;  %15233 = vmatprep.subr.bf16.mxu0 %v17733_v25  ;;  %v17780_v49 = vld [vmem:[%s18585_s19 + $0x2b68] ss:$28 sps:$4 sm:$0xff]  }
 0x6be   : > { %15255 = vmatprep.subr.bf16.mxu1 %v17735_v52  ;;  %v17781_v52 = vld [vmem:[%s18585_s19 + $0x29e0] ss:$28 sps:$4 sm:$0xff]  }
 0x6c0   : > { %15234 = vmatpush3.bf16.msra.mxu0 %v17734_v37  ;;  %v17783_v37 = vld [vmem:[%s18585_s19 + $0x2d60] ss:$28 sps:$4 sm:$0xff]  }
 0x6c1   : > { %15256 = vmatpush3.bf16.msra.mxu1 %v17736_v42  ;;  %15235 = vmatprep.subr.bf16.mxu0 %v17737_v55  ;;  %v17782_v55 = vld [vmem:[%s18585_s19 + $0x2820] ss:$28 sps:$4 sm:$0xff]  }
 0x6c2   : > { %15257 = vmatprep.subr.bf16.mxu1 %v17739_v27  ;;  %v17784_v27 = vld [vmem:[%s18585_s19 + $0x2ba0] ss:$28 sps:$4 sm:$0xff]  }
 0x6c4   : > { %15236 = vmatpush3.bf16.msra.mxu0 %v17738_v19  ;;  %v17785_v19 = vld [vmem:[%s18585_s19 + $0x2d98] ss:$28 sps:$4 sm:$0xff]  }
 0x6c5   : > { %15258 = vmatpush3.bf16.msra.mxu1 %v17740_v44  ;;  %15237 = vmatprep.subr.bf16.mxu0 %v17741_v32  ;;  %v18217_v44 = vmov 0.0   ;;  %v17786_v32 = vld [vmem:[%s18585_s19 + $0x2dd0] ss:$28 sps:$4 sm:$0xff]  }
 0x6c6   : > { %15259 = vmatprep.subr.bf16.mxu1 %v17743_v62  ;;  %v11695_v46 = vpop.f32.mrb[76].mxu0  ;;  %v17787_v62 = vld [vmem:[%s18585_s19 + $0x2e08] ss:$28 sps:$4 sm:$0xff]  }
 0x6c7   : > { %v11736_v35 = vpop.f32.mrb[76].mxu1  ;;  %v11696_v57 = vadd.f32 %v11695_v46, %v20378_v30  ;;  %v11697_v21 = vpop.f32.mrb[77].mxu0  ;;  %v17749_v30 = vld [vmem:[%s18585_s19 + $0x22e0] ss:$28 sps:$4 sm:$0xff]  }
 0x6c8   : > { %v11738_v0 = vpop.f32.mrb[77].mxu1  ;;  %v11698_v2 = vadd.f32 %v11697_v21, %v20382_v33  ;;  %v11699_v36 = vpop.f32.mrb[78].mxu0  ;;  %15238 = vmatpush3.bf16.msra.mxu0 %v17742_v16  ;;  %v17788_v16 = vld [vmem:[%s18585_s19 + $0x2e40] ss:$28 sps:$4 sm:$0xff]  }
 0x6c9   : > { %15260 = vmatpush3.bf16.msra.mxu1 %v17744_v10  ;;  %v11740_v60 = vpop.f32.mrb[78].mxu1  ;;  %v20456_v5 = vadd.f32 %v11736_v35, %v11696_v57  ;;  %v11700_v6 = vpop.f32.mrb[79].mxu0  ;;  %15239 = vmatprep.subr.bf16.mxu0 %v17745_v48  ;;  %v17789_v10 = vld [vmem:[%s18585_s19 + $0x2e78] ss:$28 sps:$4 sm:$0xff]  }
 0x6ca   : > { %15261 = vmatprep.subr.bf16.mxu1 %v17747_v54  ;;  %v11741_v33 = vpop.f32.mrb[79].mxu1  ;;  %v20460_v24 = vadd.f32 %v11738_v0, %v11698_v2  ;;  %v487_v57 = vld [vmem:[#allocation2 + $0x20] sm:$0xff]  ;;  %v17791_v2 = vld [vmem:[%s18585_s19 + $0x2ee8] ss:$28 sps:$4 sm:$0xff]   ;;  %v488_v60 = vld [vmem:[#allocation2 + $0x28] sm:$0xff] }
 0x6cc   : > { %15240 = vmatpush3.bf16.msra.mxu0 %v17746_v18 }
 0x6cd   : > { %15262 = vmatpush3.bf16.msra.mxu1 %v17748_v40  ;;  %15241 = vmatprep.subr.bf16.mxu0 %v17749_v30 }
 0x6ce   : > { %15263 = vmatprep.subr.bf16.mxu1 %v17751_v9 }
 0x6d0   : > { %15242 = vmatpush3.bf16.msra.mxu0 %v17750_v41  ;;  %v17792_v41 = vld [vmem:[%s18585_s19 + $0x2f20] ss:$28 sps:$4 sm:$0xff]  }
 0x6d1   : > { %15264 = vmatpush3.bf16.msra.mxu1 %v17752_v51  ;;  %15271 = vmatprep.subr.bf16.mxu0 %v17753_v11 }
 0x6d2   : > { %15293 = vmatprep.subr.bf16.mxu1 %v17755_v15 }
 0x6d3   : > { %12218 = vmatmul.mubr.bf16.vlgmr.msra.gmra.mrb[100].mxu0 %v19054_v50  ;;  %v17762_v50 = vld [vmem:[%s18585_s19 + $0x2708] ss:$28 sps:$4 sm:$0xff]  }
 0x6d4   : > { %12258 = vmatmul.mubr.bf16.vlgmr.msra.gmra.mrb[104].mxu1 %v19146_v47  ;;  %15272 = vmatpush3.bf16.msra.mxu0 %v17754_v20  ;;  %v17764_v47 = vld [vmem:[%s18585_s19 + $0x2a88] ss:$28 sps:$4 sm:$0xff]  }
 0x6d5   : > { %15294 = vmatpush3.bf16.msra.mxu1 %v17756_v39  ;;  %15273 = vmatprep.subr.bf16.mxu0 %v17757_v12 }
 0x6d6   : > { %15295 = vmatprep.subr.bf16.mxu1 %v17759_v4  ;;  %12297 = vmatprep.mubr.bf16.mxu0 %v19067_v59  ;;  %v17768_v59 = vld [vmem:[%s18585_s19 + $0x2ac0] ss:$28 sps:$4 sm:$0xff]  }
 0x6d7   : > { %12337 = vmatprep.mubr.bf16.mxu1 %v19156_v56  ;;  %v17769_v56 = vld [vmem:[%s18585_s19 + $0x2938] ss:$28 sps:$4 sm:$0xff]  }
 0x6d8   : > { %15274 = vmatpush3.bf16.msra.mxu0 %v17758_v1 }
 0x6d9   : > { %15296 = vmatpush3.bf16.msra.mxu1 %v17760_v26  ;;  %15275 = vmatprep.subr.bf16.mxu0 %v17761_v23 }
 0x6da   : > { %15297 = vmatprep.subr.bf16.mxu1 %v17763_v22 }
 0x6dc   : > { %15276 = vmatpush3.bf16.msra.mxu0 %v17762_v50 }
 0x6dd   : > { %15298 = vmatpush3.bf16.msra.mxu1 %v17764_v47  ;;  %15277 = vmatprep.subr.bf16.mxu0 %v17765_v13 }
 0x6de   : > { %15299 = vmatprep.subr.bf16.mxu1 %v17767_v14 }
 0x6e0   : > { %15278 = vmatpush3.bf16.msra.mxu0 %v17766_v28 }
 0x6e1   : > { %15300 = vmatpush3.bf16.msra.mxu1 %v17768_v59  ;;  %15279 = vmatprep.subr.bf16.mxu0 %v17769_v56 }
 0x6e2   : > { %15301 = vmatprep.subr.bf16.mxu1 %v17771_v29 }
 0x6e4   : > { %15280 = vmatpush3.bf16.msra.mxu0 %v17770_v3 }
 0x6e5   : > { %15302 = vmatpush3.bf16.msra.mxu1 %v17772_v45  ;;  %15281 = vmatprep.subr.bf16.mxu0 %v17773_v7 }
 0x6e6   : > { %15303 = vmatprep.subr.bf16.mxu1 %v17775_v31 }
 0x6e7   : > { %v11818_v63 = vpop.f32.mrb[80].mxu1 }
 0x6e8   : > { %v11820_v38 = vpop.f32.mrb[81].mxu1  ;;  %15282 = vmatpush3.bf16.msra.mxu0 %v17774_v8 }
 0x6e9   : > { %15304 = vmatpush3.bf16.msra.mxu1 %v17776_v17  ;;  %v11822_v25 = vpop.f32.mrb[82].mxu1  ;;  %15283 = vmatprep.subr.bf16.mxu0 %v17777_v34 }
 0x6ea   : > { %15305 = vmatprep.subr.bf16.mxu1 %v17779_v43  ;;  %v11823_v42 = vpop.f32.mrb[83].mxu1 }
 0x6ec   : > { %15284 = vmatpush3.bf16.msra.mxu0 %v17778_v61 }
 0x6ed   : > { %15306 = vmatpush3.bf16.msra.mxu1 %v17780_v49  ;;  %15285 = vmatprep.subr.bf16.mxu0 %v17781_v52 }
 0x6ee   : > { %15307 = vmatprep.subr.bf16.mxu1 %v17783_v37 }
 0x6f0   : > { %15286 = vmatpush3.bf16.msra.mxu0 %v17782_v55 }
 0x6f1   : > { %15308 = vmatpush3.bf16.msra.mxu1 %v17784_v27  ;;  %15408 = vmatprep.subr.bf16.mxu0 %v18217_v44 }
 0x6f3   : > { %12298 = vmatmul.mubr.bf16.vlgmr.msra.gmra.mrb[104].mxu0 %v19150_v53  ;;  %v17790_v53 = vld [vmem:[%s18585_s19 + $0x2eb0] ss:$28 sps:$4 sm:$0xff]  }
 0x6f4   : > { %12338 = vmatmul.mubr.bf16.vlgmr.msra.gmra.mrb[108].mxu1 %v19234_v58  ;;  %15409 = vmatpush3.bf16.msra.mxu0 %v17785_v19 }
 0x6f5   : > { %15424 = vmatprep.mubr.msk.bf16.mxu0 %vm18218_vm0, %v18217_v44  ;;  %15410 = vmatprep.subr.bf16.mxu0 %v18217_v44 }
 0x6f8   : > { %15411 = vmatpush3.bf16.msra.mxu0 %v17786_v32 }
 0x6f9   : > { %15412 = vmatprep.subr.bf16.mxu0 %v18217_v44 }
 0x6fc   : > { %15413 = vmatpush3.bf16.msra.mxu0 %v17787_v62 }
 0x6fd   : > { %15414 = vmatprep.subr.bf16.mxu0 %v18217_v44 }
 0x700   : > { %15415 = vmatpush3.bf16.msra.mxu0 %v17788_v16 }
 0x701   : > { %15416 = vmatprep.subr.bf16.mxu0 %v18217_v44 }
 0x704   : > { %15417 = vmatpush3.bf16.msra.mxu0 %v17789_v10 }
 0x705   : > { %15418 = vmatprep.subr.bf16.mxu0 %v18217_v44 }
 0x706   : > { %v11777_v58 = vpop.f32.mrb[80].mxu0 }
 0x707   : > { %v15045_v48 = vpop.f32.mrb[84].mxu1  ;;  %v11778_v54 = vadd.f32 %v11777_v58, %v20456_v5  ;;  %v11779_v46 = vpop.f32.mrb[81].mxu0 }
 0x708   : > { %v15046_v35 = vpop.f32.mrb[85].mxu1  ;;  %v11780_v21 = vadd.f32 %v11779_v46, %v20460_v24  ;;  %v11781_v0 = vpop.f32.mrb[82].mxu0  ;;  %15419 = vmatpush3.bf16.msra.mxu0 %v17790_v53  ;;  %v17795_v24 = vld [vmem:[%s18578_s12 + $0x68] ss:$0 sps:$4 sm:$0xff]  }
 0x709   : > { %v15047_v36 = vadd.f32 %v15046_v35, %v15045_v48  ;;  %v15048_v18 = vpop.f32.mrb[86].mxu1  ;;  %v11819_v40 = vadd.f32 %v11818_v63, %v11778_v54  ;;  %v11782_v6 = vpop.f32.mrb[83].mxu0  ;;  %15420 = vmatprep.subr.bf16.mxu0 %v18217_v44 }
 0x70a   : > { %v15049_v30 = vpop.f32.mrb[87].mxu1  ;;  %v11821_v9 = vadd.f32 %v11820_v38, %v11780_v21 }
 0x70b   : > { %v12389_v33 = vadd.f32 %v11819_v40, %v487_v57 }
 0x70c   : > { %v12390_v5 = vadd.f32 %v11821_v9, %v488_v60  ;;  %15421 = vmatpush3.bf16.msra.mxu0 %v17791_v2 }
 0x70d   : > { %12396 = vst [vmem:[#allocation2 + $0x20] sm:$0xff] %v12389_v33  ;;  %15422 = vmatprep.subr.bf16.mxu0 %v18217_v44 }
 0x70e   : > { %12397 = vst [vmem:[#allocation2 + $0x28] sm:$0xff] %v12390_v5 }
 0x710   : > { %15423 = vmatpush3.bf16.msra.mxu0 %v17792_v41 }
 0x713   : > { %15425 = vmatmul.mubr.bf16.vlgmr.msra.gmra.mrb[108].mxu0 %v17795_v24 }
 0x726   : > { %v15067_v51 = vpop.f32.mrb[84].mxu0 }
 0x727   : > { %v15089_v11 = vpop.f32.mrb[88].mxu1  ;;  %v15068_v15 = vpop.f32.mrb[85].mxu0 }
 0x728   : > { %v15090_v20 = vpop.f32.mrb[89].mxu1  ;;  %v15069_v39 = vadd.f32 %v15068_v15, %v15067_v51  ;;  %v15070_v12 = vpop.f32.mrb[86].mxu0 }
 0x729   : > { %v15091_v4 = vadd.f32 %v15090_v20, %v15089_v11  ;;  %v15092_v1 = vpop.f32.mrb[90].mxu1  ;;  %v15071_v26 = vpop.f32.mrb[87].mxu0 }
 0x72a   : > { %v15093_v23 = vpop.f32.mrb[91].mxu1  ;;  %v11900_v22 = vadd.f32 %v15069_v39, %v15047_v36  ;;  %v489_v26 = vld [vmem:[#allocation2 + $0x30] sm:$0xff] }
 0x72c   : > { %v11940_v50 = vadd.f32 %v15091_v4, %v11900_v22 }
 0x746   : > { %v15111_v47 = vpop.f32.mrb[88].mxu0 }
 0x747   : > { %v15133_v13 = vpop.f32.mrb[92].mxu1  ;;  %v15112_v14 = vpop.f32.mrb[89].mxu0 }
 0x748   : > { %v15134_v28 = vpop.f32.mrb[93].mxu1  ;;  %v15113_v59 = vadd.f32 %v15112_v14, %v15111_v47  ;;  %v15114_v56 = vpop.f32.mrb[90].mxu0 }
 0x749   : > { %v15135_v29 = vadd.f32 %v15134_v28, %v15133_v13  ;;  %v15136_v3 = vpop.f32.mrb[94].mxu1  ;;  %v15115_v45 = vpop.f32.mrb[91].mxu0  ;;  %v17796_v28 = vld [vmem:[#allocation11 + $0x40] sm:$0xff] (!%p14956_p9)  }
 0x74a   : > { %v15137_v7 = vpop.f32.mrb[95].mxu1  ;;  %v11980_v31 = vadd.f32 %v15113_v59, %v11940_v50  ;;  %v17797_v59 = vld [vmem:[#allocation11 + $0xc0] sm:$0xff] (!%p14956_p9)   ;;  %15324 = vmatprep.subr.bf16.mxu0 (!%p14956_p9), %v17796_v28  ;;  %v17800_v3 = vld [vmem:[#allocation11 + $0x48] sm:$0xff] (!%p14956_p9)  }
 0x74b   : > { %v17798_v56 = vld [vmem:[#allocation11] sm:$0xff] (!%p14956_p9)   ;;  %15346 = vmatprep.subr.bf16.mxu1 (!%p14956_p9), %v17797_v59  ;;  %v17801_v45 = vld [vmem:[#allocation11 + $0xc8] sm:$0xff] (!%p14956_p9)  }
 0x74c   : > { %v12020_v8 = vadd.f32 %v15135_v29, %v11980_v31  ;;  %v17799_v29 = vld [vmem:[#allocation11 + $0x80] sm:$0xff] (!%p14956_p9)   ;;  %15325 = vmatpush3.bf16.msra.mxu0 (!%p14956_p9), %v17798_v56  ;;  %v17802_v7 = vld [vmem:[#allocation11 + $0x8] sm:$0xff] (!%p14956_p9)  }
 0x74d   : > { %15347 = vmatpush3.bf16.msra.mxu1 (!%p14956_p9), %v17799_v29  ;;  %15326 = vmatprep.subr.bf16.mxu0 (!%p14956_p9), %v17800_v3  ;;  %v17803_v31 = vld [vmem:[#allocation11 + $0x88] sm:$0xff] (!%p14956_p9)   ;;  %v17829_v56 = vld [vmem:[#allocation11 + $0x100] sm:$0xff] (!%p14956_p9)  }
 0x74e   : > { %15348 = vmatprep.subr.bf16.mxu1 (!%p14956_p9), %v17801_v45  ;;  %v17830_v29 = vld [vmem:[#allocation11 + $0x180] sm:$0xff] (!%p14956_p9)  }
 0x750   : > { %15327 = vmatpush3.bf16.msra.mxu0 (!%p14956_p9), %v17802_v7 }
 0x751   : > { %15349 = vmatpush3.bf16.msra.mxu1 (!%p14956_p9), %v17803_v31 }
 0x766   : > { %v15155_v17 = vpop.f32.mrb[92].mxu0 }
 0x767   : > { %v15177_v34 = vpop.f32.mrb[96].mxu1  ;;  %v15156_v43 = vpop.f32.mrb[93].mxu0 }
 0x768   : > { %v15178_v63 = vpop.f32.mrb[97].mxu1  ;;  %v15157_v38 = vadd.f32 %v15156_v43, %v15155_v17  ;;  %v15158_v61 = vpop.f32.mrb[94].mxu0  ;;  %v17805_v17 = vld [vmem:[#allocation11 + $0xd0] sm:$0xff] (!%p14956_p9)  }
 0x769   : > { %v15179_v49 = vadd.f32 %v15178_v63, %v15177_v34  ;;  %v15180_v25 = vpop.f32.mrb[98].mxu1  ;;  %v15159_v52 = vpop.f32.mrb[95].mxu0  ;;  %v17806_v34 = vld [vmem:[#allocation11 + $0x10] sm:$0xff] (!%p14956_p9)   ;;  %15350 = vmatprep.subr.bf16.mxu1 (!%p14956_p9), %v17805_v17  ;;  %v17808_v63 = vld [vmem:[#allocation11 + $0x58] sm:$0xff] (!%p14956_p9)   ;;  %v17832_v17 = vld [vmem:[#allocation11 + $0x108] sm:$0xff] (!%p14956_p9)  }
 0x76a   : > { %v15181_v37 = vpop.f32.mrb[99].mxu1  ;;  %v12060_v42 = vadd.f32 %v15157_v38, %v12020_v8  ;;  %v17804_v8 = vld [vmem:[#allocation11 + $0x50] sm:$0xff] (!%p14956_p9)   ;;  %v17809_v38 = vld [vmem:[#allocation11 + $0xd8] sm:$0xff] (!%p14956_p9)   ;;  %v17812_v25 = vld [vmem:[#allocation11 + $0x60] sm:$0xff] (!%p14956_p9)  }
 0x76b   : > { %15328 = vmatprep.subr.bf16.mxu0 (!%p14956_p9), %v17804_v8  ;;  %v17807_v43 = vld [vmem:[#allocation11 + $0x90] sm:$0xff] (!%p14956_p9)   ;;  %v17810_v61 = vld [vmem:[#allocation11 + $0x18] sm:$0xff] (!%p14956_p9)   ;;  %v17813_v52 = vld [vmem:[#allocation11 + $0xe0] sm:$0xff] (!%p14956_p9)  }
 0x76c   : > { %v12100_v55 = vadd.f32 %v15179_v49, %v12060_v42  ;;  %15329 = vmatpush3.bf16.msra.mxu0 (!%p14956_p9), %v17806_v34  ;;  %15351 = vmatpush3.bf16.msra.mxu1 (!%p14956_p9), %v17807_v43  ;;  %v17811_v49 = vld [vmem:[#allocation11 + $0x98] sm:$0xff] (!%p14956_p9)   ;;  %v17814_v37 = vld [vmem:[#allocation11 + $0x20] sm:$0xff] (!%p14956_p9)   ;;  %v17831_v8 = vld [vmem:[#allocation11 + $0x148] sm:$0xff] (!%p14956_p9)  }
 0x76d   : > { %15330 = vmatprep.subr.bf16.mxu0 (!%p14956_p9), %v17808_v63  ;;  %15352 = vmatprep.subr.bf16.mxu1 (!%p14956_p9), %v17809_v38  ;;  %v17815_v42 = vld [vmem:[#allocation11 + $0xa0] sm:$0xff] (!%p14956_p9)   ;;  %v17833_v34 = vld [vmem:[#allocation11 + $0x188] sm:$0xff] (!%p14956_p9)   ;;  %v17834_v43 = vld [vmem:[#allocation11 + $0x150] sm:$0xff] (!%p14956_p9)  }
 0x76e   : > { %v17835_v63 = vld [vmem:[#allocation11 + $0x110] sm:$0xff] (!%p14956_p9)  }
 0x76f   : > { %v17836_v38 = vld [vmem:[#allocation11 + $0x190] sm:$0xff] (!%p14956_p9)  }
 0x770   : > { %15331 = vmatpush3.bf16.msra.mxu0 (!%p14956_p9), %v17810_v61  ;;  %15353 = vmatpush3.bf16.msra.mxu1 (!%p14956_p9), %v17811_v49  ;;  %v17837_v61 = vld [vmem:[#allocation11 + $0x158] sm:$0xff] (!%p14956_p9)  }
 0x771   : > { %15332 = vmatprep.subr.bf16.mxu0 (!%p14956_p9), %v17812_v25  ;;  %15354 = vmatprep.subr.bf16.mxu1 (!%p14956_p9), %v17813_v52  ;;  %v17838_v52 = vld [vmem:[#allocation11 + $0x118] sm:$0xff] (!%p14956_p9)  }
 0x774   : > { %15333 = vmatpush3.bf16.msra.mxu0 (!%p14956_p9), %v17814_v37  ;;  %15355 = vmatpush3.bf16.msra.mxu1 (!%p14956_p9), %v17815_v42  ;;  %v17839_v42 = vld [vmem:[#allocation11 + $0x198] sm:$0xff] (!%p14956_p9)  }
 0x786   : > { %v15199_v27 = vpop.f32.mrb[96].mxu0 }
 0x787   : > { %v15221_v19 = vpop.f32.mrb[100].mxu1  ;;  %v15200_v44 = vpop.f32.mrb[97].mxu0 }
 0x788   : > { %v15222_v32 = vpop.f32.mrb[101].mxu1  ;;  %v15201_v62 = vadd.f32 %v15200_v44, %v15199_v27  ;;  %v15202_v16 = vpop.f32.mrb[98].mxu0  ;;  %v17816_v27 = vld [vmem:[#allocation11 + $0x68] sm:$0xff] (!%p14956_p9)  }
 0x789   : > { %v15223_v10 = vadd.f32 %v15222_v32, %v15221_v19  ;;  %v15224_v53 = vpop.f32.mrb[102].mxu1  ;;  %v15203_v58 = vpop.f32.mrb[99].mxu0  ;;  %v17817_v19 = vld [vmem:[#allocation11 + $0xe8] sm:$0xff] (!%p14956_p9)   ;;  %15334 = vmatprep.subr.bf16.mxu0 (!%p14956_p9), %v17816_v27  ;;  %v17820_v16 = vld [vmem:[#allocation11 + $0x70] sm:$0xff] (!%p14956_p9)  }
 0x78a   : > { %v15225_v48 = vpop.f32.mrb[103].mxu1  ;;  %v12140_v54 = vadd.f32 %v15201_v62, %v12100_v55  ;;  %v12412_v55 = vlaneseq (!%p14956_p9)  ;;  %v17818_v44 = vld [vmem:[#allocation11 + $0x28] sm:$0xff] (!%p14956_p9)   ;;  %15356 = vmatprep.subr.bf16.mxu1 (!%p14956_p9), %v17817_v19  ;;  %v17822_v53 = vld [vmem:[#allocation11 + $0x30] sm:$0xff] (!%p14956_p9)   ;;  %v17841_v19 = vld [vmem:[#allocation11 + $0x120] sm:$0xff] (!%p14956_p9)  }
 0x78b   : > { %v17819_v32 = vld [vmem:[#allocation11 + $0xa8] sm:$0xff] (!%p14956_p9)   ;;  %15335 = vmatpush3.bf16.msra.mxu0 (!%p14956_p9), %v17818_v44  ;;  %v17823_v58 = vld [vmem:[#allocation11 + $0xb0] sm:$0xff] (!%p14956_p9)  }
 0x78c   : > { %v12180_v46 = vadd.f32 %v15223_v10, %v12140_v54  ;;  %v20514_v62 = vshrl.u32 (!%p14956_p9), %v12412_v55, 7  ;;  %15357 = vmatpush3.bf16.msra.mxu1 (!%p14956_p9), %v17819_v32  ;;  %v17821_v10 = vld [vmem:[#allocation11 + $0xf0] sm:$0xff] (!%p14956_p9)   ;;  %15336 = vmatprep.subr.bf16.mxu0 (!%p14956_p9), %v17820_v16  ;;  %v17824_v54 = vld [vmem:[#allocation11 + $0x78] sm:$0xff] (!%p14956_p9)   ;;  %v17840_v55 = vld [vmem:[#allocation11 + $0x160] sm:$0xff] (!%p14956_p9)  }
 0x78d   : > { %15358 = vmatprep.subr.bf16.mxu1 (!%p14956_p9), %v17821_v10  ;;  %v17842_v10 = vld [vmem:[#allocation11 + $0x1a0] sm:$0xff] (!%p14956_p9)  }
 0x78e   : > { %v12418_v48 = vsub.s32 (!%p14956_p9), 1, %v20514_v62  ;;  %v12434_v49 = vsub.s32 (!%p14956_p9), 5, %v20514_v62  ;;  %v12430_v25 = vsub.s32 (!%p14956_p9), 4, %v20514_v62  ;;  %v12438_v37 = vsub.s32 (!%p14956_p9), 6, %v20514_v62 }
 0x78f   : > { %15337 = vmatpush3.bf16.msra.mxu0 (!%p14956_p9), %v17822_v53  ;;  %v17843_v53 = vld [vmem:[#allocation11 + $0x168] sm:$0xff] (!%p14956_p9)  }
 0x790   : > { %15359 = vmatpush3.bf16.msra.mxu1 (!%p14956_p9), %v17823_v58  ;;  %15338 = vmatprep.subr.bf16.mxu0 (!%p14956_p9), %v17824_v54  ;;  %v17844_v54 = vld [vmem:[#allocation11 + $0x128] sm:$0xff] (!%p14956_p9)  }
 0x7a6   : > { %v15243_v35 = vpop.f32.mrb[100].mxu0 }
 0x7a7   : > { %v15265_v57 = vpop.f32.mrb[104].mxu1  ;;  %v15244_v21 = vpop.f32.mrb[101].mxu0 }
 0x7a8   : > { %v15266_v0 = vpop.f32.mrb[105].mxu1  ;;  %v15245_v2 = vadd.f32 %v15244_v21, %v15243_v35  ;;  %v15246_v36 = vpop.f32.mrb[102].mxu0  ;;  %v17825_v35 = vld [vmem:[#allocation11 + $0xf8] sm:$0xff] (!%p14956_p9)  }
 0x7a9   : > { %v15267_v18 = vadd.f32 %v15266_v0, %v15265_v57  ;;  %v15268_v40 = vpop.f32.mrb[106].mxu1  ;;  %v15247_v60 = vpop.f32.mrb[103].mxu0  ;;  %v12414_v57 = vsub.s32 (!%p14956_p9), 0, %v20514_v62  ;;  %v17826_v21 = vld [vmem:[#allocation11 + $0x38] sm:$0xff] (!%p14956_p9)   ;;  %v12422_v0 = vsub.s32 (!%p14956_p9), 2, %v20514_v62  ;;  %15360 = vmatprep.subr.bf16.mxu1 (!%p14956_p9), %v17825_v35  ;;  %v12404_v36 = vld [vmem:[#allocation2 + $0x8] sm:$0xff] (!%p14956_p9) }
 0x7aa   : > { %v15269_v6 = vpop.f32.mrb[107].mxu1  ;;  %v12220_v30 = vadd.f32 %v15245_v2, %v12180_v46  ;;  %v12426_v46 = vsub.s32 (!%p14956_p9), 3, %v20514_v62  ;;  %v17827_v2 = vld [vmem:[#allocation11 + $0xb8] sm:$0xff] (!%p14956_p9)   ;;  %15339 = vmatpush3.bf16.msra.mxu0 (!%p14956_p9), %v17826_v21  ;;  %v12408_v62 = vld [vmem:[#allocation2 + $0x28] sm:$0xff] (!%p14956_p9) }
 0x7ab   : > { %v20522_v40 = vld [vmem:[#allocation9] sm:$0xff] (!%p14956_p9)  ;;  %15361 = vmatpush3.bf16.msra.mxu1 (!%p14956_p9), %v17827_v2 }
 0x7ac   : > { %v12260_v9 = vadd.f32 %v15267_v18, %v12220_v30  ;;  %v20520_v18 = vld [vmem:[#allocation8] sm:$0xff] (!%p14956_p9)  ;;  %v12463_v6 = vrot.slane (!%p14956_p9), %v20522_v40, %v12418_v48  ;;  %v12406_v30 = vld [vmem:[#allocation2 + $0x18] sm:$0xff] (!%p14956_p9)  ;;  %v12479_v44 = vrot.slane (!%p14956_p9), %v20522_v40, %v12434_v49  ;;  %v12475_v35 = vrot.slane (!%p14956_p9), %v20522_v40, %v12430_v25 }
 0x7ad   : > { %v12419_v60 = vrot.slane (!%p14956_p9), %v20520_v18, %v12418_v48  ;;  %v12435_v27 = vrot.slane (!%p14956_p9), %v20520_v18, %v12434_v49  ;;  %v12431_v32 = vrot.slane (!%p14956_p9), %v20520_v18, %v12430_v25  ;;  %v12439_v16 = vrot.slane (!%p14956_p9), %v20520_v18, %v12438_v37  ;;  %v12407_v48 = vld [vmem:[#allocation2 + $0x20] sm:$0xff] (!%p14956_p9) }
 0x7af   : > { %v12452_v58 = vmul.f32 (!%p14956_p9), %v12435_v27, %v12408_v62 }
 0x7b1   : > { %v12496_v21 = vadd.f32 (!%p14956_p9), %v12479_v44, %v12452_v58 }
 0x7c6   : > { %v15287_v33 = vpop.f32.mrb[104].mxu0 }
 0x7c7   : > { %v15309_v5 = vpop.f32.mrb[108].mxu1  ;;  %v15288_v41 = vpop.f32.mrb[105].mxu0 }
 0x7c8   : > { %v15310_v24 = vpop.f32.mrb[109].mxu1  ;;  %v15289_v51 = vadd.f32 %v15288_v41, %v15287_v33  ;;  %v15290_v11 = vpop.f32.mrb[106].mxu0  ;;  %v12471_v33 = vrot.slane (!%p14956_p9), %v20522_v40, %v12426_v46  ;;  %v12405_v41 = vld [vmem:[#allocation2 + $0x10] sm:$0xff] (!%p14956_p9) }
 0x7c9   : > { %v15311_v15 = vadd.f32 %v15310_v24, %v15309_v5  ;;  %v15312_v20 = vpop.f32.mrb[110].mxu1  ;;  %v15291_v39 = vpop.f32.mrb[107].mxu0  ;;  %v12403_v5 = vld [vmem:[#allocation2] sm:$0xff] (!%p14956_p9)  ;;  %v12415_v24 = vrot.slane (!%p14956_p9), %v20520_v18, %v12414_v57  ;;  %v12423_v11 = vrot.slane (!%p14956_p9), %v20520_v18, %v12422_v0 }
 0x7ca   : > { %v15313_v12 = vpop.f32.mrb[111].mxu1  ;;  %v12300_v4 = vadd.f32 %v15289_v51, %v12260_v9  ;;  %v12427_v9 = vrot.slane (!%p14956_p9), %v20520_v18, %v12426_v46  ;;  %v12459_v51 = vrot.slane (!%p14956_p9), %v20522_v40, %v12414_v57  ;;  %v17828_v20 = vld [vmem:[#allocation11 + $0x140] sm:$0xff] (!%p14956_p9)   ;;  %v18219_v39 = vmov (!%p14956_p9), 0.0   ;;  %v17845_v46 = vld [vmem:[#allocation11 + $0x1a8] sm:$0xff] (!%p14956_p9)   ;;  %v17846_v18 = vld [vmem:[#allocation11 + $0x170] sm:$0xff] (!%p14956_p9)  }
 0x7cb   : > { %15428 = vmatprep.subr.bf16.mxu1 (!%p14956_p9), %v18219_v39  ;;  %v12448_v12 = vmul.f32 (!%p14956_p9), %v12419_v60, %v12404_v36  ;;  %15368 = vmatprep.subr.bf16.mxu0 (!%p14956_p9), %v17828_v20  ;;  %v12483_v36 = vrot.slane (!%p14956_p9), %v20522_v40, %v12438_v37  ;;  %v12503_v60 = vmax.f32 (!%p14956_p9), %v12496_v21, 0.0  ;;  %v15013_v37 = vld [vmem:[#allocation12] ss:$0 sm:$0xff] (!%p14956_p9) }
 0x7cc   : > { %v12340_v1 = vadd.f32 %v15311_v15, %v12300_v4  ;;  %v12467_v15 = vrot.slane (!%p14956_p9), %v20522_v40, %v12422_v0  ;;  %v12450_v4 = vmul.f32 (!%p14956_p9), %v12427_v9, %v12406_v30  ;;  %v12451_v0 = vmul.f32 (!%p14956_p9), %v12431_v32, %v12407_v48 }
 0x7cd   : > { %v12510_v30 = vpack.c.bf16 (!%p14956_p9), %v12503_v60, %v12503_v60 }
 0x7ce   : > { %v12495_v9 = vadd.f32 (!%p14956_p9), %v12475_v35, %v12451_v0 }
 0x7d0   : > { %v12502_v40 = vmax.f32 (!%p14956_p9), %v12495_v9, 0.0 }
 0x7e5   : > { %12402 = sbr.rel (%p14956_p9) target bundleno = 2506 (0x9ca), region = 100 }
 0x7e6   : > { %v12379_v23 = vpop.f32.mrb[108].mxu0 }
 0x7e7   : > { %v12380_v22 = vadd.f32 %v12379_v23, %v12340_v1  ;;  %v15426_v50 = vpop.f32.mrb[109].mxu0  ;;  %v12447_v1 = vmul.f32 (!%p14956_p9), %v12415_v24, %v12403_v5  ;;  %v12492_v23 = vadd.f32 (!%p14956_p9), %v12463_v6, %v12448_v12  ;;  %v17847_v6 = vld [vmem:[#allocation11 + $0x130] sm:$0xff] (!%p14956_p9)   ;;  %v17852_v12 = vld [vmem:[#allocation15] sm:$0xff] (!%p14956_p9)  }
 0x7e8   : > { %v12382_v47 = vpop.f32.mrb[110].mxu0  ;;  %v17848_v5 = vld [vmem:[#allocation11 + $0x1b0] sm:$0xff] (!%p14956_p9)  }
 0x7e9   : > { %v12391_v13 = vadd.f32 %v12380_v22, %v489_v26  ;;  %v15427_v14 = vpop.f32.mrb[111].mxu0  ;;  %v12449_v26 = vmul.f32 (!%p14956_p9), %v12423_v11, %v12405_v41  ;;  %v12494_v22 = vadd.f32 (!%p14956_p9), %v12471_v33, %v12450_v4  ;;  %v12491_v50 = vadd.f32 (!%p14956_p9), %v12459_v51, %v12447_v1  ;;  %v17849_v41 = vld [vmem:[#allocation11 + $0x178] sm:$0xff] (!%p14956_p9)   ;;  %v17853_v4 = vld [vmem:[#allocation15 + $0x8] sm:$0xff] (!%p14956_p9)  }
 0x7ea   : > { %v17850_v51 = vld [vmem:[#allocation11 + $0x138] sm:$0xff] (!%p14956_p9)  }
 0x7eb   : > { %12398 = vst [vmem:[#allocation2 + $0x30] sm:$0xff] %v12391_v13  ;;  %v12493_v47 = vadd.f32 (!%p14956_p9), %v12467_v15, %v12449_v26  ;;  %v12499_v13 = vmax.f32 (!%p14956_p9), %v12492_v23, 0.0  ;;  %v12501_v14 = vmax.f32 (!%p14956_p9), %v12494_v22, 0.0  ;;  %v12498_v28 = vmax.f32 (!%p14956_p9), %v12491_v50, 0.0  ;;  %v17851_v11 = vld [vmem:[#allocation11 + $0x1b8] sm:$0xff] (!%p14956_p9)   ;;  %v17856_v23 = vld [vmem:[#allocation15 + $0x20] sm:$0xff] (!%p14956_p9)  }
 0x7ec   : > { %v12509_v15 = vpack.c.bf16 %v12502_v40, %v12502_v40  ;;  %v17854_v1 = vld [vmem:[#allocation15 + $0x10] sm:$0xff]   ;;  %v17855_v26 = vld [vmem:[#allocation15 + $0x18] sm:$0xff]   ;;  %v17857_v22 = vld [vmem:[#allocation15 + $0x28] sm:$0xff]  }
 0x7ed   : > { %v12500_v59 = vmax.f32 %v12493_v47, 0.0  ;;  %v12506_v3 = vpack.c.bf16 %v12499_v13, %v12499_v13  ;;  %v12508_v45 = vpack.c.bf16 %v12501_v14, %v12501_v14  ;;  %v12505_v7 = vpack.c.bf16 %v12498_v28, %v12498_v28  ;;  %v17858_v50 = vld [vmem:[#allocation15 + $0x30] sm:$0xff]   ;;  %v17859_v47 = vld [vmem:[#allocation15 + $0x38] sm:$0xff]  }
 0x7ef   : > { %v12507_v31 = vpack.c.bf16 %v12500_v59, %v12500_v59  ;;  %12992 = vmatprep.mubr.bf16.mxu0 %v12506_v3  ;;  %13032 = vmatprep.mubr.bf16.mxu1 %v12508_v45 }
 0x7f0   : > { %12993 = vmatmul.mubr.bf16.vlgmr.msra.gmra.mrb[0].mxu0 %v12505_v7 }
 0x7f1   : > { %13033 = vmatmul.mubr.bf16.vlgmr.msra.gmra.mrb[0].mxu1 %v12507_v31  ;;  %15369 = vmatpush3.bf16.msra.mxu0 %v17829_v56 }
 0x7f2   : > { %15429 = vmatpush3.bf16.msra.mxu1 %v17830_v29  ;;  %15370 = vmatprep.subr.bf16.mxu0 %v17831_v8  ;;  %v12409_v57 = vld [vmem:[#allocation2 + $0x30] sm:$0xff] }
 0x7f3   : > { %15430 = vmatprep.subr.bf16.mxu1 %v18219_v39  ;;  %15444 = vmatprep.mubr.msk.bf16.mxu1 %vm18220_vm1, %v18219_v39  ;;  %v12453_v2 = vmul.f32 %v12439_v16, %v12409_v57  ;;  %v15015_v16 = vld [vmem:[#allocation17] ss:$0 sm:$0xff] }
 0x7f4   : > { %13072 = vmatprep.mubr.bf16.mxu0 %v12510_v30 }
 0x7f5   : > { %15371 = vmatpush3.bf16.msra.mxu0 %v17832_v17  ;;  %v12497_v33 = vadd.f32 %v12483_v36, %v12453_v2 }
 0x7f6   : > { %15431 = vmatpush3.bf16.msra.mxu1 %v17833_v34  ;;  %15372 = vmatprep.subr.bf16.mxu0 %v17834_v43 }
 0x7f7   : > { %15432 = vmatprep.subr.bf16.mxu1 %v18219_v39  ;;  %v12504_v24 = vmax.f32 %v12497_v33, 0.0 }
 0x7f9   : > { %15373 = vmatpush3.bf16.msra.mxu0 %v17835_v63  ;;  %v12511_v20 = vpack.c.bf16 %v12504_v24, %v12504_v24 }
 0x7fa   : > { %15433 = vmatpush3.bf16.msra.mxu1 %v17836_v38  ;;  %15374 = vmatprep.subr.bf16.mxu0 %v17837_v61 }
 0x7fb   : > { %15434 = vmatprep.subr.bf16.mxu1 %v18219_v39 }
 0x7fd   : > { %15375 = vmatpush3.bf16.msra.mxu0 %v17838_v52 }
 0x7fe   : > { %15435 = vmatpush3.bf16.msra.mxu1 %v17839_v42  ;;  %15376 = vmatprep.subr.bf16.mxu0 %v17840_v55  ;;  %v15014_v55 = vld [vmem:[#allocation14] ss:$0 sm:$0xff] }
 0x7ff   : > { %15436 = vmatprep.subr.bf16.mxu1 %v18219_v39 }
 0x801   : > { %15377 = vmatpush3.bf16.msra.mxu0 %v17841_v19 }
 0x802   : > { %15437 = vmatpush3.bf16.msra.mxu1 %v17842_v10  ;;  %15378 = vmatprep.subr.bf16.mxu0 %v17843_v53 }
 0x803   : > { %15438 = vmatprep.subr.bf16.mxu1 %v18219_v39 }
 0x805   : > { %15379 = vmatpush3.bf16.msra.mxu0 %v17844_v54 }
 0x806   : > { %15439 = vmatpush3.bf16.msra.mxu1 %v17845_v46  ;;  %15380 = vmatprep.subr.bf16.mxu0 %v17846_v18 }
 0x807   : > { %15440 = vmatprep.subr.bf16.mxu1 %v18219_v39 }
 0x809   : > { %15381 = vmatpush3.bf16.msra.mxu0 %v17847_v6 }
 0x80a   : > { %15441 = vmatpush3.bf16.msra.mxu1 %v17848_v5  ;;  %15382 = vmatprep.subr.bf16.mxu0 %v17849_v41 }
 0x80b   : > { %15442 = vmatprep.subr.bf16.mxu1 %v18219_v39 }
 0x80d   : > { %15383 = vmatpush3.bf16.msra.mxu0 %v17850_v51 }
 0x80e   : > { %15443 = vmatpush3.bf16.msra.mxu1 %v17851_v11  ;;  %15448 = vmatprep.subr.bf16.mxu0 %v18219_v39 }
 0x810   : > { %13073 = vmatmul.mubr.bf16.vlgmr.msra.gmra.mrb[4].mxu0 %v12509_v15 }
 0x811   : > { %15445 = vmatmul.mubr.bf16.vlgmr.msra.gmra.mrb[4].mxu1 %v12511_v20  ;;  %15464 = vmatprep.mubr.msk.bf16.mxu0 %vm18220_vm1, %v18219_v39 }
 0x812   : > { %15449 = vmatpush3.bf16.msra.mxu0 %v17852_v12 }
 0x813   : > { %15450 = vmatprep.subr.bf16.mxu0 %v18219_v39 }
 0x816   : > { %15451 = vmatpush3.bf16.msra.mxu0 %v17853_v4 }
 0x817   : > { %15452 = vmatprep.subr.bf16.mxu0 %v18219_v39 }
 0x81a   : > { %15453 = vmatpush3.bf16.msra.mxu0 %v17854_v1 }
 0x81b   : > { %15454 = vmatprep.subr.bf16.mxu0 %v18219_v39 }
 0x81e   : > { %15455 = vmatpush3.bf16.msra.mxu0 %v17855_v26 }
 0x81f   : > { %15456 = vmatprep.subr.bf16.mxu0 %v18219_v39 }
 0x822   : > { %15457 = vmatpush3.bf16.msra.mxu0 %v17856_v23 }
 0x823   : > { %15458 = vmatprep.subr.bf16.mxu0 %v18219_v39 }
 0x826   : > { %15459 = vmatpush3.bf16.msra.mxu0 %v17857_v22 }
 0x827   : > { %15460 = vmatprep.subr.bf16.mxu0 %v18219_v39 }
 0x82a   : > { %15461 = vmatpush3.bf16.msra.mxu0 %v17858_v50 }
 0x82b   : > { %15462 = vmatprep.subr.bf16.mxu0 %v18219_v39 }
 0x82e   : > { %15463 = vmatpush3.bf16.msra.mxu0 %v17859_v47 }
 0x8c3   : > { %v15340_v13 = vpop.f32.mrb[0].mxu0 }
 0x8c4   : > { %v15362_v14 = vpop.f32.mrb[0].mxu1  ;;  %v15341_v28 = vpop.f32.mrb[1].mxu0 }
 0x8c5   : > { %v15363_v59 = vpop.f32.mrb[1].mxu1  ;;  %v15342_v56 = vadd.f32 %v15341_v28, %v15340_v13  ;;  %v15343_v3 = vpop.f32.mrb[2].mxu0 }
 0x8c6   : > { %v15364_v29 = vadd.f32 %v15363_v59, %v15362_v14  ;;  %v15365_v45 = vpop.f32.mrb[2].mxu1  ;;  %v15344_v7 = vpop.f32.mrb[3].mxu0 }
 0x8c7   : > { %v15366_v31 = vpop.f32.mrb[3].mxu1 }
 0x8c8   : > { %v13035_v8 = vadd.f32 %v15364_v29, %v15342_v56 }
 0x8e3   : > { %v15384_v17 = vpop.f32.mrb[4].mxu0 }
 0x8e4   : > { %v13114_v34 = vpop.f32.mrb[4].mxu1  ;;  %v15385_v43 = vpop.f32.mrb[5].mxu0 }
 0x8e5   : > { %v15446_v63 = vpop.f32.mrb[5].mxu1  ;;  %v15386_v38 = vadd.f32 %v15385_v43, %v15384_v17  ;;  %v15387_v61 = vpop.f32.mrb[6].mxu0 }
 0x8e6   : > { %v13117_v39 = vpop.f32.mrb[6].mxu1  ;;  %v15388_v49 = vpop.f32.mrb[7].mxu0 }
 0x8e7   : > { %v15447_v25 = vpop.f32.mrb[7].mxu1  ;;  %v13075_v52 = vadd.f32 %v15386_v38, %v13035_v8 }
 0x8e9   : > { %v13115_v42 = vadd.f32 %v13114_v34, %v13075_v52 }
 0x8eb   : > { %v13127_v27 = vmul.f32 %v15013_v37, %v13115_v42 }
 0x8ed   : > { %v13135_v19 = vadd.f32 %v15014_v55, %v13127_v27 }
 0x8ef   : > { %v13136_v44 = vmax.f32 %v13135_v19, 0.0 }
 0x8f1   : > { %v13137_v32 = vpack.c.bf16 %v13136_v44, %v13136_v44 }
 0x8f3   : > { %15465 = vmatmul.mubr.bf16.vlgmr.msra.gmra.mrb[8].mxu0 %v13137_v32 }
 0x9c6   : > { %v13243_v10 = vpop.f32.mrb[8].mxu0 }
 0x9c7   : > { %v13244_v62 = vadd.f32 %v15015_v16, %v13243_v10  ;;  %v15466_v53 = vpop.f32.mrb[9].mxu0 }
 0x9c8   : > { %v13246_v58 = vpop.f32.mrb[10].mxu0 }
 0x9c9   : > { %13249 = vst [vmem:[#allocation18] sm:$0xff] %v13244_v62  ;;  %v15467_v48 = vpop.f32.mrb[11].mxu0 }
 0x9ca PF: > { %p15554_p1 = scmp.eq.s32.totalorder %s18293_s15, 1  ;;  %s18221_s16 = smov [#allocation18]  }
 0x9cb   : > { %s13257_s28 = sshll.u32 %s18221_s16, 4  ;;  %s13258_s28 = int_to_ptr.vmem [resolvable:$true] %s13257_s28 }
 0x9cc   : > { %s18116_s2 = scalar_lea.vmem %s13258_s28, 128  ;;  %p18123_p6 = scmp.lt.s32.totalorder %s13258_s28, %s13258_s28 }
 0x9cd   : > { %p18117_p4 = scmp.ne.s32.totalorder %s13258_s28, %s18116_s2  ;;  %p18124_p3 = scmp.lt.s32.totalorder %s18116_s2, %s18116_s2 }
 0x9cf   : > { %p18118_p10 = pnand %p18117_p4, %p15554_p1  ;;  %p18125_p12 = por %p18124_p3, %p18123_p6 }
 0x9d1   : > { %p18119_p13 = pneg %p18118_p10 }
 0x9d3   : > { %p18126_p0 = pnand %p18125_p12, %p18119_p13 }
 0x9d5   : > { %18129 = shalt.err (!%p18126_p0)
}
 0x9d6   : > { %s18130_s22 = scalar_lea.hbm %s20606_s9, 128 }
 0x9d7   : > { %p18131_p5 = scmp.ne.s32.totalorder %s20606_s9, %s18130_s22  ;;  %p18136_p7 = scmp.lt.u32.totalorder %s18130_s22, %s20606_s9 }
 0x9d9   : > { %p18132_p8 = pnand %p18131_p5, %p15554_p1 }
 0x9db   : > { %p18133_p11 = pneg %p18132_p8 }
 0x9dd   : > { %p18138_p2 = pnand %p18136_p7, %p18133_p11 }
 0x9df   : > { %18141 = shalt.err (!%p18138_p2)
}
 0x9e0   : > { %15506 = dma.vmem_to_hbm [thread:$0]  (%p15554_p1), %s13258_s28, 128, %s20606_s9, [#allocation5]  }
 0x9e1   : > { %18183 = dma.done.wait (%p15554_p1), [#allocation5], 128  }
 0x9e2   : > { %18185 = vsyncadd (%p15554_p1), [#allocation5], 4294967168 }
 0x9e3 PF: > { %p26_p9 = scmp.ge.s32.totalorder %s18475_s27, 4   ;;  %s20629_s30 = smov %s18192_s10 }
 0x9e4   : > { %s20630_s10 = smov %s18196_s11  ;;  %s20631_s11 = smov %s18487_s26 }
 0x9e5   : > { %s20632_s12 = smov %s18475_s27  ;;  %28 = sbr.rel (!%p26_p9) target bundleno = 12 (0xc), region = 142 }
 0x9ec   :  { %13270 = vsyncpa [#allocation4], 1 }
 0x9ed   :  { %13272 = vsyncpa [#allocation4 + $0x1], 1 }
 0x9ee   :  { %13273 = vsyncpa [#allocation7], 1 }
 0x9ef   :  { %13275 = vsyncpa [#allocation7 + $0x1], 1 }
 0x9f0   :  { %13276 = vsyncpa [#allocation10], 1 }
 0x9f1   :  { %13277 = vsyncpa [#allocation13], 1 }
 0x9f2   :  { %13278 = vsyncpa [#allocation16], 1 }
 0x9f3   :  { %13279 = vsyncpa [#allocation5], 1 }
 0x9f4   :  { %13281 = vsyncpa [#allocation5 + $0x1], 1 }

</bundles_post_ra>
